<compile_context>
chip_gen: v7x
topology: tpu7x:2x2x1
jax: 0.10.0
libtpu: 0.0.40
codegen_flags: <defaults>
</compile_context>

<pallas_src>
import functools

import jax
import jax.numpy as jnp
import numpy as np
from jax import lax
from jax.experimental import pallas as pl
from jax.experimental.pallas import tpu as pltpu


# ----------------------------------------------------------------------------
# Fused kernel: conv1 -> conv2 -> conv3 -> fc1 -> fc2, all in VMEM.
# ----------------------------------------------------------------------------
def _qnet_kernel(p1_ref, w1_ref, b1_ref,
                 g2_ref, w2_ref, b2_ref,
                 g3_ref, w3_ref, b3_ref,
                 wf1_ref, bf1_ref, wf2_ref, bf2_ref,
                 out_ref):
    f32 = jnp.float32

    # conv1: pre-extracted patches (P1, K1) @ (K1, O1) + bias, ReLU.
    a1 = jnp.dot(p1_ref[0], w1_ref[...], preferred_element_type=f32)
    a1 = jnp.maximum(a1 + b1_ref[...], 0.0)                       # (P1, 32)

    # conv2: sum over kernel positions t of (one-hot-select @ a1) @ W2_t.
    t2, p2, _ = g2_ref.shape
    o2 = w2_ref.shape[-1]
    acc2 = jnp.zeros((p2, o2), f32)
    for t in range(t2):
        sel = jnp.dot(g2_ref[t], a1, preferred_element_type=f32)  # (P2, 32)
        acc2 = acc2 + jnp.dot(sel, w2_ref[t], preferred_element_type=f32)
    a2 = jnp.maximum(acc2 + b2_ref[...], 0.0)                     # (P2, 64)

    # conv3: same selection-matmul trick.
    t3, p3, _ = g3_ref.shape
    o3 = w3_ref.shape[-1]
    acc3 = jnp.zeros((p3, o3), f32)
    for t in range(t3):
        sel = jnp.dot(g3_ref[t], a2, preferred_element_type=f32)  # (P3, 64)
        acc3 = acc3 + jnp.dot(sel, w3_ref[t], preferred_element_type=f32)
    a3 = jnp.maximum(acc3 + b3_ref[...], 0.0)                     # (P3, 64)

    # fc1: torch's CHW flatten is folded into wf1's (P3, 64, 512) layout, so
    # the flatten becomes a sum of per-spatial-row matmuls (no reshape /
    # relayout of a3 is ever needed).
    n1 = wf1_ref.shape[-1]
    accf = jnp.zeros((1, n1), f32)
    for p in range(wf1_ref.shape[0]):
        accf = accf + jnp.dot(a3[p:p + 1, :], wf1_ref[p],
                              preferred_element_type=f32)
    h = jnp.maximum(accf + bf1_ref[...], 0.0)                     # (1, 512)

    # fc2 (no ReLU) -> the only HBM store of the whole forward.  wf2/bf2 are
    # zero-padded to a 128-lane multiple, so this store is a full, unmasked
    # lane-dense vst.
    out_ref[0] = (jnp.dot(h, wf2_ref[...], preferred_element_type=f32)
                  + bf2_ref[...])


# ----------------------------------------------------------------------------
# Glue helpers (run once / per call in XLA, all tiny)
# ----------------------------------------------------------------------------
def _conv_out(n, k, s):
    return (n - k) // s + 1


def _round_up(n, m):
    return ((n + m - 1) // m) * m


def _im2col_nhwc(x_nhwc, k, s):
    """Patch extraction for conv1 only (raw input).  Feature order (kH,kW,C)."""
    B, H, W, C = x_nhwc.shape
    Ho, Wo = _conv_out(H, k, s), _conv_out(W, k, s)
    cols = [x_nhwc[:, i:i + s * Ho:s, j:j + s * Wo:s, :]
            for i in range(k) for j in range(k)]
    patches = jnp.concatenate(cols, axis=-1)              # (B, Ho, Wo, k*k*C)
    return patches.reshape(B, Ho * Wo, k * k * C)


def _selection_matrices(hi, wi, k, s):
    """G[t, p, r] = 1  iff  output position p reads input row r for kernel
    position t = i*k + j  (rows are HW-flattened, channels live in lanes)."""
    ho, wo = _conv_out(hi, k, s), _conv_out(wi, k, s)
    G = np.zeros((k * k, ho * wo, hi * wi), np.float32)
    for i in range(k):
        for j in range(k):
            t = i * k + j
            for oh in range(ho):
                for ow in range(wo):
                    G[t, oh * wo + ow, (s * oh + i) * wi + (s * ow + j)] = 1.0
    return jnp.asarray(G)


# ----------------------------------------------------------------------------
# Parameters (PyTorch layout) + one-time repack into kernel layout
# ----------------------------------------------------------------------------
def init_params(key, input_channels=3, num_actions=4, input_hw=(64, 64)):
    h, w = input_hw
    h, w = _conv_out(h, 8, 4), _conv_out(w, 8, 4)
    h, w = _conv_out(h, 4, 2), _conv_out(w, 4, 2)
    h, w = _conv_out(h, 3, 1), _conv_out(w, 3, 1)
    conv_out_size = 64 * h * w

    keys = jax.random.split(key, 10)

    def u(k, shape, fan_in):
        bound = float(fan_in) ** -0.5
        return jax.random.uniform(k, shape, jnp.float32, -bound, bound)

    params = {
        "conv1_w": u(keys[0], (32, input_channels, 8, 8), input_channels * 64),
        "conv1_b": u(keys[1], (32,), input_channels * 64),
        "conv2_w": u(keys[2], (64, 32, 4, 4), 32 * 16),
        "conv2_b": u(keys[3], (64,), 32 * 16),
        "conv3_w": u(keys[4], (64, 64, 3, 3), 64 * 9),
        "conv3_b": u(keys[5], (64,), 64 * 9),
        # fc weights stored already transposed: (in, out)
        "fc1_w": u(keys[6], (conv_out_size, 512), conv_out_size),
        "fc1_b": u(keys[7], (512,), conv_out_size),
        "fc2_w": u(keys[8], (512, num_actions), 512),
        "fc2_b": u(keys[9], (num_actions,), 512),
    }
    return params, conv_out_size


def prepare_params(params, input_hw=(64, 64)):
    """One-time repack of PyTorch-layout params into kernel-ready tensors."""
    h0, w0 = input_hw
    h1, w1 = _conv_out(h0, 8, 4), _conv_out(w0, 8, 4)
    h2, w2 = _conv_out(h1, 4, 2), _conv_out(w1, 4, 2)
    h3, w3 = _conv_out(h2, 3, 1), _conv_out(w2, 3, 1)

    o1, cin, k1, _ = params["conv1_w"].shape
    o2, _, k2, _ = params["conv2_w"].shape
    o3, _, k3, _ = params["conv3_w"].shape
    n1 = params["fc1_w"].shape[1]
    na = params["fc2_w"].shape[1]

    # OIHW -> (kH, kW, Cin, O), then flatten kernel positions.
    w1m = jnp.transpose(params["conv1_w"], (2, 3, 1, 0)).reshape(k1 * k1 * cin, o1)
    w2s = jnp.transpose(params["conv2_w"], (2, 3, 1, 0)).reshape(k2 * k2, o1, o2)
    w3s = jnp.transpose(params["conv3_w"], (2, 3, 1, 0)).reshape(k3 * k3, o2, o3)

    # Fold torch's CHW flatten order into fc1: (C*H*W, N) -> (H*W, C, N).
    wf1 = (params["fc1_w"].reshape(o3, h3, w3, n1)
           .transpose(1, 2, 0, 3).reshape(h3 * w3, o3, n1))

    # Lane-dense fc2: zero-pad the action dim up to a 128-lane multiple so the
    # kernel's only HBM store is a full-width, unmasked vst.
    na_pad = max(128, _round_up(na, 128))
    wf2 = jnp.zeros((params["fc2_w"].shape[0], na_pad), jnp.float32)
    wf2 = wf2.at[:, :na].set(params["fc2_w"])
    bf2 = jnp.zeros((1, na_pad), jnp.float32).at[0, :na].set(params["fc2_b"])

    return dict(
        w1=w1m, b1=params["conv1_b"].reshape(1, -1),
        g2=_selection_matrices(h1, w1, 4, 2), w2=w2s,
        b2=params["conv2_b"].reshape(1, -1),
        g3=_selection_matrices(h2, w2, 3, 1), w3=w3s,
        b3=params["conv3_b"].reshape(1, -1),
        wf1=wf1, bf1=params["fc1_b"].reshape(1, -1),
        wf2=wf2, bf2=bf2,
    )


# ----------------------------------------------------------------------------
# Forward: single fused pallas_call, grid over batch
# ----------------------------------------------------------------------------
@functools.partial(jax.jit, static_argnames=("num_actions",))
def qnetwork_forward(prep, x_nchw, num_actions=4):
    B = x_nchw.shape[0]
    x_nhwc = jnp.transpose(x_nchw, (0, 2, 3, 1))       # one transpose, input only
    patches1 = _im2col_nhwc(x_nhwc, 8, 4)              # (B, P1, K1)
    P1, K1 = patches1.shape[1], patches1.shape[2]
    A_pad = prep["wf2"].shape[1]                        # lane-dense padded width

    def c2(b):            # constant block -> fetched once, VMEM-resident
        return (0, 0)

    def c3(b):
        return (0, 0, 0)

    out = pl.pallas_call(
        _qnet_kernel,
        grid=(B,),
        in_specs=[
            pl.BlockSpec((1, P1, K1), lambda b: (b, 0, 0)),
            pl.BlockSpec(prep["w1"].shape, c2),
            pl.BlockSpec(prep["b1"].shape, c2),
            pl.BlockSpec(prep["g2"].shape, c3),
            pl.BlockSpec(prep["w2"].shape, c3),
            pl.BlockSpec(prep["b2"].shape, c2),
            pl.BlockSpec(prep["g3"].shape, c3),
            pl.BlockSpec(prep["w3"].shape, c3),
            pl.BlockSpec(prep["b3"].shape, c2),
            pl.BlockSpec(prep["wf1"].shape, c3),
            pl.BlockSpec(prep["bf1"].shape, c2),
            pl.BlockSpec(prep["wf2"].shape, c2),
            pl.BlockSpec(prep["bf2"].shape, c2),
        ],
        out_specs=pl.BlockSpec((1, 1, A_pad), lambda b: (b, 0, 0)),
        out_shape=jax.ShapeDtypeStruct((B, 1, A_pad), jnp.float32),
        compiler_params=pltpu.CompilerParams(
            dimension_semantics=("parallel",),          # v7x: 2 TCs split batch
            vmem_limit_bytes=32 * 1024 * 1024,
        ),
    )(patches1, prep["w1"], prep["b1"],
      prep["g2"], prep["w2"], prep["b2"],
      prep["g3"], prep["w3"], prep["b3"],
      prep["wf1"], prep["bf1"], prep["wf2"], prep["bf2"])
    return out[:, 0, :num_actions]


# ----------------------------------------------------------------------------
# Pure-JAX reference (for correctness check)
# ----------------------------------------------------------------------------
@jax.jit
def qnetwork_reference(params, x):
    def conv(x, w, b, s):
        y = lax.conv_general_dilated(
            x, w, (s, s), "VALID", dimension_numbers=("NCHW", "OIHW", "NCHW"))
        return jax.nn.relu(y + b[None, :, None, None])

    x = conv(x, params["conv1_w"], params["conv1_b"], 4)
    x = conv(x, params["conv2_w"], params["conv2_b"], 2)
    x = conv(x, params["conv3_w"], params["conv3_b"], 1)
    x = x.reshape(x.shape[0], -1)
    x = jax.nn.relu(x @ params["fc1_w"] + params["fc1_b"])
    return x @ params["fc2_w"] + params["fc2_b"]


if __name__ == "__main__":
    key = jax.random.PRNGKey(0)
    pkey, xkey = jax.random.split(key)

    # Small shapes consistent with the module: batch=2, channels=3, spatial=64.
    B, C, H, W = 2, 3, 64, 64
    NUM_ACTIONS = 4
    params, conv_out_size = init_params(pkey, input_channels=C,
                                        num_actions=NUM_ACTIONS,
                                        input_hw=(H, W))
    prep = prepare_params(params, input_hw=(H, W))
    x = jax.random.normal(xkey, (B, C, H, W), jnp.float32)

    out = jax.block_until_ready(qnetwork_forward(prep, x,
                                                 num_actions=NUM_ACTIONS))
    ref = jax.block_until_ready(qnetwork_reference(params, x))

    assert out.shape == (B, NUM_ACTIONS), out.shape
    assert jnp.allclose(out, ref, rtol=1e-3, atol=1e-3), \
        f"max abs err {float(jnp.max(jnp.abs(out - ref)))}"

    print("KERNEL_OK")
</pallas_src>

<mosaic_0001>
module attributes {stable_mosaic.version = 11 : i64} {
  func.func @_qnet_kernel(%arg0: i32, %arg1: memref<1x225x192xf32, #tpu.memory_space<vmem>>, %arg2: memref<192x32xf32, #tpu.memory_space<vmem>>, %arg3: memref<1x32xf32, #tpu.memory_space<vmem>>, %arg4: memref<16x36x225xf32, #tpu.memory_space<vmem>>, %arg5: memref<16x32x64xf32, #tpu.memory_space<vmem>>, %arg6: memref<1x64xf32, #tpu.memory_space<vmem>>, %arg7: memref<9x16x36xf32, #tpu.memory_space<vmem>>, %arg8: memref<9x64x64xf32, #tpu.memory_space<vmem>>, %arg9: memref<1x64xf32, #tpu.memory_space<vmem>>, %arg10: memref<16x64x512xf32, #tpu.memory_space<vmem>>, %arg11: memref<1x512xf32, #tpu.memory_space<vmem>>, %arg12: memref<512x128xf32, #tpu.memory_space<vmem>>, %arg13: memref<1x128xf32, #tpu.memory_space<vmem>>, %arg14: memref<1x1x128xf32, #tpu.memory_space<vmem>>) attributes {dimension_semantics = [#tpu.dimension_semantics<parallel>], iteration_bounds = array<i64: 2>, scalar_prefetch = 0 : i64, scratch_operands = 0 : i64, tpu.core_type = #tpu.core_type<tc>, window_params = [{transform_indices = @transform_0, window_bounds = array<i64: 1, 225, 192>}, {pipeline_mode = #tpu.pipeline_mode<synchronous>, transform_indices = @transform_1, window_bounds = array<i64: 192, 32>}, {pipeline_mode = #tpu.pipeline_mode<synchronous>, transform_indices = @transform_2, window_bounds = array<i64: 1, 32>}, {pipeline_mode = #tpu.pipeline_mode<synchronous>, transform_indices = @transform_3, window_bounds = array<i64: 16, 36, 225>}, {pipeline_mode = #tpu.pipeline_mode<synchronous>, transform_indices = @transform_4, window_bounds = array<i64: 16, 32, 64>}, {pipeline_mode = #tpu.pipeline_mode<synchronous>, transform_indices = @transform_5, window_bounds = array<i64: 1, 64>}, {pipeline_mode = #tpu.pipeline_mode<synchronous>, transform_indices = @transform_6, window_bounds = array<i64: 9, 16, 36>}, {pipeline_mode = #tpu.pipeline_mode<synchronous>, transform_indices = @transform_7, window_bounds = array<i64: 9, 64, 64>}, {pipeline_mode = #tpu.pipeline_mode<synchronous>, transform_indices = @transform_8, window_bounds = array<i64: 1, 64>}, {pipeline_mode = #tpu.pipeline_mode<synchronous>, transform_indices = @transform_9, window_bounds = array<i64: 16, 64, 512>}, {pipeline_mode = #tpu.pipeline_mode<synchronous>, transform_indices = @transform_10, window_bounds = array<i64: 1, 512>}, {pipeline_mode = #tpu.pipeline_mode<synchronous>, transform_indices = @transform_11, window_bounds = array<i64: 512, 128>}, {pipeline_mode = #tpu.pipeline_mode<synchronous>, transform_indices = @transform_12, window_bounds = array<i64: 1, 128>}, {transform_indices = @transform_13, window_bounds = array<i64: 1, 1, 128>}]} {
    %c0 = arith.constant 0 : index
    %c0_0 = arith.constant 0 : index
    %c0_1 = arith.constant 0 : index
    %0 = vector.load %arg1[%c0, %c0_0, %c0_1] : memref<1x225x192xf32, #tpu.memory_space<vmem>>, vector<1x225x192xf32>
    %1 = vector.shape_cast %0 : vector<1x225x192xf32> to vector<225x192xf32>
    %c0_2 = arith.constant 0 : index
    %c0_3 = arith.constant 0 : index
    %2 = vector.load %arg2[%c0_2, %c0_3] : memref<192x32xf32, #tpu.memory_space<vmem>>, vector<192x32xf32>
    %cst = arith.constant dense<0.000000e+00> : vector<225x32xf32>
    %3 = tpu.matmul %1, %2, %cst {dimension_numbers = #tpu.dot_dimension_numbers<[1], [0], [0], [1], [0, 0, 1, 1], [], []>} : vector<225x192xf32>, vector<192x32xf32>, vector<225x32xf32> -> vector<225x32xf32>
    %c0_4 = arith.constant 0 : index
    %c0_5 = arith.constant 0 : index
    %4 = vector.load %arg3[%c0_4, %c0_5] : memref<1x32xf32, #tpu.memory_space<vmem>>, vector<1x32xf32>
    %5 = vector.broadcast %4 : vector<1x32xf32> to vector<225x32xf32>
    %6 = arith.addf %3, %5 : vector<225x32xf32>
    %cst_6 = arith.constant 0.000000e+00 : f32
    %7 = vector.broadcast %cst_6 : f32 to vector<225x32xf32>
    %8 = arith.maximumf %6, %7 : vector<225x32xf32>
    %cst_7 = arith.constant 0.000000e+00 : f32
    %9 = vector.broadcast %cst_7 : f32 to vector<36x64xf32>
    %c0_8 = arith.constant 0 : index
    %c0_9 = arith.constant 0 : index
    %c0_10 = arith.constant 0 : index
    %10 = vector.load %arg4[%c0_8, %c0_9, %c0_10] : memref<16x36x225xf32, #tpu.memory_space<vmem>>, vector<1x36x225xf32>
    %11 = vector.shape_cast %10 : vector<1x36x225xf32> to vector<36x225xf32>
    %cst_11 = arith.constant dense<0.000000e+00> : vector<36x32xf32>
    %12 = tpu.matmul %11, %8, %cst_11 {dimension_numbers = #tpu.dot_dimension_numbers<[1], [0], [0], [1], [0, 0, 1, 1], [], []>} : vector<36x225xf32>, vector<225x32xf32>, vector<36x32xf32> -> vector<36x32xf32>
    %c0_12 = arith.constant 0 : index
    %c0_13 = arith.constant 0 : index
    %c0_14 = arith.constant 0 : index
    %13 = vector.load %arg5[%c0_12, %c0_13, %c0_14] : memref<16x32x64xf32, #tpu.memory_space<vmem>>, vector<1x32x64xf32>
    %14 = vector.shape_cast %13 : vector<1x32x64xf32> to vector<32x64xf32>
    %cst_15 = arith.constant dense<0.000000e+00> : vector<36x64xf32>
    %15 = tpu.matmul %12, %14, %cst_15 {dimension_numbers = #tpu.dot_dimension_numbers<[1], [0], [0], [1], [0, 0, 1, 1], [], []>} : vector<36x32xf32>, vector<32x64xf32>, vector<36x64xf32> -> vector<36x64xf32>
    %16 = arith.addf %9, %15 : vector<36x64xf32>
    %c1 = arith.constant 1 : index
    %c0_16 = arith.constant 0 : index
    %c0_17 = arith.constant 0 : index
    %17 = vector.load %arg4[%c1, %c0_16, %c0_17] : memref<16x36x225xf32, #tpu.memory_space<vmem>>, vector<1x36x225xf32>
    %18 = vector.shape_cast %17 : vector<1x36x225xf32> to vector<36x225xf32>
    %cst_18 = arith.constant dense<0.000000e+00> : vector<36x32xf32>
    %19 = tpu.matmul %18, %8, %cst_18 {dimension_numbers = #tpu.dot_dimension_numbers<[1], [0], [0], [1], [0, 0, 1, 1], [], []>} : vector<36x225xf32>, vector<225x32xf32>, vector<36x32xf32> -> vector<36x32xf32>
    %c1_19 = arith.constant 1 : index
    %c0_20 = arith.constant 0 : index
    %c0_21 = arith.constant 0 : index
    %20 = vector.load %arg5[%c1_19, %c0_20, %c0_21] : memref<16x32x64xf32, #tpu.memory_space<vmem>>, vector<1x32x64xf32>
    %21 = vector.shape_cast %20 : vector<1x32x64xf32> to vector<32x64xf32>
    %cst_22 = arith.constant dense<0.000000e+00> : vector<36x64xf32>
    %22 = tpu.matmul %19, %21, %cst_22 {dimension_numbers = #tpu.dot_dimension_numbers<[1], [0], [0], [1], [0, 0, 1, 1], [], []>} : vector<36x32xf32>, vector<32x64xf32>, vector<36x64xf32> -> vector<36x64xf32>
    %23 = arith.addf %16, %22 : vector<36x64xf32>
    %c2 = arith.constant 2 : index
    %c0_23 = arith.constant 0 : index
    %c0_24 = arith.constant 0 : index
    %24 = vector.load %arg4[%c2, %c0_23, %c0_24] : memref<16x36x225xf32, #tpu.memory_space<vmem>>, vector<1x36x225xf32>
    %25 = vector.shape_cast %24 : vector<1x36x225xf32> to vector<36x225xf32>
    %cst_25 = arith.constant dense<0.000000e+00> : vector<36x32xf32>
    %26 = tpu.matmul %25, %8, %cst_25 {dimension_numbers = #tpu.dot_dimension_numbers<[1], [0], [0], [1], [0, 0, 1, 1], [], []>} : vector<36x225xf32>, vector<225x32xf32>, vector<36x32xf32> -> vector<36x32xf32>
    %c2_26 = arith.constant 2 : index
    %c0_27 = arith.constant 0 : index
    %c0_28 = arith.constant 0 : index
    %27 = vector.load %arg5[%c2_26, %c0_27, %c0_28] : memref<16x32x64xf32, #tpu.memory_space<vmem>>, vector<1x32x64xf32>
    %28 = vector.shape_cast %27 : vector<1x32x64xf32> to vector<32x64xf32>
    %cst_29 = arith.constant dense<0.000000e+00> : vector<36x64xf32>
    %29 = tpu.matmul %26, %28, %cst_29 {dimension_numbers = #tpu.dot_dimension_numbers<[1], [0], [0], [1], [0, 0, 1, 1], [], []>} : vector<36x32xf32>, vector<32x64xf32>, vector<36x64xf32> -> vector<36x64xf32>
    %30 = arith.addf %23, %29 : vector<36x64xf32>
    %c3 = arith.constant 3 : index
    %c0_30 = arith.constant 0 : index
    %c0_31 = arith.constant 0 : index
    %31 = vector.load %arg4[%c3, %c0_30, %c0_31] : memref<16x36x225xf32, #tpu.memory_space<vmem>>, vector<1x36x225xf32>
    %32 = vector.shape_cast %31 : vector<1x36x225xf32> to vector<36x225xf32>
    %cst_32 = arith.constant dense<0.000000e+00> : vector<36x32xf32>
    %33 = tpu.matmul %32, %8, %cst_32 {dimension_numbers = #tpu.dot_dimension_numbers<[1], [0], [0], [1], [0, 0, 1, 1], [], []>} : vector<36x225xf32>, vector<225x32xf32>, vector<36x32xf32> -> vector<36x32xf32>
    %c3_33 = arith.constant 3 : index
    %c0_34 = arith.constant 0 : index
    %c0_35 = arith.constant 0 : index
    %34 = vector.load %arg5[%c3_33, %c0_34, %c0_35] : memref<16x32x64xf32, #tpu.memory_space<vmem>>, vector<1x32x64xf32>
    %35 = vector.shape_cast %34 : vector<1x32x64xf32> to vector<32x64xf32>
    %cst_36 = arith.constant dense<0.000000e+00> : vector<36x64xf32>
    %36 = tpu.matmul %33, %35, %cst_36 {dimension_numbers = #tpu.dot_dimension_numbers<[1], [0], [0], [1], [0, 0, 1, 1], [], []>} : vector<36x32xf32>, vector<32x64xf32>, vector<36x64xf32> -> vector<36x64xf32>
    %37 = arith.addf %30, %36 : vector<36x64xf32>
    %c4 = arith.constant 4 : index
    %c0_37 = arith.constant 0 : index
    %c0_38 = arith.constant 0 : index
    %38 = vector.load %arg4[%c4, %c0_37, %c0_38] : memref<16x36x225xf32, #tpu.memory_space<vmem>>, vector<1x36x225xf32>
    %39 = vector.shape_cast %38 : vector<1x36x225xf32> to vector<36x225xf32>
    %cst_39 = arith.constant dense<0.000000e+00> : vector<36x32xf32>
    %40 = tpu.matmul %39, %8, %cst_39 {dimension_numbers = #tpu.dot_dimension_numbers<[1], [0], [0], [1], [0, 0, 1, 1], [], []>} : vector<36x225xf32>, vector<225x32xf32>, vector<36x32xf32> -> vector<36x32xf32>
    %c4_40 = arith.constant 4 : index
    %c0_41 = arith.constant 0 : index
    %c0_42 = arith.constant 0 : index
    %41 = vector.load %arg5[%c4_40, %c0_41, %c0_42] : memref<16x32x64xf32, #tpu.memory_space<vmem>>, vector<1x32x64xf32>
    %42 = vector.shape_cast %41 : vector<1x32x64xf32> to vector<32x64xf32>
    %cst_43 = arith.constant dense<0.000000e+00> : vector<36x64xf32>
    %43 = tpu.matmul %40, %42, %cst_43 {dimension_numbers = #tpu.dot_dimension_numbers<[1], [0], [0], [1], [0, 0, 1, 1], [], []>} : vector<36x32xf32>, vector<32x64xf32>, vector<36x64xf32> -> vector<36x64xf32>
    %44 = arith.addf %37, %43 : vector<36x64xf32>
    %c5 = arith.constant 5 : index
    %c0_44 = arith.constant 0 : index
    %c0_45 = arith.constant 0 : index
    %45 = vector.load %arg4[%c5, %c0_44, %c0_45] : memref<16x36x225xf32, #tpu.memory_space<vmem>>, vector<1x36x225xf32>
    %46 = vector.shape_cast %45 : vector<1x36x225xf32> to vector<36x225xf32>
    %cst_46 = arith.constant dense<0.000000e+00> : vector<36x32xf32>
    %47 = tpu.matmul %46, %8, %cst_46 {dimension_numbers = #tpu.dot_dimension_numbers<[1], [0], [0], [1], [0, 0, 1, 1], [], []>} : vector<36x225xf32>, vector<225x32xf32>, vector<36x32xf32> -> vector<36x32xf32>
    %c5_47 = arith.constant 5 : index
    %c0_48 = arith.constant 0 : index
    %c0_49 = arith.constant 0 : index
    %48 = vector.load %arg5[%c5_47, %c0_48, %c0_49] : memref<16x32x64xf32, #tpu.memory_space<vmem>>, vector<1x32x64xf32>
    %49 = vector.shape_cast %48 : vector<1x32x64xf32> to vector<32x64xf32>
    %cst_50 = arith.constant dense<0.000000e+00> : vector<36x64xf32>
    %50 = tpu.matmul %47, %49, %cst_50 {dimension_numbers = #tpu.dot_dimension_numbers<[1], [0], [0], [1], [0, 0, 1, 1], [], []>} : vector<36x32xf32>, vector<32x64xf32>, vector<36x64xf32> -> vector<36x64xf32>
    %51 = arith.addf %44, %50 : vector<36x64xf32>
    %c6 = arith.constant 6 : index
    %c0_51 = arith.constant 0 : index
    %c0_52 = arith.constant 0 : index
    %52 = vector.load %arg4[%c6, %c0_51, %c0_52] : memref<16x36x225xf32, #tpu.memory_space<vmem>>, vector<1x36x225xf32>
    %53 = vector.shape_cast %52 : vector<1x36x225xf32> to vector<36x225xf32>
    %cst_53 = arith.constant dense<0.000000e+00> : vector<36x32xf32>
    %54 = tpu.matmul %53, %8, %cst_53 {dimension_numbers = #tpu.dot_dimension_numbers<[1], [0], [0], [1], [0, 0, 1, 1], [], []>} : vector<36x225xf32>, vector<225x32xf32>, vector<36x32xf32> -> vector<36x32xf32>
    %c6_54 = arith.constant 6 : index
    %c0_55 = arith.constant 0 : index
    %c0_56 = arith.constant 0 : index
    %55 = vector.load %arg5[%c6_54, %c0_55, %c0_56] : memref<16x32x64xf32, #tpu.memory_space<vmem>>, vector<1x32x64xf32>
    %56 = vector.shape_cast %55 : vector<1x32x64xf32> to vector<32x64xf32>
    %cst_57 = arith.constant dense<0.000000e+00> : vector<36x64xf32>
    %57 = tpu.matmul %54, %56, %cst_57 {dimension_numbers = #tpu.dot_dimension_numbers<[1], [0], [0], [1], [0, 0, 1, 1], [], []>} : vector<36x32xf32>, vector<32x64xf32>, vector<36x64xf32> -> vector<36x64xf32>
    %58 = arith.addf %51, %57 : vector<36x64xf32>
    %c7 = arith.constant 7 : index
    %c0_58 = arith.constant 0 : index
    %c0_59 = arith.constant 0 : index
    %59 = vector.load %arg4[%c7, %c0_58, %c0_59] : memref<16x36x225xf32, #tpu.memory_space<vmem>>, vector<1x36x225xf32>
    %60 = vector.shape_cast %59 : vector<1x36x225xf32> to vector<36x225xf32>
    %cst_60 = arith.constant dense<0.000000e+00> : vector<36x32xf32>
    %61 = tpu.matmul %60, %8, %cst_60 {dimension_numbers = #tpu.dot_dimension_numbers<[1], [0], [0], [1], [0, 0, 1, 1], [], []>} : vector<36x225xf32>, vector<225x32xf32>, vector<36x32xf32> -> vector<36x32xf32>
    %c7_61 = arith.constant 7 : index
    %c0_62 = arith.constant 0 : index
    %c0_63 = arith.constant 0 : index
    %62 = vector.load %arg5[%c7_61, %c0_62, %c0_63] : memref<16x32x64xf32, #tpu.memory_space<vmem>>, vector<1x32x64xf32>
    %63 = vector.shape_cast %62 : vector<1x32x64xf32> to vector<32x64xf32>
    %cst_64 = arith.constant dense<0.000000e+00> : vector<36x64xf32>
    %64 = tpu.matmul %61, %63, %cst_64 {dimension_numbers = #tpu.dot_dimension_numbers<[1], [0], [0], [1], [0, 0, 1, 1], [], []>} : vector<36x32xf32>, vector<32x64xf32>, vector<36x64xf32> -> vector<36x64xf32>
    %65 = arith.addf %58, %64 : vector<36x64xf32>
    %c8 = arith.constant 8 : index
    %c0_65 = arith.constant 0 : index
    %c0_66 = arith.constant 0 : index
    %66 = vector.load %arg4[%c8, %c0_65, %c0_66] : memref<16x36x225xf32, #tpu.memory_space<vmem>>, vector<1x36x225xf32>
    %67 = vector.shape_cast %66 : vector<1x36x225xf32> to vector<36x225xf32>
    %cst_67 = arith.constant dense<0.000000e+00> : vector<36x32xf32>
    %68 = tpu.matmul %67, %8, %cst_67 {dimension_numbers = #tpu.dot_dimension_numbers<[1], [0], [0], [1], [0, 0, 1, 1], [], []>} : vector<36x225xf32>, vector<225x32xf32>, vector<36x32xf32> -> vector<36x32xf32>
    %c8_68 = arith.constant 8 : index
    %c0_69 = arith.constant 0 : index
    %c0_70 = arith.constant 0 : index
    %69 = vector.load %arg5[%c8_68, %c0_69, %c0_70] : memref<16x32x64xf32, #tpu.memory_space<vmem>>, vector<1x32x64xf32>
    %70 = vector.shape_cast %69 : vector<1x32x64xf32> to vector<32x64xf32>
    %cst_71 = arith.constant dense<0.000000e+00> : vector<36x64xf32>
    %71 = tpu.matmul %68, %70, %cst_71 {dimension_numbers = #tpu.dot_dimension_numbers<[1], [0], [0], [1], [0, 0, 1, 1], [], []>} : vector<36x32xf32>, vector<32x64xf32>, vector<36x64xf32> -> vector<36x64xf32>
    %72 = arith.addf %65, %71 : vector<36x64xf32>
    %c9 = arith.constant 9 : index
    %c0_72 = arith.constant 0 : index
    %c0_73 = arith.constant 0 : index
    %73 = vector.load %arg4[%c9, %c0_72, %c0_73] : memref<16x36x225xf32, #tpu.memory_space<vmem>>, vector<1x36x225xf32>
    %74 = vector.shape_cast %73 : vector<1x36x225xf32> to vector<36x225xf32>
    %cst_74 = arith.constant dense<0.000000e+00> : vector<36x32xf32>
    %75 = tpu.matmul %74, %8, %cst_74 {dimension_numbers = #tpu.dot_dimension_numbers<[1], [0], [0], [1], [0, 0, 1, 1], [], []>} : vector<36x225xf32>, vector<225x32xf32>, vector<36x32xf32> -> vector<36x32xf32>
    %c9_75 = arith.constant 9 : index
    %c0_76 = arith.constant 0 : index
    %c0_77 = arith.constant 0 : index
    %76 = vector.load %arg5[%c9_75, %c0_76, %c0_77] : memref<16x32x64xf32, #tpu.memory_space<vmem>>, vector<1x32x64xf32>
    %77 = vector.shape_cast %76 : vector<1x32x64xf32> to vector<32x64xf32>
    %cst_78 = arith.constant dense<0.000000e+00> : vector<36x64xf32>
    %78 = tpu.matmul %75, %77, %cst_78 {dimension_numbers = #tpu.dot_dimension_numbers<[1], [0], [0], [1], [0, 0, 1, 1], [], []>} : vector<36x32xf32>, vector<32x64xf32>, vector<36x64xf32> -> vector<36x64xf32>
    %79 = arith.addf %72, %78 : vector<36x64xf32>
    %c10 = arith.constant 10 : index
    %c0_79 = arith.constant 0 : index
    %c0_80 = arith.constant 0 : index
    %80 = vector.load %arg4[%c10, %c0_79, %c0_80] : memref<16x36x225xf32, #tpu.memory_space<vmem>>, vector<1x36x225xf32>
    %81 = vector.shape_cast %80 : vector<1x36x225xf32> to vector<36x225xf32>
    %cst_81 = arith.constant dense<0.000000e+00> : vector<36x32xf32>
    %82 = tpu.matmul %81, %8, %cst_81 {dimension_numbers = #tpu.dot_dimension_numbers<[1], [0], [0], [1], [0, 0, 1, 1], [], []>} : vector<36x225xf32>, vector<225x32xf32>, vector<36x32xf32> -> vector<36x32xf32>
    %c10_82 = arith.constant 10 : index
    %c0_83 = arith.constant 0 : index
    %c0_84 = arith.constant 0 : index
    %83 = vector.load %arg5[%c10_82, %c0_83, %c0_84] : memref<16x32x64xf32, #tpu.memory_space<vmem>>, vector<1x32x64xf32>
    %84 = vector.shape_cast %83 : vector<1x32x64xf32> to vector<32x64xf32>
    %cst_85 = arith.constant dense<0.000000e+00> : vector<36x64xf32>
    %85 = tpu.matmul %82, %84, %cst_85 {dimension_numbers = #tpu.dot_dimension_numbers<[1], [0], [0], [1], [0, 0, 1, 1], [], []>} : vector<36x32xf32>, vector<32x64xf32>, vector<36x64xf32> -> vector<36x64xf32>
    %86 = arith.addf %79, %85 : vector<36x64xf32>
    %c11 = arith.constant 11 : index
    %c0_86 = arith.constant 0 : index
    %c0_87 = arith.constant 0 : index
    %87 = vector.load %arg4[%c11, %c0_86, %c0_87] : memref<16x36x225xf32, #tpu.memory_space<vmem>>, vector<1x36x225xf32>
    %88 = vector.shape_cast %87 : vector<1x36x225xf32> to vector<36x225xf32>
    %cst_88 = arith.constant dense<0.000000e+00> : vector<36x32xf32>
    %89 = tpu.matmul %88, %8, %cst_88 {dimension_numbers = #tpu.dot_dimension_numbers<[1], [0], [0], [1], [0, 0, 1, 1], [], []>} : vector<36x225xf32>, vector<225x32xf32>, vector<36x32xf32> -> vector<36x32xf32>
    %c11_89 = arith.constant 11 : index
    %c0_90 = arith.constant 0 : index
    %c0_91 = arith.constant 0 : index
    %90 = vector.load %arg5[%c11_89, %c0_90, %c0_91] : memref<16x32x64xf32, #tpu.memory_space<vmem>>, vector<1x32x64xf32>
    %91 = vector.shape_cast %90 : vector<1x32x64xf32> to vector<32x64xf32>
    %cst_92 = arith.constant dense<0.000000e+00> : vector<36x64xf32>
    %92 = tpu.matmul %89, %91, %cst_92 {dimension_numbers = #tpu.dot_dimension_numbers<[1], [0], [0], [1], [0, 0, 1, 1], [], []>} : vector<36x32xf32>, vector<32x64xf32>, vector<36x64xf32> -> vector<36x64xf32>
    %93 = arith.addf %86, %92 : vector<36x64xf32>
    %c12 = arith.constant 12 : index
    %c0_93 = arith.constant 0 : index
    %c0_94 = arith.constant 0 : index
    %94 = vector.load %arg4[%c12, %c0_93, %c0_94] : memref<16x36x225xf32, #tpu.memory_space<vmem>>, vector<1x36x225xf32>
    %95 = vector.shape_cast %94 : vector<1x36x225xf32> to vector<36x225xf32>
    %cst_95 = arith.constant dense<0.000000e+00> : vector<36x32xf32>
    %96 = tpu.matmul %95, %8, %cst_95 {dimension_numbers = #tpu.dot_dimension_numbers<[1], [0], [0], [1], [0, 0, 1, 1], [], []>} : vector<36x225xf32>, vector<225x32xf32>, vector<36x32xf32> -> vector<36x32xf32>
    %c12_96 = arith.constant 12 : index
    %c0_97 = arith.constant 0 : index
    %c0_98 = arith.constant 0 : index
    %97 = vector.load %arg5[%c12_96, %c0_97, %c0_98] : memref<16x32x64xf32, #tpu.memory_space<vmem>>, vector<1x32x64xf32>
    %98 = vector.shape_cast %97 : vector<1x32x64xf32> to vector<32x64xf32>
    %cst_99 = arith.constant dense<0.000000e+00> : vector<36x64xf32>
    %99 = tpu.matmul %96, %98, %cst_99 {dimension_numbers = #tpu.dot_dimension_numbers<[1], [0], [0], [1], [0, 0, 1, 1], [], []>} : vector<36x32xf32>, vector<32x64xf32>, vector<36x64xf32> -> vector<36x64xf32>
    %100 = arith.addf %93, %99 : vector<36x64xf32>
    %c13 = arith.constant 13 : index
    %c0_100 = arith.constant 0 : index
    %c0_101 = arith.constant 0 : index
    %101 = vector.load %arg4[%c13, %c0_100, %c0_101] : memref<16x36x225xf32, #tpu.memory_space<vmem>>, vector<1x36x225xf32>
    %102 = vector.shape_cast %101 : vector<1x36x225xf32> to vector<36x225xf32>
    %cst_102 = arith.constant dense<0.000000e+00> : vector<36x32xf32>
    %103 = tpu.matmul %102, %8, %cst_102 {dimension_numbers = #tpu.dot_dimension_numbers<[1], [0], [0], [1], [0, 0, 1, 1], [], []>} : vector<36x225xf32>, vector<225x32xf32>, vector<36x32xf32> -> vector<36x32xf32>
    %c13_103 = arith.constant 13 : index
    %c0_104 = arith.constant 0 : index
    %c0_105 = arith.constant 0 : index
    %104 = vector.load %arg5[%c13_103, %c0_104, %c0_105] : memref<16x32x64xf32, #tpu.memory_space<vmem>>, vector<1x32x64xf32>
    %105 = vector.shape_cast %104 : vector<1x32x64xf32> to vector<32x64xf32>
    %cst_106 = arith.constant dense<0.000000e+00> : vector<36x64xf32>
    %106 = tpu.matmul %103, %105, %cst_106 {dimension_numbers = #tpu.dot_dimension_numbers<[1], [0], [0], [1], [0, 0, 1, 1], [], []>} : vector<36x32xf32>, vector<32x64xf32>, vector<36x64xf32> -> vector<36x64xf32>
    %107 = arith.addf %100, %106 : vector<36x64xf32>
    %c14 = arith.constant 14 : index
    %c0_107 = arith.constant 0 : index
    %c0_108 = arith.constant 0 : index
    %108 = vector.load %arg4[%c14, %c0_107, %c0_108] : memref<16x36x225xf32, #tpu.memory_space<vmem>>, vector<1x36x225xf32>
    %109 = vector.shape_cast %108 : vector<1x36x225xf32> to vector<36x225xf32>
    %cst_109 = arith.constant dense<0.000000e+00> : vector<36x32xf32>
    %110 = tpu.matmul %109, %8, %cst_109 {dimension_numbers = #tpu.dot_dimension_numbers<[1], [0], [0], [1], [0, 0, 1, 1], [], []>} : vector<36x225xf32>, vector<225x32xf32>, vector<36x32xf32> -> vector<36x32xf32>
    %c14_110 = arith.constant 14 : index
    %c0_111 = arith.constant 0 : index
    %c0_112 = arith.constant 0 : index
    %111 = vector.load %arg5[%c14_110, %c0_111, %c0_112] : memref<16x32x64xf32, #tpu.memory_space<vmem>>, vector<1x32x64xf32>
    %112 = vector.shape_cast %111 : vector<1x32x64xf32> to vector<32x64xf32>
    %cst_113 = arith.constant dense<0.000000e+00> : vector<36x64xf32>
    %113 = tpu.matmul %110, %112, %cst_113 {dimension_numbers = #tpu.dot_dimension_numbers<[1], [0], [0], [1], [0, 0, 1, 1], [], []>} : vector<36x32xf32>, vector<32x64xf32>, vector<36x64xf32> -> vector<36x64xf32>
    %114 = arith.addf %107, %113 : vector<36x64xf32>
    %c15 = arith.constant 15 : index
    %c0_114 = arith.constant 0 : index
    %c0_115 = arith.constant 0 : index
    %115 = vector.load %arg4[%c15, %c0_114, %c0_115] : memref<16x36x225xf32, #tpu.memory_space<vmem>>, vector<1x36x225xf32>
    %116 = vector.shape_cast %115 : vector<1x36x225xf32> to vector<36x225xf32>
    %cst_116 = arith.constant dense<0.000000e+00> : vector<36x32xf32>
    %117 = tpu.matmul %116, %8, %cst_116 {dimension_numbers = #tpu.dot_dimension_numbers<[1], [0], [0], [1], [0, 0, 1, 1], [], []>} : vector<36x225xf32>, vector<225x32xf32>, vector<36x32xf32> -> vector<36x32xf32>
    %c15_117 = arith.constant 15 : index
    %c0_118 = arith.constant 0 : index
    %c0_119 = arith.constant 0 : index
    %118 = vector.load %arg5[%c15_117, %c0_118, %c0_119] : memref<16x32x64xf32, #tpu.memory_space<vmem>>, vector<1x32x64xf32>
    %119 = vector.shape_cast %118 : vector<1x32x64xf32> to vector<32x64xf32>
    %cst_120 = arith.constant dense<0.000000e+00> : vector<36x64xf32>
    %120 = tpu.matmul %117, %119, %cst_120 {dimension_numbers = #tpu.dot_dimension_numbers<[1], [0], [0], [1], [0, 0, 1, 1], [], []>} : vector<36x32xf32>, vector<32x64xf32>, vector<36x64xf32> -> vector<36x64xf32>
    %121 = arith.addf %114, %120 : vector<36x64xf32>
    %c0_121 = arith.constant 0 : index
    %c0_122 = arith.constant 0 : index
    %122 = vector.load %arg6[%c0_121, %c0_122] : memref<1x64xf32, #tpu.memory_space<vmem>>, vector<1x64xf32>
    %123 = vector.broadcast %122 : vector<1x64xf32> to vector<36x64xf32>
    %124 = arith.addf %121, %123 : vector<36x64xf32>
    %cst_123 = arith.constant 0.000000e+00 : f32
    %125 = vector.broadcast %cst_123 : f32 to vector<36x64xf32>
    %126 = arith.maximumf %124, %125 : vector<36x64xf32>
    %cst_124 = arith.constant 0.000000e+00 : f32
    %127 = vector.broadcast %cst_124 : f32 to vector<16x64xf32>
    %c0_125 = arith.constant 0 : index
    %c0_126 = arith.constant 0 : index
    %c0_127 = arith.constant 0 : index
    %128 = vector.load %arg7[%c0_125, %c0_126, %c0_127] : memref<9x16x36xf32, #tpu.memory_space<vmem>>, vector<1x16x36xf32>
    %129 = vector.shape_cast %128 : vector<1x16x36xf32> to vector<16x36xf32>
    %cst_128 = arith.constant dense<0.000000e+00> : vector<16x64xf32>
    %130 = tpu.matmul %129, %126, %cst_128 {dimension_numbers = #tpu.dot_dimension_numbers<[1], [0], [0], [1], [0, 0, 1, 1], [], []>} : vector<16x36xf32>, vector<36x64xf32>, vector<16x64xf32> -> vector<16x64xf32>
    %c0_129 = arith.constant 0 : index
    %c0_130 = arith.constant 0 : index
    %c0_131 = arith.constant 0 : index
    %131 = vector.load %arg8[%c0_129, %c0_130, %c0_131] : memref<9x64x64xf32, #tpu.memory_space<vmem>>, vector<1x64x64xf32>
    %132 = vector.shape_cast %131 : vector<1x64x64xf32> to vector<64x64xf32>
    %cst_132 = arith.constant dense<0.000000e+00> : vector<16x64xf32>
    %133 = tpu.matmul %130, %132, %cst_132 {dimension_numbers = #tpu.dot_dimension_numbers<[1], [0], [0], [1], [0, 0, 1, 1], [], []>} : vector<16x64xf32>, vector<64x64xf32>, vector<16x64xf32> -> vector<16x64xf32>
    %134 = arith.addf %127, %133 : vector<16x64xf32>
    %c1_133 = arith.constant 1 : index
    %c0_134 = arith.constant 0 : index
    %c0_135 = arith.constant 0 : index
    %135 = vector.load %arg7[%c1_133, %c0_134, %c0_135] : memref<9x16x36xf32, #tpu.memory_space<vmem>>, vector<1x16x36xf32>
    %136 = vector.shape_cast %135 : vector<1x16x36xf32> to vector<16x36xf32>
    %cst_136 = arith.constant dense<0.000000e+00> : vector<16x64xf32>
    %137 = tpu.matmul %136, %126, %cst_136 {dimension_numbers = #tpu.dot_dimension_numbers<[1], [0], [0], [1], [0, 0, 1, 1], [], []>} : vector<16x36xf32>, vector<36x64xf32>, vector<16x64xf32> -> vector<16x64xf32>
    %c1_137 = arith.constant 1 : index
    %c0_138 = arith.constant 0 : index
    %c0_139 = arith.constant 0 : index
    %138 = vector.load %arg8[%c1_137, %c0_138, %c0_139] : memref<9x64x64xf32, #tpu.memory_space<vmem>>, vector<1x64x64xf32>
    %139 = vector.shape_cast %138 : vector<1x64x64xf32> to vector<64x64xf32>
    %cst_140 = arith.constant dense<0.000000e+00> : vector<16x64xf32>
    %140 = tpu.matmul %137, %139, %cst_140 {dimension_numbers = #tpu.dot_dimension_numbers<[1], [0], [0], [1], [0, 0, 1, 1], [], []>} : vector<16x64xf32>, vector<64x64xf32>, vector<16x64xf32> -> vector<16x64xf32>
    %141 = arith.addf %134, %140 : vector<16x64xf32>
    %c2_141 = arith.constant 2 : index
    %c0_142 = arith.constant 0 : index
    %c0_143 = arith.constant 0 : index
    %142 = vector.load %arg7[%c2_141, %c0_142, %c0_143] : memref<9x16x36xf32, #tpu.memory_space<vmem>>, vector<1x16x36xf32>
    %143 = vector.shape_cast %142 : vector<1x16x36xf32> to vector<16x36xf32>
    %cst_144 = arith.constant dense<0.000000e+00> : vector<16x64xf32>
    %144 = tpu.matmul %143, %126, %cst_144 {dimension_numbers = #tpu.dot_dimension_numbers<[1], [0], [0], [1], [0, 0, 1, 1], [], []>} : vector<16x36xf32>, vector<36x64xf32>, vector<16x64xf32> -> vector<16x64xf32>
    %c2_145 = arith.constant 2 : index
    %c0_146 = arith.constant 0 : index
    %c0_147 = arith.constant 0 : index
    %145 = vector.load %arg8[%c2_145, %c0_146, %c0_147] : memref<9x64x64xf32, #tpu.memory_space<vmem>>, vector<1x64x64xf32>
    %146 = vector.shape_cast %145 : vector<1x64x64xf32> to vector<64x64xf32>
    %cst_148 = arith.constant dense<0.000000e+00> : vector<16x64xf32>
    %147 = tpu.matmul %144, %146, %cst_148 {dimension_numbers = #tpu.dot_dimension_numbers<[1], [0], [0], [1], [0, 0, 1, 1], [], []>} : vector<16x64xf32>, vector<64x64xf32>, vector<16x64xf32> -> vector<16x64xf32>
    %148 = arith.addf %141, %147 : vector<16x64xf32>
    %c3_149 = arith.constant 3 : index
    %c0_150 = arith.constant 0 : index
    %c0_151 = arith.constant 0 : index
    %149 = vector.load %arg7[%c3_149, %c0_150, %c0_151] : memref<9x16x36xf32, #tpu.memory_space<vmem>>, vector<1x16x36xf32>
    %150 = vector.shape_cast %149 : vector<1x16x36xf32> to vector<16x36xf32>
    %cst_152 = arith.constant dense<0.000000e+00> : vector<16x64xf32>
    %151 = tpu.matmul %150, %126, %cst_152 {dimension_numbers = #tpu.dot_dimension_numbers<[1], [0], [0], [1], [0, 0, 1, 1], [], []>} : vector<16x36xf32>, vector<36x64xf32>, vector<16x64xf32> -> vector<16x64xf32>
    %c3_153 = arith.constant 3 : index
    %c0_154 = arith.constant 0 : index
    %c0_155 = arith.constant 0 : index
    %152 = vector.load %arg8[%c3_153, %c0_154, %c0_155] : memref<9x64x64xf32, #tpu.memory_space<vmem>>, vector<1x64x64xf32>
    %153 = vector.shape_cast %152 : vector<1x64x64xf32> to vector<64x64xf32>
    %cst_156 = arith.constant dense<0.000000e+00> : vector<16x64xf32>
    %154 = tpu.matmul %151, %153, %cst_156 {dimension_numbers = #tpu.dot_dimension_numbers<[1], [0], [0], [1], [0, 0, 1, 1], [], []>} : vector<16x64xf32>, vector<64x64xf32>, vector<16x64xf32> -> vector<16x64xf32>
    %155 = arith.addf %148, %154 : vector<16x64xf32>
    %c4_157 = arith.constant 4 : index
    %c0_158 = arith.constant 0 : index
    %c0_159 = arith.constant 0 : index
    %156 = vector.load %arg7[%c4_157, %c0_158, %c0_159] : memref<9x16x36xf32, #tpu.memory_space<vmem>>, vector<1x16x36xf32>
    %157 = vector.shape_cast %156 : vector<1x16x36xf32> to vector<16x36xf32>
    %cst_160 = arith.constant dense<0.000000e+00> : vector<16x64xf32>
    %158 = tpu.matmul %157, %126, %cst_160 {dimension_numbers = #tpu.dot_dimension_numbers<[1], [0], [0], [1], [0, 0, 1, 1], [], []>} : vector<16x36xf32>, vector<36x64xf32>, vector<16x64xf32> -> vector<16x64xf32>
    %c4_161 = arith.constant 4 : index
    %c0_162 = arith.constant 0 : index
    %c0_163 = arith.constant 0 : index
    %159 = vector.load %arg8[%c4_161, %c0_162, %c0_163] : memref<9x64x64xf32, #tpu.memory_space<vmem>>, vector<1x64x64xf32>
    %160 = vector.shape_cast %159 : vector<1x64x64xf32> to vector<64x64xf32>
    %cst_164 = arith.constant dense<0.000000e+00> : vector<16x64xf32>
    %161 = tpu.matmul %158, %160, %cst_164 {dimension_numbers = #tpu.dot_dimension_numbers<[1], [0], [0], [1], [0, 0, 1, 1], [], []>} : vector<16x64xf32>, vector<64x64xf32>, vector<16x64xf32> -> vector<16x64xf32>
    %162 = arith.addf %155, %161 : vector<16x64xf32>
    %c5_165 = arith.constant 5 : index
    %c0_166 = arith.constant 0 : index
    %c0_167 = arith.constant 0 : index
    %163 = vector.load %arg7[%c5_165, %c0_166, %c0_167] : memref<9x16x36xf32, #tpu.memory_space<vmem>>, vector<1x16x36xf32>
    %164 = vector.shape_cast %163 : vector<1x16x36xf32> to vector<16x36xf32>
    %cst_168 = arith.constant dense<0.000000e+00> : vector<16x64xf32>
    %165 = tpu.matmul %164, %126, %cst_168 {dimension_numbers = #tpu.dot_dimension_numbers<[1], [0], [0], [1], [0, 0, 1, 1], [], []>} : vector<16x36xf32>, vector<36x64xf32>, vector<16x64xf32> -> vector<16x64xf32>
    %c5_169 = arith.constant 5 : index
    %c0_170 = arith.constant 0 : index
    %c0_171 = arith.constant 0 : index
    %166 = vector.load %arg8[%c5_169, %c0_170, %c0_171] : memref<9x64x64xf32, #tpu.memory_space<vmem>>, vector<1x64x64xf32>
    %167 = vector.shape_cast %166 : vector<1x64x64xf32> to vector<64x64xf32>
    %cst_172 = arith.constant dense<0.000000e+00> : vector<16x64xf32>
    %168 = tpu.matmul %165, %167, %cst_172 {dimension_numbers = #tpu.dot_dimension_numbers<[1], [0], [0], [1], [0, 0, 1, 1], [], []>} : vector<16x64xf32>, vector<64x64xf32>, vector<16x64xf32> -> vector<16x64xf32>
    %169 = arith.addf %162, %168 : vector<16x64xf32>
    %c6_173 = arith.constant 6 : index
    %c0_174 = arith.constant 0 : index
    %c0_175 = arith.constant 0 : index
    %170 = vector.load %arg7[%c6_173, %c0_174, %c0_175] : memref<9x16x36xf32, #tpu.memory_space<vmem>>, vector<1x16x36xf32>
    %171 = vector.shape_cast %170 : vector<1x16x36xf32> to vector<16x36xf32>
    %cst_176 = arith.constant dense<0.000000e+00> : vector<16x64xf32>
    %172 = tpu.matmul %171, %126, %cst_176 {dimension_numbers = #tpu.dot_dimension_numbers<[1], [0], [0], [1], [0, 0, 1, 1], [], []>} : vector<16x36xf32>, vector<36x64xf32>, vector<16x64xf32> -> vector<16x64xf32>
    %c6_177 = arith.constant 6 : index
    %c0_178 = arith.constant 0 : index
    %c0_179 = arith.constant 0 : index
    %173 = vector.load %arg8[%c6_177, %c0_178, %c0_179] : memref<9x64x64xf32, #tpu.memory_space<vmem>>, vector<1x64x64xf32>
    %174 = vector.shape_cast %173 : vector<1x64x64xf32> to vector<64x64xf32>
    %cst_180 = arith.constant dense<0.000000e+00> : vector<16x64xf32>
    %175 = tpu.matmul %172, %174, %cst_180 {dimension_numbers = #tpu.dot_dimension_numbers<[1], [0], [0], [1], [0, 0, 1, 1], [], []>} : vector<16x64xf32>, vector<64x64xf32>, vector<16x64xf32> -> vector<16x64xf32>
    %176 = arith.addf %169, %175 : vector<16x64xf32>
    %c7_181 = arith.constant 7 : index
    %c0_182 = arith.constant 0 : index
    %c0_183 = arith.constant 0 : index
    %177 = vector.load %arg7[%c7_181, %c0_182, %c0_183] : memref<9x16x36xf32, #tpu.memory_space<vmem>>, vector<1x16x36xf32>
    %178 = vector.shape_cast %177 : vector<1x16x36xf32> to vector<16x36xf32>
    %cst_184 = arith.constant dense<0.000000e+00> : vector<16x64xf32>
    %179 = tpu.matmul %178, %126, %cst_184 {dimension_numbers = #tpu.dot_dimension_numbers<[1], [0], [0], [1], [0, 0, 1, 1], [], []>} : vector<16x36xf32>, vector<36x64xf32>, vector<16x64xf32> -> vector<16x64xf32>
    %c7_185 = arith.constant 7 : index
    %c0_186 = arith.constant 0 : index
    %c0_187 = arith.constant 0 : index
    %180 = vector.load %arg8[%c7_185, %c0_186, %c0_187] : memref<9x64x64xf32, #tpu.memory_space<vmem>>, vector<1x64x64xf32>
    %181 = vector.shape_cast %180 : vector<1x64x64xf32> to vector<64x64xf32>
    %cst_188 = arith.constant dense<0.000000e+00> : vector<16x64xf32>
    %182 = tpu.matmul %179, %181, %cst_188 {dimension_numbers = #tpu.dot_dimension_numbers<[1], [0], [0], [1], [0, 0, 1, 1], [], []>} : vector<16x64xf32>, vector<64x64xf32>, vector<16x64xf32> -> vector<16x64xf32>
    %183 = arith.addf %176, %182 : vector<16x64xf32>
    %c8_189 = arith.constant 8 : index
    %c0_190 = arith.constant 0 : index
    %c0_191 = arith.constant 0 : index
    %184 = vector.load %arg7[%c8_189, %c0_190, %c0_191] : memref<9x16x36xf32, #tpu.memory_space<vmem>>, vector<1x16x36xf32>
    %185 = vector.shape_cast %184 : vector<1x16x36xf32> to vector<16x36xf32>
    %cst_192 = arith.constant dense<0.000000e+00> : vector<16x64xf32>
    %186 = tpu.matmul %185, %126, %cst_192 {dimension_numbers = #tpu.dot_dimension_numbers<[1], [0], [0], [1], [0, 0, 1, 1], [], []>} : vector<16x36xf32>, vector<36x64xf32>, vector<16x64xf32> -> vector<16x64xf32>
    %c8_193 = arith.constant 8 : index
    %c0_194 = arith.constant 0 : index
    %c0_195 = arith.constant 0 : index
    %187 = vector.load %arg8[%c8_193, %c0_194, %c0_195] : memref<9x64x64xf32, #tpu.memory_space<vmem>>, vector<1x64x64xf32>
    %188 = vector.shape_cast %187 : vector<1x64x64xf32> to vector<64x64xf32>
    %cst_196 = arith.constant dense<0.000000e+00> : vector<16x64xf32>
    %189 = tpu.matmul %186, %188, %cst_196 {dimension_numbers = #tpu.dot_dimension_numbers<[1], [0], [0], [1], [0, 0, 1, 1], [], []>} : vector<16x64xf32>, vector<64x64xf32>, vector<16x64xf32> -> vector<16x64xf32>
    %190 = arith.addf %183, %189 : vector<16x64xf32>
    %c0_197 = arith.constant 0 : index
    %c0_198 = arith.constant 0 : index
    %191 = vector.load %arg9[%c0_197, %c0_198] : memref<1x64xf32, #tpu.memory_space<vmem>>, vector<1x64xf32>
    %192 = vector.broadcast %191 : vector<1x64xf32> to vector<16x64xf32>
    %193 = arith.addf %190, %192 : vector<16x64xf32>
    %cst_199 = arith.constant 0.000000e+00 : f32
    %194 = vector.broadcast %cst_199 : f32 to vector<16x64xf32>
    %195 = arith.maximumf %193, %194 : vector<16x64xf32>
    %cst_200 = arith.constant 0.000000e+00 : f32
    %196 = vector.broadcast %cst_200 : f32 to vector<1x512xf32>
    %197 = vector.extract_strided_slice %195 {offsets = [0, 0], sizes = [1, 64], strides = [1, 1]} : vector<16x64xf32> to vector<1x64xf32>
    %c0_201 = arith.constant 0 : index
    %c0_202 = arith.constant 0 : index
    %c0_203 = arith.constant 0 : index
    %198 = vector.load %arg10[%c0_201, %c0_202, %c0_203] : memref<16x64x512xf32, #tpu.memory_space<vmem>>, vector<1x64x512xf32>
    %199 = vector.shape_cast %198 : vector<1x64x512xf32> to vector<64x512xf32>
    %cst_204 = arith.constant dense<0.000000e+00> : vector<1x512xf32>
    %200 = tpu.matmul %197, %199, %cst_204 {dimension_numbers = #tpu.dot_dimension_numbers<[1], [0], [0], [1], [0, 0, 1, 1], [], []>} : vector<1x64xf32>, vector<64x512xf32>, vector<1x512xf32> -> vector<1x512xf32>
    %201 = arith.addf %196, %200 : vector<1x512xf32>
    %202 = vector.extract_strided_slice %195 {offsets = [1, 0], sizes = [1, 64], strides = [1, 1]} : vector<16x64xf32> to vector<1x64xf32>
    %c1_205 = arith.constant 1 : index
    %c0_206 = arith.constant 0 : index
    %c0_207 = arith.constant 0 : index
    %203 = vector.load %arg10[%c1_205, %c0_206, %c0_207] : memref<16x64x512xf32, #tpu.memory_space<vmem>>, vector<1x64x512xf32>
    %204 = vector.shape_cast %203 : vector<1x64x512xf32> to vector<64x512xf32>
    %cst_208 = arith.constant dense<0.000000e+00> : vector<1x512xf32>
    %205 = tpu.matmul %202, %204, %cst_208 {dimension_numbers = #tpu.dot_dimension_numbers<[1], [0], [0], [1], [0, 0, 1, 1], [], []>} : vector<1x64xf32>, vector<64x512xf32>, vector<1x512xf32> -> vector<1x512xf32>
    %206 = arith.addf %201, %205 : vector<1x512xf32>
    %207 = vector.extract_strided_slice %195 {offsets = [2, 0], sizes = [1, 64], strides = [1, 1]} : vector<16x64xf32> to vector<1x64xf32>
    %c2_209 = arith.constant 2 : index
    %c0_210 = arith.constant 0 : index
    %c0_211 = arith.constant 0 : index
    %208 = vector.load %arg10[%c2_209, %c0_210, %c0_211] : memref<16x64x512xf32, #tpu.memory_space<vmem>>, vector<1x64x512xf32>
    %209 = vector.shape_cast %208 : vector<1x64x512xf32> to vector<64x512xf32>
    %cst_212 = arith.constant dense<0.000000e+00> : vector<1x512xf32>
    %210 = tpu.matmul %207, %209, %cst_212 {dimension_numbers = #tpu.dot_dimension_numbers<[1], [0], [0], [1], [0, 0, 1, 1], [], []>} : vector<1x64xf32>, vector<64x512xf32>, vector<1x512xf32> -> vector<1x512xf32>
    %211 = arith.addf %206, %210 : vector<1x512xf32>
    %212 = vector.extract_strided_slice %195 {offsets = [3, 0], sizes = [1, 64], strides = [1, 1]} : vector<16x64xf32> to vector<1x64xf32>
    %c3_213 = arith.constant 3 : index
    %c0_214 = arith.constant 0 : index
    %c0_215 = arith.constant 0 : index
    %213 = vector.load %arg10[%c3_213, %c0_214, %c0_215] : memref<16x64x512xf32, #tpu.memory_space<vmem>>, vector<1x64x512xf32>
    %214 = vector.shape_cast %213 : vector<1x64x512xf32> to vector<64x512xf32>
    %cst_216 = arith.constant dense<0.000000e+00> : vector<1x512xf32>
    %215 = tpu.matmul %212, %214, %cst_216 {dimension_numbers = #tpu.dot_dimension_numbers<[1], [0], [0], [1], [0, 0, 1, 1], [], []>} : vector<1x64xf32>, vector<64x512xf32>, vector<1x512xf32> -> vector<1x512xf32>
    %216 = arith.addf %211, %215 : vector<1x512xf32>
    %217 = vector.extract_strided_slice %195 {offsets = [4, 0], sizes = [1, 64], strides = [1, 1]} : vector<16x64xf32> to vector<1x64xf32>
    %c4_217 = arith.constant 4 : index
    %c0_218 = arith.constant 0 : index
    %c0_219 = arith.constant 0 : index
    %218 = vector.load %arg10[%c4_217, %c0_218, %c0_219] : memref<16x64x512xf32, #tpu.memory_space<vmem>>, vector<1x64x512xf32>
    %219 = vector.shape_cast %218 : vector<1x64x512xf32> to vector<64x512xf32>
    %cst_220 = arith.constant dense<0.000000e+00> : vector<1x512xf32>
    %220 = tpu.matmul %217, %219, %cst_220 {dimension_numbers = #tpu.dot_dimension_numbers<[1], [0], [0], [1], [0, 0, 1, 1], [], []>} : vector<1x64xf32>, vector<64x512xf32>, vector<1x512xf32> -> vector<1x512xf32>
    %221 = arith.addf %216, %220 : vector<1x512xf32>
    %222 = vector.extract_strided_slice %195 {offsets = [5, 0], sizes = [1, 64], strides = [1, 1]} : vector<16x64xf32> to vector<1x64xf32>
    %c5_221 = arith.constant 5 : index
    %c0_222 = arith.constant 0 : index
    %c0_223 = arith.constant 0 : index
    %223 = vector.load %arg10[%c5_221, %c0_222, %c0_223] : memref<16x64x512xf32, #tpu.memory_space<vmem>>, vector<1x64x512xf32>
    %224 = vector.shape_cast %223 : vector<1x64x512xf32> to vector<64x512xf32>
    %cst_224 = arith.constant dense<0.000000e+00> : vector<1x512xf32>
    %225 = tpu.matmul %222, %224, %cst_224 {dimension_numbers = #tpu.dot_dimension_numbers<[1], [0], [0], [1], [0, 0, 1, 1], [], []>} : vector<1x64xf32>, vector<64x512xf32>, vector<1x512xf32> -> vector<1x512xf32>
    %226 = arith.addf %221, %225 : vector<1x512xf32>
    %227 = vector.extract_strided_slice %195 {offsets = [6, 0], sizes = [1, 64], strides = [1, 1]} : vector<16x64xf32> to vector<1x64xf32>
    %c6_225 = arith.constant 6 : index
    %c0_226 = arith.constant 0 : index
    %c0_227 = arith.constant 0 : index
    %228 = vector.load %arg10[%c6_225, %c0_226, %c0_227] : memref<16x64x512xf32, #tpu.memory_space<vmem>>, vector<1x64x512xf32>
    %229 = vector.shape_cast %228 : vector<1x64x512xf32> to vector<64x512xf32>
    %cst_228 = arith.constant dense<0.000000e+00> : vector<1x512xf32>
    %230 = tpu.matmul %227, %229, %cst_228 {dimension_numbers = #tpu.dot_dimension_numbers<[1], [0], [0], [1], [0, 0, 1, 1], [], []>} : vector<1x64xf32>, vector<64x512xf32>, vector<1x512xf32> -> vector<1x512xf32>
    %231 = arith.addf %226, %230 : vector<1x512xf32>
    %232 = vector.extract_strided_slice %195 {offsets = [7, 0], sizes = [1, 64], strides = [1, 1]} : vector<16x64xf32> to vector<1x64xf32>
    %c7_229 = arith.constant 7 : index
    %c0_230 = arith.constant 0 : index
    %c0_231 = arith.constant 0 : index
    %233 = vector.load %arg10[%c7_229, %c0_230, %c0_231] : memref<16x64x512xf32, #tpu.memory_space<vmem>>, vector<1x64x512xf32>
    %234 = vector.shape_cast %233 : vector<1x64x512xf32> to vector<64x512xf32>
    %cst_232 = arith.constant dense<0.000000e+00> : vector<1x512xf32>
    %235 = tpu.matmul %232, %234, %cst_232 {dimension_numbers = #tpu.dot_dimension_numbers<[1], [0], [0], [1], [0, 0, 1, 1], [], []>} : vector<1x64xf32>, vector<64x512xf32>, vector<1x512xf32> -> vector<1x512xf32>
    %236 = arith.addf %231, %235 : vector<1x512xf32>
    %237 = vector.extract_strided_slice %195 {offsets = [8, 0], sizes = [1, 64], strides = [1, 1]} : vector<16x64xf32> to vector<1x64xf32>
    %c8_233 = arith.constant 8 : index
    %c0_234 = arith.constant 0 : index
    %c0_235 = arith.constant 0 : index
    %238 = vector.load %arg10[%c8_233, %c0_234, %c0_235] : memref<16x64x512xf32, #tpu.memory_space<vmem>>, vector<1x64x512xf32>
    %239 = vector.shape_cast %238 : vector<1x64x512xf32> to vector<64x512xf32>
    %cst_236 = arith.constant dense<0.000000e+00> : vector<1x512xf32>
    %240 = tpu.matmul %237, %239, %cst_236 {dimension_numbers = #tpu.dot_dimension_numbers<[1], [0], [0], [1], [0, 0, 1, 1], [], []>} : vector<1x64xf32>, vector<64x512xf32>, vector<1x512xf32> -> vector<1x512xf32>
    %241 = arith.addf %236, %240 : vector<1x512xf32>
    %242 = vector.extract_strided_slice %195 {offsets = [9, 0], sizes = [1, 64], strides = [1, 1]} : vector<16x64xf32> to vector<1x64xf32>
    %c9_237 = arith.constant 9 : index
    %c0_238 = arith.constant 0 : index
    %c0_239 = arith.constant 0 : index
    %243 = vector.load %arg10[%c9_237, %c0_238, %c0_239] : memref<16x64x512xf32, #tpu.memory_space<vmem>>, vector<1x64x512xf32>
    %244 = vector.shape_cast %243 : vector<1x64x512xf32> to vector<64x512xf32>
    %cst_240 = arith.constant dense<0.000000e+00> : vector<1x512xf32>
    %245 = tpu.matmul %242, %244, %cst_240 {dimension_numbers = #tpu.dot_dimension_numbers<[1], [0], [0], [1], [0, 0, 1, 1], [], []>} : vector<1x64xf32>, vector<64x512xf32>, vector<1x512xf32> -> vector<1x512xf32>
    %246 = arith.addf %241, %245 : vector<1x512xf32>
    %247 = vector.extract_strided_slice %195 {offsets = [10, 0], sizes = [1, 64], strides = [1, 1]} : vector<16x64xf32> to vector<1x64xf32>
    %c10_241 = arith.constant 10 : index
    %c0_242 = arith.constant 0 : index
    %c0_243 = arith.constant 0 : index
    %248 = vector.load %arg10[%c10_241, %c0_242, %c0_243] : memref<16x64x512xf32, #tpu.memory_space<vmem>>, vector<1x64x512xf32>
    %249 = vector.shape_cast %248 : vector<1x64x512xf32> to vector<64x512xf32>
    %cst_244 = arith.constant dense<0.000000e+00> : vector<1x512xf32>
    %250 = tpu.matmul %247, %249, %cst_244 {dimension_numbers = #tpu.dot_dimension_numbers<[1], [0], [0], [1], [0, 0, 1, 1], [], []>} : vector<1x64xf32>, vector<64x512xf32>, vector<1x512xf32> -> vector<1x512xf32>
    %251 = arith.addf %246, %250 : vector<1x512xf32>
    %252 = vector.extract_strided_slice %195 {offsets = [11, 0], sizes = [1, 64], strides = [1, 1]} : vector<16x64xf32> to vector<1x64xf32>
    %c11_245 = arith.constant 11 : index
    %c0_246 = arith.constant 0 : index
    %c0_247 = arith.constant 0 : index
    %253 = vector.load %arg10[%c11_245, %c0_246, %c0_247] : memref<16x64x512xf32, #tpu.memory_space<vmem>>, vector<1x64x512xf32>
    %254 = vector.shape_cast %253 : vector<1x64x512xf32> to vector<64x512xf32>
    %cst_248 = arith.constant dense<0.000000e+00> : vector<1x512xf32>
    %255 = tpu.matmul %252, %254, %cst_248 {dimension_numbers = #tpu.dot_dimension_numbers<[1], [0], [0], [1], [0, 0, 1, 1], [], []>} : vector<1x64xf32>, vector<64x512xf32>, vector<1x512xf32> -> vector<1x512xf32>
    %256 = arith.addf %251, %255 : vector<1x512xf32>
    %257 = vector.extract_strided_slice %195 {offsets = [12, 0], sizes = [1, 64], strides = [1, 1]} : vector<16x64xf32> to vector<1x64xf32>
    %c12_249 = arith.constant 12 : index
    %c0_250 = arith.constant 0 : index
    %c0_251 = arith.constant 0 : index
    %258 = vector.load %arg10[%c12_249, %c0_250, %c0_251] : memref<16x64x512xf32, #tpu.memory_space<vmem>>, vector<1x64x512xf32>
    %259 = vector.shape_cast %258 : vector<1x64x512xf32> to vector<64x512xf32>
    %cst_252 = arith.constant dense<0.000000e+00> : vector<1x512xf32>
    %260 = tpu.matmul %257, %259, %cst_252 {dimension_numbers = #tpu.dot_dimension_numbers<[1], [0], [0], [1], [0, 0, 1, 1], [], []>} : vector<1x64xf32>, vector<64x512xf32>, vector<1x512xf32> -> vector<1x512xf32>
    %261 = arith.addf %256, %260 : vector<1x512xf32>
    %262 = vector.extract_strided_slice %195 {offsets = [13, 0], sizes = [1, 64], strides = [1, 1]} : vector<16x64xf32> to vector<1x64xf32>
    %c13_253 = arith.constant 13 : index
    %c0_254 = arith.constant 0 : index
    %c0_255 = arith.constant 0 : index
    %263 = vector.load %arg10[%c13_253, %c0_254, %c0_255] : memref<16x64x512xf32, #tpu.memory_space<vmem>>, vector<1x64x512xf32>
    %264 = vector.shape_cast %263 : vector<1x64x512xf32> to vector<64x512xf32>
    %cst_256 = arith.constant dense<0.000000e+00> : vector<1x512xf32>
    %265 = tpu.matmul %262, %264, %cst_256 {dimension_numbers = #tpu.dot_dimension_numbers<[1], [0], [0], [1], [0, 0, 1, 1], [], []>} : vector<1x64xf32>, vector<64x512xf32>, vector<1x512xf32> -> vector<1x512xf32>
    %266 = arith.addf %261, %265 : vector<1x512xf32>
    %267 = vector.extract_strided_slice %195 {offsets = [14, 0], sizes = [1, 64], strides = [1, 1]} : vector<16x64xf32> to vector<1x64xf32>
    %c14_257 = arith.constant 14 : index
    %c0_258 = arith.constant 0 : index
    %c0_259 = arith.constant 0 : index
    %268 = vector.load %arg10[%c14_257, %c0_258, %c0_259] : memref<16x64x512xf32, #tpu.memory_space<vmem>>, vector<1x64x512xf32>
    %269 = vector.shape_cast %268 : vector<1x64x512xf32> to vector<64x512xf32>
    %cst_260 = arith.constant dense<0.000000e+00> : vector<1x512xf32>
    %270 = tpu.matmul %267, %269, %cst_260 {dimension_numbers = #tpu.dot_dimension_numbers<[1], [0], [0], [1], [0, 0, 1, 1], [], []>} : vector<1x64xf32>, vector<64x512xf32>, vector<1x512xf32> -> vector<1x512xf32>
    %271 = arith.addf %266, %270 : vector<1x512xf32>
    %272 = vector.extract_strided_slice %195 {offsets = [15, 0], sizes = [1, 64], strides = [1, 1]} : vector<16x64xf32> to vector<1x64xf32>
    %c15_261 = arith.constant 15 : index
    %c0_262 = arith.constant 0 : index
    %c0_263 = arith.constant 0 : index
    %273 = vector.load %arg10[%c15_261, %c0_262, %c0_263] : memref<16x64x512xf32, #tpu.memory_space<vmem>>, vector<1x64x512xf32>
    %274 = vector.shape_cast %273 : vector<1x64x512xf32> to vector<64x512xf32>
    %cst_264 = arith.constant dense<0.000000e+00> : vector<1x512xf32>
    %275 = tpu.matmul %272, %274, %cst_264 {dimension_numbers = #tpu.dot_dimension_numbers<[1], [0], [0], [1], [0, 0, 1, 1], [], []>} : vector<1x64xf32>, vector<64x512xf32>, vector<1x512xf32> -> vector<1x512xf32>
    %276 = arith.addf %271, %275 : vector<1x512xf32>
    %c0_265 = arith.constant 0 : index
    %c0_266 = arith.constant 0 : index
    %277 = vector.load %arg11[%c0_265, %c0_266] : memref<1x512xf32, #tpu.memory_space<vmem>>, vector<1x512xf32>
    %278 = arith.addf %276, %277 : vector<1x512xf32>
    %cst_267 = arith.constant 0.000000e+00 : f32
    %279 = vector.broadcast %cst_267 : f32 to vector<1x512xf32>
    %280 = arith.maximumf %278, %279 : vector<1x512xf32>
    %c0_268 = arith.constant 0 : index
    %c0_269 = arith.constant 0 : index
    %281 = vector.load %arg12[%c0_268, %c0_269] : memref<512x128xf32, #tpu.memory_space<vmem>>, vector<512x128xf32>
    %cst_270 = arith.constant dense<0.000000e+00> : vector<1x128xf32>
    %282 = tpu.matmul %280, %281, %cst_270 {dimension_numbers = #tpu.dot_dimension_numbers<[1], [0], [0], [1], [0, 0, 1, 1], [], []>} : vector<1x512xf32>, vector<512x128xf32>, vector<1x128xf32> -> vector<1x128xf32>
    %c0_271 = arith.constant 0 : index
    %c0_272 = arith.constant 0 : index
    %283 = vector.load %arg13[%c0_271, %c0_272] : memref<1x128xf32, #tpu.memory_space<vmem>>, vector<1x128xf32>
    %284 = arith.addf %282, %283 : vector<1x128xf32>
    %c0_273 = arith.constant 0 : index
    %c0_274 = arith.constant 0 : index
    %c0_275 = arith.constant 0 : index
    %285 = vector.load %arg14[%c0_273, %c0_274, %c0_275] : memref<1x1x128xf32, #tpu.memory_space<vmem>>, vector<1x1x128xf32>
    %286 = vector.shape_cast %285 : vector<1x1x128xf32> to vector<1x128xf32>
    %287 = vector.shape_cast %284 : vector<1x128xf32> to vector<1x1x128xf32>
    tpu.vector_store %arg14[%c0_273, %c0_274, %c0_275], %287 {strides = array<i32>} : memref<1x1x128xf32, #tpu.memory_space<vmem>>, vector<1x1x128xf32>,
    return
  }
  func.func @transform_0(%arg0: i32) -> (i32, i32, i32) {
    %c0_i32 = arith.constant 0 : i32
    %c0_i32_0 = arith.constant 0 : i32
    %c0_i32_1 = arith.constant 0 : i32
    return %arg0, %c0_i32, %c0_i32_0 : i32, i32, i32
  }
  func.func @transform_1(%arg0: i32) -> (i32, i32) {
    %c0_i32 = arith.constant 0 : i32
    %c0_i32_0 = arith.constant 0 : i32
    %c0_i32_1 = arith.constant 0 : i32
    return %c0_i32, %c0_i32_0 : i32, i32
  }
  func.func @transform_2(%arg0: i32) -> (i32, i32) {
    %c0_i32 = arith.constant 0 : i32
    %c0_i32_0 = arith.constant 0 : i32
    %c0_i32_1 = arith.constant 0 : i32
    return %c0_i32, %c0_i32_0 : i32, i32
  }
  func.func @transform_3(%arg0: i32) -> (i32, i32, i32) {
    %c0_i32 = arith.constant 0 : i32
    %c0_i32_0 = arith.constant 0 : i32
    %c0_i32_1 = arith.constant 0 : i32
    %c0_i32_2 = arith.constant 0 : i32
    return %c0_i32, %c0_i32_0, %c0_i32_1 : i32, i32, i32
  }
  func.func @transform_4(%arg0: i32) -> (i32, i32, i32) {
    %c0_i32 = arith.constant 0 : i32
    %c0_i32_0 = arith.constant 0 : i32
    %c0_i32_1 = arith.constant 0 : i32
    %c0_i32_2 = arith.constant 0 : i32
    return %c0_i32, %c0_i32_0, %c0_i32_1 : i32, i32, i32
  }
  func.func @transform_5(%arg0: i32) -> (i32, i32) {
    %c0_i32 = arith.constant 0 : i32
    %c0_i32_0 = arith.constant 0 : i32
    %c0_i32_1 = arith.constant 0 : i32
    return %c0_i32, %c0_i32_0 : i32, i32
  }
  func.func @transform_6(%arg0: i32) -> (i32, i32, i32) {
    %c0_i32 = arith.constant 0 : i32
    %c0_i32_0 = arith.constant 0 : i32
    %c0_i32_1 = arith.constant 0 : i32
    %c0_i32_2 = arith.constant 0 : i32
    return %c0_i32, %c0_i32_0, %c0_i32_1 : i32, i32, i32
  }
  func.func @transform_7(%arg0: i32) -> (i32, i32, i32) {
    %c0_i32 = arith.constant 0 : i32
    %c0_i32_0 = arith.constant 0 : i32
    %c0_i32_1 = arith.constant 0 : i32
    %c0_i32_2 = arith.constant 0 : i32
    return %c0_i32, %c0_i32_0, %c0_i32_1 : i32, i32, i32
  }
  func.func @transform_8(%arg0: i32) -> (i32, i32) {
    %c0_i32 = arith.constant 0 : i32
    %c0_i32_0 = arith.constant 0 : i32
    %c0_i32_1 = arith.constant 0 : i32
    return %c0_i32, %c0_i32_0 : i32, i32
  }
  func.func @transform_9(%arg0: i32) -> (i32, i32, i32) {
    %c0_i32 = arith.constant 0 : i32
    %c0_i32_0 = arith.constant 0 : i32
    %c0_i32_1 = arith.constant 0 : i32
    %c0_i32_2 = arith.constant 0 : i32
    return %c0_i32, %c0_i32_0, %c0_i32_1 : i32, i32, i32
  }
  func.func @transform_10(%arg0: i32) -> (i32, i32) {
    %c0_i32 = arith.constant 0 : i32
    %c0_i32_0 = arith.constant 0 : i32
    %c0_i32_1 = arith.constant 0 : i32
    return %c0_i32, %c0_i32_0 : i32, i32
  }
  func.func @transform_11(%arg0: i32) -> (i32, i32) {
    %c0_i32 = arith.constant 0 : i32
    %c0_i32_0 = arith.constant 0 : i32
    %c0_i32_1 = arith.constant 0 : i32
    return %c0_i32, %c0_i32_0 : i32, i32
  }
  func.func @transform_12(%arg0: i32) -> (i32, i32) {
    %c0_i32 = arith.constant 0 : i32
    %c0_i32_0 = arith.constant 0 : i32
    %c0_i32_1 = arith.constant 0 : i32
    return %c0_i32, %c0_i32_0 : i32, i32
  }
  func.func @transform_13(%arg0: i32) -> (i32, i32, i32) {
    %c0_i32 = arith.constant 0 : i32
    %c0_i32_0 = arith.constant 0 : i32
    %c0_i32_1 = arith.constant 0 : i32
    return %arg0, %c0_i32, %c0_i32_0 : i32, i32, i32
  }
}

</mosaic_0001>

<bundles_post_ra>
// kernel: qnetwork_forward.1
= control target key start
LH: loop header
LB: loop body
LE: loop exit
PB: predicated region body
PF: predicated region fallthrough
CT: control target
= control target key end

     0   :  { %s17578_s0 = inlined_call_operand.vmem [shape: f32[2,225,192], index: 0, kind: input, shape index: {}]   ;;  %s17579_s1 = inlined_call_operand.vmem [shape: f32[192,32], index: 1, kind: input, shape index: {}]   ;;  %s17580_s2 = inlined_call_operand.vmem [shape: f32[1,32], index: 2, kind: input, shape index: {}]   ;;  %s17581_s3 = inlined_call_operand.vmem [shape: f32[16,36,225], index: 3, kind: input, shape index: {}]   ;;  %s17582_s4 = inlined_call_operand.vmem [shape: f32[16,32,64], index: 4, kind: input, shape index: {}]   ;;  %s17583_s5 = inlined_call_operand.vmem [shape: f32[1,64], index: 5, kind: input, shape index: {}]   ;;  %s17584_s6 = inlined_call_operand.vmem [shape: f32[9,16,36], index: 6, kind: input, shape index: {}]   ;;  %s17585_s7 = inlined_call_operand.vmem [shape: f32[9,64,64], index: 7, kind: input, shape index: {}]   ;;  %s17586_s8 = inlined_call_operand.vmem [shape: f32[1,64], index: 8, kind: input, shape index: {}]   ;;  %s17587_s9 = inlined_call_operand.vmem [shape: f32[16,64,512], index: 9, kind: input, shape index: {}]   ;;  %s17588_s10 = inlined_call_operand.vmem [shape: f32[1,512], index: 10, kind: input, shape index: {}]   ;;  %s17589_s11 = inlined_call_operand.vmem [shape: f32[512,128], index: 11, kind: input, shape index: {}]   ;;  %s17590_s12 = inlined_call_operand.vmem [shape: f32[1,128], index: 12, kind: input, shape index: {}]   ;;  %s17591_s13 = inlined_call_operand.hbm [shape: f32[2,1,128], index: 13, kind: output, shape index: {}]  }
   0x1   :  { %17595 = sst [smem:[#allocation8_spill]] %s17578_s0 }
   0x2   :  { %18 = vsyncpa [#allocation3], 0 }
   0x3   :  { %20 = vsyncpa [#allocation3 + $0x1], 0  ;;  %s13301_s25 = smov 0   ;;  %s13303_s26 = smov 0  }
   0x4   :  { %s13305_s27 = smov 0   ;;  %s13307_s28 = smov 0  }
   0x5 LB: > { %17596 = sst [smem:[#allocation5_spill]] %s13221_s27  ;;  %s13322_s29 = sadd.s32 4294967295, %s13225_s28   ;;  %s13225_s28 = sphi %s13307_s28, %s17602_s28   ;;  %s13221_s27 = sphi %s13305_s27, %s17604_s27   ;;  %s13217_s26 = sphi %s13303_s26, %s17606_s26   ;;  %s13213_s25 = sphi %s13301_s25, %s17605_s25  }
   0x6   : > { %s9362_s30 = sadd.s32 4294967294, %s13225_s28   ;;  %s13326_s14 = sadd.s32 1, %s13225_s28  }
   0x7   : > { %17597 = sst [smem:[#allocation6_spill]] %s13326_s14  ;;  %s311_s15 = sadd.s32 1, %s13221_s27 }
   0x8   : > { %s308_s16 = ssub.s32 %s13225_s28, %s13326_s14  ;;  %p321_p0 = scmp.ne.s32.totalorder %s13221_s27, %s13217_s26 }
   0x9   : > { %p309_p1 = scmp.eq.s32.totalorder %s308_s16, 0  ;;  %p322_p2 = scmp.eq.s32.totalorder %s13322_s29, 1 }
   0xa   : > { %p327_p3 = scmp.ne.s32.totalorder %s13217_s26, %s13213_s25  ;;  %p328_p4 = scmp.eq.s32.totalorder %s9362_s30, 1 }
   0xb   : > { %s13337_s17 = scalar_select %p309_p1, %s13221_s27, %s311_s15  }
   0xc   : > { %p13339_p5 = por %p322_p2, %p321_p0  ;;  %p13343_p6 = por %p328_p4, %p327_p3 }
   0xd   : > { %17598 = sst [smem:[#allocation7_spill]] %s13337_s17  ;;  %p9365_p7 = scmp.ge.s32.totalorder %s13225_s28, 1 }
   0xe   : > { %p390_p8 = scmp.lt.s32.totalorder %s13225_s28, 3 }
  0x10   : > { %p391_p9 = pnand %p9365_p7, %p390_p8 }
  0x11   : > { %v496_v0 = vld [vmem:[%s17579_s1] sm:$0xff] (!%p391_p9)  ;;  %v497_v1 = vld [vmem:[%s17579_s1 + $0x8] sm:$0xff] (!%p391_p9)  ;;  %v498_v2 = vld [vmem:[%s17579_s1 + $0x10] sm:$0xff] (!%p391_p9)  ;;  %p433_p10 = scmp.lt.s32.totalorder (!%p391_p9), %s13322_s29, 1  ;;  %v13227_v3 = vmov (!%p391_p9), 0.0|0.0   ;;  %s17601_s0 = sld [smem:[#allocation8_spill]] (!%p391_p9) }
  0x12   : > { %394 = sbr.rel (%p391_p9) target bundleno = 5790 (0x169e), region = 72  ;;  %11448 = vmatprep.subr.bf16.mxu0 (!%p391_p9), %v13227_v3  ;;  %v11449_v4 = vpack.c.bf16 (!%p391_p9), %v497_v1, %v496_v0  ;;  %v499_v5 = vld [vmem:[%s17579_s1 + $0x18] sm:$0xff] (!%p391_p9)  ;;  %11568 = vmatprep.subr.bf16.mxu1 (!%p391_p9), %v13227_v3  ;;  %v500_v7 = vld [vmem:[%s17579_s1 + $0x20] sm:$0xff] (!%p391_p9)  ;;  %v501_v8 = vld [vmem:[%s17579_s1 + $0x28] sm:$0xff] (!%p391_p9)  ;;  %vm527_vm0 = vcmask (!%p391_p9), 523264   ;;  %vm864_vm1 = vcmask (!%p391_p9), 793600  }
  0x13   : > { %v11452_v6 = vpack.c.bf16 (!%p391_p9), %v499_v5, %v498_v2  ;;  %v11455_v9 = vpack.c.bf16 (!%p391_p9), %v501_v8, %v500_v7  ;;  %v502_v10 = vld [vmem:[%s17579_s1 + $0x30] sm:$0xff] (!%p391_p9)  ;;  %v503_v11 = vld [vmem:[%s17579_s1 + $0x38] sm:$0xff] (!%p391_p9)  ;;  %v504_v14 = vld [vmem:[%s17579_s1 + $0x40] sm:$0xff] (!%p391_p9)  ;;  %vm880_vm2 = vcmask (!%p391_p9), 1040384   ;;  %vm13229_vm3 = vmmov (!%p391_p9), 0  }
  0x14   : > { %11450 = vmatpush1.bf16.msra.mxu0 (!%p391_p9), %v11449_v4  ;;  %v11458_v13 = vpack.c.bf16 (!%p391_p9), %v503_v11, %v502_v10  ;;  %v505_v15 = vld [vmem:[%s17579_s1 + $0x48] sm:$0xff] (!%p391_p9)  ;;  %v506_v17 = vld [vmem:[%s17579_s1 + $0x50] sm:$0xff] (!%p391_p9)  ;;  %v507_v18 = vld [vmem:[%s17579_s1 + $0x58] sm:$0xff] (!%p391_p9)  ;;  %vm1099_vm4 = vcmask (!%p391_p9), 261120   ;;  %vm4563_vm5 = vcmask (!%p391_p9), 293888   ;;  %vm4570_vm6 = vcmask (!%p391_p9), 1043456  }
  0x15   : > { %11451 = vmatprep.subr.bf16.mxu0 (!%p391_p9), %v13227_v3  ;;  %v11461_v16 = vpack.c.bf16 (!%p391_p9), %v505_v15, %v504_v14  ;;  %v11464_v19 = vpack.c.bf16 (!%p391_p9), %v507_v18, %v506_v17  ;;  %v508_v20 = vld [vmem:[%s17579_s1 + $0x60] sm:$0xff] (!%p391_p9)  ;;  %v509_v21 = vld [vmem:[%s17579_s1 + $0x68] sm:$0xff] (!%p391_p9)  ;;  %v510_v23 = vld [vmem:[%s17579_s1 + $0x70] sm:$0xff] (!%p391_p9) }
  0x16   : > { %v11467_v22 = vpack.c.bf16 (!%p391_p9), %v509_v21, %v508_v20  ;;  %v511_v24 = vld [vmem:[%s17579_s1 + $0x78] sm:$0xff] (!%p391_p9)  ;;  %v512_v26 = vld [vmem:[%s17579_s1 + $0x80] sm:$0xff] (!%p391_p9)  ;;  %v513_v27 = vld [vmem:[%s17579_s1 + $0x88] sm:$0xff] (!%p391_p9) }
  0x17   : > { %v11470_v25 = vpack.c.bf16 (!%p391_p9), %v511_v24, %v510_v23  ;;  %v11473_v28 = vpack.c.bf16 (!%p391_p9), %v513_v27, %v512_v26  ;;  %v514_v29 = vld [vmem:[%s17579_s1 + $0x90] sm:$0xff] (!%p391_p9)  ;;  %v515_v30 = vld [vmem:[%s17579_s1 + $0x98] sm:$0xff] (!%p391_p9)  ;;  %v516_v32 = vld [vmem:[%s17579_s1 + $0xa0] sm:$0xff] (!%p391_p9) }
  0x18   : > { %11453 = vmatpush1.bf16.msra.mxu0 (!%p391_p9), %v11452_v6  ;;  %v11476_v31 = vpack.c.bf16 (!%p391_p9), %v515_v30, %v514_v29  ;;  %v517_v33 = vld [vmem:[%s17579_s1 + $0xa8] sm:$0xff] (!%p391_p9)  ;;  %v518_v35 = vld [vmem:[%s17579_s1 + $0xb0] sm:$0xff] (!%p391_p9)  ;;  %v519_v36 = vld [vmem:[%s17579_s1 + $0xb8] sm:$0xff] (!%p391_p9) }
  0x19   : > { %s434_s20 = scalar_select %p433_p10, %s13322_s29, 1  ;;  %11454 = vmatprep.subr.bf16.mxu0 %v13227_v3  ;;  %v11479_v34 = vpack.c.bf16 %v517_v33, %v516_v32  ;;  %v11482_v37 = vpack.c.bf16 %v519_v36, %v518_v35  ;;  %v855_v32 = vld [vmem:[%s17581_s3 + $0x8] sm:$0xff]  ;;  %v13536_v33 = vld [vmem:[%s17580_s2] ss:$0 sm:$0xff] }
  0x1b   : > { %s13120_s30 = smul.u32 464, %s434_s20 }
  0x1c   : > { %11456 = vmatpush1.bf16.msra.mxu0 %v11455_v9 }
  0x1d   : > { %s13375_s15 = scalar_lea.vmem %s17601_s0, %s13120_s30  ;;  %11457 = vmatprep.subr.bf16.mxu0 %v13227_v3  ;;  %s431_s0 = sand.u32 1, %s13217_s26  }
  0x1e   : > { %v439_v12 = vld [vmem:[%s13375_s15 + $0x8] sm:$0xff]  ;;  %v438_v38 = vld [vmem:[%s13375_s15] sm:$0xff]  ;;  %v441_v39 = vld [vmem:[%s13375_s15 + $0x18] sm:$0xff]  ;;  %s432_s30 = scalar_lea.vmem [#allocation2], %s431_s0  ;;  %s9295_s17 = scalar_lea.sflag [#allocation3], %s431_s0 }
  0x1f   : > { %9368 = vmatprep.mubr.msk.f32.mxu0 %vm527_vm0, %v439_v12  ;;  %v440_v40 = vld [vmem:[%s13375_s15 + $0x10] sm:$0xff]  ;;  %v443_v41 = vld [vmem:[%s13375_s15 + $0x28] sm:$0xff]  ;;  %v442_v42 = vld [vmem:[%s13375_s15 + $0x20] sm:$0xff]  ;;  %s9307_s16 = sshll.u32 %s432_s30, 4  ;;  %s17538_s16 = int_to_ptr.vmem [resolvable:$true] %s9307_s16 }
  0x20   : > { %11459 = vmatpush1.bf16.msra.mxu0 %v11458_v13  ;;  %v445_v43 = vld [vmem:[%s13375_s15 + $0x38] sm:$0xff]  ;;  %v444_v44 = vld [vmem:[%s13375_s15 + $0x30] sm:$0xff]  ;;  %v447_v45 = vld [vmem:[%s13375_s15 + $0x48] sm:$0xff]  ;;  %s13163_s20 = scalar_lea.vmem %s17538_s16, 16 }
  0x21   : > { %11460 = vmatprep.subr.bf16.mxu0 %v13227_v3  ;;  %v446_v46 = vld [vmem:[%s13375_s15 + $0x40] sm:$0xff]  ;;  %v449_v47 = vld [vmem:[%s13375_s15 + $0x58] sm:$0xff]  ;;  %v448_v48 = vld [vmem:[%s13375_s15 + $0x50] sm:$0xff]  ;;  %p13164_p11 = scmp.ne.s32.totalorder %s17538_s16, %s13163_s20 }
  0x22   : > { %v451_v49 = vld [vmem:[%s13375_s15 + $0x68] sm:$0xff]  ;;  %v450_v50 = vld [vmem:[%s13375_s15 + $0x60] sm:$0xff]  ;;  %v453_v51 = vld [vmem:[%s13375_s15 + $0x78] sm:$0xff] }
  0x23   : > { %v452_v52 = vld [vmem:[%s13375_s15 + $0x70] sm:$0xff]  ;;  %v455_v53 = vld [vmem:[%s13375_s15 + $0x88] sm:$0xff]  ;;  %v454_v54 = vld [vmem:[%s13375_s15 + $0x80] sm:$0xff]  ;;  %p13165_p12 = pnand %p13164_p11, %p13339_p5 }
  0x24   : > { %11462 = vmatpush1.bf16.msra.mxu0 %v11461_v16  ;;  %v457_v55 = vld [vmem:[%s13375_s15 + $0x98] sm:$0xff]  ;;  %v456_v56 = vld [vmem:[%s13375_s15 + $0x90] sm:$0xff]  ;;  %v459_v57 = vld [vmem:[%s13375_s15 + $0xa8] sm:$0xff] }
  0x25   : > { %11463 = vmatprep.subr.bf16.mxu0 %v13227_v3  ;;  %v458_v58 = vld [vmem:[%s13375_s15 + $0xa0] sm:$0xff]  ;;  %v461_v59 = vld [vmem:[%s13375_s15 + $0xb8] sm:$0xff]  ;;  %v460_v60 = vld [vmem:[%s13375_s15 + $0xb0] sm:$0xff]  ;;  %p13166_p13 = pneg %p13165_p12 }
  0x26   : > { %v463_v61 = vld [vmem:[%s13375_s15 + $0xc8] sm:$0xff]  ;;  %v462_v62 = vld [vmem:[%s13375_s15 + $0xc0] sm:$0xff]  ;;  %v465_v63 = vld [vmem:[%s13375_s15 + $0xd8] sm:$0xff] }
  0x27   : > { %v464_v0 = vld [vmem:[%s13375_s15 + $0xd0] sm:$0xff]  ;;  %v467_v1 = vld [vmem:[%s13375_s15 + $0xe8] sm:$0xff]  ;;  %v466_v2 = vld [vmem:[%s13375_s15 + $0xe0] sm:$0xff] }
  0x28   : > { %11465 = vmatpush1.bf16.msra.mxu0 %v11464_v19  ;;  %v469_v4 = vld [vmem:[%s13375_s15 + $0xf8] sm:$0xff]  ;;  %v468_v5 = vld [vmem:[%s13375_s15 + $0xf0] sm:$0xff]  ;;  %v471_v6 = vld [vmem:[%s13375_s15 + $0x108] sm:$0xff] }
  0x29   : > { %11466 = vmatprep.subr.bf16.mxu0 %v13227_v3  ;;  %v470_v7 = vld [vmem:[%s13375_s15 + $0x100] sm:$0xff]  ;;  %v473_v8 = vld [vmem:[%s13375_s15 + $0x118] sm:$0xff]  ;;  %v472_v9 = vld [vmem:[%s13375_s15 + $0x110] sm:$0xff] }
  0x2a   : > { %v475_v10 = vld [vmem:[%s13375_s15 + $0x128] sm:$0xff]  ;;  %v474_v11 = vld [vmem:[%s13375_s15 + $0x120] sm:$0xff]  ;;  %v477_v12 = vld [vmem:[%s13375_s15 + $0x138] sm:$0xff] }
  0x2b   : > { %v476_v13 = vld [vmem:[%s13375_s15 + $0x130] sm:$0xff]  ;;  %v479_v14 = vld [vmem:[%s13375_s15 + $0x148] sm:$0xff]  ;;  %v478_v15 = vld [vmem:[%s13375_s15 + $0x140] sm:$0xff] }
  0x2c   : > { %11468 = vmatpush1.bf16.msra.mxu0 %v11467_v22  ;;  %v481_v16 = vld [vmem:[%s13375_s15 + $0x158] sm:$0xff]  ;;  %v480_v17 = vld [vmem:[%s13375_s15 + $0x150] sm:$0xff]  ;;  %v483_v18 = vld [vmem:[%s13375_s15 + $0x168] sm:$0xff] }
  0x2d   : > { %11469 = vmatprep.subr.bf16.mxu0 %v13227_v3  ;;  %v482_v19 = vld [vmem:[%s13375_s15 + $0x160] sm:$0xff]  ;;  %v485_v20 = vld [vmem:[%s13375_s15 + $0x178] sm:$0xff]  ;;  %v484_v21 = vld [vmem:[%s13375_s15 + $0x170] sm:$0xff] }
  0x2e   : > { %v487_v22 = vld [vmem:[%s13375_s15 + $0x188] sm:$0xff]  ;;  %v486_v23 = vld [vmem:[%s13375_s15 + $0x180] sm:$0xff]  ;;  %v489_v24 = vld [vmem:[%s13375_s15 + $0x198] sm:$0xff] }
  0x2f   : > { %v491_v26 = vld [vmem:[%s13375_s15 + $0x1a8] sm:$0xff]  ;;  %v490_v27 = vld [vmem:[%s13375_s15 + $0x1a0] sm:$0xff]  ;;  %v492_v29 = vld [vmem:[%s13375_s15 + $0x1b0] sm:$0xff] }
  0x30   : > { %11471 = vmatpush1.bf16.msra.mxu0 %v11470_v25  ;;  %v488_v25 = vld [vmem:[%s13375_s15 + $0x190] sm:$0xff]  ;;  %v495_v30 = vld [vmem:[%s13375_s15 + $0x1c8] sm:$0x1] }
  0x31   : > { %11472 = vmatprep.subr.bf16.mxu0 %v13227_v3 }
  0x34   : > { %11474 = vmatpush1.bf16.msra.mxu0 %v11473_v28  ;;  %v493_v28 = vld [vmem:[%s13375_s15 + $0x1b8] sm:$0xff] }
  0x35   : > { %11475 = vmatprep.subr.bf16.mxu0 %v13227_v3 }
  0x38   : > { %11477 = vmatpush1.bf16.msra.mxu0 %v11476_v31  ;;  %v494_v31 = vld [vmem:[%s13375_s15 + $0x1c0] sm:$0x1]  ;;  %s10422_s15 = sshll.u32 %s13322_s29, 4  ;;  %s13230_s29 = smov [#allocation2]  }
  0x39   : > { %11478 = vmatprep.subr.bf16.mxu0 %v13227_v3  ;;  %s17536_s27 = scalar_lea.hbm %s17591_s13, %s10422_s15  ;;  %s13167_s23 = sshll.u32 %s13230_s29, 4  ;;  %s13168_s23 = int_to_ptr.vmem [resolvable:$false] %s13167_s23 }
  0x3a   : > { %s13169_s14 = scalar_lea.vmem %s13168_s23, 32  ;;  %p13170_p0 = scmp.lt.s32.totalorder %s17538_s16, %s13168_s23 }
  0x3b   : > { %p13171_p1 = scmp.lt.s32.totalorder %s13169_s14, %s13163_s20 }
  0x3c   : > { %11480 = vmatpush1.bf16.msra.mxu0 %v11479_v34 }
  0x3d   : > { %11481 = vmatprep.subr.bf16.mxu0 %v13227_v3  ;;  %p13172_p2 = por %p13171_p1, %p13170_p0 }
  0x3f   : > { %p13173_p3 = pnand %p13172_p2, %p13166_p13 }
  0x40   : > { %11483 = vmatpush1.bf16.msra.mxu0 %v11482_v37 }
  0x41   : > { %11484 = vmatprep.subr.bf16.mxu0 %v13227_v3 }
  0x43   : > { %680 = vmatmul.mubr.f32.vlgmr.msra.gmra.mrb[0].mxu0 %v438_v38 }
  0x44   : > { %9369 = vmatprep.mubr.msk.f32.mxu0 %vm527_vm0, %v441_v39 }
  0x47   : > { %685 = vmatmul.mubr.f32.gmra.mrb[2].mxu0 %v440_v40 }
  0x48   : > { %9370 = vmatprep.mubr.msk.f32.mxu0 %vm527_vm0, %v443_v41 }
  0x4b   : > { %690 = vmatmul.mubr.f32.gmra.mrb[4].mxu0 %v442_v42 }
  0x4c   : > { %9371 = vmatprep.mubr.msk.f32.mxu0 %vm527_vm0, %v445_v43 }
  0x4f   : > { %695 = vmatmul.mubr.f32.gmra.mrb[6].mxu0 %v444_v44 }
  0x50   : > { %9372 = vmatprep.mubr.msk.f32.mxu0 %vm527_vm0, %v447_v45 }
  0x53   : > { %700 = vmatmul.mubr.f32.gmra.mrb[8].mxu0 %v446_v46 }
  0x54   : > { %9373 = vmatprep.mubr.msk.f32.mxu0 %vm527_vm0, %v449_v47 }
  0x57   : > { %705 = vmatmul.mubr.f32.gmra.mrb[10].mxu0 %v448_v48 }
  0x58   : > { %9374 = vmatprep.mubr.msk.f32.mxu0 %vm527_vm0, %v451_v49 }
  0x5b   : > { %710 = vmatmul.mubr.f32.gmra.mrb[12].mxu0 %v450_v50 }
  0x5c   : > { %9375 = vmatprep.mubr.msk.f32.mxu0 %vm527_vm0, %v453_v51 }
  0x5f   : > { %715 = vmatmul.mubr.f32.gmra.mrb[14].mxu0 %v452_v52 }
  0x60   : > { %9376 = vmatprep.mubr.msk.f32.mxu0 %vm527_vm0, %v455_v53 }
  0x63   : > { %720 = vmatmul.mubr.f32.gmra.mrb[16].mxu0 %v454_v54 }
  0x64   : > { %9377 = vmatprep.mubr.msk.f32.mxu0 %vm527_vm0, %v457_v55 }
  0x67   : > { %725 = vmatmul.mubr.f32.gmra.mrb[18].mxu0 %v456_v56 }
  0x68   : > { %9378 = vmatprep.mubr.msk.f32.mxu0 %vm527_vm0, %v459_v57 }
  0x6b   : > { %730 = vmatmul.mubr.f32.gmra.mrb[20].mxu0 %v458_v58 }
  0x6c   : > { %9379 = vmatprep.mubr.msk.f32.mxu0 %vm527_vm0, %v461_v59 }
  0x6f   : > { %735 = vmatmul.mubr.f32.gmra.mrb[22].mxu0 %v460_v60 }
  0x70   : > { %9380 = vmatprep.mubr.msk.f32.mxu0 %vm527_vm0, %v463_v61 }
  0x73   : > { %740 = vmatmul.mubr.f32.gmra.mrb[24].mxu0 %v462_v62 }
  0x74   : > { %9381 = vmatprep.mubr.msk.f32.mxu0 %vm527_vm0, %v465_v63 }
  0x77   : > { %745 = vmatmul.mubr.f32.gmra.mrb[26].mxu0 %v464_v0 }
  0x78   : > { %9382 = vmatprep.mubr.msk.f32.mxu0 %vm527_vm0, %v467_v1 }
  0x7b   : > { %750 = vmatmul.mubr.f32.gmra.mrb[28].mxu0 %v466_v2 }
  0x7c   : > { %9383 = vmatprep.mubr.msk.f32.mxu0 %vm527_vm0, %v469_v4 }
  0x7f   : > { %755 = vmatmul.mubr.f32.gmra.mrb[30].mxu0 %v468_v5 }
  0x80   : > { %9384 = vmatprep.mubr.msk.f32.mxu0 %vm527_vm0, %v471_v6 }
  0x83   : > { %760 = vmatmul.mubr.f32.gmra.mrb[32].mxu0 %v470_v7 }
  0x84   : > { %9385 = vmatprep.mubr.msk.f32.mxu0 %vm527_vm0, %v473_v8 }
  0x87   : > { %765 = vmatmul.mubr.f32.gmra.mrb[34].mxu0 %v472_v9 }
  0x88   : > { %9386 = vmatprep.mubr.msk.f32.mxu0 %vm527_vm0, %v475_v10 }
  0x8b   : > { %770 = vmatmul.mubr.f32.gmra.mrb[36].mxu0 %v474_v11 }
  0x8c   : > { %9387 = vmatprep.mubr.msk.f32.mxu0 %vm527_vm0, %v477_v12 }
  0x8f   : > { %775 = vmatmul.mubr.f32.gmra.mrb[38].mxu0 %v476_v13 }
  0x90   : > { %9388 = vmatprep.mubr.msk.f32.mxu0 %vm527_vm0, %v479_v14 }
  0x93   : > { %780 = vmatmul.mubr.f32.gmra.mrb[40].mxu0 %v478_v15 }
  0x94   : > { %9389 = vmatprep.mubr.msk.f32.mxu0 %vm527_vm0, %v481_v16 }
  0x97   : > { %785 = vmatmul.mubr.f32.gmra.mrb[42].mxu0 %v480_v17 }
  0x98   : > { %9390 = vmatprep.mubr.msk.f32.mxu0 %vm527_vm0, %v483_v18 }
  0x9b   : > { %790 = vmatmul.mubr.f32.gmra.mrb[44].mxu0 %v482_v19 }
  0x9c   : > { %9391 = vmatprep.mubr.msk.f32.mxu0 %vm527_vm0, %v485_v20 }
  0x9f   : > { %795 = vmatmul.mubr.f32.gmra.mrb[46].mxu0 %v484_v21 }
  0xa0   : > { %9392 = vmatprep.mubr.msk.f32.mxu0 %vm527_vm0, %v487_v22 }
  0xa3   : > { %800 = vmatmul.mubr.f32.gmra.mrb[48].mxu0 %v486_v23 }
  0xa4   : > { %9393 = vmatprep.mubr.msk.f32.mxu0 %vm527_vm0, %v489_v24 }
  0xa7   : > { %805 = vmatmul.mubr.f32.gmra.mrb[50].mxu0 %v488_v25 }
  0xa8   : > { %9394 = vmatprep.mubr.msk.f32.mxu0 %vm527_vm0, %v491_v26 }
  0xab   : > { %810 = vmatmul.mubr.f32.gmra.mrb[52].mxu0 %v490_v27 }
  0xac   : > { %9395 = vmatprep.mubr.msk.f32.mxu0 %vm527_vm0, %v493_v28 }
  0xaf   : > { %815 = vmatmul.mubr.f32.gmra.mrb[54].mxu0 %v492_v29 }
  0xb0   : > { %9396 = vmatprep.mubr.msk.f32.mxu0 %vm527_vm0, %v495_v30 }
  0xb3   : > { %820 = vmatmul.mubr.f32.gmra.mrb[56].mxu0 %v494_v31 }
  0xb4   : > { %9398 = vmatprep.mubr.msk.f32.mxu0 %vm864_vm1, %v855_v32 }
 0x116   : > { %v681_v34 = vpop.f32.mrb[0].mxu0 }
 0x117   : > { %v683_v35 = vpop.f32.mrb[1].mxu0  ;;  %v682_v36 = vadd.f32 %v13536_v33, %v681_v34 }
 0x119   : > { %v825_v40 = vmax.f32 %v682_v36, 0.0 }
 0x11a   : > { %v686_v37 = vpop.f32.mrb[2].mxu0 }
 0x11b   : > { %v687_v38 = vadd.f32 %v13536_v33, %v686_v37  ;;  %v688_v39 = vpop.f32.mrb[3].mxu0 }
 0x11d   : > { %v826_v41 = vmax.f32 %v687_v38, 0.0 }
 0x11e   : > { %v691_v42 = vpop.f32.mrb[4].mxu0 }
 0x11f   : > { %v13540_v43 = vpack.c.bf16 %v826_v41, %v825_v40  ;;  %v693_v44 = vpop.f32.mrb[5].mxu0  ;;  %v692_v45 = vadd.f32 %v13536_v33, %v691_v42 }
 0x121   : > { %11486 = vmatpush1.bf16.msra.mxu0 %v13540_v43  ;;  %v827_v49 = vmax.f32 %v692_v45, 0.0 }
 0x122   : > { %v696_v46 = vpop.f32.mrb[6].mxu0  ;;  %11487 = vmatprep.subr.bf16.mxu0 %v13227_v3 }
 0x123   : > { %v697_v47 = vadd.f32 %v13536_v33, %v696_v46  ;;  %v698_v48 = vpop.f32.mrb[7].mxu0 }
 0x125   : > { %v828_v50 = vmax.f32 %v697_v47, 0.0 }
 0x126   : > { %v701_v51 = vpop.f32.mrb[8].mxu0 }
 0x127   : > { %v13546_v52 = vpack.c.bf16 %v828_v50, %v827_v49  ;;  %v703_v53 = vpop.f32.mrb[9].mxu0  ;;  %v702_v54 = vadd.f32 %v13536_v33, %v701_v51 }
 0x129   : > { %11489 = vmatpush1.bf16.msra.mxu0 %v13546_v52  ;;  %v829_v58 = vmax.f32 %v702_v54, 0.0 }
 0x12a   : > { %v706_v55 = vpop.f32.mrb[10].mxu0  ;;  %11490 = vmatprep.subr.bf16.mxu0 %v13227_v3 }
 0x12b   : > { %v707_v56 = vadd.f32 %v13536_v33, %v706_v55  ;;  %v708_v57 = vpop.f32.mrb[11].mxu0 }
 0x12d   : > { %v830_v59 = vmax.f32 %v707_v56, 0.0 }
 0x12e   : > { %v711_v60 = vpop.f32.mrb[12].mxu0 }
 0x12f   : > { %v13552_v61 = vpack.c.bf16 %v830_v59, %v829_v58  ;;  %v713_v62 = vpop.f32.mrb[13].mxu0  ;;  %v712_v63 = vadd.f32 %v13536_v33, %v711_v60 }
 0x131   : > { %11492 = vmatpush1.bf16.msra.mxu0 %v13552_v61  ;;  %v831_v4 = vmax.f32 %v712_v63, 0.0 }
 0x132   : > { %v716_v0 = vpop.f32.mrb[14].mxu0  ;;  %11493 = vmatprep.subr.bf16.mxu0 %v13227_v3 }
 0x133   : > { %v717_v1 = vadd.f32 %v13536_v33, %v716_v0  ;;  %v718_v2 = vpop.f32.mrb[15].mxu0 }
 0x135   : > { %v832_v5 = vmax.f32 %v717_v1, 0.0 }
 0x136   : > { %v721_v6 = vpop.f32.mrb[16].mxu0 }
 0x137   : > { %v13558_v7 = vpack.c.bf16 %v832_v5, %v831_v4  ;;  %v723_v8 = vpop.f32.mrb[17].mxu0  ;;  %v722_v9 = vadd.f32 %v13536_v33, %v721_v6 }
 0x139   : > { %11495 = vmatpush1.bf16.msra.mxu0 %v13558_v7  ;;  %v833_v13 = vmax.f32 %v722_v9, 0.0 }
 0x13a   : > { %v726_v10 = vpop.f32.mrb[18].mxu0  ;;  %11496 = vmatprep.subr.bf16.mxu0 %v13227_v3 }
 0x13b   : > { %v727_v11 = vadd.f32 %v13536_v33, %v726_v10  ;;  %v728_v12 = vpop.f32.mrb[19].mxu0 }
 0x13d   : > { %v834_v14 = vmax.f32 %v727_v11, 0.0 }
 0x13e   : > { %v731_v15 = vpop.f32.mrb[20].mxu0 }
 0x13f   : > { %v13564_v16 = vpack.c.bf16 %v834_v14, %v833_v13  ;;  %v733_v17 = vpop.f32.mrb[21].mxu0  ;;  %v732_v18 = vadd.f32 %v13536_v33, %v731_v15 }
 0x141   : > { %11498 = vmatpush1.bf16.msra.mxu0 %v13564_v16  ;;  %v835_v22 = vmax.f32 %v732_v18, 0.0 }
 0x142   : > { %v736_v19 = vpop.f32.mrb[22].mxu0  ;;  %11499 = vmatprep.subr.bf16.mxu0 %v13227_v3 }
 0x143   : > { %v737_v20 = vadd.f32 %v13536_v33, %v736_v19  ;;  %v738_v21 = vpop.f32.mrb[23].mxu0 }
 0x145   : > { %v836_v23 = vmax.f32 %v737_v20, 0.0 }
 0x146   : > { %v741_v24 = vpop.f32.mrb[24].mxu0 }
 0x147   : > { %v13570_v25 = vpack.c.bf16 %v836_v23, %v835_v22  ;;  %v743_v26 = vpop.f32.mrb[25].mxu0  ;;  %v742_v27 = vadd.f32 %v13536_v33, %v741_v24 }
 0x149   : > { %11501 = vmatpush1.bf16.msra.mxu0 %v13570_v25  ;;  %v837_v31 = vmax.f32 %v742_v27, 0.0 }
 0x14a   : > { %v746_v28 = vpop.f32.mrb[26].mxu0  ;;  %11502 = vmatprep.subr.bf16.mxu0 %v13227_v3 }
 0x14b   : > { %v747_v29 = vadd.f32 %v13536_v33, %v746_v28  ;;  %v748_v30 = vpop.f32.mrb[27].mxu0 }
 0x14d   : > { %v838_v32 = vmax.f32 %v747_v29, 0.0 }
 0x14e   : > { %v751_v34 = vpop.f32.mrb[28].mxu0 }
 0x14f   : > { %v13576_v35 = vpack.c.bf16 %v838_v32, %v837_v31  ;;  %v753_v36 = vpop.f32.mrb[29].mxu0  ;;  %v752_v37 = vadd.f32 %v13536_v33, %v751_v34 }
 0x151   : > { %11504 = vmatpush1.bf16.msra.mxu0 %v13576_v35  ;;  %v839_v41 = vmax.f32 %v752_v37, 0.0 }
 0x152   : > { %v756_v38 = vpop.f32.mrb[30].mxu0  ;;  %11505 = vmatprep.subr.bf16.mxu0 %v13227_v3 }
 0x153   : > { %v757_v39 = vadd.f32 %v13536_v33, %v756_v38  ;;  %v758_v40 = vpop.f32.mrb[31].mxu0 }
 0x155   : > { %v840_v42 = vmax.f32 %v757_v39, 0.0 }
 0x156   : > { %v761_v44 = vpop.f32.mrb[32].mxu0 }
 0x157   : > { %v13582_v45 = vpack.c.bf16 %v840_v42, %v839_v41  ;;  %v763_v46 = vpop.f32.mrb[33].mxu0  ;;  %v762_v47 = vadd.f32 %v13536_v33, %v761_v44 }
 0x159   : > { %11507 = vmatpush1.bf16.msra.mxu0 %v13582_v45  ;;  %v841_v51 = vmax.f32 %v762_v47, 0.0 }
 0x15a   : > { %v766_v48 = vpop.f32.mrb[34].mxu0  ;;  %11508 = vmatprep.subr.bf16.mxu0 %v13227_v3 }
 0x15b   : > { %v767_v49 = vadd.f32 %v13536_v33, %v766_v48  ;;  %v768_v50 = vpop.f32.mrb[35].mxu0 }
 0x15c   : > { %v854_v50 = vld [vmem:[%s17581_s3] sm:$0xff] }
 0x15d   : > { %v842_v53 = vmax.f32 %v767_v49, 0.0  ;;  %v13228_v49 = vmov 0.0  }
 0x15e   : > { %v771_v54 = vpop.f32.mrb[36].mxu0  ;;  %10800 = vmatprep.mubr.msk.f32.mxu1 %vm13229_vm3, %v13228_v49 }
 0x15f   : > { %v13588_v55 = vpack.c.bf16 %v842_v53, %v841_v51  ;;  %v773_v56 = vpop.f32.mrb[37].mxu0  ;;  %v772_v57 = vadd.f32 %v13536_v33, %v771_v54  ;;  %v857_v51 = vld [vmem:[%s17581_s3 + $0x18] sm:$0xff]  ;;  %v859_v53 = vld [vmem:[%s17581_s3 + $0x28] sm:$0xff]  ;;  %v858_v54 = vld [vmem:[%s17581_s3 + $0x20] sm:$0xff] }
 0x160   : > { %v861_v56 = vld [vmem:[%s17581_s3 + $0x38] sm:$0xff] }
 0x161   : > { %11510 = vmatpush1.bf16.msra.mxu0 %v13588_v55  ;;  %v843_v62 = vmax.f32 %v772_v57, 0.0  ;;  %v860_v57 = vld [vmem:[%s17581_s3 + $0x30] sm:$0xff] }
 0x162   : > { %v776_v58 = vpop.f32.mrb[38].mxu0  ;;  %11511 = vmatprep.subr.bf16.mxu0 %v13227_v3 }
 0x163   : > { %v777_v59 = vadd.f32 %v13536_v33, %v776_v58  ;;  %v778_v60 = vpop.f32.mrb[39].mxu0  ;;  %v863_v58 = vld [vmem:[%s17581_s3 + $0x48] sm:$0xf] }
 0x164   : > { %v9404_v60 = vld [vmem:[%s17581_s3 + $0x58] sm:$0xff] }
 0x165   : > { %v844_v63 = vmax.f32 %v777_v59, 0.0  ;;  %v862_v59 = vld [vmem:[%s17581_s3 + $0x40] sm:$0xf] }
 0x166   : > { %v781_v0 = vpop.f32.mrb[40].mxu0 }
 0x167   : > { %v13594_v1 = vpack.c.bf16 %v844_v63, %v843_v62  ;;  %v783_v2 = vpop.f32.mrb[41].mxu0  ;;  %v782_v4 = vadd.f32 %v13536_v33, %v781_v0  ;;  %v9403_v62 = vld [vmem:[%s17581_s3 + $0x50] sm:$0xff]  ;;  %v9406_v63 = vld [vmem:[%s17581_s3 + $0x68] sm:$0xff]  ;;  %v9405_v0 = vld [vmem:[%s17581_s3 + $0x60] sm:$0xff] }
 0x168   : > { %v9408_v2 = vld [vmem:[%s17581_s3 + $0x78] sm:$0xff] }
 0x169   : > { %11513 = vmatpush1.bf16.msra.mxu0 %v13594_v1  ;;  %v845_v9 = vmax.f32 %v782_v4, 0.0  ;;  %v9407_v4 = vld [vmem:[%s17581_s3 + $0x70] sm:$0xff] }
 0x16a   : > { %v786_v5 = vpop.f32.mrb[42].mxu0  ;;  %11514 = vmatprep.subr.bf16.mxu0 %v13227_v3 }
 0x16b   : > { %v787_v6 = vadd.f32 %v13536_v33, %v786_v5  ;;  %v788_v8 = vpop.f32.mrb[43].mxu0  ;;  %v9410_v5 = vld [vmem:[%s17581_s3 + $0x88] sm:$0xff] }
 0x16c   : > { %v9412_v8 = vld [vmem:[%s17581_s3 + $0x98] sm:$0xf] }
 0x16d   : > { %v846_v10 = vmax.f32 %v787_v6, 0.0  ;;  %v9409_v6 = vld [vmem:[%s17581_s3 + $0x80] sm:$0xff] }
 0x16e   : > { %v791_v11 = vpop.f32.mrb[44].mxu0 }
 0x16f   : > { %v13600_v12 = vpack.c.bf16 %v846_v10, %v845_v9  ;;  %v793_v13 = vpop.f32.mrb[45].mxu0  ;;  %v792_v14 = vadd.f32 %v13536_v33, %v791_v11  ;;  %v9411_v9 = vld [vmem:[%s17581_s3 + $0x90] sm:$0xf]  ;;  %v9434_v10 = vld [vmem:[%s17581_s3 + $0xa8] sm:$0xff]  ;;  %v9433_v11 = vld [vmem:[%s17581_s3 + $0xa0] sm:$0xff] }
 0x170   : > { %v9436_v13 = vld [vmem:[%s17581_s3 + $0xb8] sm:$0xff] }
 0x171   : > { %11516 = vmatpush1.bf16.msra.mxu0 %v13600_v12  ;;  %v847_v19 = vmax.f32 %v792_v14, 0.0  ;;  %v9435_v14 = vld [vmem:[%s17581_s3 + $0xb0] sm:$0xff] }
 0x172   : > { %v796_v15 = vpop.f32.mrb[46].mxu0  ;;  %11517 = vmatprep.subr.bf16.mxu0 %v13227_v3 }
 0x173   : > { %v797_v17 = vadd.f32 %v13536_v33, %v796_v15  ;;  %v798_v18 = vpop.f32.mrb[47].mxu0  ;;  %v9438_v15 = vld [vmem:[%s17581_s3 + $0xc8] sm:$0xff] }
 0x174   : > { %v9420_v18 = vld [vmem:[%s17582_s4 + $0x28] sm:$0xff] }
 0x175   : > { %v848_v20 = vmax.f32 %v797_v17, 0.0  ;;  %v9419_v17 = vld [vmem:[%s17582_s4 + $0x20] sm:$0xff] }
 0x176   : > { %v801_v21 = vpop.f32.mrb[48].mxu0 }
 0x177   : > { %v13606_v22 = vpack.c.bf16 %v848_v20, %v847_v19  ;;  %v803_v23 = vpop.f32.mrb[49].mxu0  ;;  %v802_v24 = vadd.f32 %v13536_v33, %v801_v21  ;;  %v9421_v19 = vld [vmem:[%s17582_s4 + $0x30] sm:$0xff]  ;;  %v9437_v20 = vld [vmem:[%s17581_s3 + $0xc0] sm:$0xff]  ;;  %v11569_v21 = vpack.c.bf16 %v9420_v18, %v9419_v17 }
 0x178   : > { %v9422_v23 = vld [vmem:[%s17582_s4 + $0x38] sm:$0xff] }
 0x179   : > { %11519 = vmatpush1.bf16.msra.mxu0 %v13606_v22  ;;  %v849_v29 = vmax.f32 %v802_v24, 0.0  ;;  %v9440_v24 = vld [vmem:[%s17581_s3 + $0xd8] sm:$0xff]  ;;  %11570 = vmatpush3.bf16.msra.mxu1 %v11569_v21  ;;  %v9499_v21 = vld [vmem:[%s17582_s4 + $0x80] sm:$0xff] }
 0x17a   : > { %v806_v26 = vpop.f32.mrb[50].mxu0  ;;  %11520 = vmatprep.subr.bf16.mxu0 %v13227_v3  ;;  %11571 = vmatprep.subr.bf16.mxu1 %v13227_v3 }
 0x17b   : > { %v807_v27 = vadd.f32 %v13536_v33, %v806_v26  ;;  %v808_v28 = vpop.f32.mrb[51].mxu0  ;;  %v11572_v26 = vpack.c.bf16 %v9422_v23, %v9421_v19  ;;  %v9500_v23 = vld [vmem:[%s17582_s4 + $0x88] sm:$0xff] }
 0x17c   : > { %v9442_v28 = vld [vmem:[%s17581_s3 + $0xe8] sm:$0xf] }
 0x17d   : > { %v850_v30 = vmax.f32 %v807_v27, 0.0  ;;  %v9439_v27 = vld [vmem:[%s17581_s3 + $0xd0] sm:$0xff]  ;;  %11573 = vmatpush3.bf16.msra.mxu1 %v11572_v26  ;;  %v11719_v26 = vpack.c.bf16 %v9500_v23, %v9499_v21 }
 0x17e   : > { %v811_v31 = vpop.f32.mrb[52].mxu0  ;;  %11574 = vmatprep.subr.bf16.mxu1 %v13227_v3 }
 0x17f   : > { %v13612_v32 = vpack.c.bf16 %v850_v30, %v849_v29  ;;  %v813_v34 = vpop.f32.mrb[53].mxu0  ;;  %v812_v36 = vadd.f32 %v13536_v33, %v811_v31  ;;  %v9441_v29 = vld [vmem:[%s17581_s3 + $0xe0] sm:$0xf]  ;;  %v9459_v30 = vld [vmem:[%s17581_s3 + $0xf8] sm:$0xff]  ;;  %v9458_v31 = vld [vmem:[%s17581_s3 + $0xf0] sm:$0xff] }
 0x180   : > { %v9461_v34 = vld [vmem:[%s17581_s3 + $0x108] sm:$0xff] }
 0x181   : > { %11522 = vmatpush1.bf16.msra.mxu0 %v13612_v32  ;;  %v851_v40 = vmax.f32 %v812_v36, 0.0  ;;  %v9460_v36 = vld [vmem:[%s17581_s3 + $0x100] sm:$0xff] }
 0x182   : > { %v816_v37 = vpop.f32.mrb[54].mxu0  ;;  %11523 = vmatprep.subr.bf16.mxu0 %v13227_v3 }
 0x183   : > { %v817_v38 = vadd.f32 %v13536_v33, %v816_v37  ;;  %v818_v39 = vpop.f32.mrb[55].mxu0  ;;  %v9463_v37 = vld [vmem:[%s17581_s3 + $0x118] sm:$0xff] }
 0x184   : > { %v9465_v39 = vld [vmem:[%s17581_s3 + $0x128] sm:$0xff] }
 0x185   : > { %v852_v41 = vmax.f32 %v817_v38, 0.0  ;;  %v9462_v38 = vld [vmem:[%s17581_s3 + $0x110] sm:$0xff] }
 0x186   : > { %v821_v42 = vpop.f32.mrb[56].mxu0 }
 0x187   : > { %v13618_v44 = vpack.c.bf16 %v852_v41, %v851_v40  ;;  %v822_v46 = vadd.f32 %v13536_v33, %v821_v42  ;;  %v823_v47 = vpop.f32.mrb[57].mxu0  ;;  %v856_v33 = vld [vmem:[%s17581_s3 + $0x10] sm:$0xff]  ;;  %v9464_v40 = vld [vmem:[%s17581_s3 + $0x120] sm:$0xff]  ;;  %v9467_v41 = vld [vmem:[%s17581_s3 + $0x138] sm:$0xf] }
 0x188   : > { %v9466_v42 = vld [vmem:[%s17581_s3 + $0x130] sm:$0xf] }
 0x189   : > { %v13621_v48 = vmax.f32 %v822_v46, 0.0  ;;  %11525 = vmatpush1.bf16.msra.mxu0 %v13618_v44  ;;  %v9484_v46 = vld [vmem:[%s17581_s3 + $0x148] sm:$0xff] }
 0x18a   : > { %940 = vmatprep.subr.mxu0 %v13228_v49 }
 0x18d   : > { %9397 = vmatpush1.msk.msra.mxu0 %vm880_vm2, %v13621_v48 }
 0x18e   : > { %11526 = vmatprep.subr.bf16.mxu0 %v13227_v3  ;;  %949 = vmatmul.mubr.f32.vlgmr.msra.gmra.mrb[58].mxu0 %v854_v50 }
 0x18f   : > { %11528 = vmatpush1.bf16.msra.mxu0 %v13540_v43  ;;  %9399 = vmatprep.mubr.msk.f32.mxu0 %vm864_vm1, %v857_v51 }
 0x190   : > { %11529 = vmatprep.subr.bf16.mxu0 %v13227_v3 }
 0x192   : > { %954 = vmatmul.mubr.f32.gmra.mrb[60].mxu0 %v856_v33 }
 0x193   : > { %11531 = vmatpush1.bf16.msra.mxu0 %v13546_v52  ;;  %9400 = vmatprep.mubr.msk.f32.mxu0 %vm864_vm1, %v859_v53 }
 0x194   : > { %11532 = vmatprep.subr.bf16.mxu0 %v13227_v3 }
 0x196   : > { %959 = vmatmul.mubr.f32.gmra.mrb[62].mxu0 %v858_v54 }
 0x197   : > { %11534 = vmatpush1.bf16.msra.mxu0 %v13552_v61  ;;  %9401 = vmatprep.mubr.msk.f32.mxu0 %vm864_vm1, %v861_v56 }
 0x198   : > { %11535 = vmatprep.subr.bf16.mxu0 %v13227_v3 }
 0x19a   : > { %964 = vmatmul.mubr.f32.gmra.mrb[64].mxu0 %v860_v57 }
 0x19b   : > { %11537 = vmatpush1.bf16.msra.mxu0 %v13558_v7  ;;  %9402 = vmatprep.mubr.msk.f32.mxu0 %vm864_vm1, %v863_v58 }
 0x19c   : > { %11538 = vmatprep.subr.bf16.mxu0 %v13227_v3 }
 0x19e   : > { %969 = vmatmul.mubr.f32.gmra.mrb[66].mxu0 %v862_v59 }
 0x19f   : > { %11540 = vmatpush1.bf16.msra.mxu0 %v13564_v16  ;;  %9414 = vmatprep.mubr.msk.f32.mxu0 %vm864_vm1, %v9404_v60  ;;  %v9483_v60 = vld [vmem:[%s17581_s3 + $0x140] sm:$0xff] }
 0x1a0   : > { %11541 = vmatprep.subr.bf16.mxu0 %v13227_v3 }
 0x1a3   : > { %11543 = vmatpush1.bf16.msra.mxu0 %v13570_v25 }
 0x1a4   : > { %11544 = vmatprep.subr.bf16.mxu0 %v13227_v3 }
 0x1a7   : > { %11546 = vmatpush1.bf16.msra.mxu0 %v13576_v35 }
 0x1a8   : > { %11547 = vmatprep.subr.bf16.mxu0 %v13227_v3 }
 0x1ab   : > { %11549 = vmatpush1.bf16.msra.mxu0 %v13582_v45 }
 0x1ac   : > { %11550 = vmatprep.subr.bf16.mxu0 %v13227_v3 }
 0x1af   : > { %11552 = vmatpush1.bf16.msra.mxu0 %v13588_v55 }
 0x1b0   : > { %11553 = vmatprep.subr.bf16.mxu0 %v13227_v3 }
 0x1b3   : > { %11555 = vmatpush1.bf16.msra.mxu0 %v13594_v1 }
 0x1b4   : > { %11556 = vmatprep.subr.bf16.mxu0 %v13227_v3 }
 0x1b7   : > { %11558 = vmatpush1.bf16.msra.mxu0 %v13600_v12 }
 0x1b8   : > { %11559 = vmatprep.subr.bf16.mxu0 %v13227_v3 }
 0x1bb   : > { %11561 = vmatpush1.bf16.msra.mxu0 %v13606_v22 }
 0x1bc   : > { %11562 = vmatprep.subr.bf16.mxu0 %v13227_v3 }
 0x1bf   : > { %11564 = vmatpush1.bf16.msra.mxu0 %v13612_v32 }
 0x1c0   : > { %11565 = vmatprep.subr.bf16.mxu0 %v13227_v3 }
 0x1c3   : > { %11567 = vmatpush1.bf16.msra.mxu0 %v13618_v44 }
 0x1c4   : > { %1060 = vmatprep.subr.mxu0 %v13228_v49 }
 0x1c7   : > { %9413 = vmatpush1.msk.msra.mxu0 %vm880_vm2, %v13621_v48 }
 0x1c8   : > { %1069 = vmatmul.mubr.f32.vlgmr.msra.gmra.mrb[68].mxu0 %v9403_v62  ;;  %11580 = vmatprep.subr.bf16.mxu0 %v13227_v3  ;;  %v9486_v62 = vld [vmem:[%s17581_s3 + $0x158] sm:$0xff] }
 0x1c9   : > { %11582 = vmatpush1.bf16.msra.mxu0 %v13540_v43  ;;  %9415 = vmatprep.mubr.msk.f32.mxu0 %vm864_vm1, %v9406_v63  ;;  %v9485_v63 = vld [vmem:[%s17581_s3 + $0x150] sm:$0xff] }
 0x1ca   : > { %11583 = vmatprep.subr.bf16.mxu0 %v13227_v3 }
 0x1cc   : > { %1074 = vmatmul.mubr.f32.gmra.mrb[70].mxu0 %v9405_v0  ;;  %v9488_v0 = vld [vmem:[%s17581_s3 + $0x168] sm:$0xff] }
 0x1cd   : > { %11585 = vmatpush1.bf16.msra.mxu0 %v13546_v52  ;;  %9416 = vmatprep.mubr.msk.f32.mxu0 %vm864_vm1, %v9408_v2  ;;  %v9487_v2 = vld [vmem:[%s17581_s3 + $0x160] sm:$0xff] }
 0x1ce   : > { %11586 = vmatprep.subr.bf16.mxu0 %v13227_v3 }
 0x1d0   : > { %1079 = vmatmul.mubr.f32.gmra.mrb[72].mxu0 %v9407_v4  ;;  %v9490_v4 = vld [vmem:[%s17581_s3 + $0x178] sm:$0xff] }
 0x1d1   : > { %11588 = vmatpush1.bf16.msra.mxu0 %v13552_v61  ;;  %9417 = vmatprep.mubr.msk.f32.mxu0 %vm864_vm1, %v9410_v5  ;;  %v9489_v5 = vld [vmem:[%s17581_s3 + $0x170] sm:$0xff] }
 0x1d2   : > { %11589 = vmatprep.subr.bf16.mxu0 %v13227_v3 }
 0x1d4   : > { %1084 = vmatmul.mubr.f32.gmra.mrb[74].mxu0 %v9409_v6  ;;  %v9492_v6 = vld [vmem:[%s17581_s3 + $0x188] sm:$0xf] }
 0x1d5   : > { %11591 = vmatpush1.bf16.msra.mxu0 %v13558_v7  ;;  %9418 = vmatprep.mubr.msk.f32.mxu0 %vm864_vm1, %v9412_v8  ;;  %v9491_v8 = vld [vmem:[%s17581_s3 + $0x180] sm:$0xf] }
 0x1d6   : > { %11592 = vmatprep.subr.bf16.mxu0 %v13227_v3 }
 0x1d8   : > { %1089 = vmatmul.mubr.f32.gmra.mrb[76].mxu0 %v9411_v9  ;;  %v974_v9 = vld [vmem:[%s17582_s4] sm:$0xff] }
 0x1d9   : > { %11594 = vmatpush1.bf16.msra.mxu0 %v13564_v16  ;;  %9444 = vmatprep.mubr.msk.f32.mxu0 %vm864_vm1, %v9434_v10  ;;  %v975_v10 = vld [vmem:[%s17582_s4 + $0x8] sm:$0xff] }
 0x1da   : > { %11595 = vmatprep.subr.bf16.mxu0 %v13227_v3 }
 0x1dd   : > { %11597 = vmatpush1.bf16.msra.mxu0 %v13570_v25 }
 0x1de   : > { %11598 = vmatprep.subr.bf16.mxu0 %v13227_v3 }
 0x1e1   : > { %11600 = vmatpush1.bf16.msra.mxu0 %v13576_v35 }
 0x1e2   : > { %11601 = vmatprep.subr.bf16.mxu0 %v13227_v3 }
 0x1e5   : > { %11603 = vmatpush1.bf16.msra.mxu0 %v13582_v45 }
 0x1e6   : > { %11604 = vmatprep.subr.bf16.mxu0 %v13227_v3 }
 0x1e9   : > { %11606 = vmatpush1.bf16.msra.mxu0 %v13588_v55 }
 0x1ea   : > { %11607 = vmatprep.subr.bf16.mxu0 %v13227_v3 }
 0x1ed   : > { %11609 = vmatpush1.bf16.msra.mxu0 %v13594_v1 }
 0x1ee   : > { %11610 = vmatprep.subr.bf16.mxu0 %v13227_v3 }
 0x1f1   : > { %11612 = vmatpush1.bf16.msra.mxu0 %v13600_v12 }
 0x1f2   : > { %11613 = vmatprep.subr.bf16.mxu0 %v13227_v3 }
 0x1f5   : > { %11615 = vmatpush1.bf16.msra.mxu0 %v13606_v22 }
 0x1f6   : > { %11616 = vmatprep.subr.bf16.mxu0 %v13227_v3 }
 0x1f9   : > { %11618 = vmatpush1.bf16.msra.mxu0 %v13612_v32 }
 0x1fa   : > { %11619 = vmatprep.subr.bf16.mxu0 %v13227_v3 }
 0x1fd   : > { %11621 = vmatpush1.bf16.msra.mxu0 %v13618_v44 }
 0x1fe   : > { %1392 = vmatprep.subr.mxu0 %v13228_v49 }
 0x201   : > { %9443 = vmatpush1.msk.msra.mxu0 %vm880_vm2, %v13621_v48 }
 0x202   : > { %1401 = vmatmul.mubr.f32.vlgmr.msra.gmra.mrb[78].mxu0 %v9433_v11  ;;  %11628 = vmatprep.subr.bf16.mxu0 %v13227_v3  ;;  %v11575_v11 = vpack.c.bf16 %v975_v10, %v974_v9 }
 0x203   : > { %11630 = vmatpush1.bf16.msra.mxu0 %v13540_v43  ;;  %9445 = vmatprep.mubr.msk.f32.mxu0 %vm864_vm1, %v9436_v13  ;;  %v976_v13 = vld [vmem:[%s17582_s4 + $0x10] sm:$0xff] }
 0x204   : > { %11631 = vmatprep.subr.bf16.mxu0 %v13227_v3 }
 0x206   : > { %1406 = vmatmul.mubr.f32.gmra.mrb[80].mxu0 %v9435_v14  ;;  %v977_v14 = vld [vmem:[%s17582_s4 + $0x18] sm:$0xff] }
 0x207   : > { %11633 = vmatpush1.bf16.msra.mxu0 %v13546_v52  ;;  %9446 = vmatprep.mubr.msk.f32.mxu0 %vm864_vm1, %v9438_v15  ;;  %v11578_v18 = vpack.c.bf16 %v977_v14, %v976_v13 }
 0x208   : > { %11634 = vmatprep.subr.bf16.mxu0 %v13227_v3 }
 0x20a   : > { %1411 = vmatmul.mubr.f32.gmra.mrb[82].mxu0 %v9437_v20 }
 0x20b   : > { %11636 = vmatpush1.bf16.msra.mxu0 %v13552_v61  ;;  %9447 = vmatprep.mubr.msk.f32.mxu0 %vm864_vm1, %v9440_v24  ;;  %v9501_v24 = vld [vmem:[%s17582_s4 + $0x90] sm:$0xff] }
 0x20c   : > { %11637 = vmatprep.subr.bf16.mxu0 %v13227_v3 }
 0x20e   : > { %1416 = vmatmul.mubr.f32.gmra.mrb[84].mxu0 %v9439_v27  ;;  %v9502_v27 = vld [vmem:[%s17582_s4 + $0x98] sm:$0xff] }
 0x20f   : > { %11639 = vmatpush1.bf16.msra.mxu0 %v13558_v7  ;;  %9448 = vmatprep.mubr.msk.f32.mxu0 %vm864_vm1, %v9442_v28 }
 0x210   : > { %11640 = vmatprep.subr.bf16.mxu0 %v13227_v3 }
 0x212   : > { %1421 = vmatmul.mubr.f32.gmra.mrb[86].mxu0 %v9441_v29  ;;  %v11722_v29 = vpack.c.bf16 %v9502_v27, %v9501_v24 }
 0x213   : > { %11642 = vmatpush1.bf16.msra.mxu0 %v13564_v16  ;;  %9469 = vmatprep.mubr.msk.f32.mxu0 %vm864_vm1, %v9459_v30 }
 0x214   : > { %11643 = vmatprep.subr.bf16.mxu0 %v13227_v3 }
 0x217   : > { %11645 = vmatpush1.bf16.msra.mxu0 %v13570_v25 }
 0x218   : > { %11646 = vmatprep.subr.bf16.mxu0 %v13227_v3 }
 0x21b   : > { %11648 = vmatpush1.bf16.msra.mxu0 %v13576_v35 }
 0x21c   : > { %11649 = vmatprep.subr.bf16.mxu0 %v13227_v3 }
 0x21f   : > { %11651 = vmatpush1.bf16.msra.mxu0 %v13582_v45 }
 0x220   : > { %11652 = vmatprep.subr.bf16.mxu0 %v13227_v3 }
 0x223   : > { %11654 = vmatpush1.bf16.msra.mxu0 %v13588_v55 }
 0x224   : > { %11655 = vmatprep.subr.bf16.mxu0 %v13227_v3 }
 0x227   : > { %11657 = vmatpush1.bf16.msra.mxu0 %v13594_v1 }
 0x228   : > { %11658 = vmatprep.subr.bf16.mxu0 %v13227_v3 }
 0x22b   : > { %11660 = vmatpush1.bf16.msra.mxu0 %v13600_v12 }
 0x22c   : > { %11661 = vmatprep.subr.bf16.mxu0 %v13227_v3 }
 0x22f   : > { %11663 = vmatpush1.bf16.msra.mxu0 %v13606_v22 }
 0x230   : > { %11664 = vmatprep.subr.bf16.mxu0 %v13227_v3 }
 0x233   : > { %11666 = vmatpush1.bf16.msra.mxu0 %v13612_v32 }
 0x234   : > { %11667 = vmatprep.subr.bf16.mxu0 %v13227_v3 }
 0x237   : > { %11669 = vmatpush1.bf16.msra.mxu0 %v13618_v44 }
 0x238   : > { %1623 = vmatprep.subr.mxu0 %v13228_v49 }
 0x23b   : > { %9468 = vmatpush1.msk.msra.mxu0 %vm880_vm2, %v13621_v48 }
 0x23c   : > { %1632 = vmatmul.mubr.f32.vlgmr.msra.gmra.mrb[88].mxu0 %v9458_v31  ;;  %11676 = vmatprep.subr.bf16.mxu0 %v13227_v3 }
 0x23d   : > { %11678 = vmatpush1.bf16.msra.mxu0 %v13540_v43  ;;  %9470 = vmatprep.mubr.msk.f32.mxu0 %vm864_vm1, %v9461_v34 }
 0x23e   : > { %11679 = vmatprep.subr.bf16.mxu0 %v13227_v3 }
 0x240   : > { %1637 = vmatmul.mubr.f32.gmra.mrb[90].mxu0 %v9460_v36  ;;  %v9449_v36 = vld [vmem:[%s17582_s4 + $0x40] sm:$0xff] }
 0x241   : > { %11681 = vmatpush1.bf16.msra.mxu0 %v13546_v52  ;;  %9471 = vmatprep.mubr.msk.f32.mxu0 %vm864_vm1, %v9463_v37  ;;  %v9450_v37 = vld [vmem:[%s17582_s4 + $0x48] sm:$0xff] }
 0x242   : > { %11682 = vmatprep.subr.bf16.mxu0 %v13227_v3 }
 0x244   : > { %1642 = vmatmul.mubr.f32.gmra.mrb[92].mxu0 %v9462_v38 }
 0x245   : > { %11684 = vmatpush1.bf16.msra.mxu0 %v13552_v61  ;;  %9472 = vmatprep.mubr.msk.f32.mxu0 %vm864_vm1, %v9465_v39 }
 0x246   : > { %11685 = vmatprep.subr.bf16.mxu0 %v13227_v3 }
 0x248   : > { %1647 = vmatmul.mubr.f32.gmra.mrb[94].mxu0 %v9464_v40  ;;  %v11623_v40 = vpack.c.bf16 %v9450_v37, %v9449_v36 }
 0x249   : > { %11687 = vmatpush1.bf16.msra.mxu0 %v13558_v7  ;;  %9473 = vmatprep.mubr.msk.f32.mxu0 %vm864_vm1, %v9467_v41  ;;  %v9451_v41 = vld [vmem:[%s17582_s4 + $0x50] sm:$0xff] }
 0x24a   : > { %11688 = vmatprep.subr.bf16.mxu0 %v13227_v3 }
 0x24c   : > { %1652 = vmatmul.mubr.f32.gmra.mrb[96].mxu0 %v9466_v42  ;;  %v9452_v42 = vld [vmem:[%s17582_s4 + $0x58] sm:$0xff] }
 0x24d   : > { %11690 = vmatpush1.bf16.msra.mxu0 %v13564_v16  ;;  %9494 = vmatprep.mubr.msk.f32.mxu0 %vm864_vm1, %v9484_v46  ;;  %v11626_v46 = vpack.c.bf16 %v9452_v42, %v9451_v41 }
 0x24e   : > { %11691 = vmatprep.subr.bf16.mxu0 %v13227_v3 }
 0x251   : > { %11693 = vmatpush1.bf16.msra.mxu0 %v13570_v25 }
 0x252   : > { %11694 = vmatprep.subr.bf16.mxu0 %v13227_v3 }
 0x255   : > { %11696 = vmatpush1.bf16.msra.mxu0 %v13576_v35 }
 0x256   : > { %11697 = vmatprep.subr.bf16.mxu0 %v13227_v3 }
 0x259   : > { %11699 = vmatpush1.bf16.msra.mxu0 %v13582_v45 }
 0x25a   : > { %11700 = vmatprep.subr.bf16.mxu0 %v13227_v3 }
 0x25d   : > { %11702 = vmatpush1.bf16.msra.mxu0 %v13588_v55 }
 0x25e   : > { %11703 = vmatprep.subr.bf16.mxu0 %v13227_v3 }
 0x261   : > { %11705 = vmatpush1.bf16.msra.mxu0 %v13594_v1  ;;  %v13896_v47 = vpop.f32.mrb[58].mxu0 }
 0x262   : > { %v952_v50 = vpop.f32.mrb[59].mxu0  ;;  %11706 = vmatprep.subr.bf16.mxu0 %v13227_v3 }
 0x263   : > { %v9475_v50 = vld [vmem:[%s17582_s4 + $0x68] sm:$0xff] }
 0x265   : > { %11708 = vmatpush1.bf16.msra.mxu0 %v13600_v12  ;;  %v13900_v51 = vpop.f32.mrb[60].mxu0 }
 0x266   : > { %11709 = vmatprep.subr.bf16.mxu0 %v13227_v3  ;;  %v957_v33 = vpop.f32.mrb[61].mxu0 }
 0x267   : > { %v9476_v33 = vld [vmem:[%s17582_s4 + $0x70] sm:$0xff] }
 0x269   : > { %11711 = vmatpush1.bf16.msra.mxu0 %v13606_v22  ;;  %v13904_v53 = vpop.f32.mrb[62].mxu0 }
 0x26a   : > { %11712 = vmatprep.subr.bf16.mxu0 %v13227_v3  ;;  %v962_v54 = vpop.f32.mrb[63].mxu0 }
 0x26d   : > { %11714 = vmatpush1.bf16.msra.mxu0 %v13612_v32  ;;  %v13908_v56 = vpop.f32.mrb[64].mxu0 }
 0x26e   : > { %11715 = vmatprep.subr.bf16.mxu0 %v13227_v3  ;;  %v967_v57 = vpop.f32.mrb[65].mxu0 }
 0x271   : > { %11717 = vmatpush1.bf16.msra.mxu0 %v13618_v44  ;;  %v13912_v58 = vpop.f32.mrb[66].mxu0 }
 0x272   : > { %1854 = vmatprep.subr.mxu0 %v13228_v49  ;;  %v972_v59 = vpop.f32.mrb[67].mxu0 }
 0x275   : > { %9493 = vmatpush1.msk.msra.mxu0 %vm880_vm2, %v13621_v48 }
 0x276   : > { %1863 = vmatmul.mubr.f32.vlgmr.msra.gmra.mrb[98].mxu0 %v9483_v60  ;;  %11718 = vmatprep.subr.bf16.mxu0 %v13227_v3 }
 0x277   : > { %9495 = vmatprep.mubr.msk.f32.mxu0 %vm864_vm1, %v9486_v62  ;;  %11720 = vmatpush3.bf16.msra.mxu0 %v11719_v26 }
 0x278   : > { %11721 = vmatprep.subr.bf16.mxu0 %v13227_v3 }
 0x27a   : > { %1868 = vmatmul.mubr.f32.gmra.mrb[100].mxu0 %v9485_v63 }
 0x27b   : > { %9496 = vmatprep.mubr.msk.f32.mxu0 %vm864_vm1, %v9488_v0  ;;  %11723 = vmatpush3.bf16.msra.mxu0 %v11722_v29 }
 0x27c   : > { %11724 = vmatprep.subr.bf16.mxu0 %v13227_v3 }
 0x27e   : > { %1873 = vmatmul.mubr.f32.gmra.mrb[102].mxu0 %v9487_v2 }
 0x27f   : > { %9497 = vmatprep.mubr.msk.f32.mxu0 %vm864_vm1, %v9490_v4 }
 0x282   : > { %1878 = vmatmul.mubr.f32.gmra.mrb[104].mxu0 %v9489_v5 }
 0x283   : > { %9498 = vmatprep.mubr.msk.f32.mxu0 %vm864_vm1, %v9492_v6 }
 0x286   : > { %1883 = vmatmul.mubr.f32.gmra.mrb[106].mxu0 %v9491_v8 }
 0x287   : > { %10892 = vmatprep.mubr.msk.f32.mxu0 %vm13229_vm3, %v13228_v49 }
 0x29b   : > { %v1070_v15 = vpop.f32.mrb[68].mxu0 }
 0x29c   : > { %10801 = vmatmul.mubr.msk.f32.vlgmr.msra.gmra.mrb[0].mxu1 %vm1099_vm4, %v1070_v15  ;;  %v1072_v17 = vpop.f32.mrb[69].mxu0 }
 0x29d   : > { %10803 = vmatprep.mubr.msk.f32.mxu1 %vm13229_vm3, %v13228_v49  ;;  %11576 = vmatpush3.bf16.msra.mxu1 %v11575_v11 }
 0x29e   : > { %11577 = vmatprep.subr.bf16.mxu1 %v13227_v3 }
 0x29f   : > { %v1075_v19 = vpop.f32.mrb[70].mxu0 }
 0x2a0   : > { %10804 = vmatmul.mubr.msk.f32.gmra.mrb[2].mxu1 %vm1099_vm4, %v1075_v19  ;;  %v1077_v20 = vpop.f32.mrb[71].mxu0 }
 0x2a1   : > { %10806 = vmatprep.mubr.msk.f32.mxu1 %vm13229_vm3, %v13228_v49  ;;  %11579 = vmatpush3.bf16.msra.mxu1 %v11578_v18 }
 0x2a2   : > { %11622 = vmatprep.subr.bf16.mxu1 %v13227_v3 }
 0x2a3   : > { %v1080_v28 = vpop.f32.mrb[72].mxu0 }
 0x2a4   : > { %10807 = vmatmul.mubr.msk.f32.gmra.mrb[4].mxu1 %vm1099_vm4, %v1080_v28  ;;  %v1082_v30 = vpop.f32.mrb[73].mxu0  ;;  %v9509_v28 = vld [vmem:[%s17581_s3 + $0x198] sm:$0xff] }
 0x2a5   : > { %10809 = vmatprep.mubr.msk.f32.mxu1 %vm13229_vm3, %v13228_v49 }
 0x2a7   : > { %v1085_v31 = vpop.f32.mrb[74].mxu0 }
 0x2a8   : > { %10810 = vmatmul.mubr.msk.f32.gmra.mrb[6].mxu1 %vm1099_vm4, %v1085_v31  ;;  %v1087_v34 = vpop.f32.mrb[75].mxu0 }
 0x2a9   : > { %10812 = vmatprep.mubr.msk.f32.mxu1 %vm13229_vm3, %v13228_v49 }
 0x2ab   : > { %v1090_v38 = vpop.f32.mrb[76].mxu0 }
 0x2ac   : > { %10813 = vmatmul.mubr.msk.f32.gmra.mrb[8].mxu1 %vm1099_vm4, %v1090_v38  ;;  %v1092_v39 = vpop.f32.mrb[77].mxu0 }
 0x2ad   : > { %10823 = vmatprep.mubr.msk.f32.mxu1 %vm13229_vm3, %v13228_v49 }
 0x2b0   : > { %10824 = vmatmul.mubr.msk.f32.vlgmr.msra.gmra.mrb[10].mxu1 %vm1099_vm4, %v13896_v47  ;;  %v9474_v47 = vld [vmem:[%s17582_s4 + $0x60] sm:$0xff] }
 0x2b1   : > { %10826 = vmatprep.mubr.msk.f32.mxu1 %vm13229_vm3, %v13228_v49  ;;  %11624 = vmatpush3.bf16.msra.mxu1 %v11623_v40 }
 0x2b2   : > { %11625 = vmatprep.subr.bf16.mxu1 %v13227_v3 }
 0x2b4   : > { %10827 = vmatmul.mubr.msk.f32.gmra.mrb[12].mxu1 %vm1099_vm4, %v13900_v51  ;;  %v11671_v51 = vpack.c.bf16 %v9475_v50, %v9474_v47  ;;  %v9508_v47 = vld [vmem:[%s17581_s3 + $0x190] sm:$0xff]  ;;  %v9511_v50 = vld [vmem:[%s17581_s3 + $0x1a8] sm:$0xff] }
 0x2b5   : > { %10829 = vmatprep.mubr.msk.f32.mxu1 %vm13229_vm3, %v13228_v49  ;;  %11627 = vmatpush3.bf16.msra.mxu1 %v11626_v46 }
 0x2b6   : > { %11670 = vmatprep.subr.bf16.mxu1 %v13227_v3 }
 0x2b8   : > { %10830 = vmatmul.mubr.msk.f32.gmra.mrb[14].mxu1 %vm1099_vm4, %v13904_v53  ;;  %v9477_v53 = vld [vmem:[%s17582_s4 + $0x78] sm:$0xff] }
 0x2b9   : > { %10832 = vmatprep.mubr.msk.f32.mxu1 %vm13229_vm3, %v13228_v49  ;;  %v11674_v57 = vpack.c.bf16 %v9477_v53, %v9476_v33 }
 0x2bc   : > { %10833 = vmatmul.mubr.msk.f32.gmra.mrb[16].mxu1 %vm1099_vm4, %v13908_v56 }
 0x2bd   : > { %10835 = vmatprep.mubr.msk.f32.mxu1 %vm13229_vm3, %v13228_v49 }
 0x2c0   : > { %10836 = vmatmul.mubr.msk.f32.gmra.mrb[18].mxu1 %vm1099_vm4, %v13912_v58 }
 0x2c1   : > { %10846 = vmatprep.mubr.msk.f32.mxu1 %vm13229_vm3, %v13228_v49 }
 0x2d5   : > { %v1402_v54 = vpop.f32.mrb[78].mxu0 }
 0x2d6   : > { %10847 = vmatmul.mubr.msk.f32.vlgmr.msra.gmra.mrb[20].mxu1 %vm1099_vm4, %v1402_v54  ;;  %v1404_v56 = vpop.f32.mrb[79].mxu0  ;;  %v9510_v54 = vld [vmem:[%s17581_s3 + $0x1a0] sm:$0xff] }
 0x2d7   : > { %10849 = vmatprep.mubr.msk.f32.mxu1 %vm13229_vm3, %v13228_v49  ;;  %11672 = vmatpush3.bf16.msra.mxu1 %v11671_v51  ;;  %v9513_v56 = vld [vmem:[%s17581_s3 + $0x1b8] sm:$0xff] }
 0x2d8   : > { %11673 = vmatprep.subr.bf16.mxu1 %v13227_v3 }
 0x2d9   : > { %v1407_v58 = vpop.f32.mrb[80].mxu0 }
 0x2da   : > { %10850 = vmatmul.mubr.msk.f32.gmra.mrb[22].mxu1 %vm1099_vm4, %v1407_v58  ;;  %v1409_v59 = vpop.f32.mrb[81].mxu0 }
 0x2db   : > { %10852 = vmatprep.mubr.msk.f32.mxu1 %vm13229_vm3, %v13228_v49  ;;  %11675 = vmatpush3.bf16.msra.mxu1 %v11674_v57 }
 0x2dc   : > { %11766 = vmatprep.subr.bf16.mxu1 %v13227_v3 }
 0x2dd   : > { %v1412_v60 = vpop.f32.mrb[82].mxu0 }
 0x2de   : > { %10853 = vmatmul.mubr.msk.f32.gmra.mrb[24].mxu1 %vm1099_vm4, %v1412_v60  ;;  %v1414_v62 = vpop.f32.mrb[83].mxu0  ;;  %v9512_v60 = vld [vmem:[%s17581_s3 + $0x1b0] sm:$0xff] }
 0x2df   : > { %10855 = vmatprep.mubr.msk.f32.mxu1 %vm13229_vm3, %v13228_v49  ;;  %v9515_v62 = vld [vmem:[%s17581_s3 + $0x1c8] sm:$0xff] }
 0x2e1   : > { %v1417_v63 = vpop.f32.mrb[84].mxu0 }
 0x2e2   : > { %10856 = vmatmul.mubr.msk.f32.gmra.mrb[26].mxu1 %vm1099_vm4, %v1417_v63  ;;  %v1419_v0 = vpop.f32.mrb[85].mxu0 }
 0x2e3   : > { %10858 = vmatprep.mubr.msk.f32.mxu1 %vm13229_vm3, %v13228_v49 }
 0x2e5   : > { %v1422_v2 = vpop.f32.mrb[86].mxu0 }
 0x2e6   : > { %10859 = vmatmul.mubr.msk.f32.gmra.mrb[28].mxu1 %vm1099_vm4, %v1422_v2  ;;  %v1424_v4 = vpop.f32.mrb[87].mxu0 }
 0x2e7   : > { %10869 = vmatprep.mubr.msk.f32.mxu1 %vm13229_vm3, %v13228_v49  ;;  %v9514_v4 = vld [vmem:[%s17581_s3 + $0x1c0] sm:$0xff] }
 0x30f   : > { %v1633_v5 = vpop.f32.mrb[88].mxu0 }
 0x310   : > { %10870 = vmatmul.mubr.msk.f32.vlgmr.msra.gmra.mrb[30].mxu1 %vm1099_vm4, %v1633_v5  ;;  %v1635_v6 = vpop.f32.mrb[89].mxu0  ;;  %v9517_v5 = vld [vmem:[%s17581_s3 + $0x1d8] sm:$0xf] }
 0x311   : > { %10872 = vmatprep.mubr.msk.f32.mxu1 %vm13229_vm3, %v13228_v49 }
 0x313   : > { %v1638_v8 = vpop.f32.mrb[90].mxu0 }
 0x314   : > { %10873 = vmatmul.mubr.msk.f32.gmra.mrb[32].mxu1 %vm1099_vm4, %v1638_v8  ;;  %v1640_v9 = vpop.f32.mrb[91].mxu0 }
 0x315   : > { %10875 = vmatprep.mubr.msk.f32.mxu1 %vm13229_vm3, %v13228_v49 }
 0x317   : > { %v1643_v10 = vpop.f32.mrb[92].mxu0 }
 0x318   : > { %10876 = vmatmul.mubr.msk.f32.gmra.mrb[34].mxu1 %vm1099_vm4, %v1643_v10  ;;  %v1645_v11 = vpop.f32.mrb[93].mxu0  ;;  %v9516_v10 = vld [vmem:[%s17581_s3 + $0x1d0] sm:$0xf] }
 0x319   : > { %10878 = vmatprep.mubr.msk.f32.mxu1 %vm13229_vm3, %v13228_v49 }
 0x31b   : > { %v1648_v13 = vpop.f32.mrb[94].mxu0 }
 0x31c   : > { %10879 = vmatmul.mubr.msk.f32.gmra.mrb[36].mxu1 %vm1099_vm4, %v1648_v13  ;;  %v1650_v14 = vpop.f32.mrb[95].mxu0 }
 0x31d   : > { %10881 = vmatprep.mubr.msk.f32.mxu1 %vm13229_vm3, %v13228_v49 }
 0x31f   : > { %v1653_v15 = vpop.f32.mrb[96].mxu0 }
 0x320   : > { %10882 = vmatmul.mubr.msk.f32.gmra.mrb[38].mxu1 %vm1099_vm4, %v1653_v15  ;;  %v1655_v17 = vpop.f32.mrb[97].mxu0 }
 0x321   : > { %10915 = vmatprep.mubr.msk.f32.mxu1 %vm13229_vm3, %v13228_v49 }
 0x349   : > { %v1864_v18 = vpop.f32.mrb[98].mxu0 }
 0x34a   : > { %10893 = vmatmul.mubr.msk.f32.vlgmr.msra.gmra.mrb[108].mxu0 %vm1099_vm4, %v1864_v18  ;;  %v1866_v19 = vpop.f32.mrb[99].mxu0 }
 0x34b   : > { %11726 = vmatpush1.bf16.msra.mxu0 %v13540_v43  ;;  %10895 = vmatprep.mubr.msk.f32.mxu0 %vm13229_vm3, %v13228_v49 }
 0x34c   : > { %11727 = vmatprep.subr.bf16.mxu0 %v13227_v3 }
 0x34d   : > { %v1869_v20 = vpop.f32.mrb[100].mxu0 }
 0x34e   : > { %10896 = vmatmul.mubr.msk.f32.gmra.mrb[110].mxu0 %vm1099_vm4, %v1869_v20  ;;  %v1871_v21 = vpop.f32.mrb[101].mxu0 }
 0x34f   : > { %11729 = vmatpush1.bf16.msra.mxu0 %v13546_v52  ;;  %10898 = vmatprep.mubr.msk.f32.mxu0 %vm13229_vm3, %v13228_v49 }
 0x350   : > { %11730 = vmatprep.subr.bf16.mxu0 %v13227_v3 }
 0x351   : > { %v1874_v23 = vpop.f32.mrb[102].mxu0 }
 0x352   : > { %10899 = vmatmul.mubr.msk.f32.gmra.mrb[112].mxu0 %vm1099_vm4, %v1874_v23  ;;  %v1876_v24 = vpop.f32.mrb[103].mxu0  ;;  %v9524_v23 = vld [vmem:[%s17582_s4 + $0xa0] sm:$0xff] }
 0x353   : > { %11732 = vmatpush1.bf16.msra.mxu0 %v13552_v61  ;;  %10901 = vmatprep.mubr.msk.f32.mxu0 %vm13229_vm3, %v13228_v49  ;;  %v9525_v24 = vld [vmem:[%s17582_s4 + $0xa8] sm:$0xff] }
 0x354   : > { %11733 = vmatprep.subr.bf16.mxu0 %v13227_v3 }
 0x355   : > { %v1879_v26 = vpop.f32.mrb[104].mxu0 }
 0x356   : > { %10902 = vmatmul.mubr.msk.f32.gmra.mrb[114].mxu0 %vm1099_vm4, %v1879_v26  ;;  %v1881_v27 = vpop.f32.mrb[105].mxu0  ;;  %v9526_v26 = vld [vmem:[%s17582_s4 + $0xb0] sm:$0xff] }
 0x357   : > { %11735 = vmatpush1.bf16.msra.mxu0 %v13558_v7  ;;  %10904 = vmatprep.mubr.msk.f32.mxu0 %vm13229_vm3, %v13228_v49  ;;  %v11767_v27 = vpack.c.bf16 %v9525_v24, %v9524_v23 }
 0x358   : > { %11736 = vmatprep.subr.bf16.mxu0 %v13227_v3 }
 0x359   : > { %v1884_v29 = vpop.f32.mrb[106].mxu0  ;;  %11768 = vmatpush3.bf16.msra.mxu1 %v11767_v27 }
 0x35a   : > { %10905 = vmatmul.mubr.msk.f32.gmra.mrb[116].mxu0 %vm1099_vm4, %v1884_v29  ;;  %v1886_v30 = vpop.f32.mrb[107].mxu0  ;;  %11769 = vmatprep.subr.bf16.mxu1 %v13227_v3 }
 0x35b   : > { %11738 = vmatpush1.bf16.msra.mxu0 %v13564_v16  ;;  %9519 = vmatprep.mubr.msk.f32.mxu0 %vm864_vm1, %v9509_v28  ;;  %v9527_v28 = vld [vmem:[%s17582_s4 + $0xb8] sm:$0xff] }
 0x35c   : > { %11739 = vmatprep.subr.bf16.mxu0 %v13227_v3  ;;  %v11770_v30 = vpack.c.bf16 %v9527_v28, %v9526_v26 }
 0x35e   : > { %11771 = vmatpush3.bf16.msra.mxu1 %v11770_v30  ;;  %v9534_v30 = vld [vmem:[%s17581_s3 + $0x1e8] sm:$0xff] }
 0x35f   : > { %11741 = vmatpush1.bf16.msra.mxu0 %v13570_v25  ;;  %11772 = vmatprep.subr.bf16.mxu1 %v13227_v3 }
 0x360   : > { %11742 = vmatprep.subr.bf16.mxu0 %v13227_v3 }
 0x363   : > { %11744 = vmatpush1.bf16.msra.mxu0 %v13576_v35 }
 0x364   : > { %11745 = vmatprep.subr.bf16.mxu0 %v13227_v3 }
 0x367   : > { %11747 = vmatpush1.bf16.msra.mxu0 %v13582_v45 }
 0x368   : > { %11748 = vmatprep.subr.bf16.mxu0 %v13227_v3 }
 0x36b   : > { %11750 = vmatpush1.bf16.msra.mxu0 %v13588_v55 }
 0x36c   : > { %11751 = vmatprep.subr.bf16.mxu0 %v13227_v3 }
 0x36f   : > { %11753 = vmatpush1.bf16.msra.mxu0 %v13594_v1  ;;  %v1181_v31 = vpop.f32.mrb[0].mxu1 }
 0x370   : > { %11754 = vmatprep.subr.bf16.mxu0 %v13227_v3  ;;  %v10802_v34 = vpop.f32.mrb[1].mxu1 }
 0x373   : > { %11756 = vmatpush1.bf16.msra.mxu0 %v13600_v12  ;;  %v1186_v36 = vpop.f32.mrb[2].mxu1 }
 0x374   : > { %11757 = vmatprep.subr.bf16.mxu0 %v13227_v3  ;;  %v10805_v37 = vpop.f32.mrb[3].mxu1 }
 0x377   : > { %11759 = vmatpush1.bf16.msra.mxu0 %v13606_v22  ;;  %v1191_v38 = vpop.f32.mrb[4].mxu1 }
 0x378   : > { %11760 = vmatprep.subr.bf16.mxu0 %v13227_v3  ;;  %v10808_v39 = vpop.f32.mrb[5].mxu1 }
 0x37b   : > { %11762 = vmatpush1.bf16.msra.mxu0 %v13612_v32  ;;  %v1196_v40 = vpop.f32.mrb[6].mxu1 }
 0x37c   : > { %11763 = vmatprep.subr.bf16.mxu0 %v13227_v3  ;;  %v10811_v41 = vpop.f32.mrb[7].mxu1 }
 0x37f   : > { %11765 = vmatpush1.bf16.msra.mxu0 %v13618_v44  ;;  %v1201_v42 = vpop.f32.mrb[8].mxu1 }
 0x380   : > { %2085 = vmatprep.subr.mxu0 %v13228_v49  ;;  %v10814_v46 = vpop.f32.mrb[9].mxu1 }
 0x383   : > { %9518 = vmatpush1.msk.msra.mxu0 %vm880_vm2, %v13621_v48  ;;  %v1286_v51 = vpop.f32.mrb[10].mxu1 }
 0x384   : > { %v1287_v33 = vadd.f32 %v1286_v51, %v1181_v31  ;;  %2094 = vmatmul.mubr.f32.vlgmr.msra.gmra.mrb[118].mxu0 %v9508_v47  ;;  %v10825_v53 = vpop.f32.mrb[11].mxu1  ;;  %11814 = vmatprep.subr.bf16.mxu0 %v13227_v3 }
 0x385   : > { %9520 = vmatprep.mubr.msk.f32.mxu0 %vm864_vm1, %v9511_v50 }
 0x387   : > { %v1291_v57 = vpop.f32.mrb[12].mxu1 }
 0x388   : > { %v1292_v58 = vadd.f32 %v1291_v57, %v1186_v36  ;;  %2099 = vmatmul.mubr.f32.gmra.mrb[120].mxu0 %v9510_v54  ;;  %v10828_v59 = vpop.f32.mrb[13].mxu1 }
 0x389   : > { %9521 = vmatprep.mubr.msk.f32.mxu0 %vm864_vm1, %v9513_v56 }
 0x38b   : > { %v1296_v63 = vpop.f32.mrb[14].mxu1 }
 0x38c   : > { %v1297_v0 = vadd.f32 %v1296_v63, %v1191_v38  ;;  %2104 = vmatmul.mubr.f32.gmra.mrb[122].mxu0 %v9512_v60  ;;  %v10831_v2 = vpop.f32.mrb[15].mxu1 }
 0x38d   : > { %9522 = vmatprep.mubr.msk.f32.mxu0 %vm864_vm1, %v9515_v62 }
 0x38f   : > { %v1301_v6 = vpop.f32.mrb[16].mxu1 }
 0x390   : > { %v1302_v8 = vadd.f32 %v1301_v6, %v1196_v40  ;;  %2109 = vmatmul.mubr.f32.gmra.mrb[124].mxu0 %v9514_v4  ;;  %v10834_v9 = vpop.f32.mrb[17].mxu1 }
 0x391   : > { %9523 = vmatprep.mubr.msk.f32.mxu0 %vm864_vm1, %v9517_v5 }
 0x393   : > { %v1306_v11 = vpop.f32.mrb[18].mxu1 }
 0x394   : > { %v1307_v13 = vadd.f32 %v1306_v11, %v1201_v42  ;;  %2114 = vmatmul.mubr.f32.gmra.mrb[126].mxu0 %v9516_v10  ;;  %v10837_v14 = vpop.f32.mrb[19].mxu1 }
 0x395   : > { %10938 = vmatprep.mubr.msk.f32.mxu0 %vm13229_vm3, %v13228_v49 }
 0x3a9   : > { %v1512_v15 = vpop.f32.mrb[20].mxu1 }
 0x3aa   : > { %v1536_v17 = vadd.f32 %v1512_v15, %v1287_v33  ;;  %v10848_v18 = vpop.f32.mrb[21].mxu1 }
 0x3ad   : > { %v1517_v19 = vpop.f32.mrb[22].mxu1 }
 0x3ae   : > { %v1537_v20 = vadd.f32 %v1517_v19, %v1292_v58  ;;  %v10851_v21 = vpop.f32.mrb[23].mxu1 }
 0x3b1   : > { %v1522_v29 = vpop.f32.mrb[24].mxu1 }
 0x3b2   : > { %v1538_v31 = vadd.f32 %v1522_v29, %v1297_v0  ;;  %v10854_v34 = vpop.f32.mrb[25].mxu1 }
 0x3b5   : > { %v1527_v36 = vpop.f32.mrb[26].mxu1 }
 0x3b6   : > { %v1539_v37 = vadd.f32 %v1527_v36, %v1302_v8  ;;  %v10857_v38 = vpop.f32.mrb[27].mxu1  ;;  %v9533_v36 = vld [vmem:[%s17581_s3 + $0x1e0] sm:$0xff] }
 0x3b7   : > { %v9535_v38 = vld [vmem:[%s17581_s3 + $0x1f0] sm:$0xff] }
 0x3b9   : > { %v1532_v39 = vpop.f32.mrb[28].mxu1 }
 0x3ba   : > { %v1540_v40 = vadd.f32 %v1532_v39, %v1307_v13  ;;  %v10860_v41 = vpop.f32.mrb[29].mxu1  ;;  %v9538_v39 = vld [vmem:[%s17581_s3 + $0x208] sm:$0xff] }
 0x3bb   : > { %v9540_v41 = vld [vmem:[%s17581_s3 + $0x218] sm:$0xff] }
 0x3e3   : > { %v1743_v42 = vpop.f32.mrb[30].mxu1 }
 0x3e4   : > { %v1767_v46 = vadd.f32 %v1743_v42, %v1536_v17  ;;  %v10871_v47 = vpop.f32.mrb[31].mxu1  ;;  %v9539_v42 = vld [vmem:[%s17581_s3 + $0x210] sm:$0xff] }
 0x3e5   : > { %v9541_v47 = vld [vmem:[%s17581_s3 + $0x220] sm:$0xf] }
 0x3e7   : > { %v1748_v50 = vpop.f32.mrb[32].mxu1 }
 0x3e8   : > { %v1768_v51 = vadd.f32 %v1748_v50, %v1537_v20  ;;  %v10874_v33 = vpop.f32.mrb[33].mxu1  ;;  %v9549_v50 = vld [vmem:[%s17582_s4 + $0xc0] sm:$0xff] }
 0x3e9   : > { %v9551_v33 = vld [vmem:[%s17582_s4 + $0xd0] sm:$0xff] }
 0x3eb   : > { %v1753_v53 = vpop.f32.mrb[34].mxu1 }
 0x3ec   : > { %v1769_v54 = vadd.f32 %v1753_v53, %v1538_v31  ;;  %v10877_v56 = vpop.f32.mrb[35].mxu1 }
 0x3ef   : > { %v1758_v57 = vpop.f32.mrb[36].mxu1 }
 0x3f0   : > { %v1770_v58 = vadd.f32 %v1758_v57, %v1539_v37  ;;  %v10880_v59 = vpop.f32.mrb[37].mxu1  ;;  %v9536_v37 = vld [vmem:[%s17581_s3 + $0x1f8] sm:$0xff] }
 0x3f3   : > { %v1763_v60 = vpop.f32.mrb[38].mxu1 }
 0x3f4   : > { %v1771_v62 = vadd.f32 %v1763_v60, %v1540_v40  ;;  %v10883_v63 = vpop.f32.mrb[39].mxu1  ;;  %v9537_v40 = vld [vmem:[%s17581_s3 + $0x200] sm:$0xff] }
 0x41d   : > { %v1974_v0 = vpop.f32.mrb[108].mxu0 }
 0x41e   : > { %v14167_v2 = vadd.f32 %v1974_v0, %v1767_v46  ;;  %v10894_v4 = vpop.f32.mrb[109].mxu0  ;;  %v9542_v46 = vld [vmem:[%s17581_s3 + $0x228] sm:$0xf] }
 0x421   : > { %v1979_v5 = vpop.f32.mrb[110].mxu0 }
 0x422   : > { %v14169_v6 = vadd.f32 %v1979_v5, %v1768_v51  ;;  %v10897_v8 = vpop.f32.mrb[111].mxu0  ;;  %v9550_v51 = vld [vmem:[%s17582_s4 + $0xc8] sm:$0xff] }
 0x423   : > { %v11815_v53 = vpack.c.bf16 %v9550_v51, %v9549_v50 }
 0x425   : > { %v1984_v9 = vpop.f32.mrb[112].mxu0  ;;  %11816 = vmatpush3.bf16.msra.mxu0 %v11815_v53 }
 0x426   : > { %v14171_v10 = vadd.f32 %v1984_v9, %v1769_v54  ;;  %v10900_v11 = vpop.f32.mrb[113].mxu0  ;;  %v9552_v54 = vld [vmem:[%s17582_s4 + $0xd8] sm:$0xff]  ;;  %11817 = vmatprep.subr.bf16.mxu0 %v13227_v3 }
 0x427   : > { %v11818_v56 = vpack.c.bf16 %v9552_v54, %v9551_v33 }
 0x429   : > { %v1989_v13 = vpop.f32.mrb[114].mxu0  ;;  %11819 = vmatpush3.bf16.msra.mxu0 %v11818_v56 }
 0x42a   : > { %v14173_v14 = vadd.f32 %v1989_v13, %v1770_v58  ;;  %v10903_v15 = vpop.f32.mrb[115].mxu0  ;;  %11820 = vmatprep.subr.bf16.mxu0 %v13227_v3 }
 0x42d   : > { %v1994_v17 = vpop.f32.mrb[116].mxu0 }
 0x42e   : > { %v14175_v18 = vadd.f32 %v1994_v17, %v1771_v62  ;;  %v10906_v19 = vpop.f32.mrb[117].mxu0 }
 0x457   : > { %v2095_v20 = vpop.f32.mrb[118].mxu0 }
 0x458   : > { %10916 = vmatmul.mubr.msk.f32.vlgmr.msra.gmra.mrb[40].mxu1 %vm1099_vm4, %v2095_v20  ;;  %v2097_v21 = vpop.f32.mrb[119].mxu0 }
 0x459   : > { %11774 = vmatpush1.bf16.msra.mxu1 %v13540_v43  ;;  %10918 = vmatprep.mubr.msk.f32.mxu1 %vm13229_vm3, %v13228_v49 }
 0x45a   : > { %11775 = vmatprep.subr.bf16.mxu1 %v13227_v3 }
 0x45b   : > { %v2100_v23 = vpop.f32.mrb[120].mxu0 }
 0x45c   : > { %10919 = vmatmul.mubr.msk.f32.gmra.mrb[42].mxu1 %vm1099_vm4, %v2100_v23  ;;  %v2102_v24 = vpop.f32.mrb[121].mxu0  ;;  %v9559_v23 = vld [vmem:[%s17581_s3 + $0x238] sm:$0xff] }
 0x45d   : > { %11777 = vmatpush1.bf16.msra.mxu1 %v13546_v52  ;;  %10921 = vmatprep.mubr.msk.f32.mxu1 %vm13229_vm3, %v13228_v49 }
 0x45e   : > { %11778 = vmatprep.subr.bf16.mxu1 %v13227_v3 }
 0x45f   : > { %v2105_v26 = vpop.f32.mrb[122].mxu0 }
 0x460   : > { %10922 = vmatmul.mubr.msk.f32.gmra.mrb[44].mxu1 %vm1099_vm4, %v2105_v26  ;;  %v2107_v27 = vpop.f32.mrb[123].mxu0 }
 0x461   : > { %11780 = vmatpush1.bf16.msra.mxu1 %v13552_v61  ;;  %10924 = vmatprep.mubr.msk.f32.mxu1 %vm13229_vm3, %v13228_v49  ;;  %v9558_v27 = vld [vmem:[%s17581_s3 + $0x230] sm:$0xff] }
 0x462   : > { %11781 = vmatprep.subr.bf16.mxu1 %v13227_v3 }
 0x463   : > { %v2110_v28 = vpop.f32.mrb[124].mxu0 }
 0x464   : > { %10925 = vmatmul.mubr.msk.f32.gmra.mrb[46].mxu1 %vm1099_vm4, %v2110_v28  ;;  %v2112_v29 = vpop.f32.mrb[125].mxu0  ;;  %v9561_v28 = vld [vmem:[%s17581_s3 + $0x248] sm:$0xff] }
 0x465   : > { %11783 = vmatpush1.bf16.msra.mxu1 %v13558_v7  ;;  %10927 = vmatprep.mubr.msk.f32.mxu1 %vm13229_vm3, %v13228_v49  ;;  %v9560_v29 = vld [vmem:[%s17581_s3 + $0x240] sm:$0xff] }
 0x466   : > { %11784 = vmatprep.subr.bf16.mxu1 %v13227_v3 }
 0x467   : > { %v2115_v31 = vpop.f32.mrb[126].mxu0 }
 0x468   : > { %10928 = vmatmul.mubr.msk.f32.gmra.mrb[48].mxu1 %vm1099_vm4, %v2115_v31  ;;  %v2117_v34 = vpop.f32.mrb[127].mxu0  ;;  %v9562_v31 = vld [vmem:[%s17581_s3 + $0x250] sm:$0xff] }
 0x469   : > { %11786 = vmatpush1.bf16.msra.mxu1 %v13564_v16  ;;  %9544 = vmatprep.mubr.msk.f32.mxu1 %vm864_vm1, %v9534_v30  ;;  %v9563_v30 = vld [vmem:[%s17581_s3 + $0x258] sm:$0xff]  ;;  %v9565_v34 = vld [vmem:[%s17581_s3 + $0x268] sm:$0xff] }
 0x46a   : > { %11787 = vmatprep.subr.bf16.mxu1 %v13227_v3 }
 0x46d   : > { %11789 = vmatpush1.bf16.msra.mxu1 %v13570_v25 }
 0x46e   : > { %11790 = vmatprep.subr.bf16.mxu1 %v13227_v3 }
 0x471   : > { %11792 = vmatpush1.bf16.msra.mxu1 %v13576_v35 }
 0x472   : > { %11793 = vmatprep.subr.bf16.mxu1 %v13227_v3 }
 0x475   : > { %11795 = vmatpush1.bf16.msra.mxu1 %v13582_v45 }
 0x476   : > { %11796 = vmatprep.subr.bf16.mxu1 %v13227_v3 }
 0x479   : > { %11798 = vmatpush1.bf16.msra.mxu1 %v13588_v55 }
 0x47a   : > { %11799 = vmatprep.subr.bf16.mxu1 %v13227_v3 }
 0x47d   : > { %11801 = vmatpush1.bf16.msra.mxu1 %v13594_v1 }
 0x47e   : > { %11802 = vmatprep.subr.bf16.mxu1 %v13227_v3 }
 0x481   : > { %11804 = vmatpush1.bf16.msra.mxu1 %v13600_v12 }
 0x482   : > { %11805 = vmatprep.subr.bf16.mxu1 %v13227_v3 }
 0x485   : > { %11807 = vmatpush1.bf16.msra.mxu1 %v13606_v22 }
 0x486   : > { %11808 = vmatprep.subr.bf16.mxu1 %v13227_v3 }
 0x489   : > { %11810 = vmatpush1.bf16.msra.mxu1 %v13612_v32 }
 0x48a   : > { %11811 = vmatprep.subr.bf16.mxu1 %v13227_v3 }
 0x48d   : > { %11813 = vmatpush1.bf16.msra.mxu1 %v13618_v44 }
 0x48e   : > { %2316 = vmatprep.subr.mxu1 %v13228_v49 }
 0x491   : > { %9543 = vmatpush1.msk.msra.mxu1 %vm880_vm2, %v13621_v48 }
 0x492   : > { %2325 = vmatmul.mubr.f32.vlgmr.msra.gmra.mrb[50].mxu1 %v9533_v36  ;;  %11862 = vmatprep.subr.bf16.mxu1 %v13227_v3  ;;  %v9564_v36 = vld [vmem:[%s17581_s3 + $0x260] sm:$0xff] }
 0x493   : > { %9545 = vmatprep.mubr.msk.f32.mxu1 %vm864_vm1, %v9536_v37  ;;  %v9567_v37 = vld [vmem:[%s17581_s3 + $0x278] sm:$0xf] }
 0x496   : > { %2330 = vmatmul.mubr.f32.gmra.mrb[52].mxu1 %v9535_v38  ;;  %v9566_v38 = vld [vmem:[%s17581_s3 + $0x270] sm:$0xf] }
 0x497   : > { %9546 = vmatprep.mubr.msk.f32.mxu1 %vm864_vm1, %v9538_v39  ;;  %v9574_v39 = vld [vmem:[%s17582_s4 + $0xe0] sm:$0xff] }
 0x49a   : > { %2335 = vmatmul.mubr.f32.gmra.mrb[54].mxu1 %v9537_v40  ;;  %v9575_v40 = vld [vmem:[%s17582_s4 + $0xe8] sm:$0xff] }
 0x49b   : > { %9547 = vmatprep.mubr.msk.f32.mxu1 %vm864_vm1, %v9540_v41  ;;  %v9576_v41 = vld [vmem:[%s17582_s4 + $0xf0] sm:$0xff] }
 0x49e   : > { %2340 = vmatmul.mubr.f32.gmra.mrb[56].mxu1 %v9539_v42  ;;  %v11863_v42 = vpack.c.bf16 %v9575_v40, %v9574_v39 }
 0x49f   : > { %9548 = vmatprep.mubr.msk.f32.mxu1 %vm864_vm1, %v9542_v46  ;;  %v9577_v46 = vld [vmem:[%s17582_s4 + $0xf8] sm:$0xff] }
 0x4a0   : > { %11864 = vmatpush3.bf16.msra.mxu1 %v11863_v42 }
 0x4a1   : > { %11865 = vmatprep.subr.bf16.mxu1 %v13227_v3 }
 0x4a2   : > { %2345 = vmatmul.mubr.f32.gmra.mrb[58].mxu1 %v9541_v47  ;;  %v11866_v47 = vpack.c.bf16 %v9577_v46, %v9576_v41 }
 0x4a3   : > { %10961 = vmatprep.mubr.msk.f32.mxu1 %vm13229_vm3, %v13228_v49 }
 0x4a4   : > { %11867 = vmatpush3.bf16.msra.mxu1 %v11866_v47 }
 0x4a5   : > { %11868 = vmatprep.subr.bf16.mxu1 %v13227_v3 }
 0x52b   : > { %v2205_v57 = vpop.f32.mrb[40].mxu1 }
 0x52c   : > { %v14273_v58 = vadd.f32 %v2205_v57, %v14167_v2  ;;  %v10917_v59 = vpop.f32.mrb[41].mxu1 }
 0x52f   : > { %v2210_v60 = vpop.f32.mrb[42].mxu1 }
 0x530   : > { %v14276_v62 = vadd.f32 %v2210_v60, %v14169_v6  ;;  %v10920_v63 = vpop.f32.mrb[43].mxu1 }
 0x533   : > { %v2215_v0 = vpop.f32.mrb[44].mxu1 }
 0x534   : > { %v14279_v4 = vadd.f32 %v2215_v0, %v14171_v10  ;;  %v10923_v5 = vpop.f32.mrb[45].mxu1 }
 0x537   : > { %v2220_v8 = vpop.f32.mrb[46].mxu1 }
 0x538   : > { %v14282_v9 = vadd.f32 %v2220_v8, %v14173_v14  ;;  %v10926_v11 = vpop.f32.mrb[47].mxu1 }
 0x53b   : > { %v2225_v13 = vpop.f32.mrb[48].mxu1 }
 0x53c   : > { %v14285_v2 = vadd.f32 %v2225_v13, %v14175_v18  ;;  %v10929_v15 = vpop.f32.mrb[49].mxu1 }
 0x565   : > { %v2326_v17 = vpop.f32.mrb[50].mxu1 }
 0x566   : > { %10939 = vmatmul.mubr.msk.f32.vlgmr.msra.gmra.mrb[128].mxu0 %vm1099_vm4, %v2326_v17  ;;  %v2328_v6 = vpop.f32.mrb[51].mxu1 }
 0x567   : > { %11822 = vmatpush1.bf16.msra.mxu0 %v13540_v43  ;;  %10941 = vmatprep.mubr.msk.f32.mxu0 %vm13229_vm3, %v13228_v49 }
 0x568   : > { %11823 = vmatprep.subr.bf16.mxu0 %v13227_v3 }
 0x569   : > { %v2331_v10 = vpop.f32.mrb[52].mxu1 }
 0x56a   : > { %10942 = vmatmul.mubr.msk.f32.gmra.mrb[130].mxu0 %vm1099_vm4, %v2331_v10  ;;  %v2333_v14 = vpop.f32.mrb[53].mxu1  ;;  %v9584_v10 = vld [vmem:[%s17581_s3 + $0x288] sm:$0xff] }
 0x56b   : > { %11825 = vmatpush1.bf16.msra.mxu0 %v13546_v52  ;;  %10944 = vmatprep.mubr.msk.f32.mxu0 %vm13229_vm3, %v13228_v49 }
 0x56c   : > { %11826 = vmatprep.subr.bf16.mxu0 %v13227_v3 }
 0x56d   : > { %v2336_v18 = vpop.f32.mrb[54].mxu1 }
 0x56e   : > { %10945 = vmatmul.mubr.msk.f32.gmra.mrb[132].mxu0 %vm1099_vm4, %v2336_v18  ;;  %v2338_v19 = vpop.f32.mrb[55].mxu1 }
 0x56f   : > { %11828 = vmatpush1.bf16.msra.mxu0 %v13552_v61  ;;  %10947 = vmatprep.mubr.msk.f32.mxu0 %vm13229_vm3, %v13228_v49  ;;  %v9583_v19 = vld [vmem:[%s17581_s3 + $0x280] sm:$0xff] }
 0x570   : > { %11829 = vmatprep.subr.bf16.mxu0 %v13227_v3 }
 0x571   : > { %v2341_v20 = vpop.f32.mrb[56].mxu1 }
 0x572   : > { %10948 = vmatmul.mubr.msk.f32.gmra.mrb[134].mxu0 %vm1099_vm4, %v2341_v20  ;;  %v2343_v21 = vpop.f32.mrb[57].mxu1  ;;  %v9586_v20 = vld [vmem:[%s17581_s3 + $0x298] sm:$0xff] }
 0x573   : > { %11831 = vmatpush1.bf16.msra.mxu0 %v13558_v7  ;;  %10950 = vmatprep.mubr.msk.f32.mxu0 %vm13229_vm3, %v13228_v49  ;;  %v9585_v21 = vld [vmem:[%s17581_s3 + $0x290] sm:$0xff] }
 0x574   : > { %11832 = vmatprep.subr.bf16.mxu0 %v13227_v3 }
 0x575   : > { %v2346_v24 = vpop.f32.mrb[58].mxu1 }
 0x576   : > { %10951 = vmatmul.mubr.msk.f32.gmra.mrb[136].mxu0 %vm1099_vm4, %v2346_v24  ;;  %v2348_v26 = vpop.f32.mrb[59].mxu1  ;;  %v9587_v24 = vld [vmem:[%s17581_s3 + $0x2a0] sm:$0xff] }
 0x577   : > { %11834 = vmatpush1.bf16.msra.mxu0 %v13564_v16  ;;  %9569 = vmatprep.mubr.msk.f32.mxu0 %vm864_vm1, %v9559_v23  ;;  %v9588_v23 = vld [vmem:[%s17581_s3 + $0x2a8] sm:$0xff]  ;;  %v9590_v26 = vld [vmem:[%s17581_s3 + $0x2b8] sm:$0xff] }
 0x578   : > { %11835 = vmatprep.subr.bf16.mxu0 %v13227_v3 }
 0x57b   : > { %11837 = vmatpush1.bf16.msra.mxu0 %v13570_v25 }
 0x57c   : > { %11838 = vmatprep.subr.bf16.mxu0 %v13227_v3 }
 0x57f   : > { %11840 = vmatpush1.bf16.msra.mxu0 %v13576_v35 }
 0x580   : > { %11841 = vmatprep.subr.bf16.mxu0 %v13227_v3 }
 0x583   : > { %11843 = vmatpush1.bf16.msra.mxu0 %v13582_v45 }
 0x584   : > { %11844 = vmatprep.subr.bf16.mxu0 %v13227_v3 }
 0x587   : > { %11846 = vmatpush1.bf16.msra.mxu0 %v13588_v55 }
 0x588   : > { %11847 = vmatprep.subr.bf16.mxu0 %v13227_v3 }
 0x58b   : > { %11849 = vmatpush1.bf16.msra.mxu0 %v13594_v1 }
 0x58c   : > { %11850 = vmatprep.subr.bf16.mxu0 %v13227_v3 }
 0x58f   : > { %11852 = vmatpush1.bf16.msra.mxu0 %v13600_v12 }
 0x590   : > { %11853 = vmatprep.subr.bf16.mxu0 %v13227_v3 }
 0x593   : > { %11855 = vmatpush1.bf16.msra.mxu0 %v13606_v22 }
 0x594   : > { %11856 = vmatprep.subr.bf16.mxu0 %v13227_v3 }
 0x597   : > { %11858 = vmatpush1.bf16.msra.mxu0 %v13612_v32 }
 0x598   : > { %11859 = vmatprep.subr.bf16.mxu0 %v13227_v3 }
 0x59b   : > { %11861 = vmatpush1.bf16.msra.mxu0 %v13618_v44 }
 0x59c   : > { %2547 = vmatprep.subr.mxu0 %v13228_v49 }
 0x59f   : > { %9568 = vmatpush1.msk.msra.mxu0 %vm880_vm2, %v13621_v48 }
 0x5a0   : > { %2556 = vmatmul.mubr.f32.vlgmr.msra.gmra.mrb[138].mxu0 %v9558_v27  ;;  %11910 = vmatprep.subr.bf16.mxu0 %v13227_v3  ;;  %v9589_v27 = vld [vmem:[%s17581_s3 + $0x2b0] sm:$0xff] }
 0x5a1   : > { %9570 = vmatprep.mubr.msk.f32.mxu0 %vm864_vm1, %v9561_v28  ;;  %v9592_v28 = vld [vmem:[%s17581_s3 + $0x2c8] sm:$0xf] }
 0x5a4   : > { %2561 = vmatmul.mubr.f32.gmra.mrb[140].mxu0 %v9560_v29  ;;  %v9591_v29 = vld [vmem:[%s17581_s3 + $0x2c0] sm:$0xf] }
 0x5a5   : > { %9571 = vmatprep.mubr.msk.f32.mxu0 %vm864_vm1, %v9563_v30  ;;  %v9599_v30 = vld [vmem:[%s17582_s4 + $0x100] sm:$0xff] }
 0x5a8   : > { %2566 = vmatmul.mubr.f32.gmra.mrb[142].mxu0 %v9562_v31  ;;  %v9600_v31 = vld [vmem:[%s17582_s4 + $0x108] sm:$0xff] }
 0x5a9   : > { %9572 = vmatprep.mubr.msk.f32.mxu0 %vm864_vm1, %v9565_v34  ;;  %v9601_v34 = vld [vmem:[%s17582_s4 + $0x110] sm:$0xff] }
 0x5ac   : > { %2571 = vmatmul.mubr.f32.gmra.mrb[144].mxu0 %v9564_v36  ;;  %v11911_v36 = vpack.c.bf16 %v9600_v31, %v9599_v30 }
 0x5ad   : > { %9573 = vmatprep.mubr.msk.f32.mxu0 %vm864_vm1, %v9567_v37  ;;  %v9602_v37 = vld [vmem:[%s17582_s4 + $0x118] sm:$0xff] }
 0x5ae   : > { %11912 = vmatpush3.bf16.msra.mxu0 %v11911_v36 }
 0x5af   : > { %11913 = vmatprep.subr.bf16.mxu0 %v13227_v3 }
 0x5b0   : > { %2576 = vmatmul.mubr.f32.gmra.mrb[146].mxu0 %v9566_v38  ;;  %v11914_v38 = vpack.c.bf16 %v9602_v37, %v9601_v34 }
 0x5b1   : > { %10984 = vmatprep.mubr.msk.f32.mxu0 %vm13229_vm3, %v13228_v49 }
 0x5b2   : > { %11915 = vmatpush3.bf16.msra.mxu0 %v11914_v38 }
 0x5b3   : > { %11916 = vmatprep.subr.bf16.mxu0 %v13227_v3 }
 0x639   : > { %v2436_v50 = vpop.f32.mrb[128].mxu0 }
 0x63a   : > { %v14383_v51 = vadd.f32 %v2436_v50, %v14273_v58  ;;  %v10940_v33 = vpop.f32.mrb[129].mxu0 }
 0x63d   : > { %v2441_v53 = vpop.f32.mrb[130].mxu0 }
 0x63e   : > { %v14386_v54 = vadd.f32 %v2441_v53, %v14276_v62  ;;  %v10943_v56 = vpop.f32.mrb[131].mxu0 }
 0x641   : > { %v2446_v57 = vpop.f32.mrb[132].mxu0 }
 0x642   : > { %v14389_v59 = vadd.f32 %v2446_v57, %v14279_v4  ;;  %v10946_v60 = vpop.f32.mrb[133].mxu0 }
 0x645   : > { %v2451_v63 = vpop.f32.mrb[134].mxu0 }
 0x646   : > { %v14392_v0 = vadd.f32 %v2451_v63, %v14282_v9  ;;  %v10949_v5 = vpop.f32.mrb[135].mxu0 }
 0x649   : > { %v2456_v8 = vpop.f32.mrb[136].mxu0 }
 0x64a   : > { %v14395_v58 = vadd.f32 %v2456_v8, %v14285_v2  ;;  %v10952_v11 = vpop.f32.mrb[137].mxu0 }
 0x673   : > { %v2557_v13 = vpop.f32.mrb[138].mxu0 }
 0x674   : > { %10962 = vmatmul.mubr.msk.f32.vlgmr.msra.gmra.mrb[60].mxu1 %vm1099_vm4, %v2557_v13  ;;  %v2559_v62 = vpop.f32.mrb[139].mxu0 }
 0x675   : > { %11870 = vmatpush1.bf16.msra.mxu1 %v13540_v43  ;;  %10964 = vmatprep.mubr.msk.f32.mxu1 %vm13229_vm3, %v13228_v49 }
 0x676   : > { %11871 = vmatprep.subr.bf16.mxu1 %v13227_v3 }
 0x677   : > { %v2562_v4 = vpop.f32.mrb[140].mxu0 }
 0x678   : > { %10965 = vmatmul.mubr.msk.f32.gmra.mrb[62].mxu1 %vm1099_vm4, %v2562_v4  ;;  %v2564_v9 = vpop.f32.mrb[141].mxu0  ;;  %v9609_v4 = vld [vmem:[%s17581_s3 + $0x2d8] sm:$0xff] }
 0x679   : > { %11873 = vmatpush1.bf16.msra.mxu1 %v13546_v52  ;;  %10967 = vmatprep.mubr.msk.f32.mxu1 %vm13229_vm3, %v13228_v49 }
 0x67a   : > { %11874 = vmatprep.subr.bf16.mxu1 %v13227_v3 }
 0x67b   : > { %v2567_v2 = vpop.f32.mrb[142].mxu0 }
 0x67c   : > { %10968 = vmatmul.mubr.msk.f32.gmra.mrb[64].mxu1 %vm1099_vm4, %v2567_v2  ;;  %v2569_v15 = vpop.f32.mrb[143].mxu0 }
 0x67d   : > { %11876 = vmatpush1.bf16.msra.mxu1 %v13552_v61  ;;  %10970 = vmatprep.mubr.msk.f32.mxu1 %vm13229_vm3, %v13228_v49  ;;  %v9608_v15 = vld [vmem:[%s17581_s3 + $0x2d0] sm:$0xff] }
 0x67e   : > { %11877 = vmatprep.subr.bf16.mxu1 %v13227_v3 }
 0x67f   : > { %v2572_v17 = vpop.f32.mrb[144].mxu0 }
 0x680   : > { %10971 = vmatmul.mubr.msk.f32.gmra.mrb[66].mxu1 %vm1099_vm4, %v2572_v17  ;;  %v2574_v6 = vpop.f32.mrb[145].mxu0  ;;  %v9611_v17 = vld [vmem:[%s17581_s3 + $0x2e8] sm:$0xff] }
 0x681   : > { %11879 = vmatpush1.bf16.msra.mxu1 %v13558_v7  ;;  %10973 = vmatprep.mubr.msk.f32.mxu1 %vm13229_vm3, %v13228_v49  ;;  %v9610_v6 = vld [vmem:[%s17581_s3 + $0x2e0] sm:$0xff] }
 0x682   : > { %11880 = vmatprep.subr.bf16.mxu1 %v13227_v3 }
 0x683   : > { %v2577_v14 = vpop.f32.mrb[146].mxu0 }
 0x684   : > { %10974 = vmatmul.mubr.msk.f32.gmra.mrb[68].mxu1 %vm1099_vm4, %v2577_v14  ;;  %v2579_v18 = vpop.f32.mrb[147].mxu0  ;;  %v9612_v14 = vld [vmem:[%s17581_s3 + $0x2f0] sm:$0xff] }
 0x685   : > { %11882 = vmatpush1.bf16.msra.mxu1 %v13564_v16  ;;  %9594 = vmatprep.mubr.msk.f32.mxu1 %vm864_vm1, %v9584_v10  ;;  %v9613_v10 = vld [vmem:[%s17581_s3 + $0x2f8] sm:$0xff]  ;;  %v9615_v18 = vld [vmem:[%s17581_s3 + $0x308] sm:$0xff] }
 0x686   : > { %11883 = vmatprep.subr.bf16.mxu1 %v13227_v3 }
 0x689   : > { %11885 = vmatpush1.bf16.msra.mxu1 %v13570_v25 }
 0x68a   : > { %11886 = vmatprep.subr.bf16.mxu1 %v13227_v3 }
 0x68d   : > { %11888 = vmatpush1.bf16.msra.mxu1 %v13576_v35 }
 0x68e   : > { %11889 = vmatprep.subr.bf16.mxu1 %v13227_v3 }
 0x691   : > { %11891 = vmatpush1.bf16.msra.mxu1 %v13582_v45 }
 0x692   : > { %11892 = vmatprep.subr.bf16.mxu1 %v13227_v3 }
 0x695   : > { %11894 = vmatpush1.bf16.msra.mxu1 %v13588_v55 }
 0x696   : > { %11895 = vmatprep.subr.bf16.mxu1 %v13227_v3 }
 0x699   : > { %11897 = vmatpush1.bf16.msra.mxu1 %v13594_v1 }
 0x69a   : > { %11898 = vmatprep.subr.bf16.mxu1 %v13227_v3 }
 0x69d   : > { %11900 = vmatpush1.bf16.msra.mxu1 %v13600_v12 }
 0x69e   : > { %11901 = vmatprep.subr.bf16.mxu1 %v13227_v3 }
 0x6a1   : > { %11903 = vmatpush1.bf16.msra.mxu1 %v13606_v22 }
 0x6a2   : > { %11904 = vmatprep.subr.bf16.mxu1 %v13227_v3 }
 0x6a5   : > { %11906 = vmatpush1.bf16.msra.mxu1 %v13612_v32 }
 0x6a6   : > { %11907 = vmatprep.subr.bf16.mxu1 %v13227_v3 }
 0x6a9   : > { %11909 = vmatpush1.bf16.msra.mxu1 %v13618_v44 }
 0x6aa   : > { %2778 = vmatprep.subr.mxu1 %v13228_v49 }
 0x6ad   : > { %9593 = vmatpush1.msk.msra.mxu1 %vm880_vm2, %v13621_v48 }
 0x6ae   : > { %2787 = vmatmul.mubr.f32.vlgmr.msra.gmra.mrb[70].mxu1 %v9583_v19  ;;  %11958 = vmatprep.subr.bf16.mxu1 %v13227_v3  ;;  %v9614_v19 = vld [vmem:[%s17581_s3 + $0x300] sm:$0xff] }
 0x6af   : > { %9595 = vmatprep.mubr.msk.f32.mxu1 %vm864_vm1, %v9586_v20  ;;  %v9617_v20 = vld [vmem:[%s17581_s3 + $0x318] sm:$0xf] }
 0x6b2   : > { %2792 = vmatmul.mubr.f32.gmra.mrb[72].mxu1 %v9585_v21  ;;  %v9616_v21 = vld [vmem:[%s17581_s3 + $0x310] sm:$0xf] }
 0x6b3   : > { %9596 = vmatprep.mubr.msk.f32.mxu1 %vm864_vm1, %v9588_v23  ;;  %v9624_v23 = vld [vmem:[%s17582_s4 + $0x120] sm:$0xff] }
 0x6b6   : > { %2797 = vmatmul.mubr.f32.gmra.mrb[74].mxu1 %v9587_v24  ;;  %v9625_v24 = vld [vmem:[%s17582_s4 + $0x128] sm:$0xff] }
 0x6b7   : > { %9597 = vmatprep.mubr.msk.f32.mxu1 %vm864_vm1, %v9590_v26  ;;  %v9626_v26 = vld [vmem:[%s17582_s4 + $0x130] sm:$0xff] }
 0x6ba   : > { %2802 = vmatmul.mubr.f32.gmra.mrb[76].mxu1 %v9589_v27  ;;  %v11959_v27 = vpack.c.bf16 %v9625_v24, %v9624_v23 }
 0x6bb   : > { %9598 = vmatprep.mubr.msk.f32.mxu1 %vm864_vm1, %v9592_v28  ;;  %v9627_v28 = vld [vmem:[%s17582_s4 + $0x138] sm:$0xff] }
 0x6bc   : > { %11960 = vmatpush3.bf16.msra.mxu1 %v11959_v27 }
 0x6bd   : > { %11961 = vmatprep.subr.bf16.mxu1 %v13227_v3 }
 0x6be   : > { %2807 = vmatmul.mubr.f32.gmra.mrb[78].mxu1 %v9591_v29  ;;  %v11962_v29 = vpack.c.bf16 %v9627_v28, %v9626_v26 }
 0x6bf   : > { %11007 = vmatprep.mubr.msk.f32.mxu1 %vm13229_vm3, %v13228_v49 }
 0x6c0   : > { %11963 = vmatpush3.bf16.msra.mxu1 %v11962_v29 }
 0x6c1   : > { %11964 = vmatprep.subr.bf16.mxu1 %v13227_v3 }
 0x747   : > { %v2667_v39 = vpop.f32.mrb[60].mxu1 }
 0x748   : > { %v14493_v40 = vadd.f32 %v2667_v39, %v14383_v51  ;;  %v10963_v41 = vpop.f32.mrb[61].mxu1 }
 0x74b   : > { %v2672_v42 = vpop.f32.mrb[62].mxu1 }
 0x74c   : > { %v14496_v46 = vadd.f32 %v2672_v42, %v14386_v54  ;;  %v10966_v47 = vpop.f32.mrb[63].mxu1 }
 0x74f   : > { %v2677_v50 = vpop.f32.mrb[64].mxu1 }
 0x750   : > { %v14499_v33 = vadd.f32 %v2677_v50, %v14389_v59  ;;  %v10969_v53 = vpop.f32.mrb[65].mxu1 }
 0x753   : > { %v2682_v56 = vpop.f32.mrb[66].mxu1 }
 0x754   : > { %v14502_v57 = vadd.f32 %v2682_v56, %v14392_v0  ;;  %v10972_v60 = vpop.f32.mrb[67].mxu1 }
 0x757   : > { %v2687_v63 = vpop.f32.mrb[68].mxu1 }
 0x758   : > { %v14505_v51 = vadd.f32 %v2687_v63, %v14395_v58  ;;  %v10975_v5 = vpop.f32.mrb[69].mxu1 }
 0x781   : > { %v2788_v8 = vpop.f32.mrb[70].mxu1 }
 0x782   : > { %10985 = vmatmul.mubr.msk.f32.vlgmr.msra.gmra.mrb[148].mxu0 %vm1099_vm4, %v2788_v8  ;;  %v2790_v54 = vpop.f32.mrb[71].mxu1 }
 0x783   : > { %11918 = vmatpush1.bf16.msra.mxu0 %v13540_v43  ;;  %10987 = vmatprep.mubr.msk.f32.mxu0 %vm13229_vm3, %v13228_v49 }
 0x784   : > { %11919 = vmatprep.subr.bf16.mxu0 %v13227_v3 }
 0x785   : > { %v2793_v59 = vpop.f32.mrb[72].mxu1 }
 0x786   : > { %10988 = vmatmul.mubr.msk.f32.gmra.mrb[150].mxu0 %vm1099_vm4, %v2793_v59  ;;  %v2795_v0 = vpop.f32.mrb[73].mxu1  ;;  %v9634_v59 = vld [vmem:[%s17581_s3 + $0x328] sm:$0xff] }
 0x787   : > { %11921 = vmatpush1.bf16.msra.mxu0 %v13546_v52  ;;  %10990 = vmatprep.mubr.msk.f32.mxu0 %vm13229_vm3, %v13228_v49 }
 0x788   : > { %11922 = vmatprep.subr.bf16.mxu0 %v13227_v3 }
 0x789   : > { %v2798_v58 = vpop.f32.mrb[74].mxu1 }
 0x78a   : > { %10991 = vmatmul.mubr.msk.f32.gmra.mrb[152].mxu0 %vm1099_vm4, %v2798_v58  ;;  %v2800_v11 = vpop.f32.mrb[75].mxu1 }
 0x78b   : > { %11924 = vmatpush1.bf16.msra.mxu0 %v13552_v61  ;;  %10993 = vmatprep.mubr.msk.f32.mxu0 %vm13229_vm3, %v13228_v49  ;;  %v9633_v11 = vld [vmem:[%s17581_s3 + $0x320] sm:$0xff] }
 0x78c   : > { %11925 = vmatprep.subr.bf16.mxu0 %v13227_v3 }
 0x78d   : > { %v2803_v13 = vpop.f32.mrb[76].mxu1 }
 0x78e   : > { %10994 = vmatmul.mubr.msk.f32.gmra.mrb[154].mxu0 %vm1099_vm4, %v2803_v13  ;;  %v2805_v62 = vpop.f32.mrb[77].mxu1  ;;  %v9636_v13 = vld [vmem:[%s17581_s3 + $0x338] sm:$0xff] }
 0x78f   : > { %11927 = vmatpush1.bf16.msra.mxu0 %v13558_v7  ;;  %10996 = vmatprep.mubr.msk.f32.mxu0 %vm13229_vm3, %v13228_v49  ;;  %v9635_v62 = vld [vmem:[%s17581_s3 + $0x330] sm:$0xff] }
 0x790   : > { %11928 = vmatprep.subr.bf16.mxu0 %v13227_v3 }
 0x791   : > { %v2808_v9 = vpop.f32.mrb[78].mxu1 }
 0x792   : > { %10997 = vmatmul.mubr.msk.f32.gmra.mrb[156].mxu0 %vm1099_vm4, %v2808_v9  ;;  %v2810_v2 = vpop.f32.mrb[79].mxu1  ;;  %v9637_v9 = vld [vmem:[%s17581_s3 + $0x340] sm:$0xff] }
 0x793   : > { %11930 = vmatpush1.bf16.msra.mxu0 %v13564_v16  ;;  %9619 = vmatprep.mubr.msk.f32.mxu0 %vm864_vm1, %v9609_v4  ;;  %v9638_v4 = vld [vmem:[%s17581_s3 + $0x348] sm:$0xff]  ;;  %v9640_v2 = vld [vmem:[%s17581_s3 + $0x358] sm:$0xff] }
 0x794   : > { %11931 = vmatprep.subr.bf16.mxu0 %v13227_v3 }
 0x797   : > { %11933 = vmatpush1.bf16.msra.mxu0 %v13570_v25 }
 0x798   : > { %11934 = vmatprep.subr.bf16.mxu0 %v13227_v3 }
 0x79b   : > { %11936 = vmatpush1.bf16.msra.mxu0 %v13576_v35 }
 0x79c   : > { %11937 = vmatprep.subr.bf16.mxu0 %v13227_v3 }
 0x79f   : > { %11939 = vmatpush1.bf16.msra.mxu0 %v13582_v45 }
 0x7a0   : > { %11940 = vmatprep.subr.bf16.mxu0 %v13227_v3 }
 0x7a3   : > { %11942 = vmatpush1.bf16.msra.mxu0 %v13588_v55 }
 0x7a4   : > { %11943 = vmatprep.subr.bf16.mxu0 %v13227_v3 }
 0x7a7   : > { %11945 = vmatpush1.bf16.msra.mxu0 %v13594_v1 }
 0x7a8   : > { %11946 = vmatprep.subr.bf16.mxu0 %v13227_v3 }
 0x7ab   : > { %11948 = vmatpush1.bf16.msra.mxu0 %v13600_v12 }
 0x7ac   : > { %11949 = vmatprep.subr.bf16.mxu0 %v13227_v3 }
 0x7af   : > { %11951 = vmatpush1.bf16.msra.mxu0 %v13606_v22 }
 0x7b0   : > { %11952 = vmatprep.subr.bf16.mxu0 %v13227_v3 }
 0x7b3   : > { %11954 = vmatpush1.bf16.msra.mxu0 %v13612_v32 }
 0x7b4   : > { %11955 = vmatprep.subr.bf16.mxu0 %v13227_v3 }
 0x7b7   : > { %11957 = vmatpush1.bf16.msra.mxu0 %v13618_v44 }
 0x7b8   : > { %3009 = vmatprep.subr.mxu0 %v13228_v49 }
 0x7bb   : > { %9618 = vmatpush1.msk.msra.mxu0 %vm880_vm2, %v13621_v48 }
 0x7bc   : > { %3018 = vmatmul.mubr.f32.vlgmr.msra.gmra.mrb[158].mxu0 %v9608_v15  ;;  %12006 = vmatprep.subr.bf16.mxu0 %v13227_v3  ;;  %v9639_v15 = vld [vmem:[%s17581_s3 + $0x350] sm:$0xff] }
 0x7bd   : > { %9620 = vmatprep.mubr.msk.f32.mxu0 %vm864_vm1, %v9611_v17  ;;  %v9642_v17 = vld [vmem:[%s17581_s3 + $0x368] sm:$0xf] }
 0x7c0   : > { %3023 = vmatmul.mubr.f32.gmra.mrb[160].mxu0 %v9610_v6  ;;  %v9641_v6 = vld [vmem:[%s17581_s3 + $0x360] sm:$0xf] }
 0x7c1   : > { %9621 = vmatprep.mubr.msk.f32.mxu0 %vm864_vm1, %v9613_v10  ;;  %v9649_v10 = vld [vmem:[%s17582_s4 + $0x140] sm:$0xff] }
 0x7c4   : > { %3028 = vmatmul.mubr.f32.gmra.mrb[162].mxu0 %v9612_v14  ;;  %v9650_v14 = vld [vmem:[%s17582_s4 + $0x148] sm:$0xff] }
 0x7c5   : > { %9622 = vmatprep.mubr.msk.f32.mxu0 %vm864_vm1, %v9615_v18  ;;  %v9651_v18 = vld [vmem:[%s17582_s4 + $0x150] sm:$0xff] }
 0x7c8   : > { %3033 = vmatmul.mubr.f32.gmra.mrb[164].mxu0 %v9614_v19  ;;  %v12007_v19 = vpack.c.bf16 %v9650_v14, %v9649_v10 }
 0x7c9   : > { %9623 = vmatprep.mubr.msk.f32.mxu0 %vm864_vm1, %v9617_v20  ;;  %v9652_v20 = vld [vmem:[%s17582_s4 + $0x158] sm:$0xff] }
 0x7ca   : > { %12008 = vmatpush3.bf16.msra.mxu0 %v12007_v19 }
 0x7cb   : > { %12009 = vmatprep.subr.bf16.mxu0 %v13227_v3 }
 0x7cc   : > { %3038 = vmatmul.mubr.f32.gmra.mrb[166].mxu0 %v9616_v21  ;;  %v12010_v21 = vpack.c.bf16 %v9652_v20, %v9651_v18 }
 0x7cd   : > { %11030 = vmatprep.mubr.msk.f32.mxu0 %vm13229_vm3, %v13228_v49 }
 0x7ce   : > { %12011 = vmatpush3.bf16.msra.mxu0 %v12010_v21 }
 0x7cf   : > { %12012 = vmatprep.subr.bf16.mxu0 %v13227_v3 }
 0x855   : > { %v2898_v30 = vpop.f32.mrb[148].mxu0 }
 0x856   : > { %v14603_v31 = vadd.f32 %v2898_v30, %v14493_v40  ;;  %v10986_v34 = vpop.f32.mrb[149].mxu0 }
 0x859   : > { %v2903_v36 = vpop.f32.mrb[150].mxu0 }
 0x85a   : > { %v14606_v37 = vadd.f32 %v2903_v36, %v14496_v46  ;;  %v10989_v38 = vpop.f32.mrb[151].mxu0 }
 0x85d   : > { %v2908_v39 = vpop.f32.mrb[152].mxu0 }
 0x85e   : > { %v14609_v41 = vadd.f32 %v2908_v39, %v14499_v33  ;;  %v10992_v42 = vpop.f32.mrb[153].mxu0 }
 0x861   : > { %v2913_v47 = vpop.f32.mrb[154].mxu0 }
 0x862   : > { %v14612_v50 = vadd.f32 %v2913_v47, %v14502_v57  ;;  %v10995_v53 = vpop.f32.mrb[155].mxu0 }
 0x865   : > { %v2918_v56 = vpop.f32.mrb[156].mxu0 }
 0x866   : > { %v14615_v40 = vadd.f32 %v2918_v56, %v14505_v51  ;;  %v10998_v60 = vpop.f32.mrb[157].mxu0 }
 0x88f   : > { %v3019_v63 = vpop.f32.mrb[158].mxu0 }
 0x890   : > { %11008 = vmatmul.mubr.msk.f32.vlgmr.msra.gmra.mrb[80].mxu1 %vm1099_vm4, %v3019_v63  ;;  %v3021_v46 = vpop.f32.mrb[159].mxu0 }
 0x891   : > { %11966 = vmatpush1.bf16.msra.mxu1 %v13540_v43  ;;  %11010 = vmatprep.mubr.msk.f32.mxu1 %vm13229_vm3, %v13228_v49 }
 0x892   : > { %11967 = vmatprep.subr.bf16.mxu1 %v13227_v3 }
 0x893   : > { %v3024_v33 = vpop.f32.mrb[160].mxu0 }
 0x894   : > { %11011 = vmatmul.mubr.msk.f32.gmra.mrb[82].mxu1 %vm1099_vm4, %v3024_v33  ;;  %v3026_v57 = vpop.f32.mrb[161].mxu0  ;;  %v9659_v33 = vld [vmem:[%s17581_s3 + $0x378] sm:$0xff] }
 0x895   : > { %11969 = vmatpush1.bf16.msra.mxu1 %v13546_v52  ;;  %11013 = vmatprep.mubr.msk.f32.mxu1 %vm13229_vm3, %v13228_v49 }
 0x896   : > { %11970 = vmatprep.subr.bf16.mxu1 %v13227_v3 }
 0x897   : > { %v3029_v51 = vpop.f32.mrb[162].mxu0 }
 0x898   : > { %11014 = vmatmul.mubr.msk.f32.gmra.mrb[84].mxu1 %vm1099_vm4, %v3029_v51  ;;  %v3031_v5 = vpop.f32.mrb[163].mxu0 }
 0x899   : > { %11972 = vmatpush1.bf16.msra.mxu1 %v13552_v61  ;;  %11016 = vmatprep.mubr.msk.f32.mxu1 %vm13229_vm3, %v13228_v49  ;;  %v9658_v5 = vld [vmem:[%s17581_s3 + $0x370] sm:$0xff] }
 0x89a   : > { %11973 = vmatprep.subr.bf16.mxu1 %v13227_v3 }
 0x89b   : > { %v3034_v8 = vpop.f32.mrb[164].mxu0 }
 0x89c   : > { %11017 = vmatmul.mubr.msk.f32.gmra.mrb[86].mxu1 %vm1099_vm4, %v3034_v8  ;;  %v3036_v54 = vpop.f32.mrb[165].mxu0  ;;  %v9661_v8 = vld [vmem:[%s17581_s3 + $0x388] sm:$0xff] }
 0x89d   : > { %11975 = vmatpush1.bf16.msra.mxu1 %v13558_v7  ;;  %11019 = vmatprep.mubr.msk.f32.mxu1 %vm13229_vm3, %v13228_v49  ;;  %v9660_v54 = vld [vmem:[%s17581_s3 + $0x380] sm:$0xff] }
 0x89e   : > { %11976 = vmatprep.subr.bf16.mxu1 %v13227_v3 }
 0x89f   : > { %v3039_v0 = vpop.f32.mrb[166].mxu0 }
 0x8a0   : > { %11020 = vmatmul.mubr.msk.f32.gmra.mrb[88].mxu1 %vm1099_vm4, %v3039_v0  ;;  %v3041_v58 = vpop.f32.mrb[167].mxu0  ;;  %v9662_v0 = vld [vmem:[%s17581_s3 + $0x390] sm:$0xff] }
 0x8a1   : > { %11978 = vmatpush1.bf16.msra.mxu1 %v13564_v16  ;;  %9644 = vmatprep.mubr.msk.f32.mxu1 %vm864_vm1, %v9634_v59  ;;  %v9663_v59 = vld [vmem:[%s17581_s3 + $0x398] sm:$0xff]  ;;  %v9665_v58 = vld [vmem:[%s17581_s3 + $0x3a8] sm:$0xff] }
 0x8a2   : > { %11979 = vmatprep.subr.bf16.mxu1 %v13227_v3 }
 0x8a5   : > { %11981 = vmatpush1.bf16.msra.mxu1 %v13570_v25 }
 0x8a6   : > { %11982 = vmatprep.subr.bf16.mxu1 %v13227_v3 }
 0x8a9   : > { %11984 = vmatpush1.bf16.msra.mxu1 %v13576_v35 }
 0x8aa   : > { %11985 = vmatprep.subr.bf16.mxu1 %v13227_v3 }
 0x8ad   : > { %11987 = vmatpush1.bf16.msra.mxu1 %v13582_v45 }
 0x8ae   : > { %11988 = vmatprep.subr.bf16.mxu1 %v13227_v3 }
 0x8b1   : > { %11990 = vmatpush1.bf16.msra.mxu1 %v13588_v55 }
 0x8b2   : > { %11991 = vmatprep.subr.bf16.mxu1 %v13227_v3 }
 0x8b5   : > { %11993 = vmatpush1.bf16.msra.mxu1 %v13594_v1 }
 0x8b6   : > { %11994 = vmatprep.subr.bf16.mxu1 %v13227_v3 }
 0x8b9   : > { %11996 = vmatpush1.bf16.msra.mxu1 %v13600_v12 }
 0x8ba   : > { %11997 = vmatprep.subr.bf16.mxu1 %v13227_v3 }
 0x8bd   : > { %11999 = vmatpush1.bf16.msra.mxu1 %v13606_v22 }
 0x8be   : > { %12000 = vmatprep.subr.bf16.mxu1 %v13227_v3 }
 0x8c1   : > { %12002 = vmatpush1.bf16.msra.mxu1 %v13612_v32 }
 0x8c2   : > { %12003 = vmatprep.subr.bf16.mxu1 %v13227_v3 }
 0x8c5   : > { %12005 = vmatpush1.bf16.msra.mxu1 %v13618_v44 }
 0x8c6   : > { %3240 = vmatprep.subr.mxu1 %v13228_v49 }
 0x8c9   : > { %9643 = vmatpush1.msk.msra.mxu1 %vm880_vm2, %v13621_v48 }
 0x8ca   : > { %3249 = vmatmul.mubr.f32.vlgmr.msra.gmra.mrb[90].mxu1 %v9633_v11  ;;  %12054 = vmatprep.subr.bf16.mxu1 %v13227_v3  ;;  %v9664_v11 = vld [vmem:[%s17581_s3 + $0x3a0] sm:$0xff] }
 0x8cb   : > { %9645 = vmatprep.mubr.msk.f32.mxu1 %vm864_vm1, %v9636_v13  ;;  %v9667_v13 = vld [vmem:[%s17581_s3 + $0x3b8] sm:$0xf] }
 0x8ce   : > { %3254 = vmatmul.mubr.f32.gmra.mrb[92].mxu1 %v9635_v62  ;;  %v9666_v62 = vld [vmem:[%s17581_s3 + $0x3b0] sm:$0xf] }
 0x8cf   : > { %9646 = vmatprep.mubr.msk.f32.mxu1 %vm864_vm1, %v9638_v4  ;;  %v9674_v4 = vld [vmem:[%s17582_s4 + $0x160] sm:$0xff] }
 0x8d2   : > { %3259 = vmatmul.mubr.f32.gmra.mrb[94].mxu1 %v9637_v9  ;;  %v9675_v9 = vld [vmem:[%s17582_s4 + $0x168] sm:$0xff] }
 0x8d3   : > { %9647 = vmatprep.mubr.msk.f32.mxu1 %vm864_vm1, %v9640_v2  ;;  %v9676_v2 = vld [vmem:[%s17582_s4 + $0x170] sm:$0xff] }
 0x8d6   : > { %3264 = vmatmul.mubr.f32.gmra.mrb[96].mxu1 %v9639_v15  ;;  %v12055_v15 = vpack.c.bf16 %v9675_v9, %v9674_v4 }
 0x8d7   : > { %9648 = vmatprep.mubr.msk.f32.mxu1 %vm864_vm1, %v9642_v17  ;;  %v9677_v17 = vld [vmem:[%s17582_s4 + $0x178] sm:$0xff] }
 0x8d8   : > { %12056 = vmatpush3.bf16.msra.mxu1 %v12055_v15 }
 0x8d9   : > { %12057 = vmatprep.subr.bf16.mxu1 %v13227_v3 }
 0x8da   : > { %3269 = vmatmul.mubr.f32.gmra.mrb[98].mxu1 %v9641_v6  ;;  %v12058_v6 = vpack.c.bf16 %v9677_v17, %v9676_v2 }
 0x8db   : > { %11053 = vmatprep.mubr.msk.f32.mxu1 %vm13229_vm3, %v13228_v49 }
 0x8dc   : > { %12059 = vmatpush3.bf16.msra.mxu1 %v12058_v6 }
 0x8dd   : > { %12060 = vmatprep.subr.bf16.mxu1 %v13227_v3 }
 0x963   : > { %v3129_v23 = vpop.f32.mrb[80].mxu1 }
 0x964   : > { %v14713_v24 = vadd.f32 %v3129_v23, %v14603_v31  ;;  %v11009_v26 = vpop.f32.mrb[81].mxu1 }
 0x967   : > { %v3134_v27 = vpop.f32.mrb[82].mxu1 }
 0x968   : > { %v14716_v28 = vadd.f32 %v3134_v27, %v14606_v37  ;;  %v11012_v29 = vpop.f32.mrb[83].mxu1 }
 0x96b   : > { %v3139_v30 = vpop.f32.mrb[84].mxu1 }
 0x96c   : > { %v14719_v34 = vadd.f32 %v3139_v30, %v14609_v41  ;;  %v11015_v36 = vpop.f32.mrb[85].mxu1 }
 0x96f   : > { %v3144_v38 = vpop.f32.mrb[86].mxu1 }
 0x970   : > { %v14722_v39 = vadd.f32 %v3144_v38, %v14612_v50  ;;  %v11018_v42 = vpop.f32.mrb[87].mxu1 }
 0x973   : > { %v3149_v47 = vpop.f32.mrb[88].mxu1 }
 0x974   : > { %v14725_v31 = vadd.f32 %v3149_v47, %v14615_v40  ;;  %v11021_v53 = vpop.f32.mrb[89].mxu1 }
 0x99d   : > { %v3250_v56 = vpop.f32.mrb[90].mxu1 }
 0x99e   : > { %11031 = vmatmul.mubr.msk.f32.vlgmr.msra.gmra.mrb[168].mxu0 %vm1099_vm4, %v3250_v56  ;;  %v3252_v37 = vpop.f32.mrb[91].mxu1 }
 0x99f   : > { %12014 = vmatpush1.bf16.msra.mxu0 %v13540_v43  ;;  %11033 = vmatprep.mubr.msk.f32.mxu0 %vm13229_vm3, %v13228_v49 }
 0x9a0   : > { %12015 = vmatprep.subr.bf16.mxu0 %v13227_v3 }
 0x9a1   : > { %v3255_v41 = vpop.f32.mrb[92].mxu1 }
 0x9a2   : > { %11034 = vmatmul.mubr.msk.f32.gmra.mrb[170].mxu0 %vm1099_vm4, %v3255_v41  ;;  %v3257_v50 = vpop.f32.mrb[93].mxu1  ;;  %v9684_v41 = vld [vmem:[%s17581_s3 + $0x3c8] sm:$0xff] }
 0x9a3   : > { %12017 = vmatpush1.bf16.msra.mxu0 %v13546_v52  ;;  %11036 = vmatprep.mubr.msk.f32.mxu0 %vm13229_vm3, %v13228_v49 }
 0x9a4   : > { %12018 = vmatprep.subr.bf16.mxu0 %v13227_v3 }
 0x9a5   : > { %v3260_v40 = vpop.f32.mrb[94].mxu1 }
 0x9a6   : > { %11037 = vmatmul.mubr.msk.f32.gmra.mrb[172].mxu0 %vm1099_vm4, %v3260_v40  ;;  %v3262_v60 = vpop.f32.mrb[95].mxu1 }
 0x9a7   : > { %12020 = vmatpush1.bf16.msra.mxu0 %v13552_v61  ;;  %11039 = vmatprep.mubr.msk.f32.mxu0 %vm13229_vm3, %v13228_v49  ;;  %v9683_v60 = vld [vmem:[%s17581_s3 + $0x3c0] sm:$0xff] }
 0x9a8   : > { %12021 = vmatprep.subr.bf16.mxu0 %v13227_v3 }
 0x9a9   : > { %v3265_v63 = vpop.f32.mrb[96].mxu1 }
 0x9aa   : > { %11040 = vmatmul.mubr.msk.f32.gmra.mrb[174].mxu0 %vm1099_vm4, %v3265_v63  ;;  %v3267_v46 = vpop.f32.mrb[97].mxu1  ;;  %v9686_v63 = vld [vmem:[%s17581_s3 + $0x3d8] sm:$0xff] }
 0x9ab   : > { %12023 = vmatpush1.bf16.msra.mxu0 %v13558_v7  ;;  %11042 = vmatprep.mubr.msk.f32.mxu0 %vm13229_vm3, %v13228_v49  ;;  %v9685_v46 = vld [vmem:[%s17581_s3 + $0x3d0] sm:$0xff] }
 0x9ac   : > { %12024 = vmatprep.subr.bf16.mxu0 %v13227_v3 }
 0x9ad   : > { %v3270_v57 = vpop.f32.mrb[98].mxu1 }
 0x9ae   : > { %11043 = vmatmul.mubr.msk.f32.gmra.mrb[176].mxu0 %vm1099_vm4, %v3270_v57  ;;  %v3272_v51 = vpop.f32.mrb[99].mxu1  ;;  %v9687_v57 = vld [vmem:[%s17581_s3 + $0x3e0] sm:$0xff] }
 0x9af   : > { %12026 = vmatpush1.bf16.msra.mxu0 %v13564_v16  ;;  %9669 = vmatprep.mubr.msk.f32.mxu0 %vm864_vm1, %v9659_v33  ;;  %v9688_v33 = vld [vmem:[%s17581_s3 + $0x3e8] sm:$0xff]  ;;  %v9690_v51 = vld [vmem:[%s17581_s3 + $0x3f8] sm:$0xff] }
 0x9b0   : > { %12027 = vmatprep.subr.bf16.mxu0 %v13227_v3 }
 0x9b3   : > { %12029 = vmatpush1.bf16.msra.mxu0 %v13570_v25 }
 0x9b4   : > { %12030 = vmatprep.subr.bf16.mxu0 %v13227_v3 }
 0x9b7   : > { %12032 = vmatpush1.bf16.msra.mxu0 %v13576_v35 }
 0x9b8   : > { %12033 = vmatprep.subr.bf16.mxu0 %v13227_v3 }
 0x9bb   : > { %12035 = vmatpush1.bf16.msra.mxu0 %v13582_v45 }
 0x9bc   : > { %12036 = vmatprep.subr.bf16.mxu0 %v13227_v3 }
 0x9bf   : > { %12038 = vmatpush1.bf16.msra.mxu0 %v13588_v55 }
 0x9c0   : > { %12039 = vmatprep.subr.bf16.mxu0 %v13227_v3 }
 0x9c3   : > { %12041 = vmatpush1.bf16.msra.mxu0 %v13594_v1 }
 0x9c4   : > { %12042 = vmatprep.subr.bf16.mxu0 %v13227_v3 }
 0x9c7   : > { %12044 = vmatpush1.bf16.msra.mxu0 %v13600_v12 }
 0x9c8   : > { %12045 = vmatprep.subr.bf16.mxu0 %v13227_v3 }
 0x9cb   : > { %12047 = vmatpush1.bf16.msra.mxu0 %v13606_v22 }
 0x9cc   : > { %12048 = vmatprep.subr.bf16.mxu0 %v13227_v3 }
 0x9cf   : > { %12050 = vmatpush1.bf16.msra.mxu0 %v13612_v32 }
 0x9d0   : > { %12051 = vmatprep.subr.bf16.mxu0 %v13227_v3 }
 0x9d3   : > { %12053 = vmatpush1.bf16.msra.mxu0 %v13618_v44 }
 0x9d4   : > { %3471 = vmatprep.subr.mxu0 %v13228_v49 }
 0x9d7   : > { %9668 = vmatpush1.msk.msra.mxu0 %vm880_vm2, %v13621_v48 }
 0x9d8   : > { %3480 = vmatmul.mubr.f32.vlgmr.msra.gmra.mrb[178].mxu0 %v9658_v5  ;;  %12102 = vmatprep.subr.bf16.mxu0 %v13227_v3  ;;  %v9689_v5 = vld [vmem:[%s17581_s3 + $0x3f0] sm:$0xff] }
 0x9d9   : > { %9670 = vmatprep.mubr.msk.f32.mxu0 %vm864_vm1, %v9661_v8  ;;  %v9692_v8 = vld [vmem:[%s17581_s3 + $0x408] sm:$0xf] }
 0x9dc   : > { %3485 = vmatmul.mubr.f32.gmra.mrb[180].mxu0 %v9660_v54  ;;  %v9691_v54 = vld [vmem:[%s17581_s3 + $0x400] sm:$0xf] }
 0x9dd   : > { %9671 = vmatprep.mubr.msk.f32.mxu0 %vm864_vm1, %v9663_v59  ;;  %v9699_v59 = vld [vmem:[%s17582_s4 + $0x180] sm:$0xff] }
 0x9e0   : > { %3490 = vmatmul.mubr.f32.gmra.mrb[182].mxu0 %v9662_v0  ;;  %v9700_v0 = vld [vmem:[%s17582_s4 + $0x188] sm:$0xff] }
 0x9e1   : > { %9672 = vmatprep.mubr.msk.f32.mxu0 %vm864_vm1, %v9665_v58  ;;  %v9701_v58 = vld [vmem:[%s17582_s4 + $0x190] sm:$0xff] }
 0x9e4   : > { %3495 = vmatmul.mubr.f32.gmra.mrb[184].mxu0 %v9664_v11  ;;  %v12103_v11 = vpack.c.bf16 %v9700_v0, %v9699_v59 }
 0x9e5   : > { %9673 = vmatprep.mubr.msk.f32.mxu0 %vm864_vm1, %v9667_v13  ;;  %v9702_v13 = vld [vmem:[%s17582_s4 + $0x198] sm:$0xff] }
 0x9e6   : > { %12104 = vmatpush3.bf16.msra.mxu0 %v12103_v11 }
 0x9e7   : > { %12105 = vmatprep.subr.bf16.mxu0 %v13227_v3 }
 0x9e8   : > { %3500 = vmatmul.mubr.f32.gmra.mrb[186].mxu0 %v9666_v62  ;;  %v12106_v62 = vpack.c.bf16 %v9702_v13, %v9701_v58 }
 0x9e9   : > { %11076 = vmatprep.mubr.msk.f32.mxu0 %vm13229_vm3, %v13228_v49 }
 0x9ea   : > { %12107 = vmatpush3.bf16.msra.mxu0 %v12106_v62 }
 0x9eb   : > { %12108 = vmatprep.subr.bf16.mxu0 %v13227_v3 }
 0xa71   : > { %v3360_v10 = vpop.f32.mrb[168].mxu0 }
 0xa72   : > { %v14823_v14 = vadd.f32 %v3360_v10, %v14713_v24  ;;  %v11032_v18 = vpop.f32.mrb[169].mxu0 }
 0xa75   : > { %v3365_v19 = vpop.f32.mrb[170].mxu0 }
 0xa76   : > { %v14826_v20 = vadd.f32 %v3365_v19, %v14716_v28  ;;  %v11035_v21 = vpop.f32.mrb[171].mxu0 }
 0xa79   : > { %v3370_v23 = vpop.f32.mrb[172].mxu0 }
 0xa7a   : > { %v14829_v26 = vadd.f32 %v3370_v23, %v14719_v34  ;;  %v11038_v27 = vpop.f32.mrb[173].mxu0 }
 0xa7d   : > { %v3375_v29 = vpop.f32.mrb[174].mxu0 }
 0xa7e   : > { %v14832_v30 = vadd.f32 %v3375_v29, %v14722_v39  ;;  %v11041_v36 = vpop.f32.mrb[175].mxu0 }
 0xa81   : > { %v3380_v38 = vpop.f32.mrb[176].mxu0 }
 0xa82   : > { %v14835_v24 = vadd.f32 %v3380_v38, %v14725_v31  ;;  %v11044_v42 = vpop.f32.mrb[177].mxu0 }
 0xaab   : > { %v3481_v47 = vpop.f32.mrb[178].mxu0 }
 0xaac   : > { %11054 = vmatmul.mubr.msk.f32.vlgmr.msra.gmra.mrb[100].mxu1 %vm1099_vm4, %v3481_v47  ;;  %v3483_v28 = vpop.f32.mrb[179].mxu0 }
 0xaad   : > { %12062 = vmatpush1.bf16.msra.mxu1 %v13540_v43  ;;  %11056 = vmatprep.mubr.msk.f32.mxu1 %vm13229_vm3, %v13228_v49 }
 0xaae   : > { %12063 = vmatprep.subr.bf16.mxu1 %v13227_v3 }
 0xaaf   : > { %v3486_v34 = vpop.f32.mrb[180].mxu0 }
 0xab0   : > { %11057 = vmatmul.mubr.msk.f32.gmra.mrb[102].mxu1 %vm1099_vm4, %v3486_v34  ;;  %v3488_v39 = vpop.f32.mrb[181].mxu0  ;;  %v9709_v34 = vld [vmem:[%s17581_s3 + $0x418] sm:$0xff] }
 0xab1   : > { %12065 = vmatpush1.bf16.msra.mxu1 %v13546_v52  ;;  %11059 = vmatprep.mubr.msk.f32.mxu1 %vm13229_vm3, %v13228_v49 }
 0xab2   : > { %12066 = vmatprep.subr.bf16.mxu1 %v13227_v3 }
 0xab3   : > { %v3491_v31 = vpop.f32.mrb[182].mxu0 }
 0xab4   : > { %11060 = vmatmul.mubr.msk.f32.gmra.mrb[104].mxu1 %vm1099_vm4, %v3491_v31  ;;  %v3493_v53 = vpop.f32.mrb[183].mxu0 }
 0xab5   : > { %12068 = vmatpush1.bf16.msra.mxu1 %v13552_v61  ;;  %11062 = vmatprep.mubr.msk.f32.mxu1 %vm13229_vm3, %v13228_v49  ;;  %v9708_v53 = vld [vmem:[%s17581_s3 + $0x410] sm:$0xff] }
 0xab6   : > { %12069 = vmatprep.subr.bf16.mxu1 %v13227_v3 }
 0xab7   : > { %v3496_v56 = vpop.f32.mrb[184].mxu0 }
 0xab8   : > { %11063 = vmatmul.mubr.msk.f32.gmra.mrb[106].mxu1 %vm1099_vm4, %v3496_v56  ;;  %v3498_v37 = vpop.f32.mrb[185].mxu0  ;;  %v9711_v56 = vld [vmem:[%s17581_s3 + $0x428] sm:$0xff] }
 0xab9   : > { %12071 = vmatpush1.bf16.msra.mxu1 %v13558_v7  ;;  %11065 = vmatprep.mubr.msk.f32.mxu1 %vm13229_vm3, %v13228_v49  ;;  %v9710_v37 = vld [vmem:[%s17581_s3 + $0x420] sm:$0xff] }
 0xaba   : > { %12072 = vmatprep.subr.bf16.mxu1 %v13227_v3 }
 0xabb   : > { %v3501_v50 = vpop.f32.mrb[186].mxu0 }
 0xabc   : > { %11066 = vmatmul.mubr.msk.f32.gmra.mrb[108].mxu1 %vm1099_vm4, %v3501_v50  ;;  %v3503_v40 = vpop.f32.mrb[187].mxu0  ;;  %v9712_v50 = vld [vmem:[%s17581_s3 + $0x430] sm:$0xff] }
 0xabd   : > { %12074 = vmatpush1.bf16.msra.mxu1 %v13564_v16  ;;  %9694 = vmatprep.mubr.msk.f32.mxu1 %vm864_vm1, %v9684_v41  ;;  %v9713_v41 = vld [vmem:[%s17581_s3 + $0x438] sm:$0xff]  ;;  %v9715_v40 = vld [vmem:[%s17581_s3 + $0x448] sm:$0xff] }
 0xabe   : > { %12075 = vmatprep.subr.bf16.mxu1 %v13227_v3 }
 0xac1   : > { %12077 = vmatpush1.bf16.msra.mxu1 %v13570_v25 }
 0xac2   : > { %12078 = vmatprep.subr.bf16.mxu1 %v13227_v3 }
 0xac5   : > { %12080 = vmatpush1.bf16.msra.mxu1 %v13576_v35 }
 0xac6   : > { %12081 = vmatprep.subr.bf16.mxu1 %v13227_v3 }
 0xac9   : > { %12083 = vmatpush1.bf16.msra.mxu1 %v13582_v45 }
 0xaca   : > { %12084 = vmatprep.subr.bf16.mxu1 %v13227_v3 }
 0xacd   : > { %12086 = vmatpush1.bf16.msra.mxu1 %v13588_v55 }
 0xace   : > { %12087 = vmatprep.subr.bf16.mxu1 %v13227_v3 }
 0xad1   : > { %12089 = vmatpush1.bf16.msra.mxu1 %v13594_v1 }
 0xad2   : > { %12090 = vmatprep.subr.bf16.mxu1 %v13227_v3 }
 0xad5   : > { %12092 = vmatpush1.bf16.msra.mxu1 %v13600_v12 }
 0xad6   : > { %12093 = vmatprep.subr.bf16.mxu1 %v13227_v3 }
 0xad9   : > { %12095 = vmatpush1.bf16.msra.mxu1 %v13606_v22 }
 0xada   : > { %12096 = vmatprep.subr.bf16.mxu1 %v13227_v3 }
 0xadd   : > { %12098 = vmatpush1.bf16.msra.mxu1 %v13612_v32 }
 0xade   : > { %12099 = vmatprep.subr.bf16.mxu1 %v13227_v3 }
 0xae1   : > { %12101 = vmatpush1.bf16.msra.mxu1 %v13618_v44 }
 0xae2   : > { %3702 = vmatprep.subr.mxu1 %v13228_v49 }
 0xae5   : > { %9693 = vmatpush1.msk.msra.mxu1 %vm880_vm2, %v13621_v48 }
 0xae6   : > { %3711 = vmatmul.mubr.f32.vlgmr.msra.gmra.mrb[110].mxu1 %v9683_v60  ;;  %12150 = vmatprep.subr.bf16.mxu1 %v13227_v3  ;;  %v9714_v60 = vld [vmem:[%s17581_s3 + $0x440] sm:$0xff] }
 0xae7   : > { %9695 = vmatprep.mubr.msk.f32.mxu1 %vm864_vm1, %v9686_v63  ;;  %v9717_v63 = vld [vmem:[%s17581_s3 + $0x458] sm:$0xf] }
 0xaea   : > { %3716 = vmatmul.mubr.f32.gmra.mrb[112].mxu1 %v9685_v46  ;;  %v9716_v46 = vld [vmem:[%s17581_s3 + $0x450] sm:$0xf] }
 0xaeb   : > { %9696 = vmatprep.mubr.msk.f32.mxu1 %vm864_vm1, %v9688_v33  ;;  %v9724_v33 = vld [vmem:[%s17582_s4 + $0x1a0] sm:$0xff] }
 0xaee   : > { %3721 = vmatmul.mubr.f32.gmra.mrb[114].mxu1 %v9687_v57  ;;  %v9725_v57 = vld [vmem:[%s17582_s4 + $0x1a8] sm:$0xff] }
 0xaef   : > { %9697 = vmatprep.mubr.msk.f32.mxu1 %vm864_vm1, %v9690_v51  ;;  %v9726_v51 = vld [vmem:[%s17582_s4 + $0x1b0] sm:$0xff] }
 0xaf2   : > { %3726 = vmatmul.mubr.f32.gmra.mrb[116].mxu1 %v9689_v5  ;;  %v12151_v5 = vpack.c.bf16 %v9725_v57, %v9724_v33 }
 0xaf3   : > { %9698 = vmatprep.mubr.msk.f32.mxu1 %vm864_vm1, %v9692_v8  ;;  %v9727_v8 = vld [vmem:[%s17582_s4 + $0x1b8] sm:$0xff] }
 0xaf4   : > { %12152 = vmatpush3.bf16.msra.mxu1 %v12151_v5 }
 0xaf5   : > { %12153 = vmatprep.subr.bf16.mxu1 %v13227_v3 }
 0xaf6   : > { %3731 = vmatmul.mubr.f32.gmra.mrb[118].mxu1 %v9691_v54  ;;  %v12154_v54 = vpack.c.bf16 %v9727_v8, %v9726_v51 }
 0xaf7   : > { %11099 = vmatprep.mubr.msk.f32.mxu1 %vm13229_vm3, %v13228_v49 }
 0xaf8   : > { %12155 = vmatpush3.bf16.msra.mxu1 %v12154_v54 }
 0xaf9   : > { %12156 = vmatprep.subr.bf16.mxu1 %v13227_v3 }
 0xb7f   : > { %v3591_v4 = vpop.f32.mrb[100].mxu1 }
 0xb80   : > { %v14933_v9 = vadd.f32 %v3591_v4, %v14823_v14  ;;  %v11055_v2 = vpop.f32.mrb[101].mxu1 }
 0xb83   : > { %v3596_v15 = vpop.f32.mrb[102].mxu1 }
 0xb84   : > { %v14936_v17 = vadd.f32 %v3596_v15, %v14826_v20  ;;  %v11058_v6 = vpop.f32.mrb[103].mxu1 }
 0xb87   : > { %v3601_v10 = vpop.f32.mrb[104].mxu1 }
 0xb88   : > { %v14939_v18 = vadd.f32 %v3601_v10, %v14829_v26  ;;  %v11061_v19 = vpop.f32.mrb[105].mxu1 }
 0xb8b   : > { %v3606_v21 = vpop.f32.mrb[106].mxu1 }
 0xb8c   : > { %v14942_v23 = vadd.f32 %v3606_v21, %v14832_v30  ;;  %v11064_v27 = vpop.f32.mrb[107].mxu1 }
 0xb8f   : > { %v3611_v29 = vpop.f32.mrb[108].mxu1 }
 0xb90   : > { %v14945_v14 = vadd.f32 %v3611_v29, %v14835_v24  ;;  %v11067_v36 = vpop.f32.mrb[109].mxu1 }
 0xbb9   : > { %v3712_v38 = vpop.f32.mrb[110].mxu1 }
 0xbba   : > { %11077 = vmatmul.mubr.msk.f32.vlgmr.msra.gmra.mrb[188].mxu0 %vm1099_vm4, %v3712_v38  ;;  %v3714_v20 = vpop.f32.mrb[111].mxu1 }
 0xbbb   : > { %12110 = vmatpush1.bf16.msra.mxu0 %v13540_v43  ;;  %11079 = vmatprep.mubr.msk.f32.mxu0 %vm13229_vm3, %v13228_v49 }
 0xbbc   : > { %12111 = vmatprep.subr.bf16.mxu0 %v13227_v3 }
 0xbbd   : > { %v3717_v26 = vpop.f32.mrb[112].mxu1 }
 0xbbe   : > { %11080 = vmatmul.mubr.msk.f32.gmra.mrb[190].mxu0 %vm1099_vm4, %v3717_v26  ;;  %v3719_v30 = vpop.f32.mrb[113].mxu1  ;;  %v9734_v26 = vld [vmem:[%s17581_s3 + $0x468] sm:$0xff] }
 0xbbf   : > { %12113 = vmatpush1.bf16.msra.mxu0 %v13546_v52  ;;  %11082 = vmatprep.mubr.msk.f32.mxu0 %vm13229_vm3, %v13228_v49 }
 0xbc0   : > { %12114 = vmatprep.subr.bf16.mxu0 %v13227_v3 }
 0xbc1   : > { %v3722_v24 = vpop.f32.mrb[114].mxu1 }
 0xbc2   : > { %11083 = vmatmul.mubr.msk.f32.gmra.mrb[192].mxu0 %vm1099_vm4, %v3722_v24  ;;  %v3724_v42 = vpop.f32.mrb[115].mxu1 }
 0xbc3   : > { %12116 = vmatpush1.bf16.msra.mxu0 %v13552_v61  ;;  %11085 = vmatprep.mubr.msk.f32.mxu0 %vm13229_vm3, %v13228_v49  ;;  %v9733_v42 = vld [vmem:[%s17581_s3 + $0x460] sm:$0xff] }
 0xbc4   : > { %12117 = vmatprep.subr.bf16.mxu0 %v13227_v3 }
 0xbc5   : > { %v3727_v47 = vpop.f32.mrb[116].mxu1 }
 0xbc6   : > { %11086 = vmatmul.mubr.msk.f32.gmra.mrb[194].mxu0 %vm1099_vm4, %v3727_v47  ;;  %v3729_v28 = vpop.f32.mrb[117].mxu1  ;;  %v9736_v47 = vld [vmem:[%s17581_s3 + $0x478] sm:$0xff] }
 0xbc7   : > { %12119 = vmatpush1.bf16.msra.mxu0 %v13558_v7  ;;  %11088 = vmatprep.mubr.msk.f32.mxu0 %vm13229_vm3, %v13228_v49  ;;  %v9735_v28 = vld [vmem:[%s17581_s3 + $0x470] sm:$0xff] }
 0xbc8   : > { %12120 = vmatprep.subr.bf16.mxu0 %v13227_v3 }
 0xbc9   : > { %v3732_v39 = vpop.f32.mrb[118].mxu1 }
 0xbca   : > { %11089 = vmatmul.mubr.msk.f32.gmra.mrb[196].mxu0 %vm1099_vm4, %v3732_v39  ;;  %v3734_v31 = vpop.f32.mrb[119].mxu1  ;;  %v9737_v39 = vld [vmem:[%s17581_s3 + $0x480] sm:$0xff] }
 0xbcb   : > { %12122 = vmatpush1.bf16.msra.mxu0 %v13564_v16  ;;  %9719 = vmatprep.mubr.msk.f32.mxu0 %vm864_vm1, %v9709_v34  ;;  %v9738_v34 = vld [vmem:[%s17581_s3 + $0x488] sm:$0xff]  ;;  %v9740_v31 = vld [vmem:[%s17581_s3 + $0x498] sm:$0xff] }
 0xbcc   : > { %12123 = vmatprep.subr.bf16.mxu0 %v13227_v3 }
 0xbcf   : > { %12125 = vmatpush1.bf16.msra.mxu0 %v13570_v25 }
 0xbd0   : > { %12126 = vmatprep.subr.bf16.mxu0 %v13227_v3 }
 0xbd3   : > { %12128 = vmatpush1.bf16.msra.mxu0 %v13576_v35 }
 0xbd4   : > { %12129 = vmatprep.subr.bf16.mxu0 %v13227_v3 }
 0xbd7   : > { %12131 = vmatpush1.bf16.msra.mxu0 %v13582_v45 }
 0xbd8   : > { %12132 = vmatprep.subr.bf16.mxu0 %v13227_v3 }
 0xbdb   : > { %12134 = vmatpush1.bf16.msra.mxu0 %v13588_v55 }
 0xbdc   : > { %12135 = vmatprep.subr.bf16.mxu0 %v13227_v3 }
 0xbdf   : > { %12137 = vmatpush1.bf16.msra.mxu0 %v13594_v1 }
 0xbe0   : > { %12138 = vmatprep.subr.bf16.mxu0 %v13227_v3 }
 0xbe3   : > { %12140 = vmatpush1.bf16.msra.mxu0 %v13600_v12 }
 0xbe4   : > { %12141 = vmatprep.subr.bf16.mxu0 %v13227_v3 }
 0xbe7   : > { %12143 = vmatpush1.bf16.msra.mxu0 %v13606_v22 }
 0xbe8   : > { %12144 = vmatprep.subr.bf16.mxu0 %v13227_v3 }
 0xbeb   : > { %12146 = vmatpush1.bf16.msra.mxu0 %v13612_v32 }
 0xbec   : > { %12147 = vmatprep.subr.bf16.mxu0 %v13227_v3 }
 0xbef   : > { %12149 = vmatpush1.bf16.msra.mxu0 %v13618_v44 }
 0xbf0   : > { %3933 = vmatprep.subr.mxu0 %v13228_v49 }
 0xbf3   : > { %9718 = vmatpush1.msk.msra.mxu0 %vm880_vm2, %v13621_v48 }
 0xbf4   : > { %3942 = vmatmul.mubr.f32.vlgmr.msra.gmra.mrb[198].mxu0 %v9708_v53  ;;  %12198 = vmatprep.subr.bf16.mxu0 %v13227_v3  ;;  %v9739_v53 = vld [vmem:[%s17581_s3 + $0x490] sm:$0xff] }
 0xbf5   : > { %9720 = vmatprep.mubr.msk.f32.mxu0 %vm864_vm1, %v9711_v56  ;;  %v9742_v56 = vld [vmem:[%s17581_s3 + $0x4a8] sm:$0xf] }
 0xbf8   : > { %3947 = vmatmul.mubr.f32.gmra.mrb[200].mxu0 %v9710_v37  ;;  %v9741_v37 = vld [vmem:[%s17581_s3 + $0x4a0] sm:$0xf] }
 0xbf9   : > { %9721 = vmatprep.mubr.msk.f32.mxu0 %vm864_vm1, %v9713_v41  ;;  %v9749_v41 = vld [vmem:[%s17582_s4 + $0x1c0] sm:$0xff] }
 0xbfc   : > { %3952 = vmatmul.mubr.f32.gmra.mrb[202].mxu0 %v9712_v50  ;;  %v9750_v50 = vld [vmem:[%s17582_s4 + $0x1c8] sm:$0xff] }
 0xbfd   : > { %9722 = vmatprep.mubr.msk.f32.mxu0 %vm864_vm1, %v9715_v40  ;;  %v9751_v40 = vld [vmem:[%s17582_s4 + $0x1d0] sm:$0xff] }
 0xc00   : > { %3957 = vmatmul.mubr.f32.gmra.mrb[204].mxu0 %v9714_v60  ;;  %v12199_v60 = vpack.c.bf16 %v9750_v50, %v9749_v41 }
 0xc01   : > { %9723 = vmatprep.mubr.msk.f32.mxu0 %vm864_vm1, %v9717_v63  ;;  %v9752_v63 = vld [vmem:[%s17582_s4 + $0x1d8] sm:$0xff] }
 0xc02   : > { %12200 = vmatpush3.bf16.msra.mxu0 %v12199_v60 }
 0xc03   : > { %12201 = vmatprep.subr.bf16.mxu0 %v13227_v3 }
 0xc04   : > { %3962 = vmatmul.mubr.f32.gmra.mrb[206].mxu0 %v9716_v46  ;;  %v12202_v46 = vpack.c.bf16 %v9752_v63, %v9751_v40 }
 0xc05   : > { %11122 = vmatprep.mubr.msk.f32.mxu0 %vm13229_vm3, %v13228_v49 }
 0xc06   : > { %12203 = vmatpush3.bf16.msra.mxu0 %v12202_v46 }
 0xc07   : > { %12204 = vmatprep.subr.bf16.mxu0 %v13227_v3 }
 0xc8d   : > { %v3822_v59 = vpop.f32.mrb[188].mxu0 }
 0xc8e   : > { %v15043_v0 = vadd.f32 %v3822_v59, %v14933_v9  ;;  %v11078_v58 = vpop.f32.mrb[189].mxu0 }
 0xc91   : > { %v3827_v11 = vpop.f32.mrb[190].mxu0 }
 0xc92   : > { %v15046_v13 = vadd.f32 %v3827_v11, %v14936_v17  ;;  %v11081_v62 = vpop.f32.mrb[191].mxu0 }
 0xc95   : > { %v3832_v4 = vpop.f32.mrb[192].mxu0 }
 0xc96   : > { %v15049_v2 = vadd.f32 %v3832_v4, %v14939_v18  ;;  %v11084_v15 = vpop.f32.mrb[193].mxu0 }
 0xc99   : > { %v3837_v6 = vpop.f32.mrb[194].mxu0 }
 0xc9a   : > { %v15052_v10 = vadd.f32 %v3837_v6, %v14942_v23  ;;  %v11087_v19 = vpop.f32.mrb[195].mxu0 }
 0xc9d   : > { %v3842_v21 = vpop.f32.mrb[196].mxu0 }
 0xc9e   : > { %v15055_v9 = vadd.f32 %v3842_v21, %v14945_v14  ;;  %v11090_v27 = vpop.f32.mrb[197].mxu0 }
 0xcc7   : > { %v3943_v29 = vpop.f32.mrb[198].mxu0 }
 0xcc8   : > { %11100 = vmatmul.mubr.msk.f32.vlgmr.msra.gmra.mrb[120].mxu1 %vm1099_vm4, %v3943_v29  ;;  %v3945_v17 = vpop.f32.mrb[199].mxu0 }
 0xcc9   : > { %12158 = vmatpush1.bf16.msra.mxu1 %v13540_v43  ;;  %11102 = vmatprep.mubr.msk.f32.mxu1 %vm13229_vm3, %v13228_v49 }
 0xcca   : > { %12159 = vmatprep.subr.bf16.mxu1 %v13227_v3 }
 0xccb   : > { %v3948_v18 = vpop.f32.mrb[200].mxu0 }
 0xccc   : > { %11103 = vmatmul.mubr.msk.f32.gmra.mrb[122].mxu1 %vm1099_vm4, %v3948_v18  ;;  %v3950_v23 = vpop.f32.mrb[201].mxu0 }
 0xccd   : > { %12161 = vmatpush1.bf16.msra.mxu1 %v13546_v52  ;;  %11105 = vmatprep.mubr.msk.f32.mxu1 %vm13229_vm3, %v13228_v49  ;;  %v9777_v23 = vld [vmem:[%s17582_s4 + $0x1f8] sm:$0xff] }
 0xcce   : > { %12162 = vmatprep.subr.bf16.mxu1 %v13227_v3 }
 0xccf   : > { %v3953_v14 = vpop.f32.mrb[202].mxu0 }
 0xcd0   : > { %11106 = vmatmul.mubr.msk.f32.gmra.mrb[124].mxu1 %vm1099_vm4, %v3953_v14  ;;  %v3955_v36 = vpop.f32.mrb[203].mxu0 }
 0xcd1   : > { %12164 = vmatpush1.bf16.msra.mxu1 %v13552_v61  ;;  %11108 = vmatprep.mubr.msk.f32.mxu1 %vm13229_vm3, %v13228_v49 }
 0xcd2   : > { %12165 = vmatprep.subr.bf16.mxu1 %v13227_v3 }
 0xcd3   : > { %v3958_v38 = vpop.f32.mrb[204].mxu0 }
 0xcd4   : > { %11109 = vmatmul.mubr.msk.f32.gmra.mrb[126].mxu1 %vm1099_vm4, %v3958_v38  ;;  %v3960_v20 = vpop.f32.mrb[205].mxu0 }
 0xcd5   : > { %12167 = vmatpush1.bf16.msra.mxu1 %v13558_v7  ;;  %11111 = vmatprep.mubr.msk.f32.mxu1 %vm13229_vm3, %v13228_v49 }
 0xcd6   : > { %12168 = vmatprep.subr.bf16.mxu1 %v13227_v3 }
 0xcd7   : > { %v3963_v30 = vpop.f32.mrb[206].mxu0 }
 0xcd8   : > { %11112 = vmatmul.mubr.msk.f32.gmra.mrb[128].mxu1 %vm1099_vm4, %v3963_v30  ;;  %v3965_v24 = vpop.f32.mrb[207].mxu0 }
 0xcd9   : > { %12170 = vmatpush1.bf16.msra.mxu1 %v13564_v16  ;;  %9744 = vmatprep.mubr.msk.f32.mxu1 %vm864_vm1, %v9734_v26 }
 0xcda   : > { %12171 = vmatprep.subr.bf16.mxu1 %v13227_v3 }
 0xcdd   : > { %12173 = vmatpush1.bf16.msra.mxu1 %v13570_v25 }
 0xcde   : > { %12174 = vmatprep.subr.bf16.mxu1 %v13227_v3 }
 0xce1   : > { %12176 = vmatpush1.bf16.msra.mxu1 %v13576_v35 }
 0xce2   : > { %12177 = vmatprep.subr.bf16.mxu1 %v13227_v3 }
 0xce5   : > { %12179 = vmatpush1.bf16.msra.mxu1 %v13582_v45 }
 0xce6   : > { %12180 = vmatprep.subr.bf16.mxu1 %v13227_v3 }
 0xce9   : > { %12182 = vmatpush1.bf16.msra.mxu1 %v13588_v55 }
 0xcea   : > { %12183 = vmatprep.subr.bf16.mxu1 %v13227_v3 }
 0xced   : > { %12185 = vmatpush1.bf16.msra.mxu1 %v13594_v1 }
 0xcee   : > { %12186 = vmatprep.subr.bf16.mxu1 %v13227_v3 }
 0xcf1   : > { %12188 = vmatpush1.bf16.msra.mxu1 %v13600_v12 }
 0xcf2   : > { %12189 = vmatprep.subr.bf16.mxu1 %v13227_v3 }
 0xcf5   : > { %12191 = vmatpush1.bf16.msra.mxu1 %v13606_v22 }
 0xcf6   : > { %12192 = vmatprep.subr.bf16.mxu1 %v13227_v3 }
 0xcf9   : > { %12194 = vmatpush1.bf16.msra.mxu1 %v13612_v32 }
 0xcfa   : > { %12195 = vmatprep.subr.bf16.mxu1 %v13227_v3 }
 0xcfd   : > { %12197 = vmatpush1.bf16.msra.mxu1 %v13618_v44 }
 0xcfe   : > { %4164 = vmatprep.subr.mxu1 %v13228_v49 }
 0xd01   : > { %9743 = vmatpush1.msk.msra.mxu1 %vm880_vm2, %v13621_v48 }
 0xd02   : > { %4173 = vmatmul.mubr.f32.vlgmr.msra.gmra.mrb[130].mxu1 %v9733_v42  ;;  %12246 = vmatprep.subr.bf16.mxu1 %v13227_v3 }
 0xd03   : > { %9745 = vmatprep.mubr.msk.f32.mxu1 %vm864_vm1, %v9736_v47 }
 0xd06   : > { %4178 = vmatmul.mubr.f32.gmra.mrb[132].mxu1 %v9735_v28 }
 0xd07   : > { %9746 = vmatprep.mubr.msk.f32.mxu1 %vm864_vm1, %v9738_v34 }
 0xd0a   : > { %4183 = vmatmul.mubr.f32.gmra.mrb[134].mxu1 %v9737_v39 }
 0xd0b   : > { %9747 = vmatprep.mubr.msk.f32.mxu1 %vm864_vm1, %v9740_v31 }
 0xd0e   : > { %4188 = vmatmul.mubr.f32.gmra.mrb[136].mxu1 %v9739_v53 }
 0xd0f   : > { %9748 = vmatprep.mubr.msk.f32.mxu1 %vm864_vm1, %v9742_v56 }
 0xd12   : > { %4193 = vmatmul.mubr.f32.gmra.mrb[138].mxu1 %v9741_v37 }
 0xd13   : > { %11145 = vmatprep.mubr.msk.f32.mxu1 %vm13229_vm3, %v13228_v49 }
 0xd9b   : > { %v4053_v33 = vpop.f32.mrb[120].mxu1 }
 0xd9c   : > { %v15153_v57 = vadd.f32 %v4053_v33, %v15043_v0  ;;  %v11101_v51 = vpop.f32.mrb[121].mxu1 }
 0xd9f   : > { %v4058_v5 = vpop.f32.mrb[122].mxu1 }
 0xda0   : > { %v15156_v8 = vadd.f32 %v4058_v5, %v15046_v13  ;;  %v11104_v54 = vpop.f32.mrb[123].mxu1  ;;  %v4561_v5 = vld [vmem:[%s17584_s6] sm:$0xff] }
 0xda1   : > { %v9793_v54 = vld [vmem:[%s17585_s7 + $0x48] sm:$0xff] }
 0xda3   : > { %v4063_v59 = vpop.f32.mrb[124].mxu1 }
 0xda4   : > { %v15159_v58 = vadd.f32 %v4063_v59, %v15049_v2  ;;  %v11107_v11 = vpop.f32.mrb[125].mxu1  ;;  %v9794_v59 = vld [vmem:[%s17585_s7 + $0x50] sm:$0xff] }
 0xda5   : > { %v9795_v11 = vld [vmem:[%s17585_s7 + $0x58] sm:$0xff] }
 0xda7   : > { %v4068_v62 = vpop.f32.mrb[126].mxu1 }
 0xda8   : > { %v15162_v4 = vadd.f32 %v4068_v62, %v15052_v10  ;;  %v11110_v15 = vpop.f32.mrb[127].mxu1  ;;  %v12272_v62 = vpack.c.bf16 %v9795_v11, %v9794_v59  ;;  %v4653_v59 = vld [vmem:[%s17585_s7 + $0x20] sm:$0xff] }
 0xda9   : > { %v9797_v15 = vld [vmem:[%s17585_s7 + $0x68] sm:$0xff] }
 0xdab   : > { %v4073_v6 = vpop.f32.mrb[128].mxu1 }
 0xdac   : > { %v15165_v0 = vadd.f32 %v4073_v6, %v15055_v9  ;;  %v11113_v19 = vpop.f32.mrb[129].mxu1 }
 0xdd5   : > { %v4174_v21 = vpop.f32.mrb[130].mxu1 }
 0xdd6   : > { %11123 = vmatmul.mubr.msk.f32.vlgmr.msra.gmra.mrb[208].mxu0 %vm1099_vm4, %v4174_v21  ;;  %v4176_v13 = vpop.f32.mrb[131].mxu1 }
 0xdd7   : > { %12206 = vmatpush1.bf16.msra.mxu0 %v13540_v43  ;;  %11125 = vmatprep.mubr.msk.f32.mxu0 %vm13229_vm3, %v13228_v49  ;;  %v9783_v13 = vld [vmem:[%s17583_s5] ss:$0 sm:$0xff] }
 0xdd8   : > { %12207 = vmatprep.subr.bf16.mxu0 %v13227_v3 }
 0xdd9   : > { %v4179_v2 = vpop.f32.mrb[132].mxu1 }
 0xdda   : > { %11126 = vmatmul.mubr.msk.f32.gmra.mrb[210].mxu0 %vm1099_vm4, %v4179_v2  ;;  %v4181_v10 = vpop.f32.mrb[133].mxu1 }
 0xddb   : > { %12209 = vmatpush1.bf16.msra.mxu0 %v13546_v52  ;;  %11128 = vmatprep.mubr.msk.f32.mxu0 %vm13229_vm3, %v13228_v49 }
 0xddc   : > { %12210 = vmatprep.subr.bf16.mxu0 %v13227_v3 }
 0xddd   : > { %v4184_v9 = vpop.f32.mrb[134].mxu1 }
 0xdde   : > { %11129 = vmatmul.mubr.msk.f32.gmra.mrb[212].mxu0 %vm1099_vm4, %v4184_v9  ;;  %v4186_v43 = vpop.f32.mrb[135].mxu1 }
 0xddf   : > { %12212 = vmatpush1.bf16.msra.mxu0 %v13552_v61  ;;  %11131 = vmatprep.mubr.msk.f32.mxu0 %vm13229_vm3, %v13228_v49  ;;  %v9759_v61 = vld [vmem:[%s17581_s3 + $0x4b8] sm:$0xff] }
 0xde0   : > { %12213 = vmatprep.subr.bf16.mxu0 %v13227_v3 }
 0xde1   : > { %v4189_v27 = vpop.f32.mrb[136].mxu1 }
 0xde2   : > { %11132 = vmatmul.mubr.msk.f32.gmra.mrb[214].mxu0 %vm1099_vm4, %v4189_v27  ;;  %v4191_v52 = vpop.f32.mrb[137].mxu1 }
 0xde3   : > { %12215 = vmatpush1.bf16.msra.mxu0 %v13558_v7  ;;  %11134 = vmatprep.mubr.msk.f32.mxu0 %vm13229_vm3, %v13228_v49  ;;  %v9758_v7 = vld [vmem:[%s17581_s3 + $0x4b0] sm:$0xff] }
 0xde4   : > { %12216 = vmatprep.subr.bf16.mxu0 %v13227_v3 }
 0xde5   : > { %v4194_v29 = vpop.f32.mrb[138].mxu1 }
 0xde6   : > { %11135 = vmatmul.mubr.msk.f32.gmra.mrb[216].mxu0 %vm1099_vm4, %v4194_v29  ;;  %v4196_v17 = vpop.f32.mrb[139].mxu1 }
 0xde7   : > { %12218 = vmatpush1.bf16.msra.mxu0 %v13564_v16  ;;  %9769 = vmatprep.mubr.msk.f32.mxu0 %vm864_vm1, %v9759_v61  ;;  %v9761_v16 = vld [vmem:[%s17581_s3 + $0x4c8] sm:$0xff] }
 0xde8   : > { %12219 = vmatprep.subr.bf16.mxu0 %v13227_v3 }
 0xdeb   : > { %12221 = vmatpush1.bf16.msra.mxu0 %v13570_v25  ;;  %v9760_v25 = vld [vmem:[%s17581_s3 + $0x4c0] sm:$0xff] }
 0xdec   : > { %12222 = vmatprep.subr.bf16.mxu0 %v13227_v3 }
 0xdef   : > { %12224 = vmatpush1.bf16.msra.mxu0 %v13576_v35  ;;  %v9763_v35 = vld [vmem:[%s17581_s3 + $0x4d8] sm:$0xff] }
 0xdf0   : > { %12225 = vmatprep.subr.bf16.mxu0 %v13227_v3 }
 0xdf3   : > { %12227 = vmatpush1.bf16.msra.mxu0 %v13582_v45  ;;  %v9762_v45 = vld [vmem:[%s17581_s3 + $0x4d0] sm:$0xff] }
 0xdf4   : > { %12228 = vmatprep.subr.bf16.mxu0 %v13227_v3 }
 0xdf7   : > { %12230 = vmatpush1.bf16.msra.mxu0 %v13588_v55  ;;  %v9765_v55 = vld [vmem:[%s17581_s3 + $0x4e8] sm:$0xff] }
 0xdf8   : > { %12231 = vmatprep.subr.bf16.mxu0 %v13227_v3 }
 0xdfb   : > { %12233 = vmatpush1.bf16.msra.mxu0 %v13594_v1  ;;  %v9764_v1 = vld [vmem:[%s17581_s3 + $0x4e0] sm:$0xff] }
 0xdfc   : > { %12234 = vmatprep.subr.bf16.mxu0 %v13227_v3 }
 0xdff   : > { %12236 = vmatpush1.bf16.msra.mxu0 %v13600_v12  ;;  %v9767_v12 = vld [vmem:[%s17581_s3 + $0x4f8] sm:$0xf] }
 0xe00   : > { %12237 = vmatprep.subr.bf16.mxu0 %v13227_v3 }
 0xe03   : > { %12239 = vmatpush1.bf16.msra.mxu0 %v13606_v22  ;;  %v9766_v22 = vld [vmem:[%s17581_s3 + $0x4f0] sm:$0xf] }
 0xe04   : > { %12240 = vmatprep.subr.bf16.mxu0 %v13227_v3 }
 0xe07   : > { %12242 = vmatpush1.bf16.msra.mxu0 %v13612_v32  ;;  %v9774_v32 = vld [vmem:[%s17582_s4 + $0x1e0] sm:$0xff] }
 0xe08   : > { %12243 = vmatprep.subr.bf16.mxu0 %v13227_v3 }
 0xe0b   : > { %12245 = vmatpush1.bf16.msra.mxu0 %v13618_v44  ;;  %v9775_v44 = vld [vmem:[%s17582_s4 + $0x1e8] sm:$0xff] }
 0xe0c   : > { %4395 = vmatprep.subr.mxu0 %v13228_v49  ;;  %v12247_v18 = vpack.c.bf16 %v9775_v44, %v9774_v32 }
 0xe0e   : > { %12248 = vmatpush3.bf16.msra.mxu1 %v12247_v18 }
 0xe0f   : > { %9768 = vmatpush1.msk.msra.mxu0 %vm880_vm2, %v13621_v48  ;;  %v9776_v48 = vld [vmem:[%s17582_s4 + $0x1f0] sm:$0xff]  ;;  %12249 = vmatprep.subr.bf16.mxu1 %v13227_v3 }
 0xe10   : > { %4404 = vmatmul.mubr.f32.vlgmr.msra.gmra.mrb[218].mxu0 %v9758_v7  ;;  %v12250_v14 = vpack.c.bf16 %v9777_v23, %v9776_v48 }
 0xe11   : > { %9770 = vmatprep.mubr.msk.f32.mxu0 %vm864_vm1, %v9761_v16 }
 0xe12   : > { %12251 = vmatpush3.bf16.msra.mxu1 %v12250_v14 }
 0xe14   : > { %4409 = vmatmul.mubr.f32.gmra.mrb[220].mxu0 %v9760_v25 }
 0xe15   : > { %9771 = vmatprep.mubr.msk.f32.mxu0 %vm864_vm1, %v9763_v35 }
 0xe18   : > { %4414 = vmatmul.mubr.f32.gmra.mrb[222].mxu0 %v9762_v45 }
 0xe19   : > { %9772 = vmatprep.mubr.msk.f32.mxu0 %vm864_vm1, %v9765_v55 }
 0xe1c   : > { %4419 = vmatmul.mubr.f32.gmra.mrb[224].mxu0 %v9764_v1 }
 0xe1d   : > { %9773 = vmatprep.mubr.msk.f32.mxu0 %vm864_vm1, %v9767_v12 }
 0xe20   : > { %4424 = vmatmul.mubr.f32.gmra.mrb[226].mxu0 %v9766_v22 }
 0xea9   : > { %v4284_v36 = vpop.f32.mrb[208].mxu0 }
 0xeaa   : > { %v4308_v38 = vadd.f32 %v4284_v36, %v15153_v57  ;;  %v11124_v20 = vpop.f32.mrb[209].mxu0  ;;  %v4562_v36 = vld [vmem:[%s17584_s6 + $0x8] sm:$0xff] }
 0xeab   : > { %v9788_v20 = vld [vmem:[%s17584_s6 + $0x18] sm:$0xff] }
 0xead   : > { %v4289_v26 = vpop.f32.mrb[210].mxu0 }
 0xeae   : > { %v4309_v30 = vadd.f32 %v4289_v26, %v15156_v8  ;;  %v11127_v24 = vpop.f32.mrb[211].mxu0  ;;  %v9792_v8 = vld [vmem:[%s17585_s7 + $0x40] sm:$0xff]  ;;  %v9819_v26 = vld [vmem:[%s17584_s6 + $0x30] sm:$0xff] }
 0xeaf   : > { %v9834_v24 = vld [vmem:[%s17584_s6 + $0x40] sm:$0xff] }
 0xeb1   : > { %v4294_v42 = vpop.f32.mrb[212].mxu0 }
 0xeb2   : > { %v4310_v47 = vadd.f32 %v4294_v42, %v15159_v58  ;;  %v11130_v28 = vpop.f32.mrb[213].mxu0  ;;  %v12268_v58 = vpack.c.bf16 %v9793_v54, %v9792_v8  ;;  %v9835_v42 = vld [vmem:[%s17584_s6 + $0x48] sm:$0xff] }
 0xeb3   : > { %v9850_v28 = vld [vmem:[%s17584_s6 + $0x58] sm:$0xff] }
 0xeb4   : > { %12269 = vmatprep.subr.bf16.mxu0 %v12268_v58 }
 0xeb5   : > { %v4299_v34 = vpop.f32.mrb[214].mxu0  ;;  %12271 = vmatpush3.bf16.msra.mxu0 %v12268_v58  ;;  %v4654_v58 = vld [vmem:[%s17585_s7 + $0x28] sm:$0xff] }
 0xeb6   : > { %v4311_v39 = vadd.f32 %v4299_v34, %v15162_v4  ;;  %v11133_v31 = vpop.f32.mrb[215].mxu0  ;;  %v9796_v4 = vld [vmem:[%s17585_s7 + $0x60] sm:$0xff]  ;;  %12273 = vmatprep.subr.bf16.mxu0 %v12272_v62  ;;  %v12292_v11 = vpack.c.bf16 %v4654_v58, %v4653_v59  ;;  %v9841_v58 = vld [vmem:[%s17585_s7 + $0x110] sm:$0xff] }
 0xeb7   : > { %v12276_v6 = vpack.c.bf16 %v9797_v15, %v9796_v4  ;;  %v9864_v34 = vld [vmem:[%s17584_s6 + $0x60] sm:$0xff]  ;;  %v9879_v31 = vld [vmem:[%s17584_s6 + $0x70] sm:$0xff]  ;;  %v4656_v4 = vld [vmem:[%s17585_s7 + $0x38] sm:$0xff] }
 0xeb9   : > { %v4304_v53 = vpop.f32.mrb[216].mxu0  ;;  %12275 = vmatpush3.bf16.msra.mxu0 %v12272_v62  ;;  %v4655_v62 = vld [vmem:[%s17585_s7 + $0x30] sm:$0xff] }
 0xeba   : > { %v15263_v3 = vadd.f32 %v4304_v53, %v15165_v0  ;;  %v11136_v56 = vpop.f32.mrb[217].mxu0  ;;  %12277 = vmatprep.subr.bf16.mxu0 %v12276_v6  ;;  %v9880_v53 = vld [vmem:[%s17584_s6 + $0x78] sm:$0xff]  ;;  %v12296_v15 = vpack.c.bf16 %v4656_v4, %v4655_v62  ;;  %v9843_v4 = vld [vmem:[%s17585_s7 + $0x120] sm:$0xff] }
 0xebb   : > { %v9799_v56 = vld [vmem:[%s17585_s7 + $0x78] sm:$0xff] }
 0xebd   : > { %12279 = vmatpush3.bf16.msra.mxu0 %v12276_v6  ;;  %v9804_v6 = vld [vmem:[%s17584_s6 + $0x20] sm:$0xff] }
 0xee3   : > { %v4405_v37 = vpop.f32.mrb[218].mxu0 }
 0xee4   : > { %11146 = vmatmul.mubr.msk.f32.vlgmr.msra.gmra.mrb[140].mxu1 %vm1099_vm4, %v4405_v37  ;;  %v4407_v41 = vpop.f32.mrb[219].mxu0 }
 0xee5   : > { %11148 = vmatprep.mubr.msk.f32.mxu1 %vm13229_vm3, %v13228_v49  ;;  %v4649_v41 = vld [vmem:[%s17585_s7] sm:$0xff] }
 0xee7   : > { %v4410_v50 = vpop.f32.mrb[220].mxu0 }
 0xee8   : > { %11149 = vmatmul.mubr.msk.f32.gmra.mrb[142].mxu1 %vm1099_vm4, %v4410_v50  ;;  %v4412_v40 = vpop.f32.mrb[221].mxu0  ;;  %v4650_v50 = vld [vmem:[%s17585_s7 + $0x8] sm:$0xff] }
 0xee9   : > { %11151 = vmatprep.mubr.msk.f32.mxu1 %vm13229_vm3, %v13228_v49  ;;  %v12284_v40 = vpack.c.bf16 %v4650_v50, %v4649_v41  ;;  %v9827_v41 = vld [vmem:[%s17585_s7 + $0xd8] sm:$0xff] }
 0xeeb   : > { %v4415_v60 = vpop.f32.mrb[222].mxu0 }
 0xeec   : > { %11152 = vmatmul.mubr.msk.f32.gmra.mrb[144].mxu1 %vm1099_vm4, %v4415_v60  ;;  %v4417_v63 = vpop.f32.mrb[223].mxu0  ;;  %v9894_v60 = vld [vmem:[%s17584_s6 + $0x80] sm:$0xff] }
 0xeed   : > { %11154 = vmatprep.mubr.msk.f32.mxu1 %vm13229_vm3, %v13228_v49  ;;  %v9895_v63 = vld [vmem:[%s17584_s6 + $0x88] sm:$0xff] }
 0xeef   : > { %v4420_v46 = vpop.f32.mrb[224].mxu0 }
 0xef0   : > { %11155 = vmatmul.mubr.msk.f32.gmra.mrb[146].mxu1 %vm1099_vm4, %v4420_v46  ;;  %v4422_v33 = vpop.f32.mrb[225].mxu0 }
 0xef1   : > { %11157 = vmatprep.mubr.msk.f32.mxu1 %vm13229_vm3, %v13228_v49 }
 0xef3   : > { %v4425_v57 = vpop.f32.mrb[226].mxu0 }
 0xef4   : > { %11158 = vmatmul.mubr.msk.f32.gmra.mrb[148].mxu1 %vm1099_vm4, %v4425_v57  ;;  %v4427_v51 = vpop.f32.mrb[227].mxu0  ;;  %v4651_v57 = vld [vmem:[%s17585_s7 + $0x10] sm:$0xff] }
 0xef5   : > { %11170 = vmatprep.mubr.msk.f32.mxu1 %vm4563_vm5, %v4561_v5  ;;  %v4652_v51 = vld [vmem:[%s17585_s7 + $0x18] sm:$0xff] }
 0xef6   : > { %v12288_v54 = vpack.c.bf16 %v4652_v51, %v4651_v57  ;;  %v9830_v57 = vld [vmem:[%s17585_s7 + $0xf0] sm:$0xff]  ;;  %v9831_v51 = vld [vmem:[%s17585_s7 + $0xf8] sm:$0xff] }
 0xfb7   : > { %v4515_v0 = vpop.f32.mrb[140].mxu1 }
 0xfb8   : > { %v4539_v19 = vadd.f32 %v4515_v0, %v4308_v38  ;;  %v11147_v21 = vpop.f32.mrb[141].mxu1  ;;  %v9787_v38 = vld [vmem:[%s17584_s6 + $0x10] sm:$0xff]  ;;  %v9809_v0 = vld [vmem:[%s17585_s7 + $0x80] sm:$0xff] }
 0xfb9   : > { %v9811_v21 = vld [vmem:[%s17585_s7 + $0x90] sm:$0xff] }
 0xfba   : > { %v4551_v10 = vadd.f32 %v9783_v13, %v4539_v19  ;;  %v9810_v19 = vld [vmem:[%s17585_s7 + $0x88] sm:$0xff] }
 0xfbb   : > { %v4520_v2 = vpop.f32.mrb[142].mxu1 }
 0xfbc   : > { %v4540_v9 = vadd.f32 %v4520_v2, %v4309_v30  ;;  %v11150_v43 = vpop.f32.mrb[143].mxu1  ;;  %v4556_v61 = vmax.f32 %v4551_v10, 0.0  ;;  %v9820_v30 = vld [vmem:[%s17584_s6 + $0x38] sm:$0xff]  ;;  %v12308_v2 = vpack.c.bf16 %v9810_v19, %v9809_v0  ;;  %v9805_v10 = vld [vmem:[%s17584_s6 + $0x28] sm:$0xff]  ;;  %v9845_v0 = vld [vmem:[%s17585_s7 + $0x130] sm:$0xff] }
 0xfbd   : > { %v9813_v43 = vld [vmem:[%s17585_s7 + $0xa0] sm:$0xff]  ;;  %v9846_v19 = vld [vmem:[%s17585_s7 + $0x138] sm:$0xff] }
 0xfbe   : > { %v4552_v27 = vadd.f32 %v9783_v13, %v4540_v9 }
 0xfbf   : > { %v4525_v52 = vpop.f32.mrb[144].mxu1 }
 0xfc0   : > { %v4557_v29 = vmax.f32 %v4552_v27, 0.0  ;;  %v4541_v17 = vadd.f32 %v4525_v52, %v4310_v47  ;;  %v11153_v7 = vpop.f32.mrb[145].mxu1  ;;  %v9849_v47 = vld [vmem:[%s17584_s6 + $0x50] sm:$0xff]  ;;  %v9814_v27 = vld [vmem:[%s17585_s7 + $0xa8] sm:$0xff] }
 0xfc1   : > { %v12316_v52 = vpack.c.bf16 %v9814_v27, %v9813_v43  ;;  %v9824_v7 = vld [vmem:[%s17585_s7 + $0xc0] sm:$0xff]  ;;  %v9857_v43 = vld [vmem:[%s17585_s7 + $0x158] sm:$0xff] }
 0xfc2   : > { %v15303_v16 = vpack.c.bf16 %v4557_v29, %v4556_v61  ;;  %v4553_v35 = vadd.f32 %v9783_v13, %v4541_v17  ;;  %v9815_v61 = vld [vmem:[%s17585_s7 + $0xb0] sm:$0xff]  ;;  %v9816_v29 = vld [vmem:[%s17585_s7 + $0xb8] sm:$0xff] }
 0xfc3   : > { %v4530_v25 = vpop.f32.mrb[146].mxu1  ;;  %v12320_v17 = vpack.c.bf16 %v9816_v29, %v9815_v61  ;;  %v9859_v61 = vld [vmem:[%s17585_s7 + $0x168] sm:$0xff] }
 0xfc4   : > { %v4542_v45 = vadd.f32 %v4530_v25, %v4311_v39  ;;  %12253 = vmatprep.subr.bf16.mxu1 %v15303_v16  ;;  %v11156_v55 = vpop.f32.mrb[147].mxu1  ;;  %v4558_v22 = vmax.f32 %v4553_v35, 0.0  ;;  %v9865_v39 = vld [vmem:[%s17584_s6 + $0x68] sm:$0xff] }
 0xfc5   : > { %12255 = vmatpush3.bf16.msra.mxu1 %v15303_v16 }
 0xfc6   : > { %v4554_v1 = vadd.f32 %v9783_v13, %v4542_v45 }
 0xfc7   : > { %v4535_v12 = vpop.f32.mrb[148].mxu1 }
 0xfc8   : > { %v4559_v32 = vmax.f32 %v4554_v1, 0.0  ;;  %v4543_v44 = vadd.f32 %v4535_v12, %v15263_v3  ;;  %v11159_v48 = vpop.f32.mrb[149].mxu1  ;;  %v9798_v3 = vld [vmem:[%s17585_s7 + $0x70] sm:$0xff] }
 0xfc9   : > { %v12280_v37 = vpack.c.bf16 %v9799_v56, %v9798_v3 }
 0xfca   : > { %v15308_v18 = vpack.c.bf16 %v4559_v32, %v4558_v22  ;;  %v4555_v23 = vadd.f32 %v9783_v13, %v4543_v44  ;;  %v9812_v13 = vld [vmem:[%s17585_s7 + $0x98] sm:$0xff] }
 0xfcb   : > { %12281 = vmatprep.subr.bf16.mxu0 %v12280_v37  ;;  %v12312_v9 = vpack.c.bf16 %v9812_v13, %v9811_v21  ;;  %v12368_v21 = vpack.c.bf16 %v9846_v19, %v9845_v0  ;;  %v9854_v13 = vld [vmem:[%s17585_s7 + $0x140] sm:$0xff] }
 0xfcc   : > { %v15310_v14 = vmax.f32 %v4555_v23, 0.0  ;;  %12257 = vmatprep.subr.bf16.mxu1 %v15308_v18  ;;  %12283 = vmatpush3.bf16.msra.mxu0 %v12280_v37  ;;  %v9826_v37 = vld [vmem:[%s17585_s7 + $0xd0] sm:$0xff]  ;;  %v9909_v0 = vld [vmem:[%s17586_s8] ss:$0 sm:$0xff] }
 0xfcd   : > { %12259 = vmatpush3.bf16.msra.mxu1 %v15308_v18  ;;  %12285 = vmatprep.subr.bf16.mxu0 %v12284_v40 }
 0xfce   : > { %11168 = vmatprep.subr.msk.mxu1 %vm4570_vm6, %v15310_v14 }
 0xfd1   : > { %11169 = vmatpush3.msk.msra.mxu1 %vm4570_vm6, %v15310_v14 }
 0xfd2   : > { %12261 = vmatprep.subr.bf16.mxu1 %v15303_v16  ;;  %11171 = vmatmul.mubr.msk.f32.vlgmr.msra.gmra.mrb[150].mxu1 %vm4563_vm5, %v4562_v36  ;;  %v9911_v36 = vld [vmem:[%s17587_s9 + $0x108] sm:$0xff] }
 0xfd3   : > { %12263 = vmatpush3.bf16.msra.mxu1 %v15303_v16  ;;  %11183 = vmatprep.mubr.msk.f32.mxu1 %vm4563_vm5, %v9787_v38  ;;  %v9915_v38 = vld [vmem:[%s17587_s9 + $0x128] sm:$0xff] }
 0xfd4   : > { %12265 = vmatprep.subr.bf16.mxu1 %v15308_v18 }
 0xfd7   : > { %12267 = vmatpush3.bf16.msra.mxu1 %v15308_v18 }
 0xfd8   : > { %11181 = vmatprep.subr.msk.mxu1 %vm4570_vm6, %v15310_v14 }
 0xfdb   : > { %11182 = vmatpush3.msk.msra.mxu1 %vm4570_vm6, %v15310_v14 }
 0xfdc   : > { %11184 = vmatmul.mubr.msk.f32.vlgmr.msra.gmra.mrb[152].mxu1 %vm4563_vm5, %v9788_v20  ;;  %12325 = vmatprep.subr.bf16.mxu1 %v15303_v16  ;;  %v9910_v20 = vld [vmem:[%s17587_s9 + $0x100] sm:$0xff] }
 0xfdd   : > { %12327 = vmatpush3.bf16.msra.mxu1 %v15303_v16  ;;  %11266 = vmatprep.mubr.msk.f32.mxu1 %vm4563_vm5, %v9819_v26  ;;  %v12468_v26 = vpack.c.bf16 %v9915_v38, %v9911_v36  ;;  %v9873_v36 = vld [vmem:[%s17585_s7 + $0x1a0] sm:$0xff]  ;;  %v9874_v38 = vld [vmem:[%s17585_s7 + $0x1a8] sm:$0xff] }
 0xfde   : > { %12329 = vmatprep.subr.bf16.mxu1 %v15308_v18 }
 0xfe1   : > { %12331 = vmatpush3.bf16.msra.mxu1 %v15308_v18 }
 0xfe2   : > { %11264 = vmatprep.subr.msk.mxu1 %vm4570_vm6, %v15310_v14 }
 0xfe5   : > { %11265 = vmatpush3.msk.msra.mxu1 %vm4570_vm6, %v15310_v14 }
 0xfe6   : > { %12349 = vmatprep.subr.bf16.mxu1 %v15303_v16  ;;  %11267 = vmatmul.mubr.msk.f32.vlgmr.msra.gmra.mrb[154].mxu1 %vm4563_vm5, %v9820_v30  ;;  %v9914_v30 = vld [vmem:[%s17587_s9 + $0x120] sm:$0xff] }
 0xfe7   : > { %12351 = vmatpush3.bf16.msra.mxu1 %v15303_v16  ;;  %11298 = vmatprep.mubr.msk.f32.mxu1 %vm4563_vm5, %v9834_v24  ;;  %v9919_v24 = vld [vmem:[%s17587_s9 + $0x148] sm:$0xff] }
 0xfe8   : > { %12353 = vmatprep.subr.bf16.mxu1 %v15308_v18 }
 0xfeb   : > { %12355 = vmatpush3.bf16.msra.mxu1 %v15308_v18 }
 0xfec   : > { %11296 = vmatprep.subr.msk.mxu1 %vm4570_vm6, %v15310_v14 }
 0xfef   : > { %11297 = vmatpush3.msk.msra.mxu1 %vm4570_vm6, %v15310_v14 }
 0xff0   : > { %12373 = vmatprep.subr.bf16.mxu1 %v15303_v16  ;;  %11299 = vmatmul.mubr.msk.f32.vlgmr.msra.gmra.mrb[156].mxu1 %vm4563_vm5, %v9835_v42  ;;  %v9923_v42 = vld [vmem:[%s17587_s9 + $0x168] sm:$0xff] }
 0xff1   : > { %12375 = vmatpush3.bf16.msra.mxu1 %v15303_v16  ;;  %11330 = vmatprep.mubr.msk.f32.mxu1 %vm4563_vm5, %v9849_v47  ;;  %v12470_v47 = vpack.c.bf16 %v9914_v30, %v9910_v20  ;;  %v12412_v20 = vpack.c.bf16 %v9874_v38, %v9873_v36  ;;  %v9876_v30 = vld [vmem:[%s17585_s7 + $0x1b8] sm:$0xff] }
 0xff2   : > { %12377 = vmatprep.subr.bf16.mxu1 %v15308_v18  ;;  %v9937_v36 = vld [vmem:[%s17587_s9 + $0x1d8] sm:$0xff] }
 0xff3   : > { %v9941_v38 = vld [vmem:[%s17587_s9 + $0x1f8] sm:$0xff] }
 0xff5   : > { %12379 = vmatpush3.bf16.msra.mxu1 %v15308_v18 }
 0xff6   : > { %11328 = vmatprep.subr.msk.mxu1 %vm4570_vm6, %v15310_v14 }
 0xff9   : > { %11329 = vmatpush3.msk.msra.mxu1 %vm4570_vm6, %v15310_v14 }
 0xffa   : > { %12397 = vmatprep.subr.bf16.mxu1 %v15303_v16  ;;  %11331 = vmatmul.mubr.msk.f32.vlgmr.msra.gmra.mrb[158].mxu1 %vm4563_vm5, %v9850_v28  ;;  %v12472_v28 = vpack.c.bf16 %v9923_v42, %v9919_v24 }
 0xffb   : > { %12399 = vmatpush3.bf16.msra.mxu1 %v15303_v16  ;;  %11362 = vmatprep.mubr.msk.f32.mxu1 %vm4563_vm5, %v9864_v34  ;;  %v9918_v34 = vld [vmem:[%s17587_s9 + $0x140] sm:$0xff] }
 0xffc   : > { %12401 = vmatprep.subr.bf16.mxu1 %v15308_v18 }
 0xfff   : > { %12403 = vmatpush3.bf16.msra.mxu1 %v15308_v18 }
0x1000   : > { %11360 = vmatprep.subr.msk.mxu1 %vm4570_vm6, %v15310_v14 }
0x1003   : > { %11361 = vmatpush3.msk.msra.mxu1 %vm4570_vm6, %v15310_v14 }
0x1004   : > { %12421 = vmatprep.subr.bf16.mxu1 %v15303_v16  ;;  %11363 = vmatmul.mubr.msk.f32.vlgmr.msra.gmra.mrb[160].mxu1 %vm4563_vm5, %v9865_v39  ;;  %v9922_v39 = vld [vmem:[%s17587_s9 + $0x160] sm:$0xff] }
0x1005   : > { %12423 = vmatpush3.bf16.msra.mxu1 %v15303_v16  ;;  %11394 = vmatprep.mubr.msk.f32.mxu1 %vm4563_vm5, %v9879_v31  ;;  %v9927_v31 = vld [vmem:[%s17587_s9 + $0x188] sm:$0xff]  ;;  %v12474_v3 = vpack.c.bf16 %v9922_v39, %v9918_v34  ;;  %v9888_v39 = vld [vmem:[%s17585_s7 + $0x1e0] sm:$0xff] }
0x1006   : > { %12425 = vmatprep.subr.bf16.mxu1 %v15308_v18 }
0x1009   : > { %12427 = vmatpush3.bf16.msra.mxu1 %v15308_v18 }
0x100a   : > { %11392 = vmatprep.subr.msk.mxu1 %vm4570_vm6, %v15310_v14 }
0x100d   : > { %11393 = vmatpush3.msk.msra.mxu1 %vm4570_vm6, %v15310_v14 }
0x100e   : > { %12445 = vmatprep.subr.bf16.mxu1 %v15303_v16  ;;  %11395 = vmatmul.mubr.msk.f32.vlgmr.msra.gmra.mrb[162].mxu1 %vm4563_vm5, %v9880_v53  ;;  %v9931_v53 = vld [vmem:[%s17587_s9 + $0x1a8] sm:$0xff] }
0x100f   : > { %12447 = vmatpush3.bf16.msra.mxu1 %v15303_v16  ;;  %11426 = vmatprep.mubr.msk.f32.mxu1 %vm4563_vm5, %v9894_v60  ;;  %v12476_v56 = vpack.c.bf16 %v9931_v53, %v9927_v31  ;;  %v12336_v60 = vpack.c.bf16 %v9827_v41, %v9826_v37  ;;  %v9889_v31 = vld [vmem:[%s17585_s7 + $0x1e8] sm:$0xff] }
0x1010   : > { %12449 = vmatprep.subr.bf16.mxu1 %v15308_v18  ;;  %v12436_v53 = vpack.c.bf16 %v9889_v31, %v9888_v39  ;;  %v6164_v39 = vld [vmem:[%s17587_s9 + $0x48] sm:$0xff] }
0x1011   : > { %v6168_v31 = vld [vmem:[%s17587_s9 + $0x68] sm:$0xff] }
0x1013   : > { %12451 = vmatpush3.bf16.msra.mxu1 %v15308_v18 }
0x1014   : > { %11424 = vmatprep.subr.msk.mxu1 %vm4570_vm6, %v15310_v14 }
0x1017   : > { %11425 = vmatpush3.msk.msra.mxu1 %vm4570_vm6, %v15310_v14 }
0x1018   : > { %11427 = vmatmul.mubr.msk.f32.vlgmr.msra.gmra.mrb[164].mxu1 %vm4563_vm5, %v9895_v63  ;;  %12469 = vmatprep.subr.bf16.mxu1 %v12468_v26  ;;  %v9828_v63 = vld [vmem:[%s17585_s7 + $0xe0] sm:$0xff]  ;;  %v9875_v26 = vld [vmem:[%s17585_s7 + $0x1b0] sm:$0xff] }
0x1019   : > { %6288 = vmatprep.mubr.f32.mxu1 %v13228_v49  ;;  %12471 = vmatpush1.bf16.msra.mxu1 %v12470_v47  ;;  %v12416_v24 = vpack.c.bf16 %v9876_v30, %v9875_v26  ;;  %v9886_v47 = vld [vmem:[%s17585_s7 + $0x1d0] sm:$0xff]  ;;  %v12496_v26 = vpack.c.bf16 %v9941_v38, %v9937_v36  ;;  %v9959_v36 = vld [vmem:[%s17587_s9 + $0x268] sm:$0xff] }
0x101a   : > { %12473 = vmatprep.subr.bf16.mxu1 %v12472_v28  ;;  %v9887_v28 = vld [vmem:[%s17585_s7 + $0x1d8] sm:$0xff]  ;;  %v9936_v30 = vld [vmem:[%s17587_s9 + $0x1d0] sm:$0xff] }
0x101b   : > { %v12432_v34 = vpack.c.bf16 %v9887_v28, %v9886_v47  ;;  %v6155_v28 = vld [vmem:[%s17587_s9] sm:$0xff] }
0x101d   : > { %12475 = vmatpush1.bf16.msra.mxu1 %v12474_v3  ;;  %v9890_v3 = vld [vmem:[%s17585_s7 + $0x1f0] sm:$0xff] }
0x101e   : > { %12477 = vmatprep.subr.bf16.mxu1 %v12476_v56  ;;  %v9891_v56 = vld [vmem:[%s17585_s7 + $0x1f8] sm:$0xff] }
0x101f   : > { %v12440_v37 = vpack.c.bf16 %v9891_v56, %v9890_v3  ;;  %v12504_v3 = vpack.c.bf16 %v6168_v31, %v6164_v39  ;;  %v6163_v56 = vld [vmem:[%s17587_s9 + $0x40] sm:$0xff]  ;;  %v9975_v39 = vld [vmem:[%s17587_s9 + $0x2e8] sm:$0xff] }
0x10a5   : > { %v11172_v46 = vpop.f32.mrb[150].mxu1 }
0x10a6   : > { %v4640_v33 = vpop.f32.mrb[151].mxu1 }
0x10af   : > { %v11185_v5 = vpop.f32.mrb[152].mxu1 }
0x10b0   : > { %v4732_v8 = vpop.f32.mrb[153].mxu1 }
0x10b1   : > { %11202 = vmatprep.mubr.msk.f32.mxu0 %vm527_vm0, %v4732_v8  ;;  %v9839_v8 = vld [vmem:[%s17585_s7 + $0x100] sm:$0xff] }
0x10b2   : > { %11203 = vmatmul.mubr.msk.f32.vlgmr.msra.gmra.mrb[228].mxu0 %vm527_vm0, %v11185_v5  ;;  %v12344_v5 = vpack.c.bf16 %v9831_v51, %v9830_v57  ;;  %v9905_v57 = vld [vmem:[%s17585_s7 + $0x230] sm:$0xff]  ;;  %v9906_v51 = vld [vmem:[%s17585_s7 + $0x238] sm:$0xff] }
0x10b3   : > { %12287 = vmatpush3.bf16.msra.mxu0 %v12284_v40  ;;  %11221 = vmatprep.mubr.msk.f32.mxu0 %vm527_vm0, %v4640_v33 }
0x10b4   : > { %12289 = vmatprep.subr.bf16.mxu0 %v12288_v54 }
0x10b7   : > { %12291 = vmatpush3.bf16.msra.mxu0 %v12288_v54  ;;  %v9840_v54 = vld [vmem:[%s17585_s7 + $0x108] sm:$0xff] }
0x10b8   : > { %12293 = vmatprep.subr.bf16.mxu0 %v12292_v11  ;;  %v12356_v59 = vpack.c.bf16 %v9840_v54, %v9839_v8  ;;  %v9935_v54 = vld [vmem:[%s17587_s9 + $0x1c8] sm:$0xff] }
0x10b9   : > { %v11268_v35 = vpop.f32.mrb[154].mxu1 }
0x10ba   : > { %v5163_v45 = vpop.f32.mrb[155].mxu1 }
0x10bb   : > { %12295 = vmatpush3.bf16.msra.mxu0 %v12292_v11  ;;  %v9842_v11 = vld [vmem:[%s17585_s7 + $0x118] sm:$0xff] }
0x10bc   : > { %12297 = vmatprep.subr.bf16.mxu0 %v12296_v15  ;;  %v12360_v62 = vpack.c.bf16 %v9842_v11, %v9841_v58  ;;  %v9938_v11 = vld [vmem:[%s17587_s9 + $0x1e0] sm:$0xff] }
0x10bf   : > { %12299 = vmatpush3.bf16.msra.mxu0 %v12296_v15  ;;  %v9844_v15 = vld [vmem:[%s17585_s7 + $0x128] sm:$0xff] }
0x10c0   : > { %12301 = vmatprep.subr.bf16.mxu0 %v15303_v16 }
0x10c2   : > { %11222 = vmatmul.mubr.msk.f32.vlgmr.msra.gmra.mrb[228].mxu0 %vm527_vm0, %v11172_v46  ;;  %v9829_v46 = vld [vmem:[%s17585_s7 + $0xe8] sm:$0xff] }
0x10c3   : > { %12303 = vmatpush3.bf16.msra.mxu0 %v15303_v16  ;;  %11234 = vmatprep.mubr.msk.f32.mxu0 %vm4563_vm5, %v9804_v6  ;;  %v9825_v16 = vld [vmem:[%s17585_s7 + $0xc8] sm:$0xff]  ;;  %v15515_v55 = vpop.f32.mrb[156].mxu1  ;;  %v12340_v33 = vpack.c.bf16 %v9829_v46, %v9828_v63  ;;  %v12364_v6 = vpack.c.bf16 %v9844_v15, %v9843_v4  ;;  %v9903_v63 = vld [vmem:[%s17585_s7 + $0x220] sm:$0xff]  ;;  %v9913_v4 = vld [vmem:[%s17587_s9 + $0x118] sm:$0xff] }
0x10c4   : > { %12305 = vmatprep.subr.bf16.mxu0 %v15308_v18  ;;  %v12332_v25 = vpack.c.bf16 %v9825_v16, %v9824_v7  ;;  %v5339_v1 = vpop.f32.mrb[157].mxu1  ;;  %v9861_v7 = vld [vmem:[%s17585_s7 + $0x178] sm:$0xff]  ;;  %v9904_v46 = vld [vmem:[%s17585_s7 + $0x228] sm:$0xff] }
0x10c5   : > { %v9917_v15 = vld [vmem:[%s17587_s9 + $0x138] sm:$0xff] }
0x10c7   : > { %12307 = vmatpush3.bf16.msra.mxu0 %v15308_v18 }
0x10c8   : > { %11232 = vmatprep.subr.msk.mxu0 %vm4570_vm6, %v15310_v14 }
0x10cb   : > { %11233 = vmatpush3.msk.msra.mxu0 %vm4570_vm6, %v15310_v14 }
0x10cc   : > { %11235 = vmatmul.mubr.msk.f32.vlgmr.msra.gmra.mrb[230].mxu0 %vm4563_vm5, %v9805_v10  ;;  %12309 = vmatprep.subr.bf16.mxu0 %v12308_v2 }
0x10cd   : > { %12311 = vmatpush3.bf16.msra.mxu0 %v12308_v2  ;;  %v15517_v12 = vpop.f32.mrb[158].mxu1  ;;  %v9855_v2 = vld [vmem:[%s17585_s7 + $0x148] sm:$0xff] }
0x10ce   : > { %12313 = vmatprep.subr.bf16.mxu0 %v12312_v9  ;;  %v15519_v22 = vpop.f32.mrb[159].mxu1  ;;  %v12380_v10 = vpack.c.bf16 %v9855_v2, %v9854_v13 }
0x10d1   : > { %12315 = vmatpush3.bf16.msra.mxu0 %v12312_v9  ;;  %v9856_v9 = vld [vmem:[%s17585_s7 + $0x150] sm:$0xff] }
0x10d2   : > { %12317 = vmatprep.subr.bf16.mxu0 %v12316_v52  ;;  %v12384_v27 = vpack.c.bf16 %v9857_v43, %v9856_v9  ;;  %v9916_v9 = vld [vmem:[%s17587_s9 + $0x130] sm:$0xff]  ;;  %v9921_v43 = vld [vmem:[%s17587_s9 + $0x158] sm:$0xff] }
0x10d5   : > { %12319 = vmatpush3.bf16.msra.mxu0 %v12316_v52  ;;  %v9858_v52 = vld [vmem:[%s17585_s7 + $0x160] sm:$0xff] }
0x10d6   : > { %12321 = vmatprep.subr.bf16.mxu0 %v12320_v17  ;;  %v12388_v29 = vpack.c.bf16 %v9859_v61, %v9858_v52 }
0x10d7   : > { %v15521_v32 = vpop.f32.mrb[160].mxu1 }
0x10d8   : > { %v15523_v44 = vpop.f32.mrb[161].mxu1 }
0x10d9   : > { %12323 = vmatpush3.bf16.msra.mxu0 %v12320_v17  ;;  %v9860_v17 = vld [vmem:[%s17585_s7 + $0x170] sm:$0xff] }
0x10da   : > { %12333 = vmatprep.subr.bf16.mxu0 %v12332_v25  ;;  %v12392_v16 = vpack.c.bf16 %v9861_v7, %v9860_v17  ;;  %v9920_v7 = vld [vmem:[%s17587_s9 + $0x150] sm:$0xff] }
0x10e1   : > { %v15525_v48 = vpop.f32.mrb[162].mxu1 }
0x10e2   : > { %v15527_v18 = vpop.f32.mrb[163].mxu1 }
0x10eb   : > { %v15529_v23 = vpop.f32.mrb[164].mxu1 }
0x10ec   : > { %v15531_v14 = vpop.f32.mrb[165].mxu1 }
0x119f   : > { %v11236_v50 = vpop.f32.mrb[230].mxu0 }
0x11a0   : > { %v4987_v40 = vpop.f32.mrb[231].mxu0 }
0x11a1   : > { %11253 = vmatprep.mubr.msk.f32.mxu0 %vm527_vm0, %v4987_v40  ;;  %v9902_v40 = vld [vmem:[%s17585_s7 + $0x218] sm:$0xff] }
0x11a2   : > { %11254 = vmatmul.mubr.msk.f32.vlgmr.msra.gmra.mrb[228].mxu0 %vm527_vm0, %v11236_v50  ;;  %v9901_v50 = vld [vmem:[%s17585_s7 + $0x210] sm:$0xff] }
0x11a3   : > { %12335 = vmatpush3.bf16.msra.mxu0 %v12332_v25  ;;  %11285 = vmatprep.mubr.msk.f32.mxu0 %vm527_vm0, %v5163_v45  ;;  %v9869_v25 = vld [vmem:[%s17585_s7 + $0x180] sm:$0xff] }
0x11a4   : > { %12337 = vmatprep.subr.bf16.mxu0 %v12336_v60 }
0x11a7   : > { %12339 = vmatpush3.bf16.msra.mxu0 %v12336_v60  ;;  %v12456_v60 = vpack.c.bf16 %v9902_v40, %v9901_v50  ;;  %v6171_v40 = vld [vmem:[%s17587_s9 + $0x80] sm:$0xff] }
0x11a8   : > { %12341 = vmatprep.subr.bf16.mxu0 %v12340_v33 }
0x11ab   : > { %12343 = vmatpush3.bf16.msra.mxu0 %v12340_v33  ;;  %v12460_v33 = vpack.c.bf16 %v9904_v46, %v9903_v63  ;;  %v6180_v63 = vld [vmem:[%s17587_s9 + $0xc8] sm:$0xff] }
0x11ac   : > { %12345 = vmatprep.subr.bf16.mxu0 %v12344_v5  ;;  %v6184_v46 = vld [vmem:[%s17587_s9 + $0xe8] sm:$0xff] }
0x11af   : > { %12347 = vmatpush3.bf16.msra.mxu0 %v12344_v5  ;;  %v12464_v5 = vpack.c.bf16 %v9906_v51, %v9905_v57  ;;  %v12512_v57 = vpack.c.bf16 %v6184_v46, %v6180_v63  ;;  %v6179_v51 = vld [vmem:[%s17587_s9 + $0xc0] sm:$0xff]  ;;  %v9961_v63 = vld [vmem:[%s17587_s9 + $0x278] sm:$0xff] }
0x11b0   : > { %12357 = vmatprep.subr.bf16.mxu0 %v12356_v59 }
0x11b2   : > { %11286 = vmatmul.mubr.msk.f32.vlgmr.msra.gmra.mrb[228].mxu0 %vm527_vm0, %v11268_v35  ;;  %v9870_v35 = vld [vmem:[%s17585_s7 + $0x188] sm:$0xff] }
0x11b3   : > { %12359 = vmatpush3.bf16.msra.mxu0 %v12356_v59  ;;  %11317 = vmatprep.mubr.msk.f32.mxu0 %vm527_vm0, %v5339_v1  ;;  %v12404_v45 = vpack.c.bf16 %v9870_v35, %v9869_v25  ;;  %v9872_v1 = vld [vmem:[%s17585_s7 + $0x198] sm:$0xff]  ;;  %v9939_v59 = vld [vmem:[%s17587_s9 + $0x1e8] sm:$0xff] }
0x11b4   : > { %12361 = vmatprep.subr.bf16.mxu0 %v12360_v62  ;;  %v12480_v58 = vpack.c.bf16 %v9939_v59, %v9935_v54  ;;  %v9929_v25 = vld [vmem:[%s17587_s9 + $0x198] sm:$0xff]  ;;  %v6157_v59 = vld [vmem:[%s17587_s9 + $0x10] sm:$0xff] }
0x11b5   : > { %v9933_v35 = vld [vmem:[%s17587_s9 + $0x1b8] sm:$0xff] }
0x11b7   : > { %12363 = vmatpush3.bf16.msra.mxu0 %v12360_v62 }
0x11b8   : > { %12365 = vmatprep.subr.bf16.mxu0 %v12364_v6 }
0x11bb   : > { %12367 = vmatpush3.bf16.msra.mxu0 %v12364_v6  ;;  %v12484_v6 = vpack.c.bf16 %v9917_v15, %v9913_v4  ;;  %v6165_v15 = vld [vmem:[%s17587_s9 + $0x50] sm:$0xff] }
0x11bc   : > { %12369 = vmatprep.subr.bf16.mxu0 %v12368_v21 }
0x11bf   : > { %12371 = vmatpush3.bf16.msra.mxu0 %v12368_v21 }
0x11c0   : > { %12381 = vmatprep.subr.bf16.mxu0 %v12380_v10 }
0x11c2   : > { %11318 = vmatmul.mubr.msk.f32.vlgmr.msra.gmra.mrb[228].mxu0 %vm527_vm0, %v15515_v55  ;;  %v9871_v55 = vld [vmem:[%s17585_s7 + $0x190] sm:$0xff] }
0x11c3   : > { %12383 = vmatpush3.bf16.msra.mxu0 %v12380_v10  ;;  %11349 = vmatprep.mubr.msk.f32.mxu0 %vm527_vm0, %v15519_v22  ;;  %v12408_v22 = vpack.c.bf16 %v9872_v1, %v9871_v55  ;;  %v9912_v10 = vld [vmem:[%s17587_s9 + $0x110] sm:$0xff]  ;;  %v12492_v55 = vpack.c.bf16 %v9933_v35, %v9929_v25  ;;  %v9951_v25 = vld [vmem:[%s17587_s9 + $0x228] sm:$0xff] }
0x11c4   : > { %12385 = vmatprep.subr.bf16.mxu0 %v12384_v27  ;;  %v12486_v61 = vpack.c.bf16 %v9916_v9, %v9912_v10  ;;  %v9928_v1 = vld [vmem:[%s17587_s9 + $0x190] sm:$0xff] }
0x11c5   : > { %v6173_v10 = vld [vmem:[%s17587_s9 + $0x90] sm:$0xff] }
0x11c6   : > { %v6177_v9 = vld [vmem:[%s17587_s9 + $0xb0] sm:$0xff] }
0x11c7   : > { %12387 = vmatpush3.bf16.msra.mxu0 %v12384_v27  ;;  %v9925_v27 = vld [vmem:[%s17587_s9 + $0x178] sm:$0xff] }
0x11c8   : > { %12389 = vmatprep.subr.bf16.mxu0 %v12388_v29  ;;  %v12488_v17 = vpack.c.bf16 %v9925_v27, %v9921_v43  ;;  %v6182_v43 = vld [vmem:[%s17587_s9 + $0xd8] sm:$0xff] }
0x11c9   : > { %v6186_v27 = vld [vmem:[%s17587_s9 + $0xf8] sm:$0xff] }
0x11cb   : > { %12391 = vmatpush3.bf16.msra.mxu0 %v12388_v29 }
0x11cc   : > { %12393 = vmatprep.subr.bf16.mxu0 %v12392_v16 }
0x11cf   : > { %12395 = vmatpush3.bf16.msra.mxu0 %v12392_v16  ;;  %v9924_v16 = vld [vmem:[%s17587_s9 + $0x170] sm:$0xff] }
0x11d0   : > { %12405 = vmatprep.subr.bf16.mxu0 %v12404_v45 }
0x11d2   : > { %11350 = vmatmul.mubr.msk.f32.vlgmr.msra.gmra.mrb[228].mxu0 %vm527_vm0, %v15517_v12  ;;  %v9884_v12 = vld [vmem:[%s17585_s7 + $0x1c0] sm:$0xff] }
0x11d3   : > { %12407 = vmatpush3.bf16.msra.mxu0 %v12404_v45  ;;  %11381 = vmatprep.mubr.msk.f32.mxu0 %vm527_vm0, %v15523_v44  ;;  %v9885_v44 = vld [vmem:[%s17585_s7 + $0x1c8] sm:$0xff]  ;;  %v12490_v45 = vpack.c.bf16 %v9924_v16, %v9920_v7  ;;  %v6185_v7 = vld [vmem:[%s17587_s9 + $0xf0] sm:$0xff] }
0x11d4   : > { %12409 = vmatprep.subr.bf16.mxu0 %v12408_v22  ;;  %v12428_v42 = vpack.c.bf16 %v9885_v44, %v9884_v12  ;;  %v6156_v12 = vld [vmem:[%s17587_s9 + $0x8] sm:$0xff] }
0x11d5   : > { %v6160_v44 = vld [vmem:[%s17587_s9 + $0x28] sm:$0xff] }
0x11d6   : > { %v12500_v47 = vpack.c.bf16 %v6160_v44, %v6156_v12  ;;  %v9947_v16 = vld [vmem:[%s17587_s9 + $0x208] sm:$0xff] }
0x11d7   : > { %12411 = vmatpush3.bf16.msra.mxu0 %v12408_v22  ;;  %v9932_v22 = vld [vmem:[%s17587_s9 + $0x1b0] sm:$0xff]  ;;  %v9967_v12 = vld [vmem:[%s17587_s9 + $0x2a8] sm:$0xff] }
0x11d8   : > { %12413 = vmatprep.subr.bf16.mxu0 %v12412_v20 }
0x11db   : > { %12415 = vmatpush3.bf16.msra.mxu0 %v12412_v20  ;;  %v12494_v20 = vpack.c.bf16 %v9932_v22, %v9928_v1  ;;  %v9950_v1 = vld [vmem:[%s17587_s9 + $0x220] sm:$0xff]  ;;  %v9955_v22 = vld [vmem:[%s17587_s9 + $0x248] sm:$0xff] }
0x11dc   : > { %12417 = vmatprep.subr.bf16.mxu0 %v12416_v24 }
0x11df   : > { %12419 = vmatpush3.bf16.msra.mxu0 %v12416_v24  ;;  %v9940_v24 = vld [vmem:[%s17587_s9 + $0x1f0] sm:$0xff] }
0x11e0   : > { %12429 = vmatprep.subr.bf16.mxu0 %v12428_v42 }
0x11e2   : > { %11382 = vmatmul.mubr.msk.f32.vlgmr.msra.gmra.mrb[228].mxu0 %vm527_vm0, %v15521_v32  ;;  %v9899_v32 = vld [vmem:[%s17585_s7 + $0x200] sm:$0xff] }
0x11e3   : > { %12431 = vmatpush3.bf16.msra.mxu0 %v12428_v42  ;;  %11413 = vmatprep.mubr.msk.f32.mxu0 %vm527_vm0, %v15527_v18  ;;  %v9900_v18 = vld [vmem:[%s17585_s7 + $0x208] sm:$0xff]  ;;  %v12498_v42 = vpack.c.bf16 %v9940_v24, %v9936_v30  ;;  %v9958_v30 = vld [vmem:[%s17587_s9 + $0x260] sm:$0xff] }
0x11e4   : > { %12433 = vmatprep.subr.bf16.mxu0 %v12432_v34  ;;  %v12452_v41 = vpack.c.bf16 %v9900_v18, %v9899_v32  ;;  %v6172_v32 = vld [vmem:[%s17587_s9 + $0x88] sm:$0xff] }
0x11e5   : > { %v6176_v18 = vld [vmem:[%s17587_s9 + $0xa8] sm:$0xff] }
0x11e6   : > { %v12508_v50 = vpack.c.bf16 %v6176_v18, %v6172_v32  ;;  %v9963_v24 = vld [vmem:[%s17587_s9 + $0x288] sm:$0xff]  ;;  %v9953_v32 = vld [vmem:[%s17587_s9 + $0x238] sm:$0xff] }
0x11e7   : > { %12435 = vmatpush3.bf16.msra.mxu0 %v12432_v34  ;;  %v6159_v34 = vld [vmem:[%s17587_s9 + $0x20] sm:$0xff] }
0x11e8   : > { %12437 = vmatprep.subr.bf16.mxu0 %v12436_v53 }
0x11eb   : > { %12439 = vmatpush3.bf16.msra.mxu0 %v12436_v53  ;;  %v12502_v53 = vpack.c.bf16 %v6159_v34, %v6155_v28  ;;  %v9966_v28 = vld [vmem:[%s17587_s9 + $0x2a0] sm:$0xff]  ;;  %v9971_v34 = vld [vmem:[%s17587_s9 + $0x2c8] sm:$0xff] }
0x11ec   : > { %12441 = vmatprep.subr.bf16.mxu0 %v12440_v37 }
0x11ef   : > { %12443 = vmatpush3.bf16.msra.mxu0 %v12440_v37  ;;  %v6167_v37 = vld [vmem:[%s17587_s9 + $0x60] sm:$0xff] }
0x11f0   : > { %12453 = vmatprep.subr.bf16.mxu0 %v12452_v41 }
0x11f2   : > { %11414 = vmatmul.mubr.msk.f32.vlgmr.msra.gmra.mrb[228].mxu0 %vm527_vm0, %v15525_v48  ;;  %v9926_v48 = vld [vmem:[%s17587_s9 + $0x180] sm:$0xff] }
0x11f3   : > { %12455 = vmatpush3.bf16.msra.mxu0 %v12452_v41  ;;  %11445 = vmatprep.mubr.msk.f32.mxu0 %vm527_vm0, %v15531_v14  ;;  %v9930_v14 = vld [vmem:[%s17587_s9 + $0x1a0] sm:$0xff]  ;;  %v12506_v41 = vpack.c.bf16 %v6167_v37, %v6163_v56  ;;  %v9949_v37 = vld [vmem:[%s17587_s9 + $0x218] sm:$0xff] }
0x11f4   : > { %12457 = vmatprep.subr.bf16.mxu0 %v12456_v60  ;;  %v12478_v8 = vpack.c.bf16 %v9930_v14, %v9926_v48  ;;  %v6158_v48 = vld [vmem:[%s17587_s9 + $0x18] sm:$0xff]  ;;  %v9974_v56 = vld [vmem:[%s17587_s9 + $0x2e0] sm:$0xff] }
0x11f5   : > { %v6162_v14 = vld [vmem:[%s17587_s9 + $0x38] sm:$0xff] }
0x11f6   : > { %12479 = vmatpush1.bf16.msra.mxu1 %v12478_v8  ;;  %v12516_v54 = vpack.c.bf16 %v6162_v14, %v6158_v48  ;;  %v9965_v48 = vld [vmem:[%s17587_s9 + $0x298] sm:$0xff] }
0x11f7   : > { %12459 = vmatpush3.bf16.msra.mxu0 %v12456_v60  ;;  %12481 = vmatprep.subr.bf16.mxu1 %v12480_v58  ;;  %v6175_v60 = vld [vmem:[%s17587_s9 + $0xa0] sm:$0xff]  ;;  %v6161_v58 = vld [vmem:[%s17587_s9 + $0x30] sm:$0xff]  ;;  %v9969_v14 = vld [vmem:[%s17587_s9 + $0x2b8] sm:$0xff] }
0x11f8   : > { %12461 = vmatprep.subr.bf16.mxu0 %v12460_v33 }
0x11fb   : > { %12463 = vmatpush3.bf16.msra.mxu0 %v12460_v33  ;;  %v12510_v33 = vpack.c.bf16 %v6175_v60, %v6171_v40  ;;  %v9952_v40 = vld [vmem:[%s17587_s9 + $0x230] sm:$0xff]  ;;  %v9957_v60 = vld [vmem:[%s17587_s9 + $0x258] sm:$0xff] }
0x11fc   : > { %12465 = vmatprep.subr.bf16.mxu0 %v12464_v5 }
0x11ff   : > { %12467 = vmatpush3.bf16.msra.mxu0 %v12464_v5  ;;  %v6183_v5 = vld [vmem:[%s17587_s9 + $0xe0] sm:$0xff] }
0x1200   : > { %v12514_v8 = vpack.c.bf16 %v6183_v5, %v6179_v51  ;;  %v9956_v51 = vld [vmem:[%s17587_s9 + $0x250] sm:$0xff] }
0x1201   : > { %v9960_v5 = vld [vmem:[%s17587_s9 + $0x270] sm:$0xff] }
0x1202   : > { %11446 = vmatmul.mubr.msk.f32.vlgmr.msra.gmra.mrb[228].mxu0 %vm527_vm0, %v15529_v23  ;;  %v9934_v23 = vld [vmem:[%s17587_s9 + $0x1c0] sm:$0xff] }
0x1203   : > { %v12482_v62 = vpack.c.bf16 %v9938_v11, %v9934_v23  ;;  %v6166_v23 = vld [vmem:[%s17587_s9 + $0x58] sm:$0xff] }
0x1204   : > { %v6170_v11 = vld [vmem:[%s17587_s9 + $0x78] sm:$0xff] }
0x1205   : > { %12483 = vmatpush1.bf16.msra.mxu1 %v12482_v62  ;;  %v12518_v62 = vpack.c.bf16 %v6161_v58, %v6157_v59  ;;  %v12520_v4 = vpack.c.bf16 %v6170_v11, %v6166_v23  ;;  %v9964_v59 = vld [vmem:[%s17587_s9 + $0x290] sm:$0xff]  ;;  %v9973_v23 = vld [vmem:[%s17587_s9 + $0x2d8] sm:$0xff] }
0x1206   : > { %12485 = vmatprep.subr.bf16.mxu1 %v12484_v6  ;;  %v6169_v6 = vld [vmem:[%s17587_s9 + $0x70] sm:$0xff]  ;;  %v9977_v11 = vld [vmem:[%s17587_s9 + $0x2f8] sm:$0xff] }
0x1207   : > { %v9968_v58 = vld [vmem:[%s17587_s9 + $0x2b0] sm:$0xff] }
0x12d5   : > { %v11447_v19 = vpop.f32.mrb[228].mxu0 }
0x12d6   : > { %v15751_v21 = vadd.f32 %v11447_v19, %v9909_v0  ;;  %v6133_v13 = vpop.f32.mrb[229].mxu0  ;;  %v6178_v19 = vld [vmem:[%s17587_s9 + $0xb8] sm:$0xff] }
0x12d7   : > { %v6151_v2 = vadd.f32 %v9909_v0, %v6133_v13  ;;  %v6174_v0 = vld [vmem:[%s17587_s9 + $0x98] sm:$0xff]  ;;  %v12522_v13 = vpack.c.bf16 %v6169_v6, %v6165_v15  ;;  %v9972_v15 = vld [vmem:[%s17587_s9 + $0x2d0] sm:$0xff] }
0x12d8   : > { %v9976_v6 = vld [vmem:[%s17587_s9 + $0x2f0] sm:$0xff] }
0x12d9   : > { %v15765_v52 = vmax.f32 %v6151_v2, 0.0  ;;  %v12524_v2 = vpack.c.bf16 %v6178_v19, %v6174_v0  ;;  %v9981_v0 = vld [vmem:[%s17587_s9 + $0x308] sm:$0xff] }
0x12da   : > { %v9985_v19 = vld [vmem:[%s17587_s9 + $0x328] sm:$0xff] }
0x12db   : > { %v6221_v29 = vrot.slane %v15765_v52, 1 }
0x12dd   : > { %9942 = vmatmul.mubr.msk.f32.vlgmr.msra.gmra.mrb[166].mxu1 %vm527_vm0, %v6221_v29 }
0x12de   : > { %12487 = vmatpush1.bf16.msra.mxu1 %v12486_v61  ;;  %6359 = vmatprep.mubr.f32.mxu1 %v13228_v49  ;;  %v12526_v61 = vpack.c.bf16 %v6177_v9, %v6173_v10  ;;  %v9980_v10 = vld [vmem:[%s17587_s9 + $0x300] sm:$0xff] }
0x12df   : > { %12489 = vmatprep.subr.bf16.mxu1 %v12488_v17  ;;  %v6181_v17 = vld [vmem:[%s17587_s9 + $0xd0] sm:$0xff]  ;;  %v9984_v9 = vld [vmem:[%s17587_s9 + $0x320] sm:$0xff] }
0x12e0   : > { %v12530_v35 = vpack.c.bf16 %v6185_v7, %v6181_v17  ;;  %v9988_v17 = vld [vmem:[%s17587_s9 + $0x340] sm:$0xff] }
0x12e1   : > { %v9992_v7 = vld [vmem:[%s17587_s9 + $0x360] sm:$0xff] }
0x12e2   : > { %12491 = vmatpush1.bf16.msra.mxu1 %v12490_v45  ;;  %v12532_v45 = vpack.c.bf16 %v9951_v25, %v9947_v16  ;;  %v9997_v16 = vld [vmem:[%s17587_s9 + $0x388] sm:$0xff] }
0x12e3   : > { %12493 = vmatprep.subr.bf16.mxu1 %v12492_v55  ;;  %v9946_v55 = vld [vmem:[%s17587_s9 + $0x200] sm:$0xff]  ;;  %v10001_v25 = vld [vmem:[%s17587_s9 + $0x3a8] sm:$0xff] }
0x12e4   : > { %v12534_v38 = vpack.c.bf16 %v9950_v1, %v9946_v55  ;;  %v9996_v55 = vld [vmem:[%s17587_s9 + $0x380] sm:$0xff] }
0x12e5   : > { %v10000_v1 = vld [vmem:[%s17587_s9 + $0x3a0] sm:$0xff] }
0x12e6   : > { %12495 = vmatpush1.bf16.msra.mxu1 %v12494_v20  ;;  %v12536_v20 = vpack.c.bf16 %v9959_v36, %v9955_v22  ;;  %v10005_v22 = vld [vmem:[%s17587_s9 + $0x3c8] sm:$0xff] }
0x12e7   : > { %12497 = vmatprep.subr.bf16.mxu1 %v12496_v26  ;;  %v9954_v26 = vld [vmem:[%s17587_s9 + $0x240] sm:$0xff]  ;;  %v10009_v36 = vld [vmem:[%s17587_s9 + $0x3e8] sm:$0xff] }
0x12e8   : > { %v12538_v44 = vpack.c.bf16 %v9958_v30, %v9954_v26  ;;  %v10004_v26 = vld [vmem:[%s17587_s9 + $0x3c0] sm:$0xff] }
0x12e9   : > { %v10008_v30 = vld [vmem:[%s17587_s9 + $0x3e0] sm:$0xff] }
0x12ea   : > { %12499 = vmatpush1.bf16.msra.mxu1 %v12498_v42  ;;  %v12540_v42 = vpack.c.bf16 %v9967_v12, %v9963_v24  ;;  %v9983_v24 = vld [vmem:[%s17587_s9 + $0x318] sm:$0xff] }
0x12eb   : > { %12501 = vmatprep.subr.bf16.mxu1 %v12500_v47  ;;  %v9962_v47 = vld [vmem:[%s17587_s9 + $0x280] sm:$0xff]  ;;  %v9987_v12 = vld [vmem:[%s17587_s9 + $0x338] sm:$0xff] }
0x12ec   : > { %v12542_v31 = vpack.c.bf16 %v9966_v28, %v9962_v47  ;;  %v9982_v47 = vld [vmem:[%s17587_s9 + $0x310] sm:$0xff] }
0x12ed   : > { %9943 = vmatmul.mubr.msk.f32.vlgmr.msra.gmra.mrb[168].mxu1 %vm527_vm0, %v6221_v29  ;;  %v12528_v29 = vpack.c.bf16 %v6186_v27, %v6182_v43  ;;  %v9989_v43 = vld [vmem:[%s17587_s9 + $0x348] sm:$0xff]  ;;  %v9986_v28 = vld [vmem:[%s17587_s9 + $0x330] sm:$0xff] }
0x12ee   : > { %12503 = vmatpush1.bf16.msra.mxu1 %v12502_v53  ;;  %6432 = vmatprep.mubr.f32.mxu1 %v13228_v49  ;;  %v12544_v53 = vpack.c.bf16 %v9975_v39, %v9971_v34  ;;  %v9993_v27 = vld [vmem:[%s17587_s9 + $0x368] sm:$0xff]  ;;  %v9991_v34 = vld [vmem:[%s17587_s9 + $0x358] sm:$0xff] }
0x12ef   : > { %12505 = vmatprep.subr.bf16.mxu1 %v12504_v3  ;;  %v9970_v3 = vld [vmem:[%s17587_s9 + $0x2c0] sm:$0xff]  ;;  %v9995_v39 = vld [vmem:[%s17587_s9 + $0x378] sm:$0xff] }
0x12f0   : > { %v12546_v18 = vpack.c.bf16 %v9974_v56, %v9970_v3  ;;  %v12584_v3 = vpack.c.bf16 %v9995_v39, %v9991_v34  ;;  %v9990_v56 = vld [vmem:[%s17587_s9 + $0x350] sm:$0xff]  ;;  %v10041_v39 = vld [vmem:[%s17587_s9 + $0x4d8] sm:$0xff] }
0x12f1   : > { %v10036_v34 = vld [vmem:[%s17587_s9 + $0x4b0] sm:$0xff] }
0x12f2   : > { %12507 = vmatpush1.bf16.msra.mxu1 %v12506_v41  ;;  %v12548_v41 = vpack.c.bf16 %v9953_v32, %v9949_v37  ;;  %v9994_v37 = vld [vmem:[%s17587_s9 + $0x370] sm:$0xff]  ;;  %v9999_v32 = vld [vmem:[%s17587_s9 + $0x398] sm:$0xff] }
0x12f3   : > { %12509 = vmatprep.subr.bf16.mxu1 %v12508_v50  ;;  %v9948_v50 = vld [vmem:[%s17587_s9 + $0x210] sm:$0xff] }
0x12f4   : > { %v12550_v46 = vpack.c.bf16 %v9952_v40, %v9948_v50  ;;  %v9998_v40 = vld [vmem:[%s17587_s9 + $0x390] sm:$0xff] }
0x12f6   : > { %12511 = vmatpush1.bf16.msra.mxu1 %v12510_v33  ;;  %v6543_v33 = vrot.slane %v15765_v52, 2 }
0x12f7   : > { %12513 = vmatprep.subr.bf16.mxu1 %v12512_v57  ;;  %v12552_v57 = vpack.c.bf16 %v9961_v63, %v9957_v60  ;;  %v10002_v60 = vld [vmem:[%s17587_s9 + $0x3b0] sm:$0xff]  ;;  %v10007_v63 = vld [vmem:[%s17587_s9 + $0x3d8] sm:$0xff] }
0x12fa   : > { %12515 = vmatpush1.bf16.msra.mxu1 %v12514_v8  ;;  %v12554_v8 = vpack.c.bf16 %v9960_v5, %v9956_v51  ;;  %v10006_v51 = vld [vmem:[%s17587_s9 + $0x3d0] sm:$0xff] }
0x12fb   : > { %12517 = vmatprep.subr.bf16.mxu1 %v12516_v54  ;;  %v12556_v54 = vpack.c.bf16 %v9969_v14, %v9965_v48  ;;  %v10010_v5 = vld [vmem:[%s17587_s9 + $0x3f0] sm:$0xff]  ;;  %v10015_v48 = vld [vmem:[%s17587_s9 + $0x408] sm:$0xff] }
0x12fc   : > { %v10019_v14 = vld [vmem:[%s17587_s9 + $0x428] sm:$0xff] }
0x12fd   : > { %9944 = vmatmul.mubr.msk.f32.vlgmr.msra.gmra.mrb[166].mxu1 %vm527_vm0, %v15765_v52 }
0x12fe   : > { %12519 = vmatpush1.bf16.msra.mxu1 %v12518_v62  ;;  %6503 = vmatprep.mubr.f32.mxu1 %v13228_v49  ;;  %v12558_v62 = vpack.c.bf16 %v9968_v58, %v9964_v59  ;;  %v10014_v59 = vld [vmem:[%s17587_s9 + $0x400] sm:$0xff] }
0x12ff   : > { %12521 = vmatprep.subr.bf16.mxu1 %v12520_v4  ;;  %v12560_v4 = vpack.c.bf16 %v9977_v11, %v9973_v23  ;;  %v10018_v58 = vld [vmem:[%s17587_s9 + $0x420] sm:$0xff]  ;;  %v10023_v23 = vld [vmem:[%s17587_s9 + $0x448] sm:$0xff] }
0x1300   : > { %v10027_v11 = vld [vmem:[%s17587_s9 + $0x468] sm:$0xff] }
0x1302   : > { %12523 = vmatpush1.bf16.msra.mxu1 %v12522_v13  ;;  %v12562_v13 = vpack.c.bf16 %v9976_v6, %v9972_v15  ;;  %v10022_v15 = vld [vmem:[%s17587_s9 + $0x440] sm:$0xff] }
0x1303   : > { %12525 = vmatprep.subr.bf16.mxu1 %v12524_v2  ;;  %v12564_v2 = vpack.c.bf16 %v9985_v19, %v9981_v0  ;;  %v10026_v6 = vld [vmem:[%s17587_s9 + $0x460] sm:$0xff]  ;;  %v10031_v0 = vld [vmem:[%s17587_s9 + $0x488] sm:$0xff] }
0x1304   : > { %v10035_v19 = vld [vmem:[%s17587_s9 + $0x4a8] sm:$0xff] }
0x1306   : > { %12527 = vmatpush1.bf16.msra.mxu1 %v12526_v61  ;;  %v12566_v61 = vpack.c.bf16 %v9984_v9, %v9980_v10  ;;  %v10030_v10 = vld [vmem:[%s17587_s9 + $0x480] sm:$0xff] }
0x1307   : > { %12529 = vmatprep.subr.bf16.mxu1 %v12528_v29  ;;  %v12568_v29 = vpack.c.bf16 %v9993_v27, %v9989_v43  ;;  %v10034_v9 = vld [vmem:[%s17587_s9 + $0x4a0] sm:$0xff]  ;;  %v10039_v43 = vld [vmem:[%s17587_s9 + $0x4c8] sm:$0xff] }
0x1308   : > { %v10043_v27 = vld [vmem:[%s17587_s9 + $0x4e8] sm:$0xff] }
0x130a   : > { %12531 = vmatpush1.bf16.msra.mxu1 %v12530_v35  ;;  %v12570_v35 = vpack.c.bf16 %v9992_v7, %v9988_v17  ;;  %v10038_v17 = vld [vmem:[%s17587_s9 + $0x4c0] sm:$0xff] }
0x130b   : > { %12533 = vmatprep.subr.bf16.mxu1 %v12532_v45  ;;  %v12572_v45 = vpack.c.bf16 %v10001_v25, %v9997_v16  ;;  %v10042_v7 = vld [vmem:[%s17587_s9 + $0x4e0] sm:$0xff]  ;;  %v10017_v16 = vld [vmem:[%s17587_s9 + $0x418] sm:$0xff] }
0x130c   : > { %v10021_v25 = vld [vmem:[%s17587_s9 + $0x438] sm:$0xff] }
0x130d   : > { %9945 = vmatmul.mubr.msk.f32.vlgmr.msra.gmra.mrb[168].mxu1 %vm527_vm0, %v15765_v52 }
0x130e   : > { %12535 = vmatpush1.bf16.msra.mxu1 %v12534_v38  ;;  %6610 = vmatprep.mubr.f32.mxu1 %v13228_v49  ;;  %v12574_v38 = vpack.c.bf16 %v10000_v1, %v9996_v55  ;;  %v10016_v55 = vld [vmem:[%s17587_s9 + $0x410] sm:$0xff] }
0x130f   : > { %12537 = vmatprep.subr.bf16.mxu1 %v12536_v20  ;;  %v12576_v20 = vpack.c.bf16 %v10009_v36, %v10005_v22  ;;  %v10020_v1 = vld [vmem:[%s17587_s9 + $0x430] sm:$0xff]  ;;  %v10025_v22 = vld [vmem:[%s17587_s9 + $0x458] sm:$0xff] }
0x1310   : > { %v10029_v36 = vld [vmem:[%s17587_s9 + $0x478] sm:$0xff] }
0x1312   : > { %12539 = vmatpush1.bf16.msra.mxu1 %v12538_v44  ;;  %v12578_v44 = vpack.c.bf16 %v10008_v30, %v10004_v26  ;;  %v12616_v26 = vpack.c.bf16 %v10029_v36, %v10025_v22  ;;  %v10024_v30 = vld [vmem:[%s17587_s9 + $0x450] sm:$0xff]  ;;  %v10075_v36 = vld [vmem:[%s17587_s9 + $0x5d8] sm:$0xff] }
0x1313   : > { %12541 = vmatprep.subr.bf16.mxu1 %v12540_v42  ;;  %v12580_v42 = vpack.c.bf16 %v9987_v12, %v9983_v24  ;;  %v10028_v24 = vld [vmem:[%s17587_s9 + $0x470] sm:$0xff]  ;;  %v10033_v12 = vld [vmem:[%s17587_s9 + $0x498] sm:$0xff] }
0x1314   : > { %v10070_v22 = vld [vmem:[%s17587_s9 + $0x5b0] sm:$0xff] }
0x1316   : > { %12543 = vmatpush1.bf16.msra.mxu1 %v12542_v31  ;;  %v12582_v31 = vpack.c.bf16 %v9986_v28, %v9982_v47  ;;  %v10032_v28 = vld [vmem:[%s17587_s9 + $0x490] sm:$0xff] }
0x1317   : > { %12545 = vmatprep.subr.bf16.mxu1 %v12544_v53  ;;  %v6725_v53 = vrot.slane %v15765_v52, 3 }
0x131a   : > { %12547 = vmatpush1.bf16.msra.mxu1 %v12546_v18  ;;  %v10003_v18 = vld [vmem:[%s17587_s9 + $0x3b8] sm:$0xff] }
0x131b   : > { %12549 = vmatprep.subr.bf16.mxu1 %v12548_v41  ;;  %v12586_v41 = vpack.c.bf16 %v9994_v37, %v9990_v56  ;;  %v12588_v50 = vpack.c.bf16 %v10003_v18, %v9999_v32  ;;  %v10040_v56 = vld [vmem:[%s17587_s9 + $0x4d0] sm:$0xff]  ;;  %v10049_v32 = vld [vmem:[%s17587_s9 + $0x508] sm:$0xff] }
0x131c   : > { %v10044_v37 = vld [vmem:[%s17587_s9 + $0x4f0] sm:$0xff]  ;;  %v10053_v18 = vld [vmem:[%s17587_s9 + $0x528] sm:$0xff] }
0x131d   : > { %9978 = vmatmul.mubr.msk.f32.vlgmr.msra.gmra.mrb[166].mxu1 %vm527_vm0, %v6543_v33 }
0x131e   : > { %12551 = vmatpush1.bf16.msra.mxu1 %v12550_v46  ;;  %6681 = vmatprep.mubr.f32.mxu1 %v13228_v49  ;;  %v10011_v46 = vld [vmem:[%s17587_s9 + $0x3f8] sm:$0xff] }
0x131f   : > { %12553 = vmatprep.subr.bf16.mxu1 %v12552_v57  ;;  %v12592_v57 = vpack.c.bf16 %v10011_v46, %v10007_v63  ;;  %v10057_v63 = vld [vmem:[%s17587_s9 + $0x548] sm:$0xff] }
0x1320   : > { %v10061_v46 = vld [vmem:[%s17587_s9 + $0x568] sm:$0xff] }
0x1322   : > { %12555 = vmatpush1.bf16.msra.mxu1 %v12554_v8  ;;  %v12594_v8 = vpack.c.bf16 %v10010_v5, %v10006_v51  ;;  %v10056_v51 = vld [vmem:[%s17587_s9 + $0x540] sm:$0xff] }
0x1323   : > { %12557 = vmatprep.subr.bf16.mxu1 %v12556_v54  ;;  %v12596_v54 = vpack.c.bf16 %v10019_v14, %v10015_v48  ;;  %v10060_v5 = vld [vmem:[%s17587_s9 + $0x560] sm:$0xff]  ;;  %v10065_v48 = vld [vmem:[%s17587_s9 + $0x588] sm:$0xff] }
0x1324   : > { %v10069_v14 = vld [vmem:[%s17587_s9 + $0x5a8] sm:$0xff] }
0x1326   : > { %12559 = vmatpush1.bf16.msra.mxu1 %v12558_v62  ;;  %v12598_v62 = vpack.c.bf16 %v10018_v58, %v10014_v59  ;;  %v10064_v59 = vld [vmem:[%s17587_s9 + $0x580] sm:$0xff] }
0x1327   : > { %12561 = vmatprep.subr.bf16.mxu1 %v12560_v4  ;;  %v12600_v4 = vpack.c.bf16 %v10027_v11, %v10023_v23  ;;  %v10068_v58 = vld [vmem:[%s17587_s9 + $0x5a0] sm:$0xff]  ;;  %v10073_v23 = vld [vmem:[%s17587_s9 + $0x5c8] sm:$0xff] }
0x1328   : > { %v10077_v11 = vld [vmem:[%s17587_s9 + $0x5e8] sm:$0xff] }
0x132a   : > { %12563 = vmatpush1.bf16.msra.mxu1 %v12562_v13  ;;  %v12602_v13 = vpack.c.bf16 %v10026_v6, %v10022_v15  ;;  %v10072_v15 = vld [vmem:[%s17587_s9 + $0x5c0] sm:$0xff] }
0x132b   : > { %12565 = vmatprep.subr.bf16.mxu1 %v12564_v2  ;;  %v12604_v2 = vpack.c.bf16 %v10035_v19, %v10031_v0  ;;  %v10076_v6 = vld [vmem:[%s17587_s9 + $0x5e0] sm:$0xff]  ;;  %v10051_v0 = vld [vmem:[%s17587_s9 + $0x518] sm:$0xff] }
0x132c   : > { %v10055_v19 = vld [vmem:[%s17587_s9 + $0x538] sm:$0xff] }
0x132d   : > { %9979 = vmatmul.mubr.msk.f32.vlgmr.msra.gmra.mrb[168].mxu1 %vm527_vm0, %v6543_v33  ;;  %v12590_v33 = vpack.c.bf16 %v10002_v60, %v9998_v40  ;;  %v10048_v40 = vld [vmem:[%s17587_s9 + $0x500] sm:$0xff] }
0x132e   : > { %12567 = vmatpush1.bf16.msra.mxu1 %v12566_v61  ;;  %6792 = vmatprep.mubr.f32.mxu1 %v13228_v49  ;;  %v12606_v61 = vpack.c.bf16 %v10034_v9, %v10030_v10  ;;  %v10052_v60 = vld [vmem:[%s17587_s9 + $0x520] sm:$0xff]  ;;  %v10050_v10 = vld [vmem:[%s17587_s9 + $0x510] sm:$0xff] }
0x132f   : > { %12569 = vmatprep.subr.bf16.mxu1 %v12568_v29  ;;  %v12608_v29 = vpack.c.bf16 %v10043_v27, %v10039_v43  ;;  %v10054_v9 = vld [vmem:[%s17587_s9 + $0x530] sm:$0xff]  ;;  %v10059_v43 = vld [vmem:[%s17587_s9 + $0x558] sm:$0xff] }
0x1330   : > { %v10063_v27 = vld [vmem:[%s17587_s9 + $0x578] sm:$0xff] }
0x1332   : > { %12571 = vmatpush1.bf16.msra.mxu1 %v12570_v35  ;;  %v12610_v35 = vpack.c.bf16 %v10042_v7, %v10038_v17  ;;  %v12648_v17 = vpack.c.bf16 %v10063_v27, %v10059_v43  ;;  %v10058_v7 = vld [vmem:[%s17587_s9 + $0x550] sm:$0xff]  ;;  %v10109_v27 = vld [vmem:[%s17587_s9 + $0x6d8] sm:$0xff] }
0x1333   : > { %12573 = vmatprep.subr.bf16.mxu1 %v12572_v45  ;;  %v12612_v45 = vpack.c.bf16 %v10021_v25, %v10017_v16  ;;  %v10062_v16 = vld [vmem:[%s17587_s9 + $0x570] sm:$0xff]  ;;  %v10067_v25 = vld [vmem:[%s17587_s9 + $0x598] sm:$0xff] }
0x1334   : > { %v10104_v43 = vld [vmem:[%s17587_s9 + $0x6b0] sm:$0xff] }
0x1336   : > { %12575 = vmatpush1.bf16.msra.mxu1 %v12574_v38  ;;  %v12614_v38 = vpack.c.bf16 %v10020_v1, %v10016_v55  ;;  %v10066_v1 = vld [vmem:[%s17587_s9 + $0x590] sm:$0xff] }
0x1337   : > { %12577 = vmatprep.subr.bf16.mxu1 %v12576_v20  ;;  %v6907_v20 = vrot.slane %v15765_v52, 4 }
0x133a   : > { %12579 = vmatpush1.bf16.msra.mxu1 %v12578_v44  ;;  %v10037_v44 = vld [vmem:[%s17587_s9 + $0x4b8] sm:$0xff] }
0x133b   : > { %12581 = vmatprep.subr.bf16.mxu1 %v12580_v42  ;;  %v12618_v42 = vpack.c.bf16 %v10028_v24, %v10024_v30  ;;  %v12620_v47 = vpack.c.bf16 %v10037_v44, %v10033_v12  ;;  %v10074_v30 = vld [vmem:[%s17587_s9 + $0x5d0] sm:$0xff]  ;;  %v10083_v12 = vld [vmem:[%s17587_s9 + $0x608] sm:$0xff] }
0x133c   : > { %v10078_v24 = vld [vmem:[%s17587_s9 + $0x5f0] sm:$0xff]  ;;  %v10087_v44 = vld [vmem:[%s17587_s9 + $0x628] sm:$0xff] }
0x133d   : > { %10012 = vmatmul.mubr.msk.f32.vlgmr.msra.gmra.mrb[166].mxu1 %vm527_vm0, %v6725_v53 }
0x133e   : > { %12583 = vmatpush1.bf16.msra.mxu1 %v12582_v31  ;;  %6863 = vmatprep.mubr.f32.mxu1 %v13228_v49  ;;  %v10045_v31 = vld [vmem:[%s17587_s9 + $0x4f8] sm:$0xff] }
0x133f   : > { %12585 = vmatprep.subr.bf16.mxu1 %v12584_v3  ;;  %v12624_v3 = vpack.c.bf16 %v10045_v31, %v10041_v39  ;;  %v10091_v39 = vld [vmem:[%s17587_s9 + $0x648] sm:$0xff] }
0x1340   : > { %v10095_v31 = vld [vmem:[%s17587_s9 + $0x668] sm:$0xff] }
0x1342   : > { %12587 = vmatpush1.bf16.msra.mxu1 %v12586_v41  ;;  %v12626_v41 = vpack.c.bf16 %v10044_v37, %v10040_v56  ;;  %v10090_v56 = vld [vmem:[%s17587_s9 + $0x640] sm:$0xff] }
0x1343   : > { %12589 = vmatprep.subr.bf16.mxu1 %v12588_v50  ;;  %v12628_v50 = vpack.c.bf16 %v10053_v18, %v10049_v32  ;;  %v10094_v37 = vld [vmem:[%s17587_s9 + $0x660] sm:$0xff]  ;;  %v10099_v32 = vld [vmem:[%s17587_s9 + $0x688] sm:$0xff] }
0x1344   : > { %v10103_v18 = vld [vmem:[%s17587_s9 + $0x6a8] sm:$0xff] }
0x1346   : > { %12591 = vmatpush1.bf16.msra.mxu1 %v12590_v33  ;;  %v12630_v33 = vpack.c.bf16 %v10052_v60, %v10048_v40  ;;  %v10098_v40 = vld [vmem:[%s17587_s9 + $0x680] sm:$0xff] }
0x1347   : > { %12593 = vmatprep.subr.bf16.mxu1 %v12592_v57  ;;  %v12632_v57 = vpack.c.bf16 %v10061_v46, %v10057_v63  ;;  %v10102_v60 = vld [vmem:[%s17587_s9 + $0x6a0] sm:$0xff]  ;;  %v10107_v63 = vld [vmem:[%s17587_s9 + $0x6c8] sm:$0xff] }
0x1348   : > { %v10111_v46 = vld [vmem:[%s17587_s9 + $0x6e8] sm:$0xff] }
0x134a   : > { %12595 = vmatpush1.bf16.msra.mxu1 %v12594_v8  ;;  %v12634_v8 = vpack.c.bf16 %v10060_v5, %v10056_v51  ;;  %v10106_v51 = vld [vmem:[%s17587_s9 + $0x6c0] sm:$0xff] }
0x134b   : > { %12597 = vmatprep.subr.bf16.mxu1 %v12596_v54  ;;  %v12636_v54 = vpack.c.bf16 %v10069_v14, %v10065_v48  ;;  %v10110_v5 = vld [vmem:[%s17587_s9 + $0x6e0] sm:$0xff]  ;;  %v10085_v48 = vld [vmem:[%s17587_s9 + $0x618] sm:$0xff] }
0x134c   : > { %v10089_v14 = vld [vmem:[%s17587_s9 + $0x638] sm:$0xff] }
0x134d   : > { %10013 = vmatmul.mubr.msk.f32.vlgmr.msra.gmra.mrb[168].mxu1 %vm527_vm0, %v6725_v53  ;;  %v12622_v53 = vpack.c.bf16 %v10036_v34, %v10032_v28  ;;  %v10082_v28 = vld [vmem:[%s17587_s9 + $0x600] sm:$0xff] }
0x134e   : > { %12599 = vmatpush1.bf16.msra.mxu1 %v12598_v62  ;;  %6974 = vmatprep.mubr.f32.mxu1 %v13228_v49  ;;  %v12638_v62 = vpack.c.bf16 %v10068_v58, %v10064_v59  ;;  %v10086_v34 = vld [vmem:[%s17587_s9 + $0x620] sm:$0xff]  ;;  %v10084_v59 = vld [vmem:[%s17587_s9 + $0x610] sm:$0xff] }
0x134f   : > { %12601 = vmatprep.subr.bf16.mxu1 %v12600_v4  ;;  %v12640_v4 = vpack.c.bf16 %v10077_v11, %v10073_v23  ;;  %v10088_v58 = vld [vmem:[%s17587_s9 + $0x630] sm:$0xff]  ;;  %v10093_v23 = vld [vmem:[%s17587_s9 + $0x658] sm:$0xff] }
0x1350   : > { %v10097_v11 = vld [vmem:[%s17587_s9 + $0x678] sm:$0xff] }
0x1352   : > { %12603 = vmatpush1.bf16.msra.mxu1 %v12602_v13  ;;  %v12642_v13 = vpack.c.bf16 %v10076_v6, %v10072_v15  ;;  %v12680_v15 = vpack.c.bf16 %v10097_v11, %v10093_v23  ;;  %v10092_v6 = vld [vmem:[%s17587_s9 + $0x650] sm:$0xff]  ;;  %v10143_v23 = vld [vmem:[%s17587_s9 + $0x7d8] sm:$0xff] }
0x1353   : > { %12605 = vmatprep.subr.bf16.mxu1 %v12604_v2  ;;  %v12644_v2 = vpack.c.bf16 %v10055_v19, %v10051_v0  ;;  %v10096_v0 = vld [vmem:[%s17587_s9 + $0x670] sm:$0xff]  ;;  %v10101_v19 = vld [vmem:[%s17587_s9 + $0x698] sm:$0xff] }
0x1354   : > { %v10147_v11 = vld [vmem:[%s17587_s9 + $0x7f8] sm:$0xff] }
0x1356   : > { %12607 = vmatpush1.bf16.msra.mxu1 %v12606_v61  ;;  %v12646_v61 = vpack.c.bf16 %v10054_v9, %v10050_v10  ;;  %v10100_v9 = vld [vmem:[%s17587_s9 + $0x690] sm:$0xff] }
0x1357   : > { %12609 = vmatprep.subr.bf16.mxu1 %v12608_v29  ;;  %v7089_v29 = vrot.slane %v15765_v52, 5 }
0x135a   : > { %12611 = vmatpush1.bf16.msra.mxu1 %v12610_v35  ;;  %v10071_v35 = vld [vmem:[%s17587_s9 + $0x5b8] sm:$0xff] }
0x135b   : > { %12613 = vmatprep.subr.bf16.mxu1 %v12612_v45  ;;  %v12650_v45 = vpack.c.bf16 %v10062_v16, %v10058_v7  ;;  %v12652_v55 = vpack.c.bf16 %v10071_v35, %v10067_v25  ;;  %v10108_v7 = vld [vmem:[%s17587_s9 + $0x6d0] sm:$0xff]  ;;  %v10117_v25 = vld [vmem:[%s17587_s9 + $0x708] sm:$0xff] }
0x135c   : > { %v10112_v16 = vld [vmem:[%s17587_s9 + $0x6f0] sm:$0xff]  ;;  %v10121_v35 = vld [vmem:[%s17587_s9 + $0x728] sm:$0xff] }
0x135d   : > { %10046 = vmatmul.mubr.msk.f32.vlgmr.msra.gmra.mrb[166].mxu1 %vm527_vm0, %v6907_v20 }
0x135e   : > { %12615 = vmatpush1.bf16.msra.mxu1 %v12614_v38  ;;  %7045 = vmatprep.mubr.f32.mxu1 %v13228_v49  ;;  %v10079_v38 = vld [vmem:[%s17587_s9 + $0x5f8] sm:$0xff] }
0x135f   : > { %12617 = vmatprep.subr.bf16.mxu1 %v12616_v26  ;;  %v12656_v26 = vpack.c.bf16 %v10079_v38, %v10075_v36  ;;  %v10125_v36 = vld [vmem:[%s17587_s9 + $0x748] sm:$0xff] }
0x1360   : > { %v10129_v38 = vld [vmem:[%s17587_s9 + $0x768] sm:$0xff] }
0x1362   : > { %12619 = vmatpush1.bf16.msra.mxu1 %v12618_v42  ;;  %v12658_v42 = vpack.c.bf16 %v10078_v24, %v10074_v30  ;;  %v10124_v30 = vld [vmem:[%s17587_s9 + $0x740] sm:$0xff] }
0x1363   : > { %12621 = vmatprep.subr.bf16.mxu1 %v12620_v47  ;;  %v12660_v47 = vpack.c.bf16 %v10087_v44, %v10083_v12  ;;  %v10128_v24 = vld [vmem:[%s17587_s9 + $0x760] sm:$0xff]  ;;  %v10133_v12 = vld [vmem:[%s17587_s9 + $0x788] sm:$0xff] }
0x1364   : > { %v10137_v44 = vld [vmem:[%s17587_s9 + $0x7a8] sm:$0xff] }
0x1366   : > { %12623 = vmatpush1.bf16.msra.mxu1 %v12622_v53  ;;  %v12662_v53 = vpack.c.bf16 %v10086_v34, %v10082_v28  ;;  %v10132_v28 = vld [vmem:[%s17587_s9 + $0x780] sm:$0xff] }
0x1367   : > { %12625 = vmatprep.subr.bf16.mxu1 %v12624_v3  ;;  %v12664_v3 = vpack.c.bf16 %v10095_v31, %v10091_v39  ;;  %v10136_v34 = vld [vmem:[%s17587_s9 + $0x7a0] sm:$0xff]  ;;  %v10141_v39 = vld [vmem:[%s17587_s9 + $0x7c8] sm:$0xff] }
0x1368   : > { %v10145_v31 = vld [vmem:[%s17587_s9 + $0x7e8] sm:$0xff] }
0x136a   : > { %12627 = vmatpush1.bf16.msra.mxu1 %v12626_v41  ;;  %v12666_v41 = vpack.c.bf16 %v10094_v37, %v10090_v56  ;;  %v10140_v56 = vld [vmem:[%s17587_s9 + $0x7c0] sm:$0xff] }
0x136b   : > { %12629 = vmatprep.subr.bf16.mxu1 %v12628_v50  ;;  %v12668_v50 = vpack.c.bf16 %v10103_v18, %v10099_v32  ;;  %v10144_v37 = vld [vmem:[%s17587_s9 + $0x7e0] sm:$0xff]  ;;  %v10119_v32 = vld [vmem:[%s17587_s9 + $0x718] sm:$0xff] }
0x136c   : > { %v10123_v18 = vld [vmem:[%s17587_s9 + $0x738] sm:$0xff] }
0x136d   : > { %10047 = vmatmul.mubr.msk.f32.vlgmr.msra.gmra.mrb[168].mxu1 %vm527_vm0, %v6907_v20  ;;  %v12654_v20 = vpack.c.bf16 %v10070_v22, %v10066_v1  ;;  %v10116_v1 = vld [vmem:[%s17587_s9 + $0x700] sm:$0xff] }
0x136e   : > { %12631 = vmatpush1.bf16.msra.mxu1 %v12630_v33  ;;  %7156 = vmatprep.mubr.f32.mxu1 %v13228_v49  ;;  %v12670_v33 = vpack.c.bf16 %v10102_v60, %v10098_v40  ;;  %v10120_v22 = vld [vmem:[%s17587_s9 + $0x720] sm:$0xff]  ;;  %v10118_v40 = vld [vmem:[%s17587_s9 + $0x710] sm:$0xff] }
0x136f   : > { %12633 = vmatprep.subr.bf16.mxu1 %v12632_v57  ;;  %v12672_v57 = vpack.c.bf16 %v10111_v46, %v10107_v63  ;;  %v10122_v60 = vld [vmem:[%s17587_s9 + $0x730] sm:$0xff]  ;;  %v10127_v63 = vld [vmem:[%s17587_s9 + $0x758] sm:$0xff] }
0x1370   : > { %v10131_v46 = vld [vmem:[%s17587_s9 + $0x778] sm:$0xff] }
0x1372   : > { %12635 = vmatpush1.bf16.msra.mxu1 %v12634_v8  ;;  %v12674_v8 = vpack.c.bf16 %v10110_v5, %v10106_v51  ;;  %v12712_v51 = vpack.c.bf16 %v10131_v46, %v10127_v63  ;;  %v10126_v5 = vld [vmem:[%s17587_s9 + $0x750] sm:$0xff]  ;;  %v10181_v63 = vld [vmem:[%s17587_s9 + $0x8f8] sm:$0xff] }
0x1373   : > { %12637 = vmatprep.subr.bf16.mxu1 %v12636_v54  ;;  %v12676_v54 = vpack.c.bf16 %v10089_v14, %v10085_v48  ;;  %v10130_v48 = vld [vmem:[%s17587_s9 + $0x770] sm:$0xff]  ;;  %v10135_v14 = vld [vmem:[%s17587_s9 + $0x798] sm:$0xff] }
0x1376   : > { %12639 = vmatpush1.bf16.msra.mxu1 %v12638_v62  ;;  %v12678_v62 = vpack.c.bf16 %v10088_v58, %v10084_v59  ;;  %v10134_v59 = vld [vmem:[%s17587_s9 + $0x790] sm:$0xff] }
0x1377   : > { %12641 = vmatprep.subr.bf16.mxu1 %v12640_v4  ;;  %v7271_v4 = vrot.slane %v15765_v52, 6  ;;  %v10138_v58 = vld [vmem:[%s17587_s9 + $0x7b0] sm:$0xff] }
0x137a   : > { %12643 = vmatpush1.bf16.msra.mxu1 %v12642_v13  ;;  %v10105_v13 = vld [vmem:[%s17587_s9 + $0x6b8] sm:$0xff] }
0x137b   : > { %12645 = vmatprep.subr.bf16.mxu1 %v12644_v2  ;;  %v12682_v2 = vpack.c.bf16 %v10096_v0, %v10092_v6  ;;  %v12684_v10 = vpack.c.bf16 %v10105_v13, %v10101_v19  ;;  %v10146_v6 = vld [vmem:[%s17587_s9 + $0x7f0] sm:$0xff]  ;;  %v10151_v0 = vld [vmem:[%s17587_s9 + $0x808] sm:$0xff] }
0x137c   : > { %v10155_v19 = vld [vmem:[%s17587_s9 + $0x828] sm:$0xff] }
0x137d   : > { %10080 = vmatmul.mubr.msk.f32.vlgmr.msra.gmra.mrb[166].mxu1 %vm527_vm0, %v7089_v29 }
0x137e   : > { %12647 = vmatpush1.bf16.msra.mxu1 %v12646_v61  ;;  %7227 = vmatprep.mubr.f32.mxu1 %v13228_v49  ;;  %v10113_v61 = vld [vmem:[%s17587_s9 + $0x6f8] sm:$0xff] }
0x137f   : > { %12649 = vmatprep.subr.bf16.mxu1 %v12648_v17  ;;  %v12688_v17 = vpack.c.bf16 %v10113_v61, %v10109_v27  ;;  %v10163_v27 = vld [vmem:[%s17587_s9 + $0x868] sm:$0xff] }
0x1382   : > { %12651 = vmatpush1.bf16.msra.mxu1 %v12650_v45  ;;  %v12690_v45 = vpack.c.bf16 %v10112_v16, %v10108_v7  ;;  %v10162_v7 = vld [vmem:[%s17587_s9 + $0x860] sm:$0xff]  ;;  %v10167_v16 = vld [vmem:[%s17587_s9 + $0x888] sm:$0xff] }
0x1383   : > { %12653 = vmatprep.subr.bf16.mxu1 %v12652_v55  ;;  %v12692_v55 = vpack.c.bf16 %v10121_v35, %v10117_v25  ;;  %v10171_v25 = vld [vmem:[%s17587_s9 + $0x8a8] sm:$0xff] }
0x1386   : > { %12655 = vmatpush1.bf16.msra.mxu1 %v12654_v20  ;;  %v12694_v20 = vpack.c.bf16 %v10120_v22, %v10116_v1  ;;  %v10170_v1 = vld [vmem:[%s17587_s9 + $0x8a0] sm:$0xff]  ;;  %v10175_v22 = vld [vmem:[%s17587_s9 + $0x8c8] sm:$0xff] }
0x1387   : > { %12657 = vmatprep.subr.bf16.mxu1 %v12656_v26  ;;  %v12696_v26 = vpack.c.bf16 %v10129_v38, %v10125_v36  ;;  %v10179_v36 = vld [vmem:[%s17587_s9 + $0x8e8] sm:$0xff] }
0x138a   : > { %12659 = vmatpush1.bf16.msra.mxu1 %v12658_v42  ;;  %v12698_v42 = vpack.c.bf16 %v10128_v24, %v10124_v30  ;;  %v10178_v30 = vld [vmem:[%s17587_s9 + $0x8e0] sm:$0xff]  ;;  %v10153_v24 = vld [vmem:[%s17587_s9 + $0x818] sm:$0xff] }
0x138b   : > { %12661 = vmatprep.subr.bf16.mxu1 %v12660_v47  ;;  %v12700_v47 = vpack.c.bf16 %v10137_v44, %v10133_v12  ;;  %v10157_v12 = vld [vmem:[%s17587_s9 + $0x838] sm:$0xff] }
0x138d   : > { %10081 = vmatmul.mubr.msk.f32.vlgmr.msra.gmra.mrb[168].mxu1 %vm527_vm0, %v7089_v29  ;;  %v12686_v29 = vpack.c.bf16 %v10104_v43, %v10100_v9  ;;  %v10154_v9 = vld [vmem:[%s17587_s9 + $0x820] sm:$0xff]  ;;  %v10159_v43 = vld [vmem:[%s17587_s9 + $0x848] sm:$0xff] }
0x138e   : > { %12663 = vmatpush1.bf16.msra.mxu1 %v12662_v53  ;;  %7338 = vmatprep.mubr.f32.mxu1 %v13228_v49  ;;  %v12702_v53 = vpack.c.bf16 %v10136_v34, %v10132_v28  ;;  %v10156_v28 = vld [vmem:[%s17587_s9 + $0x830] sm:$0xff]  ;;  %v10161_v34 = vld [vmem:[%s17587_s9 + $0x858] sm:$0xff] }
0x138f   : > { %12665 = vmatprep.subr.bf16.mxu1 %v12664_v3  ;;  %v12704_v3 = vpack.c.bf16 %v10145_v31, %v10141_v39  ;;  %v10165_v39 = vld [vmem:[%s17587_s9 + $0x878] sm:$0xff] }
0x1392   : > { %12667 = vmatpush1.bf16.msra.mxu1 %v12666_v41  ;;  %v12706_v41 = vpack.c.bf16 %v10144_v37, %v10140_v56  ;;  %v10160_v56 = vld [vmem:[%s17587_s9 + $0x850] sm:$0xff] }
0x1393   : > { %12669 = vmatprep.subr.bf16.mxu1 %v12668_v50  ;;  %v12708_v50 = vpack.c.bf16 %v10123_v18, %v10119_v32  ;;  %v10164_v37 = vld [vmem:[%s17587_s9 + $0x870] sm:$0xff]  ;;  %v10169_v32 = vld [vmem:[%s17587_s9 + $0x898] sm:$0xff] }
0x1394   : > { %v10173_v18 = vld [vmem:[%s17587_s9 + $0x8b8] sm:$0xff] }
0x1396   : > { %12671 = vmatpush1.bf16.msra.mxu1 %v12670_v33  ;;  %v12710_v33 = vpack.c.bf16 %v10122_v60, %v10118_v40  ;;  %v10172_v40 = vld [vmem:[%s17587_s9 + $0x8b0] sm:$0xff]  ;;  %v10177_v60 = vld [vmem:[%s17587_s9 + $0x8d8] sm:$0xff] }
0x1397   : > { %12673 = vmatprep.subr.bf16.mxu1 %v12672_v57  ;;  %v7453_v57 = vrot.slane %v15765_v52, 7  ;;  %v12714_v52 = vpack.c.bf16 %v10130_v48, %v10126_v5  ;;  %v10185_v5 = vld [vmem:[%s17587_s9 + $0x908] sm:$0xff] }
0x1398   : > { %v10189_v48 = vld [vmem:[%s17587_s9 + $0x928] sm:$0xff] }
0x139a   : > { %12675 = vmatpush1.bf16.msra.mxu1 %v12674_v8  ;;  %v10139_v8 = vld [vmem:[%s17587_s9 + $0x7b8] sm:$0xff] }
0x139b   : > { %12677 = vmatprep.subr.bf16.mxu1 %v12676_v54  ;;  %v12716_v54 = vpack.c.bf16 %v10139_v8, %v10135_v14  ;;  %v12756_v8 = vpack.c.bf16 %v10189_v48, %v10185_v5  ;;  %v10239_v5 = vld [vmem:[%s17587_s9 + $0xaa8] sm:$0xff] }
0x139d   : > { %10114 = vmatmul.mubr.msk.f32.vlgmr.msra.gmra.mrb[166].mxu1 %vm527_vm0, %v7271_v4 }
0x139e   : > { %12679 = vmatpush1.bf16.msra.mxu1 %v12678_v62  ;;  %7409 = vmatprep.mubr.f32.mxu1 %v13228_v49  ;;  %v12718_v62 = vpack.c.bf16 %v10138_v58, %v10134_v59  ;;  %v10193_v59 = vld [vmem:[%s17587_s9 + $0x948] sm:$0xff] }
0x139f   : > { %12681 = vmatprep.subr.bf16.mxu1 %v12680_v15  ;;  %v10142_v15 = vld [vmem:[%s17587_s9 + $0x7d0] sm:$0xff]  ;;  %v10197_v58 = vld [vmem:[%s17587_s9 + $0x968] sm:$0xff] }
0x13a0   : > { %v12722_v13 = vpack.c.bf16 %v10146_v6, %v10142_v15  ;;  %v10201_v15 = vld [vmem:[%s17587_s9 + $0x988] sm:$0xff] }
0x13a1   : > { %v10205_v6 = vld [vmem:[%s17587_s9 + $0x9a8] sm:$0xff] }
0x13a2   : > { %12683 = vmatpush1.bf16.msra.mxu1 %v12682_v2  ;;  %v12724_v2 = vpack.c.bf16 %v10155_v19, %v10151_v0  ;;  %v12764_v19 = vpack.c.bf16 %v10205_v6, %v10201_v15  ;;  %v10225_v15 = vld [vmem:[%s17587_s9 + $0xa38] sm:$0xff] }
0x13a3   : > { %12685 = vmatprep.subr.bf16.mxu1 %v12684_v10  ;;  %v10150_v10 = vld [vmem:[%s17587_s9 + $0x800] sm:$0xff] }
0x13a4   : > { %v12726_v61 = vpack.c.bf16 %v10154_v9, %v10150_v10  ;;  %v10209_v10 = vld [vmem:[%s17587_s9 + $0x9c8] sm:$0xff] }
0x13a5   : > { %v10213_v9 = vld [vmem:[%s17587_s9 + $0x9e8] sm:$0xff] }
0x13a6   : > { %12687 = vmatpush1.bf16.msra.mxu1 %v12686_v29  ;;  %v12728_v29 = vpack.c.bf16 %v10163_v27, %v10159_v43  ;;  %v12768_v27 = vpack.c.bf16 %v10213_v9, %v10209_v10  ;;  %v10233_v10 = vld [vmem:[%s17587_s9 + $0xa78] sm:$0xff] }
0x13a7   : > { %12689 = vmatprep.subr.bf16.mxu1 %v12688_v17  ;;  %v10158_v17 = vld [vmem:[%s17587_s9 + $0x840] sm:$0xff] }
0x13a8   : > { %v12730_v35 = vpack.c.bf16 %v10162_v7, %v10158_v17  ;;  %v10187_v17 = vld [vmem:[%s17587_s9 + $0x918] sm:$0xff] }
0x13a9   : > { %v10191_v7 = vld [vmem:[%s17587_s9 + $0x938] sm:$0xff] }
0x13aa   : > { %12691 = vmatpush1.bf16.msra.mxu1 %v12690_v45  ;;  %v12732_v45 = vpack.c.bf16 %v10171_v25, %v10167_v16  ;;  %v12772_v25 = vpack.c.bf16 %v10191_v7, %v10187_v17  ;;  %v10237_v17 = vld [vmem:[%s17587_s9 + $0xa98] sm:$0xff] }
0x13ab   : > { %12693 = vmatprep.subr.bf16.mxu1 %v12692_v55  ;;  %v10166_v55 = vld [vmem:[%s17587_s9 + $0x880] sm:$0xff]  ;;  %v10241_v7 = vld [vmem:[%s17587_s9 + $0xab8] sm:$0xff] }
0x13ac   : > { %v12734_v38 = vpack.c.bf16 %v10170_v1, %v10166_v55  ;;  %v10195_v55 = vld [vmem:[%s17587_s9 + $0x958] sm:$0xff] }
0x13ad   : > { %10115 = vmatmul.mubr.msk.f32.vlgmr.msra.gmra.mrb[168].mxu1 %vm527_vm0, %v7271_v4  ;;  %v12720_v4 = vpack.c.bf16 %v10147_v11, %v10143_v23  ;;  %v12760_v11 = vpack.c.bf16 %v10197_v58, %v10193_v59  ;;  %v10199_v1 = vld [vmem:[%s17587_s9 + $0x978] sm:$0xff]  ;;  %v10247_v59 = vld [vmem:[%s17587_s9 + $0xae8] sm:$0xff] }
0x13ae   : > { %12695 = vmatpush1.bf16.msra.mxu1 %v12694_v20  ;;  %7520 = vmatprep.mubr.f32.mxu1 %v13228_v49  ;;  %v12736_v20 = vpack.c.bf16 %v10179_v36, %v10175_v22 }
0x13af   : > { %12697 = vmatprep.subr.bf16.mxu1 %v12696_v26  ;;  %v10174_v26 = vld [vmem:[%s17587_s9 + $0x8c0] sm:$0xff] }
0x13b0   : > { %v12738_v44 = vpack.c.bf16 %v10178_v30, %v10174_v26  ;;  %v10198_v26 = vld [vmem:[%s17587_s9 + $0x970] sm:$0xff]  ;;  %v10203_v30 = vld [vmem:[%s17587_s9 + $0x998] sm:$0xff] }
0x13b2   : > { %12699 = vmatpush1.bf16.msra.mxu1 %v12698_v42  ;;  %v12740_v42 = vpack.c.bf16 %v10157_v12, %v10153_v24  ;;  %v10207_v24 = vld [vmem:[%s17587_s9 + $0x9b8] sm:$0xff] }
0x13b3   : > { %12701 = vmatprep.subr.bf16.mxu1 %v12700_v47  ;;  %v10152_v47 = vld [vmem:[%s17587_s9 + $0x810] sm:$0xff] }
0x13b4   : > { %v12742_v31 = vpack.c.bf16 %v10156_v28, %v10152_v47  ;;  %v10206_v47 = vld [vmem:[%s17587_s9 + $0x9b0] sm:$0xff]  ;;  %v10211_v28 = vld [vmem:[%s17587_s9 + $0x9d8] sm:$0xff] }
0x13b6   : > { %12703 = vmatpush1.bf16.msra.mxu1 %v12702_v53  ;;  %v16577_v53 = vmax.f32 %v15751_v21, 0.0  ;;  %v12746_v21 = vpack.c.bf16 %v10164_v37, %v10160_v56  ;;  %v10214_v56 = vld [vmem:[%s17587_s9 + $0x9f0] sm:$0xff]  ;;  %v10219_v37 = vld [vmem:[%s17587_s9 + $0xa08] sm:$0xff] }
0x13b7   : > { %12705 = vmatprep.subr.bf16.mxu1 %v12704_v3  ;;  %v12744_v3 = vpack.c.bf16 %v10165_v39, %v10161_v34  ;;  %v10215_v34 = vld [vmem:[%s17587_s9 + $0x9f8] sm:$0xff] }
0x13b8   : > { %v7817_v36 = vrot.slane %v16577_v53, 1 }
0x13ba   : > { %12707 = vmatpush1.bf16.msra.mxu1 %v12706_v41  ;;  %v12748_v41 = vpack.c.bf16 %v10173_v18, %v10169_v32  ;;  %v10223_v32 = vld [vmem:[%s17587_s9 + $0xa28] sm:$0xff] }
0x13bb   : > { %12709 = vmatprep.subr.bf16.mxu1 %v12708_v50  ;;  %v10168_v50 = vld [vmem:[%s17587_s9 + $0x890] sm:$0xff] }
0x13bc   : > { %v12750_v46 = vpack.c.bf16 %v10172_v40, %v10168_v50  ;;  %v10222_v50 = vld [vmem:[%s17587_s9 + $0xa20] sm:$0xff]  ;;  %v10227_v40 = vld [vmem:[%s17587_s9 + $0xa48] sm:$0xff] }
0x13bd   : > { %10148 = vmatmul.mubr.msk.f32.vlgmr.msra.gmra.mrb[166].mxu1 %vm527_vm0, %v7453_v57 }
0x13be   : > { %12711 = vmatpush1.bf16.msra.mxu1 %v12710_v33  ;;  %7591 = vmatprep.mubr.f32.mxu1 %v13228_v49  ;;  %v12752_v33 = vpack.c.bf16 %v10181_v63, %v10177_v60  ;;  %v10231_v60 = vld [vmem:[%s17587_s9 + $0xa68] sm:$0xff] }
0x13bf   : > { %12713 = vmatprep.subr.bf16.mxu1 %v12712_v51  ;;  %v10180_v51 = vld [vmem:[%s17587_s9 + $0x8f0] sm:$0xff] }
0x13c2   : > { %12715 = vmatpush1.bf16.msra.mxu1 %v12714_v52  ;;  %v10184_v52 = vld [vmem:[%s17587_s9 + $0x900] sm:$0xff] }
0x13c3   : > { %12717 = vmatprep.subr.bf16.mxu1 %v12716_v54  ;;  %v10188_v54 = vld [vmem:[%s17587_s9 + $0x920] sm:$0xff] }
0x13c4   : > { %v12758_v23 = vpack.c.bf16 %v10188_v54, %v10184_v52  ;;  %v10238_v52 = vld [vmem:[%s17587_s9 + $0xaa0] sm:$0xff]  ;;  %v10243_v54 = vld [vmem:[%s17587_s9 + $0xac8] sm:$0xff] }
0x13c6   : > { %12719 = vmatpush1.bf16.msra.mxu1 %v12718_v62  ;;  %v10192_v62 = vld [vmem:[%s17587_s9 + $0x940] sm:$0xff] }
0x13c7   : > { %12721 = vmatprep.subr.bf16.mxu1 %v12720_v4  ;;  %v10196_v4 = vld [vmem:[%s17587_s9 + $0x960] sm:$0xff] }
0x13c8   : > { %v12762_v0 = vpack.c.bf16 %v10196_v4, %v10192_v62  ;;  %v10246_v62 = vld [vmem:[%s17587_s9 + $0xae0] sm:$0xff]  ;;  %v10221_v4 = vld [vmem:[%s17587_s9 + $0xa18] sm:$0xff] }
0x13ca   : > { %12723 = vmatpush1.bf16.msra.mxu1 %v12722_v13  ;;  %v10200_v13 = vld [vmem:[%s17587_s9 + $0x980] sm:$0xff] }
0x13cb   : > { %12725 = vmatprep.subr.bf16.mxu1 %v12724_v2  ;;  %v10204_v2 = vld [vmem:[%s17587_s9 + $0x9a0] sm:$0xff] }
0x13cc   : > { %v12766_v43 = vpack.c.bf16 %v10204_v2, %v10200_v13  ;;  %v10224_v13 = vld [vmem:[%s17587_s9 + $0xa30] sm:$0xff]  ;;  %v10229_v2 = vld [vmem:[%s17587_s9 + $0xa58] sm:$0xff] }
0x13cd   : > { %10149 = vmatmul.mubr.msk.f32.vlgmr.msra.gmra.mrb[168].mxu1 %vm527_vm0, %v7453_v57  ;;  %v10176_v57 = vld [vmem:[%s17587_s9 + $0x8d0] sm:$0xff] }
0x13ce   : > { %12727 = vmatpush1.bf16.msra.mxu1 %v12726_v61  ;;  %7702 = vmatprep.mubr.f32.mxu1 %v13228_v49  ;;  %v12754_v14 = vpack.c.bf16 %v10180_v51, %v10176_v57  ;;  %v10208_v61 = vld [vmem:[%s17587_s9 + $0x9c0] sm:$0xff]  ;;  %v10235_v51 = vld [vmem:[%s17587_s9 + $0xa88] sm:$0xff] }
0x13cf   : > { %12729 = vmatprep.subr.bf16.mxu1 %v12728_v29  ;;  %v10212_v29 = vld [vmem:[%s17587_s9 + $0x9e0] sm:$0xff] }
0x13d0   : > { %v12770_v16 = vpack.c.bf16 %v10212_v29, %v10208_v61  ;;  %v10230_v57 = vld [vmem:[%s17587_s9 + $0xa60] sm:$0xff]  ;;  %v10228_v61 = vld [vmem:[%s17587_s9 + $0xa50] sm:$0xff] }
0x13d1   : > { %v10232_v29 = vld [vmem:[%s17587_s9 + $0xa70] sm:$0xff] }
0x13d2   : > { %12731 = vmatpush1.bf16.msra.mxu1 %v12730_v35  ;;  %v10186_v35 = vld [vmem:[%s17587_s9 + $0x910] sm:$0xff] }
0x13d3   : > { %12733 = vmatprep.subr.bf16.mxu1 %v12732_v45  ;;  %v10190_v45 = vld [vmem:[%s17587_s9 + $0x930] sm:$0xff] }
0x13d4   : > { %v12774_v22 = vpack.c.bf16 %v10190_v45, %v10186_v35  ;;  %v10236_v35 = vld [vmem:[%s17587_s9 + $0xa90] sm:$0xff] }
0x13d5   : > { %v10240_v45 = vld [vmem:[%s17587_s9 + $0xab0] sm:$0xff] }
0x13d6   : > { %12735 = vmatpush1.bf16.msra.mxu1 %v12734_v38  ;;  %v12776_v38 = vpack.c.bf16 %v10199_v1, %v10195_v55  ;;  %v10245_v55 = vld [vmem:[%s17587_s9 + $0xad8] sm:$0xff] }
0x13d7   : > { %12737 = vmatprep.subr.bf16.mxu1 %v12736_v20  ;;  %v10194_v20 = vld [vmem:[%s17587_s9 + $0x950] sm:$0xff]  ;;  %v10249_v1 = vld [vmem:[%s17587_s9 + $0xaf8] sm:$0xff] }
0x13d8   : > { %v12778_v12 = vpack.c.bf16 %v10198_v26, %v10194_v20  ;;  %v10248_v20 = vld [vmem:[%s17587_s9 + $0xaf0] sm:$0xff]  ;;  %v10253_v26 = vld [vmem:[%s17587_s9 + $0xb08] sm:$0xff] }
0x13da   : > { %12739 = vmatpush1.bf16.msra.mxu1 %v12738_v44  ;;  %v12780_v44 = vpack.c.bf16 %v10207_v24, %v10203_v30  ;;  %v10257_v30 = vld [vmem:[%s17587_s9 + $0xb28] sm:$0xff] }
0x13db   : > { %12741 = vmatprep.subr.bf16.mxu1 %v12740_v42  ;;  %v10202_v42 = vld [vmem:[%s17587_s9 + $0x990] sm:$0xff] }
0x13dc   : > { %v12782_v39 = vpack.c.bf16 %v10206_v47, %v10202_v42  ;;  %v10256_v42 = vld [vmem:[%s17587_s9 + $0xb20] sm:$0xff]  ;;  %v10261_v47 = vld [vmem:[%s17587_s9 + $0xb48] sm:$0xff] }
0x13dd   : > { %10182 = vmatmul.mubr.msk.f32.vlgmr.msra.gmra.mrb[166].mxu1 %vm527_vm0, %v16577_v53 }
0x13de   : > { %12743 = vmatpush1.bf16.msra.mxu1 %v12742_v31  ;;  %7773 = vmatprep.mubr.f32.mxu1 %v13228_v49  ;;  %v12784_v31 = vpack.c.bf16 %v10215_v34, %v10211_v28  ;;  %v10265_v28 = vld [vmem:[%s17587_s9 + $0xb68] sm:$0xff] }
0x13df   : > { %12745 = vmatprep.subr.bf16.mxu1 %v12744_v3  ;;  %v10210_v3 = vld [vmem:[%s17587_s9 + $0x9d0] sm:$0xff] }
0x13e0   : > { %v12786_v18 = vpack.c.bf16 %v10214_v56, %v10210_v3  ;;  %v10264_v3 = vld [vmem:[%s17587_s9 + $0xb60] sm:$0xff]  ;;  %v10269_v56 = vld [vmem:[%s17587_s9 + $0xb88] sm:$0xff] }
0x13e2   : > { %12747 = vmatpush1.bf16.msra.mxu1 %v12746_v21  ;;  %v12788_v21 = vpack.c.bf16 %v10223_v32, %v10219_v37  ;;  %v10273_v37 = vld [vmem:[%s17587_s9 + $0xba8] sm:$0xff] }
0x13e3   : > { %12749 = vmatprep.subr.bf16.mxu1 %v12748_v41  ;;  %v10218_v41 = vld [vmem:[%s17587_s9 + $0xa00] sm:$0xff] }
0x13e4   : > { %v12790_v63 = vpack.c.bf16 %v10222_v50, %v10218_v41  ;;  %v10272_v41 = vld [vmem:[%s17587_s9 + $0xba0] sm:$0xff]  ;;  %v10277_v50 = vld [vmem:[%s17587_s9 + $0xbc8] sm:$0xff] }
0x13e6   : > { %12751 = vmatpush1.bf16.msra.mxu1 %v12750_v46  ;;  %v12792_v46 = vpack.c.bf16 %v10231_v60, %v10227_v40  ;;  %v10281_v40 = vld [vmem:[%s17587_s9 + $0xbe8] sm:$0xff] }
0x13e7   : > { %12753 = vmatprep.subr.bf16.mxu1 %v12752_v33  ;;  %v10226_v33 = vld [vmem:[%s17587_s9 + $0xa40] sm:$0xff] }
0x13e8   : > { %v12794_v48 = vpack.c.bf16 %v10230_v57, %v10226_v33  ;;  %v10280_v33 = vld [vmem:[%s17587_s9 + $0xbe0] sm:$0xff]  ;;  %v10255_v57 = vld [vmem:[%s17587_s9 + $0xb18] sm:$0xff] }
0x13ea   : > { %12755 = vmatpush1.bf16.msra.mxu1 %v12754_v14  ;;  %v12796_v14 = vpack.c.bf16 %v10239_v5, %v10235_v51  ;;  %v10259_v51 = vld [vmem:[%s17587_s9 + $0xb38] sm:$0xff] }
0x13eb   : > { %12757 = vmatprep.subr.bf16.mxu1 %v12756_v8  ;;  %v10234_v8 = vld [vmem:[%s17587_s9 + $0xa80] sm:$0xff] }
0x13ec   : > { %v12798_v58 = vpack.c.bf16 %v10238_v52, %v10234_v8  ;;  %v10258_v8 = vld [vmem:[%s17587_s9 + $0xb30] sm:$0xff]  ;;  %v10263_v52 = vld [vmem:[%s17587_s9 + $0xb58] sm:$0xff] }
0x13ed   : > { %10183 = vmatmul.mubr.msk.f32.vlgmr.msra.gmra.mrb[168].mxu1 %vm527_vm0, %v16577_v53 }
0x13ee   : > { %12759 = vmatpush1.bf16.msra.mxu1 %v12758_v23  ;;  %7884 = vmatprep.mubr.f32.mxu1 %v13228_v49  ;;  %v12800_v23 = vpack.c.bf16 %v10247_v59, %v10243_v54  ;;  %v10267_v54 = vld [vmem:[%s17587_s9 + $0xb78] sm:$0xff] }
0x13ef   : > { %12761 = vmatprep.subr.bf16.mxu1 %v12760_v11  ;;  %v10242_v11 = vld [vmem:[%s17587_s9 + $0xac0] sm:$0xff] }
0x13f0   : > { %v12802_v6 = vpack.c.bf16 %v10246_v62, %v10242_v11  ;;  %v10262_v11 = vld [vmem:[%s17587_s9 + $0xb50] sm:$0xff] }
0x13f1   : > { %v10266_v62 = vld [vmem:[%s17587_s9 + $0xb70] sm:$0xff] }
0x13f2   : > { %12763 = vmatpush1.bf16.msra.mxu1 %v12762_v0  ;;  %v12804_v0 = vpack.c.bf16 %v10225_v15, %v10221_v4  ;;  %v10271_v4 = vld [vmem:[%s17587_s9 + $0xb98] sm:$0xff] }
0x13f3   : > { %12765 = vmatprep.subr.bf16.mxu1 %v12764_v19  ;;  %v10220_v19 = vld [vmem:[%s17587_s9 + $0xa10] sm:$0xff]  ;;  %v10275_v15 = vld [vmem:[%s17587_s9 + $0xbb8] sm:$0xff] }
0x13f4   : > { %v12806_v9 = vpack.c.bf16 %v10224_v13, %v10220_v19  ;;  %v10270_v19 = vld [vmem:[%s17587_s9 + $0xb90] sm:$0xff] }
0x13f5   : > { %v10274_v13 = vld [vmem:[%s17587_s9 + $0xbb0] sm:$0xff] }
0x13f6   : > { %12767 = vmatpush1.bf16.msra.mxu1 %v12766_v43  ;;  %v7999_v43 = vrot.slane %v16577_v53, 2 }
0x13f7   : > { %12769 = vmatprep.subr.bf16.mxu1 %v12768_v27  ;;  %v12808_v27 = vpack.c.bf16 %v10233_v10, %v10229_v2  ;;  %v10279_v2 = vld [vmem:[%s17587_s9 + $0xbd8] sm:$0xff] }
0x13f8   : > { %v10283_v10 = vld [vmem:[%s17587_s9 + $0xbf8] sm:$0xff] }
0x13fa   : > { %12771 = vmatpush1.bf16.msra.mxu1 %v12770_v16  ;;  %v12810_v16 = vpack.c.bf16 %v10232_v29, %v10228_v61  ;;  %v10282_v61 = vld [vmem:[%s17587_s9 + $0xbf0] sm:$0xff]  ;;  %v10287_v29 = vld [vmem:[%s17587_s9 + $0xc08] sm:$0xff] }
0x13fb   : > { %12773 = vmatprep.subr.bf16.mxu1 %v12772_v25  ;;  %v12812_v25 = vpack.c.bf16 %v10241_v7, %v10237_v17  ;;  %v10291_v17 = vld [vmem:[%s17587_s9 + $0xc28] sm:$0xff] }
0x13fd   : > { %10216 = vmatmul.mubr.msk.f32.vlgmr.msra.gmra.mrb[166].mxu1 %vm527_vm0, %v7817_v36 }
0x13fe   : > { %12775 = vmatpush1.bf16.msra.mxu1 %v12774_v22  ;;  %7955 = vmatprep.mubr.f32.mxu1 %v13228_v49  ;;  %v12814_v22 = vpack.c.bf16 %v10240_v45, %v10236_v35  ;;  %v10290_v35 = vld [vmem:[%s17587_s9 + $0xc20] sm:$0xff]  ;;  %v10295_v45 = vld [vmem:[%s17587_s9 + $0xc48] sm:$0xff] }
0x13ff   : > { %12777 = vmatprep.subr.bf16.mxu1 %v12776_v38  ;;  %v10244_v38 = vld [vmem:[%s17587_s9 + $0xad0] sm:$0xff] }
0x1400   : > { %v12818_v24 = vpack.c.bf16 %v10248_v20, %v10244_v38  ;;  %v10298_v38 = vld [vmem:[%s17587_s9 + $0xc60] sm:$0xff]  ;;  %v10303_v20 = vld [vmem:[%s17587_s9 + $0xc88] sm:$0xff] }
0x1402   : > { %12779 = vmatpush1.bf16.msra.mxu1 %v12778_v12  ;;  %v12820_v12 = vpack.c.bf16 %v10257_v30, %v10253_v26  ;;  %v10307_v26 = vld [vmem:[%s17587_s9 + $0xca8] sm:$0xff]  ;;  %v10302_v30 = vld [vmem:[%s17587_s9 + $0xc80] sm:$0xff] }
0x1403   : > { %12781 = vmatprep.subr.bf16.mxu1 %v12780_v44  ;;  %v10252_v44 = vld [vmem:[%s17587_s9 + $0xb00] sm:$0xff] }
0x1404   : > { %v12822_v34 = vpack.c.bf16 %v10256_v42, %v10252_v44  ;;  %v9105_v44 = vld [vmem:[%s17589_s11 + $0x88] sm:$0xff]  ;;  %v9088_v42 = vld [vmem:[%s17589_s11] sm:$0xff] }
0x1406   : > { %12783 = vmatpush1.bf16.msra.mxu1 %v12782_v39  ;;  %v12824_v39 = vpack.c.bf16 %v10265_v28, %v10261_v47 }
0x1407   : > { %12785 = vmatprep.subr.bf16.mxu1 %v12784_v31  ;;  %v10260_v31 = vld [vmem:[%s17587_s9 + $0xb40] sm:$0xff] }
0x1408   : > { %v12826_v32 = vpack.c.bf16 %v10264_v3, %v10260_v31  ;;  %v9107_v31 = vld [vmem:[%s17589_s11 + $0x98] sm:$0xff]  ;;  %v12860_v3 = vpack.c.bf16 %v10307_v26, %v10303_v20  ;;  %v9098_v20 = vld [vmem:[%s17589_s11 + $0x50] sm:$0xff] }
0x1409   : > { %v9099_v26 = vld [vmem:[%s17589_s11 + $0x58] sm:$0xff] }
0x140a   : > { %12787 = vmatpush1.bf16.msra.mxu1 %v12786_v18  ;;  %v12828_v18 = vpack.c.bf16 %v10273_v37, %v10269_v56 }
0x140b   : > { %12789 = vmatprep.subr.bf16.mxu1 %v12788_v21  ;;  %v10268_v21 = vld [vmem:[%s17587_s9 + $0xb80] sm:$0xff] }
0x140c   : > { %v12830_v60 = vpack.c.bf16 %v10272_v41, %v10268_v21  ;;  %v9108_v21 = vld [vmem:[%s17589_s11 + $0xa0] sm:$0xff]  ;;  %v10311_v41 = vld [vmem:[%s17587_s9 + $0xcc8] sm:$0xff] }
0x140d   : > { %10217 = vmatmul.mubr.msk.f32.vlgmr.msra.gmra.mrb[168].mxu1 %vm527_vm0, %v7817_v36  ;;  %v12816_v36 = vpack.c.bf16 %v10249_v1, %v10245_v55  ;;  %v10299_v55 = vld [vmem:[%s17587_s9 + $0xc68] sm:$0xff] }
0x140e   : > { %12791 = vmatpush1.bf16.msra.mxu1 %v12790_v63  ;;  %8066 = vmatprep.mubr.f32.mxu1 %v13228_v49  ;;  %v12832_v63 = vpack.c.bf16 %v10281_v40, %v10277_v50  ;;  %v10315_v50 = vld [vmem:[%s17587_s9 + $0xce8] sm:$0xff] }
0x140f   : > { %12793 = vmatprep.subr.bf16.mxu1 %v12792_v46  ;;  %v10276_v46 = vld [vmem:[%s17587_s9 + $0xbc0] sm:$0xff]  ;;  %v9109_v40 = vld [vmem:[%s17589_s11 + $0xa8] sm:$0xff] }
0x1410   : > { %v12834_v5 = vpack.c.bf16 %v10280_v33, %v10276_v46  ;;  %v10310_v46 = vld [vmem:[%s17587_s9 + $0xcc0] sm:$0xff]  ;;  %v12988_v33 = vpack.c.bf16 %v9109_v40, %v9108_v21  ;;  %v10325_v21 = vld [vmem:[%s17587_s9 + $0xd28] sm:$0xff] }
0x1412   : > { %12795 = vmatpush1.bf16.msra.mxu1 %v12794_v48  ;;  %v12836_v48 = vpack.c.bf16 %v10259_v51, %v10255_v57  ;;  %v9092_v57 = vld [vmem:[%s17589_s11 + $0x20] sm:$0xff]  ;;  %v9093_v51 = vld [vmem:[%s17589_s11 + $0x28] sm:$0xff] }
0x1413   : > { %12797 = vmatprep.subr.bf16.mxu1 %v12796_v14  ;;  %v10254_v14 = vld [vmem:[%s17587_s9 + $0xb10] sm:$0xff] }
0x1414   : > { %v12838_v59 = vpack.c.bf16 %v10258_v8, %v10254_v14  ;;  %v9110_v14 = vld [vmem:[%s17589_s11 + $0xb0] sm:$0xff]  ;;  %v9111_v8 = vld [vmem:[%s17589_s11 + $0xb8] sm:$0xff] }
0x1416   : > { %12799 = vmatpush1.bf16.msra.mxu1 %v12798_v58  ;;  %v8181_v58 = vrot.slane %v16577_v53, 3 }
0x1417   : > { %12801 = vmatprep.subr.bf16.mxu1 %v12800_v23  ;;  %v12840_v23 = vpack.c.bf16 %v10267_v54, %v10263_v52  ;;  %v10289_v52 = vld [vmem:[%s17587_s9 + $0xc18] sm:$0xff] }
0x1418   : > { %v10293_v54 = vld [vmem:[%s17587_s9 + $0xc38] sm:$0xff] }
0x141a   : > { %12803 = vmatpush1.bf16.msra.mxu1 %v12802_v6  ;;  %v12842_v6 = vpack.c.bf16 %v10266_v62, %v10262_v11  ;;  %v9094_v11 = vld [vmem:[%s17589_s11 + $0x30] sm:$0xff]  ;;  %v9095_v62 = vld [vmem:[%s17589_s11 + $0x38] sm:$0xff] }
0x141b   : > { %12805 = vmatprep.subr.bf16.mxu1 %v12804_v0  ;;  %v12844_v0 = vpack.c.bf16 %v10275_v15, %v10271_v4  ;;  %v12868_v4 = vpack.c.bf16 %v10293_v54, %v10289_v52  ;;  %v10288_v15 = vld [vmem:[%s17587_s9 + $0xc10] sm:$0xff] }
0x141d   : > { %10250 = vmatmul.mubr.msk.f32.vlgmr.msra.gmra.mrb[166].mxu1 %vm527_vm0, %v7999_v43 }
0x141e   : > { %12807 = vmatpush1.bf16.msra.mxu1 %v12806_v9  ;;  %8137 = vmatprep.mubr.f32.mxu1 %v13228_v49  ;;  %v12846_v9 = vpack.c.bf16 %v10274_v13, %v10270_v19  ;;  %v10301_v19 = vld [vmem:[%s17587_s9 + $0xc78] sm:$0xff]  ;;  %v9112_v13 = vld [vmem:[%s17589_s11 + $0xc0] sm:$0xff] }
0x141f   : > { %12809 = vmatprep.subr.bf16.mxu1 %v12808_v27  ;;  %v10278_v27 = vld [vmem:[%s17587_s9 + $0xbd0] sm:$0xff] }
0x1420   : > { %v12850_v7 = vpack.c.bf16 %v10282_v61, %v10278_v27  ;;  %v9096_v27 = vld [vmem:[%s17589_s11 + $0x40] sm:$0xff]  ;;  %v9097_v61 = vld [vmem:[%s17589_s11 + $0x48] sm:$0xff] }
0x1422   : > { %12811 = vmatpush1.bf16.msra.mxu1 %v12810_v16  ;;  %v12852_v16 = vpack.c.bf16 %v10291_v17, %v10287_v29  ;;  %v8363_v29 = vrot.slane %v16577_v53, 4 }
0x1423   : > { %12813 = vmatprep.subr.bf16.mxu1 %v12812_v25  ;;  %v10286_v25 = vld [vmem:[%s17587_s9 + $0xc00] sm:$0xff] }
0x1424   : > { %v12854_v1 = vpack.c.bf16 %v10290_v35, %v10286_v25  ;;  %v9114_v25 = vld [vmem:[%s17589_s11 + $0xd0] sm:$0xff]  ;;  %v9115_v35 = vld [vmem:[%s17589_s11 + $0xd8] sm:$0xff] }
0x1426   : > { %12815 = vmatpush1.bf16.msra.mxu1 %v12814_v22  ;;  %v12856_v22 = vpack.c.bf16 %v10299_v55, %v10295_v45  ;;  %v10305_v45 = vld [vmem:[%s17587_s9 + $0xc98] sm:$0xff] }
0x1427   : > { %12817 = vmatprep.subr.bf16.mxu1 %v12816_v36  ;;  %v10294_v36 = vld [vmem:[%s17587_s9 + $0xc40] sm:$0xff]  ;;  %v10309_v55 = vld [vmem:[%s17587_s9 + $0xcb8] sm:$0xff] }
0x1428   : > { %v12858_v47 = vpack.c.bf16 %v10298_v38, %v10294_v36  ;;  %v10304_v36 = vld [vmem:[%s17587_s9 + $0xc90] sm:$0xff]  ;;  %v13000_v38 = vpack.c.bf16 %v9115_v35, %v9114_v25  ;;  %v10339_v25 = vld [vmem:[%s17587_s9 + $0xd98] sm:$0xff] }
0x1429   : > { %v10343_v35 = vld [vmem:[%s17587_s9 + $0xdb8] sm:$0xff] }
0x142a   : > { %12819 = vmatpush1.bf16.msra.mxu1 %v12818_v24  ;;  %v10306_v24 = vld [vmem:[%s17587_s9 + $0xca0] sm:$0xff] }
0x142b   : > { %12821 = vmatprep.subr.bf16.mxu1 %v12820_v12  ;;  %v9104_v12 = vld [vmem:[%s17589_s11 + $0x80] sm:$0xff] }
0x142c   : > { %v12980_v28 = vpack.c.bf16 %v9105_v44, %v9104_v12  ;;  %v9116_v12 = vld [vmem:[%s17589_s11 + $0xe0] sm:$0xff]  ;;  %v9117_v44 = vld [vmem:[%s17589_s11 + $0xe8] sm:$0xff] }
0x142d   : > { %10251 = vmatmul.mubr.msk.f32.vlgmr.msra.gmra.mrb[168].mxu1 %vm527_vm0, %v7999_v43  ;;  %v12848_v43 = vpack.c.bf16 %v10283_v10, %v10279_v2  ;;  %v9113_v2 = vld [vmem:[%s17589_s11 + $0xc8] sm:$0xff]  ;;  %v12994_v10 = vpack.c.bf16 %v9095_v62, %v9094_v11 }
0x142e   : > { %12823 = vmatpush1.bf16.msra.mxu1 %v12822_v34  ;;  %8248 = vmatprep.mubr.f32.mxu1 %v13228_v49  ;;  %v9089_v34 = vld [vmem:[%s17589_s11 + $0x8] sm:$0xff] }
0x142f   : > { %12825 = vmatprep.subr.bf16.mxu1 %v12824_v39  ;;  %v9106_v39 = vld [vmem:[%s17589_s11 + $0x90] sm:$0xff]  ;;  %v12982_v56 = vpack.c.bf16 %v9089_v34, %v9088_v42  ;;  %12981 = vmatprep.subr.bf16.mxu0 %v12980_v28  ;;  %v10313_v42 = vld [vmem:[%s17587_s9 + $0xcd8] sm:$0xff]  ;;  %v13002_v28 = vpack.c.bf16 %v9099_v26, %v9098_v20  ;;  %v10349_v11 = vld [vmem:[%s17587_s9 + $0xde8] sm:$0xff] }
0x1430   : > { %v12984_v37 = vpack.c.bf16 %v9107_v31, %v9106_v39  ;;  %v13004_v39 = vpack.c.bf16 %v9117_v44, %v9116_v12  ;;  %v9100_v31 = vld [vmem:[%s17589_s11 + $0x60] sm:$0xff]  ;;  %v10355_v12 = vld [vmem:[%s17587_s9 + $0xe08] sm:$0xff] }
0x1431   : > { %12983 = vmatpush3.bf16.msra.mxu0 %v12982_v56  ;;  %v10359_v44 = vld [vmem:[%s17587_s9 + $0xe28] sm:$0xff] }
0x1432   : > { %12827 = vmatpush1.bf16.msra.mxu1 %v12826_v32  ;;  %v9090_v32 = vld [vmem:[%s17589_s11 + $0x10] sm:$0xff]  ;;  %12985 = vmatprep.subr.bf16.mxu0 %v12984_v37 }
0x1433   : > { %12829 = vmatprep.subr.bf16.mxu1 %v12828_v18  ;;  %v9091_v18 = vld [vmem:[%s17589_s11 + $0x18] sm:$0xff]  ;;  %v10312_v37 = vld [vmem:[%s17587_s9 + $0xcd0] sm:$0xff] }
0x1436   : > { %12831 = vmatpush1.bf16.msra.mxu1 %v12830_v60  ;;  %v12986_v60 = vpack.c.bf16 %v9091_v18, %v9090_v32  ;;  %v10316_v32 = vld [vmem:[%s17587_s9 + $0xcf0] sm:$0xff]  ;;  %v10321_v18 = vld [vmem:[%s17587_s9 + $0xd08] sm:$0xff] }
0x1437   : > { %12833 = vmatprep.subr.bf16.mxu1 %v12832_v63  ;;  %v12862_v63 = vpack.c.bf16 %v10306_v24, %v10302_v30  ;;  %v12876_v30 = vpack.c.bf16 %v10309_v55, %v10305_v45  ;;  %v10308_v24 = vld [vmem:[%s17587_s9 + $0xcb0] sm:$0xff]  ;;  %v12884_v40 = vpack.c.bf16 %v10325_v21, %v10321_v18  ;;  %v12908_v55 = vpack.c.bf16 %v10343_v35, %v10339_v25  ;;  %v10371_v18 = vld [vmem:[%s17587_s9 + $0xe88] sm:$0xff] }
0x1438   : > { %12987 = vmatpush3.bf16.msra.mxu0 %v12986_v60  ;;  %v12878_v34 = vpack.c.bf16 %v10308_v24, %v10304_v36  ;;  %v10320_v60 = vld [vmem:[%s17587_s9 + $0xd00] sm:$0xff]  ;;  %v10347_v36 = vld [vmem:[%s17587_s9 + $0xdd8] sm:$0xff]  ;;  %v10350_v24 = vld [vmem:[%s17587_s9 + $0xdf0] sm:$0xff] }
0x1439   : > { %12989 = vmatprep.subr.bf16.mxu0 %v12988_v33  ;;  %v10333_v33 = vld [vmem:[%s17587_s9 + $0xd68] sm:$0xff] }
0x143a   : > { %12835 = vmatpush1.bf16.msra.mxu1 %v12834_v5  ;;  %v12864_v5 = vpack.c.bf16 %v10315_v50, %v10311_v41  ;;  %v12882_v50 = vpack.c.bf16 %v10316_v32, %v10312_v37  ;;  %v10362_v37 = vld [vmem:[%s17587_s9 + $0xe40] sm:$0xff]  ;;  %v10375_v21 = vld [vmem:[%s17587_s9 + $0xea8] sm:$0xff] }
0x143b   : > { %12837 = vmatprep.subr.bf16.mxu1 %v12836_v48  ;;  %v10314_v48 = vld [vmem:[%s17587_s9 + $0xce0] sm:$0xff]  ;;  %v10393_v25 = vld [vmem:[%s17587_s9 + $0xf28] sm:$0xff] }
0x143c   : > { %v10366_v32 = vld [vmem:[%s17587_s9 + $0xe60] sm:$0xff] }
0x143d   : > { %10284 = vmatmul.mubr.msk.f32.vlgmr.msra.gmra.mrb[166].mxu1 %vm527_vm0, %v8181_v58 }
0x143e   : > { %12839 = vmatpush1.bf16.msra.mxu1 %v12838_v59  ;;  %8319 = vmatprep.mubr.f32.mxu1 %v13228_v49  ;;  %v12990_v59 = vpack.c.bf16 %v9093_v51, %v9092_v57 }
0x143f   : > { %12841 = vmatprep.subr.bf16.mxu1 %v12840_v23  ;;  %v12992_v23 = vpack.c.bf16 %v9111_v8, %v9110_v14  ;;  %v10337_v14 = vld [vmem:[%s17587_s9 + $0xd88] sm:$0xff] }
0x1440   : > { %12991 = vmatpush3.bf16.msra.mxu0 %v12990_v59  ;;  %v10341_v8 = vld [vmem:[%s17587_s9 + $0xda8] sm:$0xff]  ;;  %v10336_v59 = vld [vmem:[%s17587_s9 + $0xd80] sm:$0xff] }
0x1441   : > { %12993 = vmatprep.subr.bf16.mxu0 %v12992_v23  ;;  %v12892_v54 = vpack.c.bf16 %v10341_v8, %v10337_v14  ;;  %v10345_v23 = vld [vmem:[%s17587_s9 + $0xdc8] sm:$0xff]  ;;  %v10361_v14 = vld [vmem:[%s17587_s9 + $0xe38] sm:$0xff] }
0x1442   : > { %12843 = vmatpush1.bf16.msra.mxu1 %v12842_v6  ;;  %v10292_v6 = vld [vmem:[%s17587_s9 + $0xc30] sm:$0xff] }
0x1443   : > { %12845 = vmatprep.subr.bf16.mxu1 %v12844_v0  ;;  %v10297_v0 = vld [vmem:[%s17587_s9 + $0xc58] sm:$0xff] }
0x1444   : > { %v12872_v17 = vpack.c.bf16 %v10301_v19, %v10297_v0  ;;  %12995 = vmatpush3.bf16.msra.mxu0 %v12994_v10  ;;  %v10323_v0 = vld [vmem:[%s17587_s9 + $0xd18] sm:$0xff]  ;;  %v10322_v10 = vld [vmem:[%s17587_s9 + $0xd10] sm:$0xff] }
0x1445   : > { %v10327_v19 = vld [vmem:[%s17587_s9 + $0xd38] sm:$0xff] }
0x1446   : > { %12847 = vmatpush1.bf16.msra.mxu1 %v12846_v9  ;;  %v12870_v9 = vpack.c.bf16 %v10292_v6, %v10288_v15  ;;  %v10344_v15 = vld [vmem:[%s17587_s9 + $0xdc0] sm:$0xff] }
0x1447   : > { %12849 = vmatprep.subr.bf16.mxu1 %v12848_v43  ;;  %v10296_v43 = vld [vmem:[%s17587_s9 + $0xc50] sm:$0xff]  ;;  %v10348_v6 = vld [vmem:[%s17587_s9 + $0xde0] sm:$0xff] }
0x144a   : > { %12851 = vmatpush1.bf16.msra.mxu1 %v12850_v7  ;;  %v10300_v7 = vld [vmem:[%s17587_s9 + $0xc70] sm:$0xff] }
0x144b   : > { %12853 = vmatprep.subr.bf16.mxu1 %v12852_v16  ;;  %v12996_v16 = vpack.c.bf16 %v9113_v2, %v9112_v13  ;;  %v12898_v13 = vpack.c.bf16 %v10348_v6, %v10344_v15  ;;  %v12900_v2 = vpack.c.bf16 %v10327_v19, %v10323_v0  ;;  %v10364_v15 = vld [vmem:[%s17587_s9 + $0xe50] sm:$0xff]  ;;  %v10373_v0 = vld [vmem:[%s17587_s9 + $0xe98] sm:$0xff] }
0x144c   : > { %v10368_v6 = vld [vmem:[%s17587_s9 + $0xe70] sm:$0xff]  ;;  %v10377_v19 = vld [vmem:[%s17587_s9 + $0xeb8] sm:$0xff] }
0x144d   : > { %10285 = vmatmul.mubr.msk.f32.vlgmr.msra.gmra.mrb[168].mxu1 %vm527_vm0, %v8181_v58  ;;  %v12866_v58 = vpack.c.bf16 %v10314_v48, %v10310_v46  ;;  %12997 = vmatprep.subr.bf16.mxu0 %v12996_v16  ;;  %v10329_v46 = vld [vmem:[%s17587_s9 + $0xd48] sm:$0xff]  ;;  %v10332_v48 = vld [vmem:[%s17587_s9 + $0xd60] sm:$0xff]  ;;  %v10334_v16 = vld [vmem:[%s17587_s9 + $0xd70] sm:$0xff] }
0x144e   : > { %12855 = vmatpush1.bf16.msra.mxu1 %v12854_v1  ;;  %8430 = vmatprep.mubr.f32.mxu1 %v13228_v49  ;;  %v12998_v1 = vpack.c.bf16 %v9097_v61, %v9096_v27  ;;  %v12888_v51 = vpack.c.bf16 %v10333_v33, %v10329_v46  ;;  %v10335_v27 = vld [vmem:[%s17587_s9 + $0xd78] sm:$0xff]  ;;  %v10383_v46 = vld [vmem:[%s17587_s9 + $0xee8] sm:$0xff] }
0x144f   : > { %12857 = vmatprep.subr.bf16.mxu1 %v12856_v22  ;;  %v12874_v22 = vpack.c.bf16 %v10300_v7, %v10296_v43  ;;  %v10331_v43 = vld [vmem:[%s17587_s9 + $0xd58] sm:$0xff]  ;;  %v10330_v7 = vld [vmem:[%s17587_s9 + $0xd50] sm:$0xff] }
0x1450   : > { %12999 = vmatpush3.bf16.msra.mxu0 %v12998_v1  ;;  %v12906_v45 = vpack.c.bf16 %v10334_v16, %v10330_v7  ;;  %v10338_v1 = vld [vmem:[%s17587_s9 + $0xd90] sm:$0xff]  ;;  %v10389_v16 = vld [vmem:[%s17587_s9 + $0xf08] sm:$0xff] }
0x1451   : > { %13001 = vmatprep.subr.bf16.mxu0 %v13000_v38  ;;  %v10351_v38 = vld [vmem:[%s17587_s9 + $0xdf8] sm:$0xff]  ;;  %v10384_v7 = vld [vmem:[%s17587_s9 + $0xef0] sm:$0xff] }
0x1452   : > { %12859 = vmatpush1.bf16.msra.mxu1 %v12858_v47  ;;  %v10317_v47 = vld [vmem:[%s17587_s9 + $0xcf8] sm:$0xff]  ;;  %v12912_v26 = vpack.c.bf16 %v10351_v38, %v10347_v36  ;;  %v10401_v36 = vld [vmem:[%s17587_s9 + $0xf68] sm:$0xff] }
0x1453   : > { %12861 = vmatprep.subr.bf16.mxu1 %v12860_v3  ;;  %v9101_v3 = vld [vmem:[%s17589_s11 + $0x68] sm:$0xff]  ;;  %v12880_v56 = vpack.c.bf16 %v10317_v47, %v10313_v42  ;;  %v12916_v47 = vpack.c.bf16 %v10359_v44, %v10355_v12 }
0x1454   : > { %13003 = vmatpush3.bf16.msra.mxu0 %v13002_v28  ;;  %v13006_v41 = vpack.c.bf16 %v9101_v3, %v9100_v31  ;;  %v10354_v28 = vld [vmem:[%s17587_s9 + $0xe00] sm:$0xff]  ;;  %v10367_v31 = vld [vmem:[%s17587_s9 + $0xe68] sm:$0xff] }
0x1455   : > { %13005 = vmatprep.subr.bf16.mxu0 %v13004_v39  ;;  %v10363_v39 = vld [vmem:[%s17587_s9 + $0xe48] sm:$0xff] }
0x1456   : > { %12863 = vmatpush1.bf16.msra.mxu1 %v12862_v63  ;;  %v10324_v63 = vld [vmem:[%s17587_s9 + $0xd20] sm:$0xff]  ;;  %v10409_v12 = vld [vmem:[%s17587_s9 + $0xfa8] sm:$0xff] }
0x1457   : > { %12865 = vmatprep.subr.bf16.mxu1 %v12864_v5  ;;  %v12886_v57 = vpack.c.bf16 %v10324_v63, %v10320_v60  ;;  %v10328_v5 = vld [vmem:[%s17587_s9 + $0xd40] sm:$0xff]  ;;  %v10379_v63 = vld [vmem:[%s17587_s9 + $0xec8] sm:$0xff] }
0x1458   : > { %13007 = vmatpush3.bf16.msra.mxu0 %v13006_v41  ;;  %v12890_v52 = vpack.c.bf16 %v10332_v48, %v10328_v5  ;;  %v12922_v41 = vpack.c.bf16 %v10366_v32, %v10362_v37  ;;  %v10374_v60 = vld [vmem:[%s17587_s9 + $0xea0] sm:$0xff]  ;;  %v10357_v48 = vld [vmem:[%s17587_s9 + $0xe18] sm:$0xff] }
0x1459   : > { %v10382_v5 = vld [vmem:[%s17587_s9 + $0xee0] sm:$0xff]  ;;  %v10391_v32 = vld [vmem:[%s17587_s9 + $0xf18] sm:$0xff] }
0x145a   : > { %12867 = vmatpush1.bf16.msra.mxu1 %v12866_v58  ;;  %v10340_v58 = vld [vmem:[%s17587_s9 + $0xda0] sm:$0xff] }
0x145b   : > { %12869 = vmatprep.subr.bf16.mxu1 %v12868_v4  ;;  %v12894_v62 = vpack.c.bf16 %v10340_v58, %v10336_v59  ;;  %v12896_v4 = vpack.c.bf16 %v10349_v11, %v10345_v23  ;;  %v10360_v59 = vld [vmem:[%s17587_s9 + $0xe30] sm:$0xff]  ;;  %v10365_v58 = vld [vmem:[%s17587_s9 + $0xe58] sm:$0xff]  ;;  %v10416_v37 = vld [vmem:[%s17587_s9 + $0xfe0] sm:$0xff] }
0x145c   : > { %v10369_v23 = vld [vmem:[%s17587_s9 + $0xe78] sm:$0xff] }
0x145d   : > { %10318 = vmatmul.mubr.msk.f32.vlgmr.msra.gmra.mrb[166].mxu1 %vm527_vm0, %v8363_v29 }
0x145e   : > { %12871 = vmatpush1.bf16.msra.mxu1 %v12870_v9  ;;  %8501 = vmatprep.mubr.f32.mxu1 %v13228_v49  ;;  %v10326_v9 = vld [vmem:[%s17587_s9 + $0xd30] sm:$0xff] }
0x145f   : > { %12873 = vmatprep.subr.bf16.mxu1 %v12872_v17  ;;  %v12902_v61 = vpack.c.bf16 %v10326_v9, %v10322_v10  ;;  %v12904_v17 = vpack.c.bf16 %v10335_v27, %v10331_v43  ;;  %v10372_v10 = vld [vmem:[%s17587_s9 + $0xe90] sm:$0xff]  ;;  %v10381_v43 = vld [vmem:[%s17587_s9 + $0xed8] sm:$0xff] }
0x1460   : > { %v10376_v9 = vld [vmem:[%s17587_s9 + $0xeb0] sm:$0xff]  ;;  %v10385_v27 = vld [vmem:[%s17587_s9 + $0xef8] sm:$0xff] }
0x1462   : > { %12875 = vmatpush1.bf16.msra.mxu1 %v12874_v22  ;;  %v10342_v22 = vld [vmem:[%s17587_s9 + $0xdb0] sm:$0xff] }
0x1463   : > { %12877 = vmatprep.subr.bf16.mxu1 %v12876_v30  ;;  %v12910_v20 = vpack.c.bf16 %v10342_v22, %v10338_v1  ;;  %v10346_v30 = vld [vmem:[%s17587_s9 + $0xdd0] sm:$0xff]  ;;  %v10392_v1 = vld [vmem:[%s17587_s9 + $0xf20] sm:$0xff]  ;;  %v10397_v22 = vld [vmem:[%s17587_s9 + $0xf48] sm:$0xff] }
0x1464   : > { %v12914_v42 = vpack.c.bf16 %v10350_v24, %v10346_v30  ;;  %v10400_v30 = vld [vmem:[%s17587_s9 + $0xf60] sm:$0xff]  ;;  %v10405_v24 = vld [vmem:[%s17587_s9 + $0xf88] sm:$0xff] }
0x1466   : > { %12879 = vmatpush1.bf16.msra.mxu1 %v12878_v34  ;;  %v10358_v34 = vld [vmem:[%s17587_s9 + $0xe20] sm:$0xff] }
0x1467   : > { %12881 = vmatprep.subr.bf16.mxu1 %v12880_v56  ;;  %v12918_v3 = vpack.c.bf16 %v10358_v34, %v10354_v28  ;;  %v12920_v56 = vpack.c.bf16 %v10367_v31, %v10363_v39  ;;  %v10408_v28 = vld [vmem:[%s17587_s9 + $0xfa0] sm:$0xff]  ;;  %v10413_v34 = vld [vmem:[%s17587_s9 + $0xfc8] sm:$0xff] }
0x1468   : > { %v10417_v39 = vld [vmem:[%s17587_s9 + $0xfe8] sm:$0xff] }
0x146a   : > { %12883 = vmatpush1.bf16.msra.mxu1 %v12882_v50  ;;  %v12924_v50 = vpack.c.bf16 %v10375_v21, %v10371_v18  ;;  %v10395_v18 = vld [vmem:[%s17587_s9 + $0xf38] sm:$0xff] }
0x146b   : > { %12885 = vmatprep.subr.bf16.mxu1 %v12884_v40  ;;  %v10370_v40 = vld [vmem:[%s17587_s9 + $0xe80] sm:$0xff] }
0x146c   : > { %v12926_v33 = vpack.c.bf16 %v10374_v60, %v10370_v40  ;;  %v10394_v40 = vld [vmem:[%s17587_s9 + $0xf30] sm:$0xff]  ;;  %v10399_v60 = vld [vmem:[%s17587_s9 + $0xf58] sm:$0xff] }
0x146d   : > { %10319 = vmatmul.mubr.msk.f32.vlgmr.msra.gmra.mrb[168].mxu1 %vm527_vm0, %v8363_v29  ;;  %v8545_v29 = vrot.slane %v16577_v53, 5 }
0x146e   : > { %12887 = vmatpush1.bf16.msra.mxu1 %v12886_v57  ;;  %8612 = vmatprep.mubr.f32.mxu1 %v13228_v49  ;;  %v12928_v57 = vpack.c.bf16 %v10383_v46, %v10379_v63  ;;  %v10403_v63 = vld [vmem:[%s17587_s9 + $0xf78] sm:$0xff] }
0x146f   : > { %12889 = vmatprep.subr.bf16.mxu1 %v12888_v51  ;;  %v10378_v51 = vld [vmem:[%s17587_s9 + $0xec0] sm:$0xff] }
0x1470   : > { %v12930_v8 = vpack.c.bf16 %v10382_v5, %v10378_v51  ;;  %v10398_v51 = vld [vmem:[%s17587_s9 + $0xf50] sm:$0xff] }
0x1471   : > { %v10402_v5 = vld [vmem:[%s17587_s9 + $0xf70] sm:$0xff] }
0x1472   : > { %12891 = vmatpush1.bf16.msra.mxu1 %v12890_v52  ;;  %v12932_v52 = vpack.c.bf16 %v10361_v14, %v10357_v48  ;;  %v10407_v48 = vld [vmem:[%s17587_s9 + $0xf98] sm:$0xff] }
0x1473   : > { %12893 = vmatprep.subr.bf16.mxu1 %v12892_v54  ;;  %v10356_v54 = vld [vmem:[%s17587_s9 + $0xe10] sm:$0xff]  ;;  %v10411_v14 = vld [vmem:[%s17587_s9 + $0xfb8] sm:$0xff] }
0x1474   : > { %v12934_v11 = vpack.c.bf16 %v10360_v59, %v10356_v54  ;;  %v10410_v54 = vld [vmem:[%s17587_s9 + $0xfb0] sm:$0xff]  ;;  %v10415_v59 = vld [vmem:[%s17587_s9 + $0xfd8] sm:$0xff] }
0x1476   : > { %12895 = vmatpush1.bf16.msra.mxu1 %v12894_v62  ;;  %v8727_v62 = vrot.slane %v16577_v53, 6 }
0x1477   : > { %12897 = vmatprep.subr.bf16.mxu1 %v12896_v4  ;;  %v12936_v4 = vpack.c.bf16 %v10369_v23, %v10365_v58  ;;  %v10419_v58 = vld [vmem:[%s17587_s9 + $0xff8] sm:$0xff] }
0x1478   : > { %v12976_v23 = vpack.c.bf16 %v10419_v58, %v10415_v59  ;;  %v9130_v58 = vld [vmem:[%s17589_s11 + $0x150] sm:$0xff] }
0x147a   : > { %12899 = vmatpush1.bf16.msra.mxu1 %v12898_v13  ;;  %v12938_v13 = vpack.c.bf16 %v10368_v6, %v10364_v15  ;;  %v9118_v15 = vld [vmem:[%s17589_s11 + $0xf0] sm:$0xff]  ;;  %v9119_v6 = vld [vmem:[%s17589_s11 + $0xf8] sm:$0xff] }
0x147b   : > { %12901 = vmatprep.subr.bf16.mxu1 %v12900_v2  ;;  %v12940_v2 = vpack.c.bf16 %v10377_v19, %v10373_v0  ;;  %v13008_v0 = vpack.c.bf16 %v9119_v6, %v9118_v15  ;;  %v9102_v19 = vld [vmem:[%s17589_s11 + $0x70] sm:$0xff]  ;;  %v9132_v6 = vld [vmem:[%s17589_s11 + $0x160] sm:$0xff] }
0x147d   : > { %10352 = vmatmul.mubr.msk.f32.vlgmr.msra.gmra.mrb[166].mxu1 %vm527_vm0, %v8545_v29  ;;  %13009 = vmatprep.subr.bf16.mxu0 %v13008_v0  ;;  %v9133_v0 = vld [vmem:[%s17589_s11 + $0x168] sm:$0xff] }
0x147e   : > { %12903 = vmatpush1.bf16.msra.mxu1 %v12902_v61  ;;  %8683 = vmatprep.mubr.f32.mxu1 %v13228_v49  ;;  %v12942_v61 = vpack.c.bf16 %v10376_v9, %v10372_v10  ;;  %v9136_v10 = vld [vmem:[%s17589_s11 + $0x180] sm:$0xff]  ;;  %v9137_v9 = vld [vmem:[%s17589_s11 + $0x188] sm:$0xff] }
0x147f   : > { %12905 = vmatprep.subr.bf16.mxu1 %v12904_v17  ;;  %v10380_v17 = vld [vmem:[%s17587_s9 + $0xed0] sm:$0xff] }
0x1480   : > { %v12946_v35 = vpack.c.bf16 %v10384_v7, %v10380_v17  ;;  %v17429_v17 = vld [vmem:[%s17588_s10] sm:$0xf] }
0x1482   : > { %12907 = vmatpush1.bf16.msra.mxu1 %v12906_v45  ;;  %v12948_v45 = vpack.c.bf16 %v10393_v25, %v10389_v16 }
0x1483   : > { %12909 = vmatprep.subr.bf16.mxu1 %v12908_v55  ;;  %v10388_v55 = vld [vmem:[%s17587_s9 + $0xf00] sm:$0xff] }
0x1484   : > { %v12950_v38 = vpack.c.bf16 %v10392_v1, %v10388_v55  ;;  %v9120_v1 = vld [vmem:[%s17589_s11 + $0x100] sm:$0xff] }
0x1486   : > { %12911 = vmatpush1.bf16.msra.mxu1 %v12910_v20  ;;  %v12952_v20 = vpack.c.bf16 %v10401_v36, %v10397_v22  ;;  %v9121_v22 = vld [vmem:[%s17589_s11 + $0x108] sm:$0xff] }
0x1487   : > { %12913 = vmatprep.subr.bf16.mxu1 %v12912_v26  ;;  %v10396_v26 = vld [vmem:[%s17587_s9 + $0xf40] sm:$0xff] }
0x1488   : > { %v12954_v44 = vpack.c.bf16 %v10400_v30, %v10396_v26  ;;  %v13014_v30 = vpack.c.bf16 %v9121_v22, %v9120_v1 }
0x148a   : > { %12915 = vmatpush1.bf16.msra.mxu1 %v12914_v42  ;;  %v12956_v42 = vpack.c.bf16 %v10409_v12, %v10405_v24 }
0x148b   : > { %12917 = vmatprep.subr.bf16.mxu1 %v12916_v47  ;;  %v10404_v47 = vld [vmem:[%s17587_s9 + $0xf80] sm:$0xff] }
0x148c   : > { %v12958_v31 = vpack.c.bf16 %v10408_v28, %v10404_v47  ;;  %v9140_v47 = vld [vmem:[%s17589_s11 + $0x1a0] sm:$0xff]  ;;  %v9141_v28 = vld [vmem:[%s17589_s11 + $0x1a8] sm:$0xff] }
0x148d   : > { %10353 = vmatmul.mubr.msk.f32.vlgmr.msra.gmra.mrb[168].mxu1 %vm527_vm0, %v8545_v29  ;;  %v12944_v29 = vpack.c.bf16 %v10385_v27, %v10381_v43  ;;  %v13012_v43 = vpack.c.bf16 %v9137_v9, %v9136_v10  ;;  %v9060_v27 = vlaneseq }
0x148e   : > { %12919 = vmatpush1.bf16.msra.mxu1 %v12918_v3  ;;  %8794 = vmatprep.mubr.f32.mxu1 %v13228_v49  ;;  %v12960_v3 = vpack.c.bf16 %v10417_v39, %v10413_v34  ;;  %v13020_v39 = vpack.c.bf16 %v9141_v28, %v9140_v47 }
0x148f   : > { %12921 = vmatprep.subr.bf16.mxu1 %v12920_v56  ;;  %v10412_v56 = vld [vmem:[%s17587_s9 + $0xfc0] sm:$0xff] }
0x1490   : > { %v12962_v21 = vpack.c.bf16 %v10416_v37, %v10412_v56  ;;  %v9142_v37 = vld [vmem:[%s17589_s11 + $0x1b0] sm:$0xff] }
0x1492   : > { %12923 = vmatpush1.bf16.msra.mxu1 %v12922_v41  ;;  %v12964_v41 = vpack.c.bf16 %v10395_v18, %v10391_v32  ;;  %v9143_v32 = vld [vmem:[%s17589_s11 + $0x1b8] sm:$0xff] }
0x1493   : > { %12925 = vmatprep.subr.bf16.mxu1 %v12924_v50  ;;  %v10390_v50 = vld [vmem:[%s17587_s9 + $0xf10] sm:$0xff] }
0x1494   : > { %v12966_v46 = vpack.c.bf16 %v10394_v40, %v10390_v50  ;;  %v9127_v50 = vld [vmem:[%s17589_s11 + $0x138] sm:$0xff] }
0x1496   : > { %12927 = vmatpush1.bf16.msra.mxu1 %v12926_v33  ;;  %v8909_v33 = vrot.slane %v16577_v53, 7  ;;  %v12970_v53 = vpack.c.bf16 %v10402_v5, %v10398_v51  ;;  %v9128_v5 = vld [vmem:[%s17589_s11 + $0x140] sm:$0xff] }
0x1497   : > { %12929 = vmatprep.subr.bf16.mxu1 %v12928_v57  ;;  %v12968_v57 = vpack.c.bf16 %v10403_v63, %v10399_v60  ;;  %v9144_v60 = vld [vmem:[%s17589_s11 + $0x1c0] sm:$0xff]  ;;  %v9145_v63 = vld [vmem:[%s17589_s11 + $0x1c8] sm:$0xff] }
0x1498   : > { %v13028_v51 = vpack.c.bf16 %v9145_v63, %v9144_v60 }
0x149a   : > { %12931 = vmatpush1.bf16.msra.mxu1 %v12930_v8  ;;  %v12972_v8 = vpack.c.bf16 %v10411_v14, %v10407_v48  ;;  %v9129_v48 = vld [vmem:[%s17589_s11 + $0x148] sm:$0xff] }
0x149b   : > { %12933 = vmatprep.subr.bf16.mxu1 %v12932_v52  ;;  %v10406_v52 = vld [vmem:[%s17587_s9 + $0xf90] sm:$0xff] }
0x149d   : > { %10386 = vmatmul.mubr.msk.f32.vlgmr.msra.gmra.mrb[166].mxu1 %vm527_vm0, %v8727_v62 }
0x149e   : > { %12935 = vmatpush1.bf16.msra.mxu1 %v12934_v11  ;;  %8865 = vmatprep.mubr.f32.mxu1 %v13228_v49  ;;  %v10414_v11 = vld [vmem:[%s17587_s9 + $0xfd0] sm:$0xff] }
0x149f   : > { %12937 = vmatprep.subr.bf16.mxu1 %v12936_v4 }
0x14a2   : > { %12939 = vmatpush1.bf16.msra.mxu1 %v12938_v13  ;;  %v9103_v13 = vld [vmem:[%s17589_s11 + $0x78] sm:$0xff] }
0x14a3   : > { %12941 = vmatprep.subr.bf16.mxu1 %v12940_v2  ;;  %v13010_v2 = vpack.c.bf16 %v9103_v13, %v9102_v19  ;;  %v9150_v19 = vld [vmem:[%s17589_s11 + $0x1f0] sm:$0xff]  ;;  %v9151_v13 = vld [vmem:[%s17589_s11 + $0x1f8] sm:$0xff] }
0x14a4   : > { %v13040_v9 = vpack.c.bf16 %v9151_v13, %v9150_v19 }
0x14a5   : > { %13011 = vmatpush3.bf16.msra.mxu0 %v13010_v2  ;;  %v13038_v2 = vpack.c.bf16 %v9133_v0, %v9132_v6 }
0x14a6   : > { %12943 = vmatpush1.bf16.msra.mxu1 %v12942_v61  ;;  %13013 = vmatprep.subr.bf16.mxu0 %v13012_v43  ;;  %v17423_v61 = vshrl.u32 %v9060_v27, 7  ;;  %v9134_v43 = vld [vmem:[%s17589_s11 + $0x170] sm:$0xff]  ;;  %v9135_v27 = vld [vmem:[%s17589_s11 + $0x178] sm:$0xff] }
0x14a7   : > { %12945 = vmatprep.subr.bf16.mxu1 %v12944_v29 }
0x14a8   : > { %v9062_v29 = vsub.s32 0, %v17423_v61  ;;  %v9066_v7 = vsub.s32 1, %v17423_v61  ;;  %v9074_v56 = vsub.s32 3, %v17423_v61 }
0x14aa   : > { %12947 = vmatpush1.bf16.msra.mxu1 %v12946_v35  ;;  %v9063_v16 = vrot.slane %v17429_v17, %v9062_v29  ;;  %v9067_v25 = vrot.slane %v17429_v17, %v9066_v7  ;;  %v9075_v40 = vrot.slane %v17429_v17, %v9074_v56 }
0x14ab   : > { %12949 = vmatprep.subr.bf16.mxu1 %v12948_v45 }
0x14ad   : > { %10387 = vmatmul.mubr.msk.f32.vlgmr.msra.gmra.mrb[168].mxu1 %vm527_vm0, %v8727_v62  ;;  %v10418_v62 = vld [vmem:[%s17587_s9 + $0xff0] sm:$0xff] }
0x14ae   : > { %12951 = vmatpush1.bf16.msra.mxu1 %v12950_v38  ;;  %8976 = vmatprep.mubr.f32.mxu1 %v13228_v49  ;;  %v12978_v4 = vpack.c.bf16 %v10418_v62, %v10414_v11  ;;  %v9138_v38 = vld [vmem:[%s17589_s11 + $0x190] sm:$0xff]  ;;  %v9149_v11 = vld [vmem:[%s17589_s11 + $0x1e8] sm:$0xff] }
0x14af   : > { %12953 = vmatprep.subr.bf16.mxu1 %v12952_v20  ;;  %v9139_v20 = vld [vmem:[%s17589_s11 + $0x198] sm:$0xff] }
0x14b0   : > { %v13016_v12 = vpack.c.bf16 %v9139_v20, %v9138_v38 }
0x14b2   : > { %12955 = vmatpush1.bf16.msra.mxu1 %v12954_v44  ;;  %v9122_v44 = vld [vmem:[%s17589_s11 + $0x110] sm:$0xff] }
0x14b3   : > { %12957 = vmatprep.subr.bf16.mxu1 %v12956_v42  ;;  %v9123_v42 = vld [vmem:[%s17589_s11 + $0x118] sm:$0xff] }
0x14b4   : > { %v13018_v34 = vpack.c.bf16 %v9123_v42, %v9122_v44 }
0x14b6   : > { %12959 = vmatpush1.bf16.msra.mxu1 %v12958_v31  ;;  %v9124_v31 = vld [vmem:[%s17589_s11 + $0x120] sm:$0xff] }
0x14b7   : > { %12961 = vmatprep.subr.bf16.mxu1 %v12960_v3  ;;  %v9125_v3 = vld [vmem:[%s17589_s11 + $0x128] sm:$0xff] }
0x14b8   : > { %v13022_v18 = vpack.c.bf16 %v9125_v3, %v9124_v31 }
0x14ba   : > { %12963 = vmatpush1.bf16.msra.mxu1 %v12962_v21  ;;  %v13024_v21 = vpack.c.bf16 %v9143_v32, %v9142_v37 }
0x14bb   : > { %12965 = vmatprep.subr.bf16.mxu1 %v12964_v41  ;;  %v9126_v41 = vld [vmem:[%s17589_s11 + $0x130] sm:$0xff] }
0x14bd   : > { %10420 = vmatmul.mubr.msk.f32.vlgmr.msra.gmra.mrb[166].mxu1 %vm527_vm0, %v8909_v33 }
0x14be   : > { %12967 = vmatpush1.bf16.msra.mxu1 %v12966_v46  ;;  %9047 = vmatprep.mubr.f32.mxu1 %v13228_v49  ;;  %v12974_v49 = vpack.c.bf16 %v10410_v54, %v10406_v52  ;;  %v13030_v54 = vpack.c.bf16 %v9129_v48, %v9128_v5 }
0x14bf   : > { %12969 = vmatprep.subr.bf16.mxu1 %v12968_v57 }
0x14c2   : > { %12971 = vmatpush1.bf16.msra.mxu1 %v12970_v53  ;;  %v9146_v53 = vld [vmem:[%s17589_s11 + $0x1d0] sm:$0xff] }
0x14c3   : > { %12973 = vmatprep.subr.bf16.mxu1 %v12972_v8  ;;  %v9147_v8 = vld [vmem:[%s17589_s11 + $0x1d8] sm:$0xff] }
0x14c4   : > { %v13032_v59 = vpack.c.bf16 %v9147_v8, %v9146_v53 }
0x14c6   : > { %12975 = vmatpush1.bf16.msra.mxu1 %v12974_v49  ;;  %v9131_v49 = vld [vmem:[%s17589_s11 + $0x158] sm:$0xff] }
0x14c7   : > { %12977 = vmatprep.subr.bf16.mxu1 %v12976_v23  ;;  %v9148_v23 = vld [vmem:[%s17589_s11 + $0x1e0] sm:$0xff]  ;;  %v13034_v62 = vpack.c.bf16 %v9131_v49, %v9130_v58 }
0x14c8   : > { %v13036_v15 = vpack.c.bf16 %v9149_v11, %v9148_v23 }
0x14ca   : > { %12979 = vmatpush1.bf16.msra.mxu1 %v12978_v4  ;;  %v9070_v4 = vsub.s32 2, %v17423_v61  ;;  %v13042_v61 = vpack.c.bf16 %v9135_v27, %v9134_v43 }
0x14cc   : > { %v9071_v10 = vrot.slane %v17429_v17, %v9070_v4 }
0x14cd   : > { %10421 = vmatmul.mubr.msk.f32.vlgmr.msra.gmra.mrb[168].mxu1 %vm527_vm0, %v8909_v33  ;;  %v13026_v33 = vpack.c.bf16 %v9127_v50, %v9126_v41 }
0x1590   : > { %v8978_v35 = vpop.f32.mrb[166].mxu1 }
0x1591   : > { %v9080_v45 = vadd.f32 %v9063_v16, %v8978_v35  ;;  %v8980_v55 = vpop.f32.mrb[167].mxu1  ;;  %v9152_v35 = vld [vmem:[%s17590_s12] sm:$0x1] }
0x1592   : > { %v9081_v36 = vadd.f32 %v9067_v25, %v8980_v55 }
0x1593   : > { %v9084_v24 = vmax.f32 %v9080_v45, 0.0 }
0x1594   : > { %v9085_v26 = vmax.f32 %v9081_v36, 0.0 }
0x1596   : > { %9217 = vmatprep.mubr.f32.mxu0 %v9085_v26 }
0x1597   : > { %9218 = vmatmul.mubr.f32.vlgmr.msra.gmra.mrb[232].mxu0 %v9084_v24 }
0x1598   : > { %13015 = vmatpush3.bf16.msra.mxu0 %v13014_v30 }
0x1599   : > { %13017 = vmatprep.subr.bf16.mxu0 %v13016_v12 }
0x159c   : > { %13019 = vmatpush3.bf16.msra.mxu0 %v13018_v34 }
0x159d   : > { %13021 = vmatprep.subr.bf16.mxu0 %v13020_v39 }
0x15a0   : > { %13023 = vmatpush3.bf16.msra.mxu0 %v13022_v18  ;;  %v9049_v46 = vpop.f32.mrb[168].mxu1 }
0x15a1   : > { %v9051_v57 = vpop.f32.mrb[169].mxu1  ;;  %13025 = vmatprep.subr.bf16.mxu0 %v13024_v21  ;;  %v9082_v29 = vadd.f32 %v9071_v10, %v9049_v46 }
0x15a2   : > { %v9083_v14 = vadd.f32 %v9075_v40, %v9051_v57 }
0x15a3   : > { %v9086_v7 = vmax.f32 %v9082_v29, 0.0 }
0x15a4   : > { %v9087_v52 = vmax.f32 %v9083_v14, 0.0  ;;  %13027 = vmatpush3.bf16.msra.mxu0 %v13026_v33 }
0x15a5   : > { %13029 = vmatprep.subr.bf16.mxu0 %v13028_v51 }
0x15a6   : > { %9287 = vmatprep.mubr.f32.mxu0 %v9087_v52 }
0x15a8   : > { %13031 = vmatpush3.bf16.msra.mxu0 %v13030_v54 }
0x15a9   : > { %13033 = vmatprep.subr.bf16.mxu0 %v13032_v59 }
0x15ac   : > { %13035 = vmatpush3.bf16.msra.mxu0 %v13034_v62 }
0x15ad   : > { %13037 = vmatprep.subr.bf16.mxu0 %v13036_v15 }
0x15b0   : > { %13039 = vmatpush3.bf16.msra.mxu0 %v13038_v2 }
0x15b1   : > { %13041 = vmatprep.subr.bf16.mxu0 %v13040_v9 }
0x15b4   : > { %13043 = vmatpush3.bf16.msra.mxu0 %v13042_v61 }
0x15b7   : > { %9288 = vmatmul.mubr.f32.vlgmr.msra.gmra.mrb[234].mxu0 %v9086_v7 }
0x166a   : > { %v10754_v16 = vpop.f32.mrb[232].mxu0 }
0x166b   : > { %v10755_v17 = vpop.f32.mrb[233].mxu0 }
0x166c   : > { %v10756_v25 = vadd.f32 %v10755_v17, %v10754_v16 }
0x166e   : > { %v9220_v1 = vadd.f32 %v10756_v25, %v9152_v35 }
0x168a   : > { %v10789_v45 = vpop.f32.mrb[234].mxu0 }
0x168b   : > { %v10790_v55 = vpop.f32.mrb[235].mxu0 }
0x168c   : > { %v10791_v22 = vadd.f32 %v10790_v55, %v10789_v45 }
0x168e   : > { %v9290_v36 = vadd.f32 %v10791_v22, %v9220_v1 }
0x1690   : > { %9293 = vst [vmem:[%s432_s30] sm:$0x1] %v9290_v36 }
0x1691   : > { %13176 = shalt.err (!%p13173_p3)
}
0x1692   : > { %s13177_s0 = scalar_lea.hbm %s17536_s27, 16  ;;  %s13181_s30 = scalar_lea.hbm %s17591_s13, 32 }
0x1693   : > { %p13178_p4 = scmp.ne.s32.totalorder %s17536_s27, %s13177_s0  ;;  %p13182_p9 = scmp.lt.u32.totalorder %s17536_s27, %s17591_s13 }
0x1694   : > { %p13183_p10 = scmp.lt.u32.totalorder %s13181_s30, %s13177_s0  ;;  %p13185_p12 = scmp.lt.u32.totalorder %s13177_s0, %s17536_s27 }
0x1695   : > { %p13179_p7 = pnand %p13178_p4, %p13339_p5 }
0x1696   : > { %p13184_p11 = por %p13183_p10, %p13182_p9 }
0x1697   : > { %p13180_p8 = pneg %p13179_p7 }
0x1698   : > { %p13186_p13 = por %p13185_p12, %p13184_p11 }
0x169a   : > { %p13187_p0 = pnand %p13186_p13, %p13180_p8 }
0x169c   : > { %13190 = shalt.err (!%p13187_p0)
}
0x169d   : > { %13121 = dma.vmem_to_hbm [thread:$0]  (%p13339_p5), %s17538_s16, 16, %s17536_s27, %s9295_s17  }
0x169e PF: > { %p13127_p1 = scmp.ge.s32.totalorder %s13225_s28, 2  ;;  %s9319_s20 = sand.u32 1, %s13213_s25  }
0x169f   : > { %s9320_s29 = scalar_lea.sflag [#allocation3], %s9319_s20 }
0x16a0   : > { %p13124_p2 = pnand %p13127_p1, %p13343_p6 }
0x16a2   : > { %13208 = dma.done.wait (!%p13124_p2), %s9320_s29, 16  }
0x16a3   : > { %13210 = vsyncadd (!%p13124_p2), %s9320_s29, 4294967280  ;;  %s17602_s28 = sld [smem:[#allocation6_spill]]  ;;  %s17603_s23 = sld [smem:[#allocation5_spill]] }
0x16a4   : > { %s17604_s27 = sld [smem:[#allocation7_spill]]  ;;  %s17605_s25 = smov %s13217_s26 }
0x16a9   : > { %p23_p3 = scmp.ge.s32.totalorder %s17602_s28, 4   ;;  %s17606_s26 = smov %s17603_s23 }
0x16ab   :  { %25 = sbr.rel (!%p23_p3) target bundleno = 5 (0x5), region = 168 }
0x16b2   :  { %9324 = vsyncpa [#allocation3], 1 }
0x16b3   :  { %9326 = vsyncpa [#allocation3 + $0x1], 1 }

</bundles_post_ra>
